<compile_context>
chip_gen: v7x
topology: tpu7x:2x2x1
jax: 0.10.0
libtpu: 0.0.40
codegen_flags: <defaults>
</compile_context>

<pallas_src>
import jax
import jax.numpy as jnp
from jax import lax
from jax.experimental import pallas as pl
from jax.experimental.pallas import tpu as pltpu


# ----------------------------- Pallas kernels --------------------------------------------


def _make_stats_kernel(m_valid, emit_y):
    """Pass A: conv for one row tile + per-tile (sum, mean-shifted M2) BatchNorm partials.

    x_ref: (TR, KP) bf16   w_ref: (KP, CP) bf16
    optional y_ref: (TR, CP) bf16 (conv output, re-used by the affine-only pass B)
    s1_ref / m2_ref: (1, 1, CP) f32  -- this tile's per-channel sum / centered sum-of-squares
    """

    def kernel(x_ref, w_ref, *out_refs):
        if emit_y:
            y_ref, s1_ref, m2_ref = out_refs
        else:
            s1_ref, m2_ref = out_refs
        tr = x_ref.shape[0]
        y = jnp.dot(x_ref[...], w_ref[...], preferred_element_type=jnp.float32)  # (TR, CP)
        if emit_y:
            y_ref[...] = y.astype(y_ref.dtype)

        # Mask padded rows (only the last tile can have any); count is never zero because
        # the tile count is derived as ceil(M / TR).
        row0 = pl.program_id(0) * tr
        rows = lax.broadcasted_iota(jnp.int32, (tr, 1), 0) + row0
        valid = rows < m_valid
        cnt = jnp.maximum(jnp.minimum(tr, m_valid - row0), 1).astype(jnp.float32)

        ym = jnp.where(valid, y, 0.0)
        s = jnp.sum(ym, axis=0, keepdims=True)                  # (1, CP)
        mu = s / cnt                                            # per-tile mean
        d = jnp.where(valid, y - mu, 0.0)                       # mean-shifted residuals
        s1_ref[0] = s
        m2_ref[0] = jnp.sum(d * d, axis=0, keepdims=True)

    return kernel


def _conv_affine_kernel(x_ref, w_ref, scale_ref, shift_ref, o_ref):
    """Pass B (recompute branch): conv tile + folded BN affine, one dense store.

    x_ref: (TR, KP) bf16   w_ref: (KP, CP) bf16
    scale_ref / shift_ref: (1, CP) f32     o_ref: (TR, CP)
    """
    y = jnp.dot(x_ref[...], w_ref[...], preferred_element_type=jnp.float32)
    o_ref[...] = (y * scale_ref[...] + shift_ref[...]).astype(o_ref.dtype)


def _affine_kernel(y_ref, scale_ref, shift_ref, o_ref):
    """Pass B (materialize branch): pure element-wise BN affine on the stored conv output."""
    y = y_ref[...].astype(jnp.float32)
    o_ref[...] = (y * scale_ref[...] + shift_ref[...]).astype(o_ref.dtype)


# ----------------------------- wrapper helpers --------------------------------------------


def _round_up(x, m):
    return (x + m - 1) // m * m


def _choose_tiles(m, kp, cp, *, budget_bytes=20 << 20, max_rows=2048):
    """Pick the row tile from a VMEM budget that is safe on every generation (v7x: 64 MiB),
    preferring >= 2 (and even) tiles so the parallel grid axis can use both v7x cores."""
    fixed = 2 * kp * cp * 2                                       # double-buffered bf16 weight
    per_row = 2 * kp * 2 + 2 * cp * 4 + 2 * cp * 2 + cp * 4      # x dbl + out dbl + y dbl + f32 tmp
    tr = max(8, (budget_bytes - fixed) // per_row)
    tr = max(8, (min(max_rows, tr) // 8) * 8)
    if m > 16:
        want = max(2, -(-m // tr))
        if want % 2:
            want += 1
        tr = max(8, ((-(-m // want)) + 7) // 8 * 8)
    num_tiles = max(1, -(-m // tr))
    return tr, num_tiles, num_tiles * tr


def _vmem_limit(tr, kp, cp, out_bytes, emit_y):
    est = (2 * tr * kp * 2                  # double-buffered bf16 input tile
           + 2 * kp * cp * 2                # weight (budgeted as double-buffered)
           + 2 * tr * cp * out_bytes        # double-buffered output tile
           + (2 * tr * cp * 2 if emit_y else 0)
           + tr * cp * 4                    # f32 matmul temporary
           + (2 << 20))
    return int(min(60 << 20, max(32 << 20, est * 3 // 2)))


# ----------------------------- main wrapper ------------------------------------------------


def conv_bn3d(x, conv_w, gamma, beta, *, eps=1e-5, out_dtype=jnp.float32,
              channels_last=False, mxu_dtype=jnp.bfloat16):
    """Forward of ConvBn3D: BatchNorm3d(Conv3d(x)), kernel=3, stride=1, pad=1, bias=False.

    BatchNorm uses batch statistics (training-mode forward), biased variance, affine gamma/beta.
    x: (N, Cin, D, H, W) f32;  conv_w: (Cout, Cin, 3, 3, 3);  gamma/beta: (Cout,)
    """
    n, cin, d, h, w = x.shape
    cout, cin_w, kd, kh, kw = conv_w.shape
    assert cin_w == cin and (kd, kh, kw) == (3, 3, 3), "only kernel=3 / stride=1 / pad=1"

    m = n * d * h * w
    k = 27 * cin
    kp = _round_up(k, 128)           # lane-aligned contraction (do NOT over-pad to 256)
    cp = _round_up(cout, 128)        # lane-aligned output channels
    out_bytes = jnp.dtype(out_dtype).itemsize
    tr, num_tiles, mp = _choose_tiles(m, kp, cp)
    emit_y = kp > 2 * cp             # materialize y when re-reading the slab would cost more

    # -------- layout glue (plain JAX): NCDHW -> NDHWC, zero-pad, fold 27 taps into K -------
    # K-padding is folded into the concat so the slab is built padded once (no second pad).
    x_ndhwc = jnp.transpose(x, (0, 2, 3, 4, 1)).astype(mxu_dtype)
    xp = jnp.pad(x_ndhwc, ((0, 0), (1, 1), (1, 1), (1, 1), (0, 0)))
    taps = [xp[:, dz:dz + d, dy:dy + h, dx:dx + w, :].reshape(m, cin)
            for dz in range(3) for dy in range(3) for dx in range(3)]
    if kp > k:
        taps.append(jnp.zeros((m, kp - k), mxu_dtype))
    x_slab = jnp.concatenate(taps, axis=1)                       # (M, KP) bf16
    if mp > m:
        x_slab = jnp.pad(x_slab, ((0, mp - m), (0, 0)))          # rare: tile doesn't divide M

    w_mat = jnp.transpose(conv_w, (2, 3, 4, 1, 0)).reshape(k, cout).astype(mxu_dtype)
    w_mat = jnp.pad(w_mat, ((0, kp - k), (0, cp - cout)))        # (KP, CP)

    params = pltpu.CompilerParams(
        dimension_semantics=("parallel",),
        vmem_limit_bytes=_vmem_limit(tr, kp, cp, out_bytes, emit_y))

    # -------- pass A: conv + per-tile (sum, M2) partials (+ optional bf16 y) ----------------
    a_out_specs = [pl.BlockSpec((1, 1, cp), lambda i: (i, 0, 0)),
                   pl.BlockSpec((1, 1, cp), lambda i: (i, 0, 0))]
    a_out_shape = [jax.ShapeDtypeStruct((num_tiles, 1, cp), jnp.float32),
                   jax.ShapeDtypeStruct((num_tiles, 1, cp), jnp.float32)]
    a_bytes = mp * kp * 2 + kp * cp * 2 + 2 * num_tiles * cp * 4
    if emit_y:
        a_out_specs = [pl.BlockSpec((tr, cp), lambda i: (i, 0))] + a_out_specs
        a_out_shape = [jax.ShapeDtypeStruct((mp, cp), jnp.bfloat16)] + a_out_shape
        a_bytes += mp * cp * 2

    a_results = pl.pallas_call(
        _make_stats_kernel(m, emit_y),
        grid_spec=pltpu.PrefetchScalarGridSpec(
            num_scalar_prefetch=0,
            grid=(num_tiles,),
            in_specs=[pl.BlockSpec((tr, kp), lambda i: (i, 0)),
                      pl.BlockSpec((kp, cp), lambda i: (0, 0))],   # grid-invariant -> resident
            out_specs=a_out_specs),
        out_shape=a_out_shape,
        compiler_params=params,
        cost_estimate=pl.CostEstimate(flops=2 * mp * kp * cp + 6 * mp * cp,
                                      transcendentals=0,
                                      bytes_accessed=a_bytes),
    )(x_slab, w_mat)
    if emit_y:
        y_bf16, s1_p, m2_p = a_results
    else:
        s1_p, m2_p = a_results

    # -------- tiny O(C) finalize: Chan-style merge, fold BN into a per-channel affine -------
    cnts = jnp.clip(m - jnp.arange(num_tiles) * tr, 0, tr).astype(jnp.float32)   # (T,)
    s1 = s1_p[:, 0, :]                                           # (T, CP)
    m2 = m2_p[:, 0, :]
    mean = jnp.sum(s1, axis=0) / jnp.float32(m)                  # (CP,)
    tmean = s1 / jnp.maximum(cnts, 1.0)[:, None]
    m2_tot = jnp.sum(m2, axis=0) + jnp.sum(cnts[:, None] * (tmean - mean[None, :]) ** 2, axis=0)
    var = jnp.maximum(m2_tot / jnp.float32(m), 0.0)              # biased variance (PyTorch BN)
    inv = lax.rsqrt(var + eps)
    gamma_p = jnp.pad(gamma.astype(jnp.float32), (0, cp - cout), constant_values=1.0)
    beta_p = jnp.pad(beta.astype(jnp.float32), (0, cp - cout))
    scale = (gamma_p * inv).reshape(1, cp)
    shift = (beta_p - mean * gamma_p * inv).reshape(1, cp)

    # -------- pass B: fused BN affine, lane-dense full-width stores ------------------------
    if emit_y:
        out_flat = pl.pallas_call(
            _affine_kernel,
            grid_spec=pltpu.PrefetchScalarGridSpec(
                num_scalar_prefetch=0,
                grid=(num_tiles,),
                in_specs=[pl.BlockSpec((tr, cp), lambda i: (i, 0)),
                          pl.BlockSpec((1, cp), lambda i: (0, 0)),
                          pl.BlockSpec((1, cp), lambda i: (0, 0))],
                out_specs=pl.BlockSpec((tr, cp), lambda i: (i, 0))),
            out_shape=jax.ShapeDtypeStruct((mp, cp), out_dtype),
            compiler_params=params,
            cost_estimate=pl.CostEstimate(flops=2 * mp * cp,
                                          transcendentals=0,
                                          bytes_accessed=mp * cp * (2 + out_bytes) + 2 * cp * 4),
        )(y_bf16, scale, shift)
    else:
        out_flat = pl.pallas_call(
            _conv_affine_kernel,
            grid_spec=pltpu.PrefetchScalarGridSpec(
                num_scalar_prefetch=0,
                grid=(num_tiles,),
                in_specs=[pl.BlockSpec((tr, kp), lambda i: (i, 0)),
                          pl.BlockSpec((kp, cp), lambda i: (0, 0)),
                          pl.BlockSpec((1, cp), lambda i: (0, 0)),
                          pl.BlockSpec((1, cp), lambda i: (0, 0))],
                out_specs=pl.BlockSpec((tr, cp), lambda i: (i, 0))),
            out_shape=jax.ShapeDtypeStruct((mp, cp), out_dtype),
            compiler_params=params,
            cost_estimate=pl.CostEstimate(flops=2 * mp * kp * cp + 2 * mp * cp,
                                          transcendentals=0,
                                          bytes_accessed=(mp * kp * 2 + kp * cp * 2
                                                          + mp * cp * out_bytes + 2 * cp * 4)),
        )(x_slab, w_mat, scale, shift)

    out = out_flat[:m, :cout].reshape(n, d, h, w, cout)
    if channels_last:
        return out                                               # NDHWC (skips the transpose)
    return jnp.transpose(out, (0, 4, 1, 2, 3))                   # NCDHW (PyTorch semantics)


# ----------------------------- pure-JAX reference -----------------------------------------


def conv_bn3d_reference(x, conv_w, gamma, beta, eps=1e-5):
    """Mirror of PyTorch ConvBn3D.forward in f32 (training-mode BatchNorm3d)."""
    y = lax.conv_general_dilated(x, conv_w, window_strides=(1, 1, 1),
                                 padding=((1, 1), (1, 1), (1, 1)),
                                 dimension_numbers=('NCDHW', 'OIDHW', 'NCDHW'))
    mean = jnp.mean(y, axis=(0, 2, 3, 4), keepdims=True)
    var = jnp.mean((y - mean) ** 2, axis=(0, 2, 3, 4), keepdims=True)
    yn = (y - mean) * lax.rsqrt(var + eps)
    c = y.shape[1]
    return yn * gamma.reshape(1, c, 1, 1, 1) + beta.reshape(1, c, 1, 1, 1)


if __name__ == "__main__":
    key = jax.random.PRNGKey(0)

    def run_case(name, n, cin, cout, dd, hh, ww, k0):
        k1, k2, k3, k4 = jax.random.split(k0, 4)
        x = jax.random.normal(k1, (n, cin, dd, hh, ww), dtype=jnp.float32)
        conv_weight = 0.1 * jax.random.normal(k2, (cout, cin, 3, 3, 3), dtype=jnp.float32)
        bn_weight = 1.0 + 0.1 * jax.random.normal(k3, (cout,), dtype=jnp.float32)
        bn_bias = 0.1 * jax.random.normal(k4, (cout,), dtype=jnp.float32)

        out = jax.block_until_ready(conv_bn3d(x, conv_weight, bn_weight, bn_bias))
        ref = conv_bn3d_reference(x, conv_weight, bn_weight, bn_bias)
        assert out.shape == ref.shape == (n, cout, dd, hh, ww)
        # bf16 MXU inputs (f32 accumulation / statistics) vs an all-f32 reference: tolerance
        # covers bf16 rounding of the conv inputs (and of the stored y on the large-Cin path).
        max_err = float(jnp.max(jnp.abs(out - ref)))
        assert max_err < 4e-2, f"{name}: max abs error {max_err}"

    k_a, k_b = jax.random.split(key)
    # small-Cin case (KP <= 2*CP): pass B recomputes the conv from the bf16 slab.
    run_case("recompute", 2, 4, 8, 8, 16, 16, k_a)
    # larger-Cin case (KP > 2*CP): pass A stores y bf16, pass B is affine-only.
    run_case("materialize", 1, 16, 8, 4, 8, 8, k_b)

    print("KERNEL_OK")
</pallas_src>

<mosaic_0001>
module attributes {stable_mosaic.version = 11 : i64} {
  func.func @kernel(%arg0: i32, %arg1: memref<2048x128xbf16, #tpu.memory_space<vmem>>, %arg2: memref<128x128xbf16, #tpu.memory_space<vmem>>, %arg3: memref<1x1x128xf32, #tpu.memory_space<vmem>>, %arg4: memref<1x1x128xf32, #tpu.memory_space<vmem>>) attributes {dimension_semantics = [#tpu.dimension_semantics<parallel>], iteration_bounds = array<i64: 2>, scalar_prefetch = 0 : i64, scratch_operands = 0 : i64, tpu.core_type = #tpu.core_type<tc>, window_params = [{transform_indices = @transform_0, window_bounds = array<i64: 2048, 128>}, {pipeline_mode = #tpu.pipeline_mode<synchronous>, transform_indices = @transform_1, window_bounds = array<i64: 128, 128>}, {transform_indices = @transform_2, window_bounds = array<i64: 1, 1, 128>}, {transform_indices = @transform_3, window_bounds = array<i64: 1, 1, 128>}]} {
    %c0 = arith.constant 0 : index
    %c0_0 = arith.constant 0 : index
    %0 = vector.load %arg1[%c0, %c0_0] : memref<2048x128xbf16, #tpu.memory_space<vmem>>, vector<2048x128xbf16>
    %c0_1 = arith.constant 0 : index
    %c0_2 = arith.constant 0 : index
    %1 = vector.load %arg2[%c0_1, %c0_2] : memref<128x128xbf16, #tpu.memory_space<vmem>>, vector<128x128xbf16>
    %cst = arith.constant dense<0.000000e+00> : vector<2048x128xf32>
    %2 = tpu.matmul %0, %1, %cst {dimension_numbers = #tpu.dot_dimension_numbers<[1], [0], [0], [1], [0, 0, 1, 1], [], []>} : vector<2048x128xbf16>, vector<128x128xbf16>, vector<2048x128xf32> -> vector<2048x128xf32>
    %c2048_i32 = arith.constant 2048 : i32
    %3 = arith.muli %arg0, %c2048_i32 : i32
    %4 = tpu.iota {dimensions = array<i32: 0>} : vector<2048x1xi32>
    %5 = vector.broadcast %3 : i32 to vector<2048x1xi32>
    %6 = arith.addi %4, %5 : vector<2048x1xi32>
    %c4096_i32 = arith.constant 4096 : i32
    %7 = vector.broadcast %c4096_i32 : i32 to vector<2048x1xi32>
    %8 = arith.cmpi slt, %6, %7 : vector<2048x1xi32>
    %c4096_i32_3 = arith.constant 4096 : i32
    %9 = arith.subi %c4096_i32_3, %3 : i32
    %c2048_i32_4 = arith.constant 2048 : i32
    %10 = arith.minsi %c2048_i32_4, %9 : i32
    %c1_i32 = arith.constant 1 : i32
    %11 = arith.maxsi %10, %c1_i32 : i32
    %12 = arith.sitofp %11 : i32 to f32
    %cst_5 = arith.constant 0.000000e+00 : f32
    %13 = vector.shape_cast %8 : vector<2048x1xi1> to vector<2048x1xi1>
    %14 = vector.broadcast %13 : vector<2048x1xi1> to vector<2048x128xi1>
    %15 = vector.broadcast %cst_5 : f32 to vector<2048x128xf32>
    %16 = arith.select %14, %2, %15 : vector<2048x128xi1>, vector<2048x128xf32>
    %cst_6 = arith.constant dense<0.000000e+00> : vector<128xf32>
    %17 = vector.multi_reduction <add>, %16, %cst_6 [0] : vector<2048x128xf32> to vector<128xf32>
    %18 = vector.shape_cast %17 : vector<128xf32> to vector<1x128xf32>
    %19 = vector.broadcast %12 : f32 to vector<1x128xf32>
    %20 = arith.divf %18, %19 : vector<1x128xf32>
    %21 = vector.broadcast %20 : vector<1x128xf32> to vector<2048x128xf32>
    %22 = arith.subf %2, %21 : vector<2048x128xf32>
    %cst_7 = arith.constant 0.000000e+00 : f32
    %23 = vector.shape_cast %8 : vector<2048x1xi1> to vector<2048x1xi1>
    %24 = vector.broadcast %23 : vector<2048x1xi1> to vector<2048x128xi1>
    %25 = vector.broadcast %cst_7 : f32 to vector<2048x128xf32>
    %26 = arith.select %24, %22, %25 : vector<2048x128xi1>, vector<2048x128xf32>
    %c0_8 = arith.constant 0 : index
    %c0_9 = arith.constant 0 : index
    %c0_10 = arith.constant 0 : index
    %27 = vector.load %arg3[%c0_8, %c0_9, %c0_10] : memref<1x1x128xf32, #tpu.memory_space<vmem>>, vector<1x1x128xf32>
    %28 = vector.shape_cast %27 : vector<1x1x128xf32> to vector<1x128xf32>
    %29 = vector.shape_cast %18 : vector<1x128xf32> to vector<1x1x128xf32>
    tpu.vector_store %arg3[%c0_8, %c0_9, %c0_10], %29 {strides = array<i32>} : memref<1x1x128xf32, #tpu.memory_space<vmem>>, vector<1x1x128xf32>,
    %30 = arith.mulf %26, %26 : vector<2048x128xf32>
    %cst_11 = arith.constant dense<0.000000e+00> : vector<128xf32>
    %31 = vector.multi_reduction <add>, %30, %cst_11 [0] : vector<2048x128xf32> to vector<128xf32>
    %32 = vector.shape_cast %31 : vector<128xf32> to vector<1x128xf32>
    %c0_12 = arith.constant 0 : index
    %c0_13 = arith.constant 0 : index
    %c0_14 = arith.constant 0 : index
    %33 = vector.load %arg4[%c0_12, %c0_13, %c0_14] : memref<1x1x128xf32, #tpu.memory_space<vmem>>, vector<1x1x128xf32>
    %34 = vector.shape_cast %33 : vector<1x1x128xf32> to vector<1x128xf32>
    %35 = vector.shape_cast %32 : vector<1x128xf32> to vector<1x1x128xf32>
    tpu.vector_store %arg4[%c0_12, %c0_13, %c0_14], %35 {strides = array<i32>} : memref<1x1x128xf32, #tpu.memory_space<vmem>>, vector<1x1x128xf32>,
    return
  }
  func.func @transform_0(%arg0: i32) -> (i32, i32) {
    %c0_i32 = arith.constant 0 : i32
    %c0_i32_0 = arith.constant 0 : i32
    return %arg0, %c0_i32 : i32, i32
  }
  func.func @transform_1(%arg0: i32) -> (i32, i32) {
    %c0_i32 = arith.constant 0 : i32
    %c0_i32_0 = arith.constant 0 : i32
    %c0_i32_1 = arith.constant 0 : i32
    return %c0_i32, %c0_i32_0 : i32, i32
  }
  func.func @transform_2(%arg0: i32) -> (i32, i32, i32) {
    %c0_i32 = arith.constant 0 : i32
    %c0_i32_0 = arith.constant 0 : i32
    %c0_i32_1 = arith.constant 0 : i32
    return %arg0, %c0_i32, %c0_i32_0 : i32, i32, i32
  }
  func.func @transform_3(%arg0: i32) -> (i32, i32, i32) {
    %c0_i32 = arith.constant 0 : i32
    %c0_i32_0 = arith.constant 0 : i32
    %c0_i32_1 = arith.constant 0 : i32
    return %arg0, %c0_i32, %c0_i32_0 : i32, i32, i32
  }
}

</mosaic_0001>

<bundles_post_ra>
// kernel: tpu_custom_call.1
= control target key start
LH: loop header
LB: loop body
LE: loop exit
PB: predicated region body
PF: predicated region fallthrough
CT: control target
= control target key end

     0   :  { %9 = vsyncpa [#allocation3], 0  ;;  %s11055_s0 = inlined_call_operand.hbm [shape: bf16[4096,128], index: 0, kind: input, shape index: {}]   ;;  %s11056_s1 = inlined_call_operand.hbm [shape: bf16[128,128], index: 1, kind: input, shape index: {}]   ;;  %s11057_s2 = inlined_call_operand.hbm [shape: f32[2,1,128], index: 2, kind: output, shape index: {0}]   ;;  %s11058_s3 = inlined_call_operand.hbm [shape: f32[2,1,128], index: 3, kind: output, shape index: {1}]  }
   0x1   :  { %11 = vsyncpa [#allocation3 + $0x1], 0 }
   0x2   :  { %12 = vsyncpa [#allocation6], 0 }
   0x3   :  { %13 = vsyncpa [#allocation4], 0 }
   0x4   :  { %15 = vsyncpa [#allocation4 + $0x1], 0 }
   0x5   :  { %16 = vsyncpa [#allocation9], 0 }
   0x6   :  { %18 = vsyncpa [#allocation9 + $0x1], 0  ;;  %s6307_s12 = smov 0   ;;  %s6309_s13 = smov 0  }
   0x7   :  { %s6311_s14 = smov 0   ;;  %s6313_s15 = smov 0  }
   0x8 LB: > { %s6328_s16 = sadd.s32 4294967295, %s6279_s15   ;;  %s5334_s17 = sadd.s32 4294967294, %s6279_s15   ;;  %s6279_s15 = sphi %s6313_s15, %s13671_s15   ;;  %s6275_s14 = sphi %s6311_s14, %s13670_s14   ;;  %s6271_s13 = sphi %s6309_s13, %s13669_s13   ;;  %s6267_s12 = sphi %s6307_s12, %s13668_s12  }
   0x9   : > { %p44_p0 = scmp.ne.s32.totalorder %s6271_s13, %s6267_s12  ;;  %p11059_p1 = scmp.eq.s32.totalorder %s6328_s16, 0 }
   0xa   : > { %p95_p3 = scmp.eq.s32.totalorder %s5334_s17, 1  ;;  %p5335_p5 = scmp.ge.s32.totalorder %s6279_s15, 1 }
   0xb   : > { %p6337_p4 = por %p11059_p1, %p44_p0  ;;  %p128_p7 = scmp.lt.s32.totalorder %s6279_s15, 3 }
   0xc   : > { %p6342_p6 = por %p95_p3, %p44_p0  ;;  %s6281_s21 = smov [#allocation5]  }
   0xd   : > { %s11964_s18 = scalar_select %p6337_p4, 1, 0 }
   0xe   : > { %s11965_s19 = scalar_select %p6342_p6, 1, 0 }
   0xf   : > { %p6347_p8 = pnand %p5335_p5, %p128_p7  ;;  %s140_s22 = sshll.u32 %s6281_s21, 4  ;;  %s6351_s22 = int_to_ptr.vmem [resolvable:$true] %s140_s22 }
  0x10   : > { %s6363_s24 = sadd.s32 1, %s6279_s15   ;;  %s31_s25 = sadd.s32 1, %s6275_s14 }
  0x11   : > { %s11966_s20 = scalar_select %p6347_p8, 1, 0 }
  0x12   : > { %p5927_p9 = pneg %p6347_p8  ;;  %s28_s26 = ssub.s32 %s6279_s15, %s6363_s24 }
  0x13   : > { %s6119_s29 = scalar_lea.hbm %s11056_s1, 1024 }
  0x14   : > { %p6358_p11 = pnand %p5927_p9, %p11059_p1  ;;  %p6120_p12 = scmp.ne.s32.totalorder %s11056_s1, %s6119_s29 }
  0x15   : > { %p6126_p5 = scmp.lt.u32.totalorder %s6119_s29, %s11056_s1 }
  0x16   : > { %p6121_p13 = pneg %p6358_p11 }
  0x18   : > { %p6122_p0 = pnand %p6121_p13, %p6120_p12 }
  0x1a   : > { %p6123_p3 = pneg %p6122_p0 }
  0x1c   : > { %p6128_p7 = pnand %p6126_p5, %p6123_p3 }
  0x1e   : > { %6131 = shalt.err (!%p6128_p7)
}
  0x1f   : > { %s6132_s7 = scalar_lea.vmem %s6351_s22, 1024  ;;  %p6140_p2 = scmp.lt.s32.totalorder %s6351_s22, %s6351_s22 }
  0x20   : > { %p6133_p9 = scmp.ne.s32.totalorder %s6351_s22, %s6132_s7  ;;  %p6141_p6 = scmp.lt.s32.totalorder %s6132_s7, %s6132_s7 }
  0x22   : > { %p6135_p10 = pnand %p6133_p9, %p6121_p13  ;;  %p6142_p4 = por %p6141_p6, %p6140_p2 }
  0x24   : > { %p6136_p1 = pneg %p6135_p10 }
  0x26   : > { %p6143_p8 = pnand %p6142_p4, %p6136_p1 }
  0x28   : > { %6146 = shalt.err (!%p6143_p8)
}
  0x29   : > { %s6282_s8 = smov 64   ;;  %s6283_s9 = smov 4  }
  0x2a   : > { %5930 = dma.hbm_to_vmem [thread:$0]  (!%p6358_p11), %s11056_s1, 1024, %s6351_s22, [#allocation6], %s6282_s8, %s6282_s8, %s6283_s9  }
  0x2b   : > { %p29_p1 = scmp.eq.s32.totalorder %s28_s26, 0  ;;  %p38_p2 = scmp.ne.s32.totalorder %s6275_s14, %s6271_s13 }
  0x2c   : > { %p39_p4 = scmp.eq.s32.totalorder %s6279_s15, 0  ;;  %p5943_p6 = scmp.lt.s32.totalorder %s6279_s15, 2 }
  0x2d   : > { %s6397_s17 = scalar_select %p29_p1, %s6275_s14, %s31_s25  }
  0x2e   : > { %p40_p8 = por %p39_p4, %p38_p2  ;;  %p11968_p10 = scmp.eq.s32.totalorder %s6328_s16, 1 }
  0x2f   : > { %s154_s23 = sand.u32 1, %s6275_s14   ;;  %s5490_s27 = sshll.u32 %s6279_s15, 14 }
  0x30   : > { %p6401_p12 = por %p11968_p10, %p38_p2  ;;  %s5338_s28 = sshll.u32 %s154_s23, 10 }
  0x31   : > { %s6410_s4 = scalar_lea.hbm %s11055_s0, %s5490_s27  ;;  %s158_s22 = scalar_lea.vmem [#allocation2], %s5338_s28 }
  0x32   : > { %s165_s25 = sshll.u32 %s158_s22, 4  ;;  %p6412_p11 = pnand %p5943_p6, %p40_p8  ;;  %s6416_s25 = int_to_ptr.vmem [resolvable:$true] %s165_s25 }
  0x33   : > { %s6418_s5 = scalar_lea.sflag [#allocation3], %s154_s23  ;;  %s6147_s6 = scalar_lea.hbm %s6410_s4, 16384 }
  0x34   : > { %p6148_p13 = scmp.ne.s32.totalorder %s6410_s4, %s6147_s6  ;;  %p6149_p0 = pneg %p6412_p11 }
  0x35   : > { %s6152_s11 = scalar_lea.hbm %s11055_s0, 32768  ;;  %p6153_p7 = scmp.lt.u32.totalorder %s6410_s4, %s11055_s0 }
  0x36   : > { %p6150_p3 = pnand %p6149_p0, %p6148_p13  ;;  %p6154_p9 = scmp.lt.u32.totalorder %s6152_s11, %s6147_s6 }
  0x37   : > { %p6156_p2 = scmp.lt.u32.totalorder %s6147_s6, %s6410_s4 }
  0x38   : > { %p6151_p5 = pneg %p6150_p3  ;;  %p6155_p1 = por %p6154_p9, %p6153_p7 }
  0x3a   : > { %p6157_p4 = por %p6156_p2, %p6155_p1 }
  0x3c   : > { %p6158_p6 = pnand %p6157_p4, %p6151_p5 }
  0x3e   : > { %6161 = shalt.err (!%p6158_p6)
}
  0x3f   : > { %s6162_s23 = scalar_lea.vmem %s6416_s25, 16384  ;;  %s6284_s29 = smov [#allocation2]  }
  0x40   : > { %p6163_p8 = scmp.ne.s32.totalorder %s6416_s25, %s6162_s23  ;;  %s6167_s30 = sshll.u32 %s6284_s29, 4  ;;  %s6168_s30 = int_to_ptr.vmem [resolvable:$false] %s6167_s30 }
  0x41   : > { %s6169_s22 = scalar_lea.vmem %s6168_s30, 32768  ;;  %p6170_p3 = scmp.lt.s32.totalorder %s6416_s25, %s6168_s30 }
  0x42   : > { %p6165_p10 = pnand %p6163_p8, %p6149_p0  ;;  %p6171_p7 = scmp.lt.s32.totalorder %s6169_s22, %s6162_s23 }
  0x44   : > { %p6166_p13 = pneg %p6165_p10  ;;  %p6172_p9 = por %p6171_p7, %p6170_p3 }
  0x46   : > { %p6173_p1 = pnand %p6172_p9, %p6166_p13 }
  0x48   : > { %6176 = shalt.err (!%p6173_p1)
}
  0x49   : > { %5934 = dma.hbm_to_vmem [thread:$0]  (!%p6412_p11), %s6410_s4, 16384, %s6416_s25, %s6418_s5, %s6282_s8, %s6282_s8, %s6283_s9  }
  0x4a   : > { %p11971_p0 = scmp.ne.s32.totalorder %s11966_s20, 0 }
  0x4c   : > { %177 = sbr.rel (%p11971_p0) target bundleno = 1415 (0x587), region = 28 }
  0x53   : > { %s6452_s6 = sand.u32 1, %s6271_s13   ;;  %p11972_p5 = scmp.ne.s32.totalorder %s11964_s18, 0 }
  0x54   : > { %s5342_s7 = sshll.u32 %s6452_s6, 10  ;;  %s180_s10 = scalar_lea.sflag [#allocation3], %s6452_s6 }
  0x55   : > { %s6456_s11 = scalar_lea.vmem [#allocation2], %s5342_s7 }
  0x56   : > { %6250 = dma.done.wait (%p11972_p5), %s180_s10, 16384  }
  0x57   : > { %6252 = vsyncadd (%p11972_p5), %s180_s10, 4294950912  ;;  %p11973_p11 = scmp.eq.s32.totalorder %s6328_s16, 0 }
  0x59   : > { %6254 = dma.done.wait (%p11973_p11), [#allocation6], 1024   ;;  %p11974_p2 = pmov %p11973_p11 }
  0x5a   : > { %v5981_v0 = vld [vmem:[#allocation5] sm:$0xff]   ;;  %v5982_v1 = vld [vmem:[#allocation5 + $0x8] sm:$0xff]   ;;  %v5983_v2 = vld [vmem:[#allocation5 + $0x10] sm:$0xff]   ;;  %s5480_s18 = sshll.u32 %s6328_s16, 11  ;;  %s206_s4 = scalar_lea.vmem [#allocation7], %s6452_s6 }
  0x5b   : > { %6256 = vsyncadd (%p11974_p2), [#allocation6], 4294966272  ;;  %5629 = vmatprep.subr.bf16.mxu0 %v5981_v0  ;;  %5901 = vmatprep.subr.bf16.mxu1 %v5981_v0  ;;  %v5984_v3 = vld [vmem:[#allocation5 + $0x18] sm:$0xff]   ;;  %v5989_v4 = vld [vmem:[%s6456_s11] sm:$0xff]   ;;  %s9100_s20 = ssub.s32 4096, %s5480_s18  ;;  %s5486_s25 = sshll.u32 %s6328_s16, 4 }
  0x5c   : > { %5630 = vmatpush3.bf16.msra.mxu0 %v5981_v0  ;;  %5909 = vmatpush3.bf16.msra.mxu1 %v5981_v0  ;;  %v5985_v5 = vld [vmem:[#allocation5 + $0x20] sm:$0xff]   ;;  %v5986_v6 = vld [vmem:[#allocation5 + $0x28] sm:$0xff]   ;;  %v5987_v7 = vld [vmem:[#allocation5 + $0x30] sm:$0xff]   ;;  %p3132_p4 = scmp.lt.s32.totalorder %s9100_s20, 2048  ;;  %p5481_p6 = scmp.gt.s32.totalorder %s9100_s20, 1 }
  0x5d   : > { %5631 = vmatprep.subr.bf16.mxu0 %v5982_v1  ;;  %5902 = vmatprep.subr.bf16.mxu1 %v5982_v1  ;;  %v5988_v8 = vld [vmem:[#allocation5 + $0x38] sm:$0xff]   ;;  %v5990_v9 = vld [vmem:[%s6456_s11 + $0x8] sm:$0xff]   ;;  %v5991_v10 = vld [vmem:[%s6456_s11 + $0x10] sm:$0xff]   ;;  %s10687_s27 = scalar_lea.hbm %s11057_s2, %s5486_s25  ;;  %s5217_s28 = sshll.u32 %s206_s4, 4  ;;  %s10691_s28 = int_to_ptr.vmem [resolvable:$true] %s5217_s28 }
  0x5e   : > { %5645 = vmatprep.mubr.bf16.mxu0 %v5989_v4  ;;  %v5992_v11 = vld [vmem:[%s6456_s11 + $0x18] sm:$0xff]   ;;  %v5993_v12 = vld [vmem:[%s6456_s11 + $0x20] sm:$0xff]   ;;  %v5994_v13 = vld [vmem:[%s6456_s11 + $0x28] sm:$0xff]   ;;  %s3133_s8 = scalar_select %p3132_p4, %s9100_s20, 2048 }
  0x5f   : > { %v5995_v14 = vld [vmem:[%s6456_s11 + $0x30] sm:$0xff]   ;;  %v5996_v15 = vld [vmem:[%s6456_s11 + $0x38] sm:$0xff]   ;;  %v5997_v16 = vld [vmem:[%s6456_s11 + $0x40] sm:$0xff]   ;;  %s5201_s23 = scalar_lea.sflag [#allocation4], %s6452_s6  ;;  %s6177_s29 = scalar_lea.vmem %s10691_s28, 16 }
  0x60   : > { %5632 = vmatpush3.bf16.msra.mxu0 %v5982_v1  ;;  %5910 = vmatpush3.bf16.msra.mxu1 %v5982_v1  ;;  %v5998_v17 = vld [vmem:[%s6456_s11 + $0x48] sm:$0xff]   ;;  %v5999_v18 = vld [vmem:[%s6456_s11 + $0x50] sm:$0xff]   ;;  %v6000_v19 = vld [vmem:[%s6456_s11 + $0x58] sm:$0xff]   ;;  %s13673_s8 = smov (!%p5481_p6, %s3133_s8), 1  ;;  %p6178_p8 = scmp.ne.s32.totalorder %s10691_s28, %s6177_s29 }
  0x61   : > { %5633 = vmatprep.subr.bf16.mxu0 %v5983_v2  ;;  %5903 = vmatprep.subr.bf16.mxu1 %v5983_v2  ;;  %v6001_v20 = vld [vmem:[%s6456_s11 + $0x60] sm:$0xff]   ;;  %v6002_v21 = vld [vmem:[%s6456_s11 + $0x68] sm:$0xff]   ;;  %v6003_v22 = vld [vmem:[%s6456_s11 + $0x70] sm:$0xff]   ;;  %s3136_s9 = scvt.s32.f32 %s13673_s8  ;;  %s6285_s30 = smov [#allocation7]  }
  0x62   : > { %v6004_v23 = vld [vmem:[%s6456_s11 + $0x78] sm:$0xff]   ;;  %v6005_v24 = vld [vmem:[%s6456_s11 + $0x80] sm:$0xff]   ;;  %v6006_v25 = vld [vmem:[%s6456_s11 + $0x88] sm:$0xff]   ;;  %p6179_p10 = pnand %p6178_p8, %p6401_p12  ;;  %s6181_s22 = sshll.u32 %s6285_s30, 4  ;;  %s6182_s22 = int_to_ptr.vmem [resolvable:$false] %s6181_s22 }
  0x63   : > { %v6007_v26 = vld [vmem:[%s6456_s11 + $0x90] sm:$0xff]   ;;  %v6008_v27 = vld [vmem:[%s6456_s11 + $0x98] sm:$0xff]   ;;  %v6009_v28 = vld [vmem:[%s6456_s11 + $0xa0] sm:$0xff]   ;;  %s6183_s7 = scalar_lea.vmem %s6182_s22, 32  ;;  %p6184_p3 = scmp.lt.s32.totalorder %s10691_s28, %s6182_s22 }
  0x64   : > { %5634 = vmatpush3.bf16.msra.mxu0 %v5983_v2  ;;  %5911 = vmatpush3.bf16.msra.mxu1 %v5983_v2  ;;  %v6010_v29 = vld [vmem:[%s6456_s11 + $0xa8] sm:$0xff]   ;;  %v6011_v30 = vld [vmem:[%s6456_s11 + $0xb0] sm:$0xff]   ;;  %v6012_v31 = vld [vmem:[%s6456_s11 + $0xb8] sm:$0xff]   ;;  %p6180_p13 = pneg %p6179_p10  ;;  %p6185_p7 = scmp.lt.s32.totalorder %s6183_s7, %s6177_s29 }
  0x65   : > { %5635 = vmatprep.subr.bf16.mxu0 %v5984_v3  ;;  %5904 = vmatprep.subr.bf16.mxu1 %v5984_v3  ;;  %v6013_v32 = vld [vmem:[%s6456_s11 + $0xc0] sm:$0xff]   ;;  %v6014_v33 = vld [vmem:[%s6456_s11 + $0xc8] sm:$0xff]   ;;  %v6015_v34 = vld [vmem:[%s6456_s11 + $0xd0] sm:$0xff]  }
  0x66   : > { %v6016_v35 = vld [vmem:[%s6456_s11 + $0xd8] sm:$0xff]   ;;  %v6017_v36 = vld [vmem:[%s6456_s11 + $0xe0] sm:$0xff]   ;;  %v6018_v37 = vld [vmem:[%s6456_s11 + $0xe8] sm:$0xff]   ;;  %p6186_p9 = por %p6185_p7, %p6184_p3 }
  0x67   : > { %v6019_v38 = vld [vmem:[%s6456_s11 + $0xf0] sm:$0xff]   ;;  %v6020_v39 = vld [vmem:[%s6456_s11 + $0xf8] sm:$0xff]   ;;  %v6021_v40 = vld [vmem:[%s6456_s11 + $0x100] sm:$0xff]  }
  0x68   : > { %5636 = vmatpush3.bf16.msra.mxu0 %v5984_v3  ;;  %5912 = vmatpush3.bf16.msra.mxu1 %v5984_v3  ;;  %v6053_v41 = vld [vmem:[%s6456_s11 + $0x200] sm:$0xff]   ;;  %v6054_v42 = vld [vmem:[%s6456_s11 + $0x208] sm:$0xff]   ;;  %v6023_v44 = vld [vmem:[%s6456_s11 + $0x110] sm:$0xff]   ;;  %p6187_p1 = pnand %p6186_p9, %p6180_p13 }
  0x69   : > { %5637 = vmatprep.subr.bf16.mxu0 %v5985_v5  ;;  %5905 = vmatprep.subr.bf16.mxu1 %v5985_v5  ;;  %v6022_v43 = vld [vmem:[%s6456_s11 + $0x108] sm:$0xff]   ;;  %v6055_v45 = vld [vmem:[%s6456_s11 + $0x210] sm:$0xff]   ;;  %v6056_v46 = vld [vmem:[%s6456_s11 + $0x218] sm:$0xff]  }
  0x6a   : > { %5773 = vmatprep.mubr.bf16.mxu1 %v6053_v41  ;;  %v6024_v47 = vld [vmem:[%s6456_s11 + $0x118] sm:$0xff]   ;;  %v6025_v48 = vld [vmem:[%s6456_s11 + $0x120] sm:$0xff]   ;;  %v6058_v50 = vld [vmem:[%s6456_s11 + $0x228] sm:$0xff]  }
  0x6b   : > { %v6057_v49 = vld [vmem:[%s6456_s11 + $0x220] sm:$0xff]   ;;  %v6026_v51 = vld [vmem:[%s6456_s11 + $0x128] sm:$0xff]   ;;  %v6027_v52 = vld [vmem:[%s6456_s11 + $0x130] sm:$0xff]  }
  0x6c   : > { %5638 = vmatpush3.bf16.msra.mxu0 %v5985_v5  ;;  %5913 = vmatpush3.bf16.msra.mxu1 %v5985_v5  ;;  %v6059_v53 = vld [vmem:[%s6456_s11 + $0x230] sm:$0xff]   ;;  %v6060_v54 = vld [vmem:[%s6456_s11 + $0x238] sm:$0xff]   ;;  %v6029_v56 = vld [vmem:[%s6456_s11 + $0x140] sm:$0xff]  }
  0x6d   : > { %5639 = vmatprep.subr.bf16.mxu0 %v5986_v6  ;;  %5906 = vmatprep.subr.bf16.mxu1 %v5986_v6  ;;  %v6028_v55 = vld [vmem:[%s6456_s11 + $0x138] sm:$0xff]   ;;  %v6061_v57 = vld [vmem:[%s6456_s11 + $0x240] sm:$0xff]   ;;  %v6062_v58 = vld [vmem:[%s6456_s11 + $0x248] sm:$0xff]  }
  0x6e   : > { %v6030_v59 = vld [vmem:[%s6456_s11 + $0x148] sm:$0xff]   ;;  %v6031_v60 = vld [vmem:[%s6456_s11 + $0x150] sm:$0xff]   ;;  %v6064_v62 = vld [vmem:[%s6456_s11 + $0x258] sm:$0xff]  }
  0x6f   : > { %v6063_v61 = vld [vmem:[%s6456_s11 + $0x250] sm:$0xff]   ;;  %v6032_v63 = vld [vmem:[%s6456_s11 + $0x158] sm:$0xff]   ;;  %v6033_v0 = vld [vmem:[%s6456_s11 + $0x160] sm:$0xff]  }
  0x70   : > { %5640 = vmatpush3.bf16.msra.mxu0 %v5986_v6  ;;  %5914 = vmatpush3.bf16.msra.mxu1 %v5986_v6  ;;  %v6065_v1 = vld [vmem:[%s6456_s11 + $0x260] sm:$0xff]   ;;  %v6066_v2 = vld [vmem:[%s6456_s11 + $0x268] sm:$0xff]   ;;  %v6035_v4 = vld [vmem:[%s6456_s11 + $0x170] sm:$0xff]  }
  0x71   : > { %5641 = vmatprep.subr.bf16.mxu0 %v5987_v7  ;;  %5907 = vmatprep.subr.bf16.mxu1 %v5987_v7  ;;  %v6034_v3 = vld [vmem:[%s6456_s11 + $0x168] sm:$0xff]   ;;  %v6067_v5 = vld [vmem:[%s6456_s11 + $0x270] sm:$0xff]   ;;  %v6068_v6 = vld [vmem:[%s6456_s11 + $0x278] sm:$0xff]  }
  0x74   : > { %5642 = vmatpush3.bf16.msra.mxu0 %v5987_v7  ;;  %5915 = vmatpush3.bf16.msra.mxu1 %v5987_v7  ;;  %v6036_v7 = vld [vmem:[%s6456_s11 + $0x178] sm:$0xff]  }
  0x75   : > { %5643 = vmatprep.subr.bf16.mxu0 %v5988_v8  ;;  %5908 = vmatprep.subr.bf16.mxu1 %v5988_v8 }
  0x78   : > { %5644 = vmatpush3.bf16.msra.mxu0 %v5988_v8  ;;  %5916 = vmatpush3.bf16.msra.mxu1 %v5988_v8  ;;  %v6037_v8 = vld [vmem:[%s6456_s11 + $0x180] sm:$0xff]  }
  0x7b   : > { %5646 = vmatmul.mubr.bf16.vlgmr.msra.gmra.mrb[0].mxu0 %v5990_v9  ;;  %5774 = vmatmul.mubr.bf16.vlgmr.msra.gmra.mrb[0].mxu1 %v6054_v42  ;;  %v6069_v9 = vld [vmem:[%s6456_s11 + $0x280] sm:$0xff]  }
  0x7c   : > { %5649 = vmatprep.mubr.bf16.mxu0 %v5991_v10  ;;  %5777 = vmatprep.mubr.bf16.mxu1 %v6055_v45  ;;  %v6070_v10 = vld [vmem:[%s6456_s11 + $0x288] sm:$0xff]  }
  0x83   : > { %5650 = vmatmul.mubr.bf16.gmra.mrb[4].mxu0 %v5992_v11  ;;  %5778 = vmatmul.mubr.bf16.gmra.mrb[4].mxu1 %v6056_v46  ;;  %v6038_v11 = vld [vmem:[%s6456_s11 + $0x188] sm:$0xff]  }
  0x84   : > { %5653 = vmatprep.mubr.bf16.mxu0 %v5993_v12  ;;  %5781 = vmatprep.mubr.bf16.mxu1 %v6057_v49  ;;  %v6039_v12 = vld [vmem:[%s6456_s11 + $0x190] sm:$0xff]  }
  0x8b   : > { %5654 = vmatmul.mubr.bf16.gmra.mrb[8].mxu0 %v5994_v13  ;;  %5782 = vmatmul.mubr.bf16.gmra.mrb[8].mxu1 %v6058_v50  ;;  %v6071_v13 = vld [vmem:[%s6456_s11 + $0x290] sm:$0xff]  }
  0x8c   : > { %5657 = vmatprep.mubr.bf16.mxu0 %v5995_v14  ;;  %5785 = vmatprep.mubr.bf16.mxu1 %v6059_v53  ;;  %v6072_v14 = vld [vmem:[%s6456_s11 + $0x298] sm:$0xff]  }
  0x93   : > { %5658 = vmatmul.mubr.bf16.gmra.mrb[12].mxu0 %v5996_v15  ;;  %5786 = vmatmul.mubr.bf16.gmra.mrb[12].mxu1 %v6060_v54  ;;  %v6040_v15 = vld [vmem:[%s6456_s11 + $0x198] sm:$0xff]  }
  0x94   : > { %5661 = vmatprep.mubr.bf16.mxu0 %v5997_v16  ;;  %5789 = vmatprep.mubr.bf16.mxu1 %v6061_v57  ;;  %v6041_v16 = vld [vmem:[%s6456_s11 + $0x1a0] sm:$0xff]  }
  0x9b   : > { %5662 = vmatmul.mubr.bf16.gmra.mrb[16].mxu0 %v5998_v17  ;;  %5790 = vmatmul.mubr.bf16.gmra.mrb[16].mxu1 %v6062_v58  ;;  %v2361_v17 = vlaneseq }
  0x9c   : > { %5665 = vmatprep.mubr.bf16.mxu0 %v5999_v18  ;;  %5793 = vmatprep.mubr.bf16.mxu1 %v6063_v61 }
  0x9d   : > { %v6540_v18 = vshrl.u32 %v2361_v17, 7 }
  0x9f   : > { %v2368_v41 = vadd.s32 48, %v6540_v18  ;;  %v2369_v46 = vadd.s32 56, %v6540_v18 }
  0xa3   : > { %5666 = vmatmul.mubr.bf16.gmra.mrb[20].mxu0 %v6000_v19  ;;  %5794 = vmatmul.mubr.bf16.gmra.mrb[20].mxu1 %v6064_v62  ;;  %v6073_v19 = vld [vmem:[%s6456_s11 + $0x2a0] sm:$0xff]  }
  0xa4   : > { %5669 = vmatprep.mubr.bf16.mxu0 %v6001_v20  ;;  %5797 = vmatprep.mubr.bf16.mxu1 %v6065_v1  ;;  %v6074_v20 = vld [vmem:[%s6456_s11 + $0x2a8] sm:$0xff]  }
  0xab   : > { %5670 = vmatmul.mubr.bf16.gmra.mrb[24].mxu0 %v6002_v21  ;;  %5798 = vmatmul.mubr.bf16.gmra.mrb[24].mxu1 %v6066_v2  ;;  %v6042_v21 = vld [vmem:[%s6456_s11 + $0x1a8] sm:$0xff]   ;;  %v2372_v2 = vadd.s32 80, %v6540_v18 }
  0xac   : > { %5673 = vmatprep.mubr.bf16.mxu0 %v6003_v22  ;;  %5801 = vmatprep.mubr.bf16.mxu1 %v6067_v5  ;;  %v2363_v22 = vadd.s32 8, %v6540_v18 }
  0xb3   : > { %5674 = vmatmul.mubr.bf16.gmra.mrb[28].mxu0 %v6004_v23  ;;  %5802 = vmatmul.mubr.bf16.gmra.mrb[28].mxu1 %v6068_v6  ;;  %v6548_v23 = vstv %s5480_s18  ;;  %v2373_v6 = vadd.s32 88, %v6540_v18 }
  0xb4   : > { %5677 = vmatprep.mubr.bf16.mxu0 %v6005_v24  ;;  %5805 = vmatprep.mubr.bf16.mxu1 %v6069_v9  ;;  %v6043_v24 = vld [vmem:[%s6456_s11 + $0x1b0] sm:$0xff]   ;;  %v6602_v50 = vadd.s32 %v6548_v23, %v2368_v41  ;;  %v6616_v58 = vadd.s32 %v6548_v23, %v2369_v46  ;;  %v2378_v46 = vadd.s32 128, %v6540_v18 }
  0xb6   : > { %11985 = vst [vmem:[#allocation24_spill] sm:$0xff] %v6602_v50  ;;  %11988 = vst [vmem:[#allocation27_spill] sm:$0xff] %v6616_v58  ;;  %vm2881_vm6 = vcmp.lt.s32.totalorder %v6602_v50, 4096  ;;  %vm2882_vm7 = vcmp.lt.s32.totalorder %v6616_v58, 4096  ;;  %v6095_v58 = vld [vmem:[%s6456_s11 + $0x350] sm:$0xff]  }
  0xbb   : > { %5678 = vmatmul.mubr.bf16.gmra.mrb[32].mxu0 %v6006_v25  ;;  %5806 = vmatmul.mubr.bf16.gmra.mrb[32].mxu1 %v6070_v10  ;;  %v2364_v25 = vadd.s32 16, %v6540_v18  ;;  %v6646_v10 = vadd.s32 %v6548_v23, %v2372_v2 }
  0xbc   : > { %5681 = vmatprep.mubr.bf16.mxu0 %v6007_v26  ;;  %5809 = vmatprep.mubr.bf16.mxu1 %v6071_v13  ;;  %v6554_v26 = vadd.s32 %v6548_v23, %v6540_v18 }
  0xbd   : > { %11993 = vst [vmem:[#allocation32_spill] sm:$0xff] %v6646_v10  ;;  %vm2885_vm10 = vcmp.lt.s32.totalorder %v6646_v10, 4096 }
  0xbe   : > { %11975 = vst [vmem:[#allocation14_spill] sm:$0xff] %v6554_v26  ;;  %vm2875_vm0 = vcmp.lt.s32.totalorder %v6554_v26, 4096 }
  0xc3   : > { %5682 = vmatmul.mubr.bf16.gmra.mrb[36].mxu0 %v6008_v27  ;;  %5810 = vmatmul.mubr.bf16.gmra.mrb[36].mxu1 %v6072_v14  ;;  %v2365_v27 = vadd.s32 24, %v6540_v18 }
  0xc4   : > { %5685 = vmatprep.mubr.bf16.mxu0 %v6009_v28  ;;  %5813 = vmatprep.mubr.bf16.mxu1 %v6073_v19  ;;  %v6558_v28 = vadd.s32 %v6548_v23, %v2363_v22  ;;  %v6660_v19 = vadd.s32 %v6548_v23, %v2373_v6  ;;  %v6720_v6 = vadd.s32 %v6548_v23, %v2378_v46 }
  0xc6   : > { %11976 = vst [vmem:[#allocation15_spill] sm:$0xff] %v6558_v28  ;;  %vm2876_vm1 = vcmp.lt.s32.totalorder %v6558_v28, 4096  ;;  %11996 = vst [vmem:[#allocation35_spill] sm:$0xff] %v6660_v19  ;;  %vm2886_vm11 = vcmp.lt.s32.totalorder %v6660_v19, 4096  ;;  %v6093_v19 = vld [vmem:[%s6456_s11 + $0x340] sm:$0xff]  }
  0xc7   : > { %12007 = vst [vmem:[#allocation46_spill] sm:$0xff] %v6720_v6 }
  0xcb   : > { %5686 = vmatmul.mubr.bf16.gmra.mrb[40].mxu0 %v6010_v29  ;;  %5814 = vmatmul.mubr.bf16.gmra.mrb[40].mxu1 %v6074_v20  ;;  %v6561_v29 = vadd.s32 %v6548_v23, %v2364_v25  ;;  %v6048_v20 = vld [vmem:[%s6456_s11 + $0x1d8] sm:$0xff]   ;;  %v6049_v25 = vld [vmem:[%s6456_s11 + $0x1e0] sm:$0xff]  }
  0xcc   : > { %5689 = vmatprep.mubr.bf16.mxu0 %v6011_v30  ;;  %v2366_v30 = vadd.s32 32, %v6540_v18 }
  0xcd   : > { %11977 = vst [vmem:[#allocation16_spill] sm:$0xff] %v6561_v29  ;;  %vm2877_vm2 = vcmp.lt.s32.totalorder %v6561_v29, 4096 }
  0xce   : > { %v6585_v42 = vadd.s32 %v6548_v23, %v2366_v30 }
  0xd0   : > { %11983 = vst [vmem:[#allocation22_spill] sm:$0xff] %v6585_v42  ;;  %vm2879_vm4 = vcmp.lt.s32.totalorder %v6585_v42, 4096 }
  0xd3   : > { %5690 = vmatmul.mubr.bf16.gmra.mrb[44].mxu0 %v6012_v31  ;;  %v6075_v31 = vld [vmem:[%s6456_s11 + $0x2b0] sm:$0xff]  }
  0xd4   : > { %5693 = vmatprep.mubr.bf16.mxu0 %v6013_v32  ;;  %5817 = vmatprep.mubr.bf16.mxu1 %v6075_v31  ;;  %v2376_v31 = vadd.s32 112, %v6540_v18 }
  0xdb   : > { %5694 = vmatmul.mubr.bf16.gmra.mrb[48].mxu0 %v6014_v33  ;;  %v6076_v33 = vld [vmem:[%s6456_s11 + $0x2b8] sm:$0xff]  }
  0xdc   : > { %5697 = vmatprep.mubr.bf16.mxu0 %v6015_v34  ;;  %5818 = vmatmul.mubr.bf16.gmra.mrb[44].mxu1 %v6076_v33 }
  0xe3   : > { %5698 = vmatmul.mubr.bf16.gmra.mrb[52].mxu0 %v6016_v35  ;;  %v6572_v35 = vadd.s32 %v6548_v23, %v2365_v27 }
  0xe4   : > { %5701 = vmatprep.mubr.bf16.mxu0 %v6017_v36  ;;  %v6044_v36 = vld [vmem:[%s6456_s11 + $0x1b8] sm:$0xff]  }
  0xe5   : > { %11980 = vst [vmem:[#allocation19_spill] sm:$0xff] %v6572_v35  ;;  %vm2878_vm3 = vcmp.lt.s32.totalorder %v6572_v35, 4096  ;;  %v6097_v35 = vld [vmem:[%s6456_s11 + $0x360] sm:$0xff]  }
  0xeb   : > { %5702 = vmatmul.mubr.bf16.gmra.mrb[56].mxu0 %v6018_v37  ;;  %v2367_v37 = vadd.s32 40, %v6540_v18 }
  0xec   : > { %5705 = vmatprep.mubr.bf16.mxu0 %v6019_v38 }
  0xf3   : > { %5706 = vmatmul.mubr.bf16.gmra.mrb[60].mxu0 %v6020_v39  ;;  %v6045_v39 = vld [vmem:[%s6456_s11 + $0x1c0] sm:$0xff]  }
  0xf4   : > { %5709 = vmatprep.mubr.bf16.mxu0 %v6021_v40 }
  0xfb   : > { %5710 = vmatmul.mubr.bf16.gmra.mrb[64].mxu0 %v6022_v43 }
  0xfc   : > { %5713 = vmatprep.mubr.bf16.mxu0 %v6023_v44 }
 0x103   : > { %5714 = vmatmul.mubr.bf16.gmra.mrb[68].mxu0 %v6024_v47  ;;  %v6596_v47 = vadd.s32 %v6548_v23, %v2367_v37 }
 0x104   : > { %5717 = vmatprep.mubr.bf16.mxu0 %v6025_v48 }
 0x105   : > { %11984 = vst [vmem:[#allocation23_spill] sm:$0xff] %v6596_v47  ;;  %vm2880_vm5 = vcmp.lt.s32.totalorder %v6596_v47, 4096 }
 0x10b   : > { %5718 = vmatmul.mubr.bf16.gmra.mrb[72].mxu0 %v6026_v51  ;;  %v2370_v51 = vadd.s32 64, %v6540_v18 }
 0x10c   : > { %5721 = vmatprep.mubr.bf16.mxu0 %v6027_v52  ;;  %v6077_v52 = vld [vmem:[%s6456_s11 + $0x2c0] sm:$0xff]  }
 0x10d   : > { %5821 = vmatprep.mubr.bf16.mxu1 %v6077_v52  ;;  %v6082_v52 = vld [vmem:[%s6456_s11 + $0x2e8] sm:$0xff]  }
 0x113   : > { %5722 = vmatmul.mubr.bf16.gmra.mrb[76].mxu0 %v6028_v55  ;;  %v6078_v55 = vld [vmem:[%s6456_s11 + $0x2c8] sm:$0xff]  }
 0x114   : > { %5725 = vmatprep.mubr.bf16.mxu0 %v6029_v56  ;;  %5822 = vmatmul.mubr.bf16.gmra.mrb[48].mxu1 %v6078_v55 }
 0x11b   : > { %5726 = vmatmul.mubr.bf16.gmra.mrb[80].mxu0 %v6030_v59  ;;  %v6046_v59 = vld [vmem:[%s6456_s11 + $0x1c8] sm:$0xff]  }
 0x11c   : > { %5729 = vmatprep.mubr.bf16.mxu0 %v6031_v60  ;;  %v2371_v60 = vadd.s32 72, %v6540_v18 }
 0x123   : > { %5730 = vmatmul.mubr.bf16.gmra.mrb[84].mxu0 %v6032_v63  ;;  %v6047_v63 = vld [vmem:[%s6456_s11 + $0x1d0] sm:$0xff]  }
 0x124   : > { %5733 = vmatprep.mubr.bf16.mxu0 %v6033_v0 }
 0x12b   : > { %5734 = vmatmul.mubr.bf16.gmra.mrb[88].mxu0 %v6034_v3  ;;  %v6632_v3 = vadd.s32 %v6548_v23, %v2370_v51 }
 0x12c   : > { %5737 = vmatprep.mubr.bf16.mxu0 %v6035_v4 }
 0x12d   : > { %11991 = vst [vmem:[#allocation30_spill] sm:$0xff] %v6632_v3  ;;  %vm2883_vm8 = vcmp.lt.s32.totalorder %v6632_v3, 4096 }
 0x133   : > { %5738 = vmatmul.mubr.bf16.gmra.mrb[92].mxu0 %v6036_v7  ;;  %v6640_v7 = vadd.s32 %v6548_v23, %v2371_v60  ;;  %v2379_v60 = vadd.s32 136, %v6540_v18 }
 0x134   : > { %5741 = vmatprep.mubr.bf16.mxu0 %v6037_v8 }
 0x135   : > { %11992 = vst [vmem:[#allocation31_spill] sm:$0xff] %v6640_v7  ;;  %vm2884_vm9 = vcmp.lt.s32.totalorder %v6640_v7, 4096 }
 0x13b   : > { %5742 = vmatmul.mubr.bf16.gmra.mrb[96].mxu0 %v6038_v11  ;;  %v2374_v11 = vadd.s32 96, %v6540_v18 }
 0x13c   : > { %5745 = vmatprep.mubr.bf16.mxu0 %v6039_v12  ;;  %v6079_v12 = vld [vmem:[%s6456_s11 + $0x2d0] sm:$0xff]  }
 0x13d   : > { %5825 = vmatprep.mubr.bf16.mxu1 %v6079_v12  ;;  %v6676_v33 = vadd.s32 %v6548_v23, %v2374_v11  ;;  %v2381_v11 = vadd.s32 152, %v6540_v18  ;;  %v6728_v12 = vadd.s32 %v6548_v23, %v2379_v60 }
 0x13f   : > { %11999 = vst [vmem:[#allocation38_spill] sm:$0xff] %v6676_v33  ;;  %vm11066_vm12 = vcmp.lt.s32.totalorder %v6676_v33, 4096  ;;  %12008 = vst [vmem:[#allocation47_spill] sm:$0xff] %v6728_v12 }
 0x143   : > { %5746 = vmatmul.mubr.bf16.gmra.mrb[100].mxu0 %v6040_v15  ;;  %v6080_v15 = vld [vmem:[%s6456_s11 + $0x2d8] sm:$0xff]  }
 0x144   : > { %5749 = vmatprep.mubr.bf16.mxu0 %v6041_v16  ;;  %5826 = vmatmul.mubr.bf16.gmra.mrb[52].mxu1 %v6080_v15 }
 0x14b   : > { %5750 = vmatmul.mubr.bf16.gmra.mrb[104].mxu0 %v6042_v21  ;;  %v2375_v21 = vadd.s32 104, %v6540_v18 }
 0x14c   : > { %5753 = vmatprep.mubr.bf16.mxu0 %v6043_v24 }
 0x14d   : > { %v6684_v41 = vadd.s32 %v6548_v23, %v2375_v21  ;;  %v6083_v21 = vld [vmem:[%s6456_s11 + $0x2f0] sm:$0xff]  }
 0x14e   : > { %v6565_v32 = vpop.f32.mrb[0].mxu0 }
 0x14f   : > { %11978 = vst [vmem:[#allocation17_spill] sm:$0xff] %v6565_v32  ;;  %v6568_v34 = vpop.f32.mrb[1].mxu0  ;;  %v3651_v48 = vsel %vm2877_vm2, %v6565_v32, 0.0  ;;  %12000 = vst [vmem:[#allocation39_spill] sm:$0xff] %v6684_v41  ;;  %vm11062_vm13 = vcmp.lt.s32.totalorder %v6684_v41, 4096 }
 0x150   : > { %11979 = vst [vmem:[#allocation18_spill] sm:$0xff] %v6568_v34  ;;  %v6577_v38 = vpop.f32.mrb[2].mxu0  ;;  %v3649_v43 = vsel %vm2875_vm0, %v6568_v34, 0.0 }
 0x151   : > { %11981 = vst [vmem:[#allocation20_spill] sm:$0xff] %v6577_v38  ;;  %v6581_v40 = vpop.f32.mrb[3].mxu0  ;;  %v3652_v53 = vsel %vm2878_vm3, %v6577_v38, 0.0 }
 0x152   : > { %11982 = vst [vmem:[#allocation21_spill] sm:$0xff] %v6581_v40  ;;  %v3650_v44 = vsel %vm2876_vm1, %v6581_v40, 0.0 }
 0x153   : > { %v3905_v45 = vadd.f32 %v3650_v44, %v3649_v43  ;;  %5754 = vmatmul.mubr.bf16.gmra.mrb[108].mxu0 %v6044_v36 }
 0x154   : > { %5757 = vmatprep.mubr.bf16.mxu0 %v6045_v39  ;;  %v2377_v39 = vadd.s32 120, %v6540_v18 }
 0x155   : > { %v3906_v49 = vadd.f32 %v3905_v45, %v3651_v48  ;;  %v6690_v45 = vadd.s32 %v6548_v23, %v2376_v31  ;;  %v6081_v48 = vld [vmem:[%s6456_s11 + $0x2e0] sm:$0xff]  }
 0x156   : > { %v6610_v54 = vpop.f32.mrb[4].mxu0  ;;  %5829 = vmatprep.mubr.bf16.mxu1 %v6081_v48 }
 0x157   : > { %11986 = vst [vmem:[#allocation25_spill] sm:$0xff] %v6610_v54  ;;  %v3907_v56 = vadd.f32 %v3906_v49, %v3652_v53  ;;  %v6613_v57 = vpop.f32.mrb[5].mxu0  ;;  %v3655_v8 = vsel %vm2881_vm6, %v6610_v54, 0.0  ;;  %12001 = vst [vmem:[#allocation40_spill] sm:$0xff] %v6690_v45  ;;  %5830 = vmatmul.mubr.bf16.gmra.mrb[56].mxu1 %v6082_v52  ;;  %vm11063_vm14 = vcmp.lt.s32.totalorder %v6690_v45, 4096  ;;  %v2384_v52 = vadd.s32 176, %v6540_v18 }
 0x158   : > { %11987 = vst [vmem:[#allocation26_spill] sm:$0xff] %v6613_v57  ;;  %v3653_v61 = vsel %vm2879_vm4, %v6613_v57, 0.0  ;;  %v6624_v62 = vpop.f32.mrb[6].mxu0  ;;  %5833 = vmatprep.mubr.bf16.mxu1 %v6083_v21 }
 0x159   : > { %11989 = vst [vmem:[#allocation28_spill] sm:$0xff] %v6624_v62  ;;  %v3908_v0 = vadd.f32 %v3907_v56, %v3653_v61  ;;  %v6628_v1 = vpop.f32.mrb[7].mxu0  ;;  %v3656_v13 = vsel %vm2882_vm7, %v6624_v62, 0.0  ;;  %v6704_v56 = vadd.s32 %v6548_v23, %v2377_v39  ;;  %v6052_v39 = vld [vmem:[%s6456_s11 + $0x1f8] sm:$0xff]  }
 0x15a   : > { %11990 = vst [vmem:[#allocation29_spill] sm:$0xff] %v6628_v1  ;;  %v3654_v4 = vsel %vm2880_vm5, %v6628_v1, 0.0 }
 0x15b   : > { %v3909_v5 = vadd.f32 %v3908_v0, %v3654_v4  ;;  %5758 = vmatmul.mubr.bf16.gmra.mrb[112].mxu0 %v6046_v59  ;;  %12004 = vst [vmem:[#allocation43_spill] sm:$0xff] %v6704_v56  ;;  %v6050_v59 = vld [vmem:[%s6456_s11 + $0x1e8] sm:$0xff]   ;;  %v6051_v0 = vld [vmem:[%s6456_s11 + $0x1f0] sm:$0xff]   ;;  %vm11064_vm15 = vcmp.lt.s32.totalorder %v6704_v56, 4096 }
 0x15c   : > { %5761 = vmatprep.mubr.bf16.mxu0 %v6047_v63  ;;  %v6091_v56 = vld [vmem:[%s6456_s11 + $0x330] sm:$0xff]  }
 0x15d   : > { %v3910_v9 = vadd.f32 %v3909_v5, %v3655_v8  ;;  %v2380_v5 = vadd.s32 144, %v6540_v18 }
 0x15e   : > { %v6654_v14 = vpop.f32.mrb[8].mxu0 }
 0x15f   : > { %11994 = vst [vmem:[#allocation33_spill] sm:$0xff] %v6654_v14  ;;  %v3911_v16 = vadd.f32 %v3910_v9, %v3656_v13  ;;  %v6657_v17 = vpop.f32.mrb[9].mxu0  ;;  %v3659_v43 = vsel %vm2885_vm10, %v6654_v14, 0.0 }
 0x160   : > { %11995 = vst [vmem:[#allocation34_spill] sm:$0xff] %v6657_v17  ;;  %v3657_v22 = vsel %vm2883_vm8, %v6657_v17, 0.0  ;;  %v6668_v24 = vpop.f32.mrb[10].mxu0 }
 0x161   : > { %11997 = vst [vmem:[#allocation36_spill] sm:$0xff] %v6668_v24  ;;  %v3912_v27 = vadd.f32 %v3911_v16, %v3657_v22  ;;  %v6672_v30 = vpop.f32.mrb[11].mxu0  ;;  %v3660_v49 = vsel %vm2886_vm11, %v6668_v24, 0.0  ;;  %v6734_v16 = vadd.s32 %v6548_v23, %v2380_v5 }
 0x162   : > { %11998 = vst [vmem:[#allocation37_spill] sm:$0xff] %v6672_v30  ;;  %v3658_v36 = vsel %vm2884_vm9, %v6672_v30, 0.0 }
 0x163   : > { %v3913_v37 = vadd.f32 %v3912_v27, %v3658_v36  ;;  %5762 = vmatmul.mubr.bf16.gmra.mrb[116].mxu0 %v6048_v20  ;;  %12009 = vst [vmem:[#allocation48_spill] sm:$0xff] %v6734_v16  ;;  %v2382_v20 = vadd.s32 160, %v6540_v18  ;;  %v6084_v27 = vld [vmem:[%s6456_s11 + $0x2f8] sm:$0xff]  }
 0x164   : > { %5765 = vmatprep.mubr.bf16.mxu0 %v6049_v25  ;;  %5834 = vmatmul.mubr.bf16.gmra.mrb[60].mxu1 %v6084_v27 }
 0x165   : > { %v3914_v44 = vadd.f32 %v3913_v37, %v3659_v43  ;;  %v6748_v37 = vadd.s32 %v6548_v23, %v2381_v11  ;;  %v2383_v43 = vadd.s32 168, %v6540_v18  ;;  %v6085_v11 = vld [vmem:[%s6456_s11 + $0x300] sm:$0xff]  }
 0x166   : > { %v6698_v51 = vpop.f32.mrb[12].mxu0  ;;  %5837 = vmatprep.mubr.bf16.mxu1 %v6085_v11 }
 0x167   : > { %12002 = vst [vmem:[#allocation41_spill] sm:$0xff] %v6698_v51  ;;  %v3915_v53 = vadd.f32 %v3914_v44, %v3660_v49  ;;  %v6701_v55 = vpop.f32.mrb[13].mxu0  ;;  %v3663_v13 = vsel %vm11063_vm14, %v6698_v51, 0.0  ;;  %12012 = vst [vmem:[#allocation51_spill] sm:$0xff] %v6748_v37  ;;  %vm11070_vm14 = vcmp.lt.s32.totalorder %v6728_v12, 4096 }
 0x168   : > { %12003 = vst [vmem:[#allocation42_spill] sm:$0xff] %v6701_v55  ;;  %v3661_v61 = vsel %vm11066_vm12, %v6701_v55, 0.0  ;;  %v6712_v63 = vpop.f32.mrb[14].mxu0 }
 0x169   : > { %12005 = vst [vmem:[#allocation44_spill] sm:$0xff] %v6712_v63  ;;  %v3916_v2 = vadd.f32 %v3915_v53, %v3661_v61  ;;  %v6716_v4 = vpop.f32.mrb[15].mxu0  ;;  %v3664_v22 = vsel %vm11064_vm15, %v6712_v63, 0.0  ;;  %vm11067_vm15 = vcmp.lt.s32.totalorder %v6734_v16, 4096  ;;  %v6763_v53 = vadd.s32 %v6548_v23, %v2382_v20  ;;  %v6086_v20 = vld [vmem:[%s6456_s11 + $0x308] sm:$0xff]  }
 0x16a   : > { %12006 = vst [vmem:[#allocation45_spill] sm:$0xff] %v6716_v4  ;;  %v3662_v8 = vsel %vm11062_vm13, %v6716_v4, 0.0  ;;  %vm11065_vm13 = vcmp.lt.s32.totalorder %v6720_v6, 4096  ;;  %v2385_v61 = vadd.s32 184, %v6540_v18 }
 0x16b   : > { %v3917_v9 = vadd.f32 %v3916_v2, %v3662_v8  ;;  %5766 = vmatmul.mubr.bf16.gmra.mrb[120].mxu0 %v6050_v59  ;;  %12015 = vst [vmem:[#allocation54_spill] sm:$0xff] %v6763_v53  ;;  %v6777_v8 = vadd.s32 %v6548_v23, %v2384_v52  ;;  %vm11069_vm12 = vcmp.lt.s32.totalorder %v6763_v53, 4096  ;;  %v2388_v52 = vadd.s32 208, %v6540_v18 }
 0x16c   : > { %5769 = vmatprep.mubr.bf16.mxu0 %v6051_v0  ;;  %v6771_v0 = vadd.s32 %v6548_v23, %v2383_v43  ;;  %v6791_v27 = vadd.s32 %v6548_v23, %v2385_v61  ;;  %5838 = vmatmul.mubr.bf16.gmra.mrb[64].mxu1 %v6086_v20  ;;  %v2390_v20 = vadd.s32 224, %v6540_v18 }
 0x16d   : > { %v3918_v15 = vadd.f32 %v3917_v9, %v3663_v13  ;;  %12017 = vst [vmem:[#allocation56_spill] sm:$0xff] %v6777_v8  ;;  %v2386_v9 = vadd.s32 192, %v6540_v18 }
 0x16e   : > { %v6742_v25 = vpop.f32.mrb[16].mxu0  ;;  %12016 = vst [vmem:[#allocation55_spill] sm:$0xff] %v6771_v0  ;;  %12020 = vst [vmem:[#allocation59_spill] sm:$0xff] %v6791_v27 }
 0x16f   : > { %12010 = vst [vmem:[#allocation49_spill] sm:$0xff] %v6742_v25  ;;  %v3919_v31 = vadd.f32 %v3918_v15, %v3664_v22  ;;  %v6745_v36 = vpop.f32.mrb[17].mxu0  ;;  %v3667_v2 = vsel %vm11067_vm15, %v6742_v25, 0.0  ;;  %vm11079_vm15 = vcmp.lt.s32.totalorder %v6771_v0, 4096 }
 0x170   : > { %12011 = vst [vmem:[#allocation50_spill] sm:$0xff] %v6745_v36  ;;  %v3665_v44 = vsel %vm11065_vm13, %v6745_v36, 0.0  ;;  %v6756_v46 = vpop.f32.mrb[18].mxu0  ;;  %vm11068_vm13 = vcmp.lt.s32.totalorder %v6748_v37, 4096  ;;  %v6089_v37 = vld [vmem:[%s6456_s11 + $0x320] sm:$0xff]  }
 0x171   : > { %12013 = vst [vmem:[#allocation52_spill] sm:$0xff] %v6756_v46  ;;  %v3920_v48 = vadd.f32 %v3919_v31, %v3665_v44  ;;  %v6759_v49 = vpop.f32.mrb[19].mxu0  ;;  %v3668_v13 = vsel %vm11068_vm13, %v6756_v46, 0.0  ;;  %v2387_v31 = vadd.s32 200, %v6540_v18  ;;  %vm11072_vm13 = vcmp.lt.s32.totalorder %v6777_v8, 4096 }
 0x172   : > { %12014 = vst [vmem:[#allocation53_spill] sm:$0xff] %v6759_v49  ;;  %v3666_v59 = vsel %vm11070_vm14, %v6759_v49, 0.0  ;;  %v6847_v8 = vadd.s32 %v6548_v23, %v2390_v20 }
 0x173   : > { %v3921_v60 = vadd.f32 %v3920_v48, %v3666_v59  ;;  %5770 = vmatmul.mubr.bf16.gmra.mrb[124].mxu0 %v6052_v39  ;;  %v6805_v59 = vadd.s32 %v6548_v23, %v2386_v9  ;;  %v6819_v9 = vadd.s32 %v6548_v23, %v2388_v52  ;;  %v2391_v52 = vadd.s32 232, %v6540_v18 }
 0x174   : > { %12031 = vst [vmem:[#allocation70_spill] sm:$0xff] %v6847_v8 }
 0x175   : > { %v3922_v5 = vadd.f32 %v3921_v60, %v3667_v2  ;;  %12023 = vst [vmem:[#allocation62_spill] sm:$0xff] %v6805_v59  ;;  %v2389_v2 = vadd.s32 216, %v6540_v18  ;;  %12025 = vst [vmem:[#allocation64_spill] sm:$0xff] %v6819_v9  ;;  %vm11076_vm14 = vcmp.lt.s32.totalorder %v6805_v59, 4096  ;;  %v6855_v53 = vadd.s32 %v6548_v23, %v2391_v52  ;;  %v6090_v52 = vld [vmem:[%s6456_s11 + $0x328] sm:$0xff]  }
 0x176   : > { %v6785_v15 = vpop.f32.mrb[20].mxu0 }
 0x177   : > { %12018 = vst [vmem:[#allocation57_spill] sm:$0xff] %v6785_v15  ;;  %v3923_v21 = vadd.f32 %v3922_v5, %v3668_v13  ;;  %v6788_v22 = vpop.f32.mrb[21].mxu0  ;;  %v6813_v5 = vadd.s32 %v6548_v23, %v2387_v31  ;;  %v3671_v11 = vsel %vm11072_vm13, %v6785_v15, 0.0  ;;  %v6088_v31 = vld [vmem:[%s6456_s11 + $0x318] sm:$0xff]   ;;  %12032 = vst [vmem:[#allocation71_spill] sm:$0xff] %v6855_v53 }
 0x178   : > { %12019 = vst [vmem:[#allocation58_spill] sm:$0xff] %v6788_v22  ;;  %v3669_v39 = vsel %vm11069_vm12, %v6788_v22, 0.0  ;;  %v6798_v43 = vpop.f32.mrb[22].mxu0  ;;  %vm11074_vm12 = vcmp.lt.s32.totalorder %v6791_v27, 4096 }
 0x179   : > { %12021 = vst [vmem:[#allocation60_spill] sm:$0xff] %v6798_v43  ;;  %v3924_v44 = vadd.f32 %v3923_v21, %v3669_v39  ;;  %v6801_v48 = vpop.f32.mrb[23].mxu0  ;;  %12024 = vst [vmem:[#allocation63_spill] sm:$0xff] %v6813_v5  ;;  %v6087_v21 = vld [vmem:[%s6456_s11 + $0x310] sm:$0xff]   ;;  %v3672_v39 = vsel %vm11074_vm12, %v6798_v43, 0.0  ;;  %vm11091_vm13 = vcmp.lt.s32.totalorder %v6813_v5, 4096 }
 0x17a   : > { %12022 = vst [vmem:[#allocation61_spill] sm:$0xff] %v6801_v48  ;;  %v3670_v60 = vsel %vm11079_vm15, %v6801_v48, 0.0  ;;  %5841 = vmatprep.mubr.bf16.mxu1 %v6087_v21  ;;  %vm11084_vm12 = vcmp.lt.s32.totalorder %v6819_v9, 4096  ;;  %vm11088_vm15 = vcmp.lt.s32.totalorder %v6847_v8, 4096  ;;  %v2394_v5 = vadd.s32 256, %v6540_v18 }
 0x17b   : > { %v3925_v61 = vadd.f32 %v3924_v44, %v3670_v60  ;;  %5842 = vmatmul.mubr.bf16.gmra.mrb[68].mxu1 %v6088_v31  ;;  %v2393_v31 = vadd.s32 248, %v6540_v18 }
 0x17c   : > { %5845 = vmatprep.mubr.bf16.mxu1 %v6089_v37  ;;  %v6889_v9 = vadd.s32 %v6548_v23, %v2394_v5 }
 0x17d   : > { %v3926_v13 = vadd.f32 %v3925_v61, %v3671_v11  ;;  %v6833_v61 = vadd.s32 %v6548_v23, %v2389_v2  ;;  %v2392_v2 = vadd.s32 240, %v6540_v18 }
 0x17e   : > { %v6827_v44 = vpop.f32.mrb[24].mxu0  ;;  %12039 = vst [vmem:[#allocation78_spill] sm:$0xff] %v6889_v9 }
 0x17f   : > { %12026 = vst [vmem:[#allocation65_spill] sm:$0xff] %v6827_v44  ;;  %v3927_v60 = vadd.f32 %v3926_v13, %v3672_v39  ;;  %v6830_v0 = vpop.f32.mrb[25].mxu0  ;;  %12028 = vst [vmem:[#allocation67_spill] sm:$0xff] %v6833_v61  ;;  %v6861_v20 = vadd.s32 %v6548_v23, %v2392_v2  ;;  %v2395_v2 = vadd.s32 264, %v6540_v18 }
 0x180   : > { %12027 = vst [vmem:[#allocation66_spill] sm:$0xff] %v6830_v0  ;;  %v3673_v11 = vsel %vm11076_vm14, %v6830_v0, 0.0  ;;  %v6840_v27 = vpop.f32.mrb[26].mxu0  ;;  %vm11086_vm14 = vcmp.lt.s32.totalorder %v6833_v61, 4096 }
 0x181   : > { %12029 = vst [vmem:[#allocation68_spill] sm:$0xff] %v6840_v27  ;;  %v3928_v13 = vadd.f32 %v3927_v60, %v3673_v11  ;;  %v6843_v39 = vpop.f32.mrb[27].mxu0  ;;  %v3675_v60 = vsel %vm11084_vm12, %v6827_v44, 0.0  ;;  %12033 = vst [vmem:[#allocation72_spill] sm:$0xff] %v6861_v20  ;;  %vm11103_vm12 = vcmp.lt.s32.totalorder %v6855_v53, 4096  ;;  %v6897_v6 = vadd.s32 %v6548_v23, %v2395_v2  ;;  %v6092_v2 = vld [vmem:[%s6456_s11 + $0x338] sm:$0xff]  }
 0x182   : > { %12030 = vst [vmem:[#allocation69_spill] sm:$0xff] %v6843_v39  ;;  %v3674_v21 = vsel %vm11091_vm13, %v6843_v39, 0.0  ;;  %vm11100_vm13 = vcmp.lt.s32.totalorder %v6889_v9, 4096  ;;  %v2398_v53 = vadd.s32 288, %v6540_v18  ;;  %v2447_v44 = vadd.s32 680, %v6540_v18 }
 0x183   : > { %v3929_v59 = vadd.f32 %v3928_v13, %v3674_v21  ;;  %v3676_v13 = vsel %vm11086_vm14, %v6840_v27, 0.0  ;;  %5846 = vmatmul.mubr.bf16.gmra.mrb[72].mxu1 %v6090_v52  ;;  %vm11096_vm14 = vcmp.lt.s32.totalorder %v6861_v20, 4096  ;;  %v2397_v52 = vadd.s32 280, %v6540_v18  ;;  %12040 = vst [vmem:[#allocation79_spill] sm:$0xff] %v6897_v6 }
 0x184   : > { %5849 = vmatprep.mubr.bf16.mxu1 %v6091_v56  ;;  %v6931_v20 = vadd.s32 %v6548_v23, %v2398_v53 }
 0x185   : > { %v3930_v11 = vadd.f32 %v3929_v59, %v3675_v60  ;;  %v6875_v59 = vadd.s32 %v6548_v23, %v2393_v31  ;;  %v2396_v31 = vadd.s32 272, %v6540_v18 }
 0x186   : > { %v6869_v21 = vpop.f32.mrb[28].mxu0  ;;  %12047 = vst [vmem:[#allocation86_spill] sm:$0xff] %v6931_v20 }
 0x187   : > { %12034 = vst [vmem:[#allocation73_spill] sm:$0xff] %v6869_v21  ;;  %v3931_v16 = vadd.f32 %v3930_v11, %v3676_v13  ;;  %v6872_v12 = vpop.f32.mrb[29].mxu0  ;;  %12036 = vst [vmem:[#allocation75_spill] sm:$0xff] %v6875_v59  ;;  %v6903_v5 = vadd.s32 %v6548_v23, %v2396_v31  ;;  %v2399_v31 = vadd.s32 296, %v6540_v18 }
 0x188   : > { %12035 = vst [vmem:[#allocation74_spill] sm:$0xff] %v6872_v12  ;;  %v3677_v60 = vsel %vm11088_vm15, %v6872_v12, 0.0  ;;  %v6882_v61 = vpop.f32.mrb[30].mxu0  ;;  %vm11098_vm15 = vcmp.lt.s32.totalorder %v6875_v59, 4096 }
 0x189   : > { %12037 = vst [vmem:[#allocation76_spill] sm:$0xff] %v6882_v61  ;;  %v3932_v11 = vadd.f32 %v3931_v16, %v3677_v60  ;;  %v6885_v13 = vpop.f32.mrb[31].mxu0  ;;  %v3679_v16 = vsel %vm11096_vm14, %v6869_v21, 0.0  ;;  %12041 = vst [vmem:[#allocation80_spill] sm:$0xff] %v6903_v5  ;;  %vm11115_vm14 = vcmp.lt.s32.totalorder %v6897_v6, 4096  ;;  %v6939_v33 = vadd.s32 %v6548_v23, %v2399_v31  ;;  %v6094_v31 = vld [vmem:[%s6456_s11 + $0x348] sm:$0xff]  }
 0x18a   : > { %12038 = vst [vmem:[#allocation77_spill] sm:$0xff] %v6885_v13  ;;  %v3678_v37 = vsel %vm11103_vm12, %v6885_v13, 0.0  ;;  %vm11112_vm12 = vcmp.lt.s32.totalorder %v6931_v20, 4096  ;;  %v2402_v6 = vadd.s32 320, %v6540_v18  ;;  %v2443_v21 = vadd.s32 648, %v6540_v18 }
 0x18b   : > { %v3933_v8 = vadd.f32 %v3932_v11, %v3678_v37  ;;  %v3680_v11 = vsel %vm11098_vm15, %v6882_v61, 0.0  ;;  %5850 = vmatmul.mubr.bf16.gmra.mrb[76].mxu1 %v6092_v2  ;;  %vm11108_vm15 = vcmp.lt.s32.totalorder %v6903_v5, 4096  ;;  %v2401_v2 = vadd.s32 312, %v6540_v18  ;;  %12048 = vst [vmem:[#allocation87_spill] sm:$0xff] %v6939_v33 }
 0x18c   : > { %5853 = vmatprep.mubr.bf16.mxu1 %v6093_v19  ;;  %v6973_v5 = vadd.s32 %v6548_v23, %v2402_v6 }
 0x18d   : > { %v3934_v60 = vadd.f32 %v3933_v8, %v3679_v16  ;;  %v6917_v8 = vadd.s32 %v6548_v23, %v2397_v52  ;;  %v2400_v52 = vadd.s32 304, %v6540_v18 }
 0x18e   : > { %v6911_v37 = vpop.f32.mrb[32].mxu0  ;;  %12055 = vst [vmem:[#allocation94_spill] sm:$0xff] %v6973_v5 }
 0x18f   : > { %12042 = vst [vmem:[#allocation81_spill] sm:$0xff] %v6911_v37  ;;  %v3935_v45 = vadd.f32 %v3934_v60, %v3680_v11  ;;  %v6914_v41 = vpop.f32.mrb[33].mxu0  ;;  %12044 = vst [vmem:[#allocation83_spill] sm:$0xff] %v6917_v8  ;;  %v6945_v53 = vadd.s32 %v6548_v23, %v2400_v52  ;;  %v2403_v52 = vadd.s32 328, %v6540_v18 }
 0x190   : > { %12043 = vst [vmem:[#allocation82_spill] sm:$0xff] %v6914_v41  ;;  %v3681_v16 = vsel %vm11100_vm13, %v6914_v41, 0.0  ;;  %v6924_v59 = vpop.f32.mrb[34].mxu0  ;;  %vm11110_vm13 = vcmp.lt.s32.totalorder %v6917_v8, 4096 }
 0x191   : > { %12045 = vst [vmem:[#allocation84_spill] sm:$0xff] %v6924_v59  ;;  %v3936_v60 = vadd.f32 %v3935_v45, %v3681_v16  ;;  %v6927_v11 = vpop.f32.mrb[35].mxu0  ;;  %v3683_v45 = vsel %vm11108_vm15, %v6911_v37, 0.0  ;;  %12049 = vst [vmem:[#allocation88_spill] sm:$0xff] %v6945_v53  ;;  %vm11127_vm15 = vcmp.lt.s32.totalorder %v6939_v33, 4096  ;;  %v6981_v3 = vadd.s32 %v6548_v23, %v2403_v52  ;;  %v6096_v52 = vld [vmem:[%s6456_s11 + $0x358] sm:$0xff]  }
 0x192   : > { %12046 = vst [vmem:[#allocation85_spill] sm:$0xff] %v6927_v11  ;;  %v3682_v56 = vsel %vm11115_vm14, %v6927_v11, 0.0  ;;  %vm11124_vm14 = vcmp.lt.s32.totalorder %v6973_v5, 4096  ;;  %v2406_v33 = vadd.s32 352, %v6540_v18  ;;  %v2439_v37 = vadd.s32 616, %v6540_v18 }
 0x193   : > { %v3937_v9 = vadd.f32 %v3936_v60, %v3682_v56  ;;  %v3684_v60 = vsel %vm11110_vm13, %v6924_v59, 0.0  ;;  %5854 = vmatmul.mubr.bf16.gmra.mrb[80].mxu1 %v6094_v31  ;;  %vm11120_vm13 = vcmp.lt.s32.totalorder %v6945_v53, 4096  ;;  %v2405_v31 = vadd.s32 344, %v6540_v18  ;;  %12056 = vst [vmem:[#allocation95_spill] sm:$0xff] %v6981_v3 }
 0x194   : > { %5857 = vmatprep.mubr.bf16.mxu1 %v6095_v58  ;;  %v7015_v53 = vadd.s32 %v6548_v23, %v2406_v33 }
 0x195   : > { %v3938_v16 = vadd.f32 %v3937_v9, %v3683_v45  ;;  %v6959_v9 = vadd.s32 %v6548_v23, %v2401_v2  ;;  %v2404_v2 = vadd.s32 336, %v6540_v18 }
 0x196   : > { %v6953_v56 = vpop.f32.mrb[36].mxu0  ;;  %12063 = vst [vmem:[#allocation102_spill] sm:$0xff] %v7015_v53 }
 0x197   : > { %12050 = vst [vmem:[#allocation89_spill] sm:$0xff] %v6953_v56  ;;  %v3939_v10 = vadd.f32 %v3938_v16, %v3684_v60  ;;  %v6956_v7 = vpop.f32.mrb[37].mxu0  ;;  %12052 = vst [vmem:[#allocation91_spill] sm:$0xff] %v6959_v9  ;;  %v6987_v6 = vadd.s32 %v6548_v23, %v2404_v2  ;;  %v2407_v2 = vadd.s32 360, %v6540_v18 }
 0x198   : > { %12051 = vst [vmem:[#allocation90_spill] sm:$0xff] %v6956_v7  ;;  %v3685_v45 = vsel %vm11112_vm12, %v6956_v7, 0.0  ;;  %v6966_v8 = vpop.f32.mrb[38].mxu0  ;;  %vm11122_vm12 = vcmp.lt.s32.totalorder %v6959_v9, 4096 }
 0x199   : > { %12053 = vst [vmem:[#allocation92_spill] sm:$0xff] %v6966_v8  ;;  %v3940_v16 = vadd.f32 %v3939_v10, %v3685_v45  ;;  %v6969_v60 = vpop.f32.mrb[39].mxu0  ;;  %v3687_v10 = vsel %vm11120_vm13, %v6953_v56, 0.0  ;;  %12057 = vst [vmem:[#allocation96_spill] sm:$0xff] %v6987_v6  ;;  %vm11139_vm13 = vcmp.lt.s32.totalorder %v6981_v3, 4096  ;;  %v7023_v42 = vadd.s32 %v6548_v23, %v2407_v2  ;;  %v6098_v2 = vld [vmem:[%s6456_s11 + $0x368] sm:$0xff]  }
 0x19a   : > { %12054 = vst [vmem:[#allocation93_spill] sm:$0xff] %v6969_v60  ;;  %v3686_v19 = vsel %vm11127_vm15, %v6969_v60, 0.0  ;;  %vm11136_vm15 = vcmp.lt.s32.totalorder %v7015_v53, 4096  ;;  %v2410_v3 = vadd.s32 384, %v6540_v18  ;;  %v2435_v56 = vadd.s32 584, %v6540_v18 }
 0x19b   : > { %v3941_v20 = vadd.f32 %v3940_v16, %v3686_v19  ;;  %v3688_v16 = vsel %vm11122_vm12, %v6966_v8, 0.0  ;;  %5858 = vmatmul.mubr.bf16.gmra.mrb[84].mxu1 %v6096_v52  ;;  %vm11132_vm12 = vcmp.lt.s32.totalorder %v6987_v6, 4096  ;;  %v2409_v52 = vadd.s32 376, %v6540_v18  ;;  %12064 = vst [vmem:[#allocation103_spill] sm:$0xff] %v7023_v42 }
 0x19c   : > { %5861 = vmatprep.mubr.bf16.mxu1 %v6097_v35  ;;  %v7057_v6 = vadd.s32 %v6548_v23, %v2410_v3 }
 0x19d   : > { %v3942_v45 = vadd.f32 %v3941_v20, %v3687_v10  ;;  %v7001_v20 = vadd.s32 %v6548_v23, %v2405_v31  ;;  %v2408_v31 = vadd.s32 368, %v6540_v18 }
 0x19e   : > { %v6995_v19 = vpop.f32.mrb[40].mxu0  ;;  %12071 = vst [vmem:[#allocation110_spill] sm:$0xff] %v7057_v6 }
 0x19f   : > { %12058 = vst [vmem:[#allocation97_spill] sm:$0xff] %v6995_v19  ;;  %v3943_v50 = vadd.f32 %v3942_v45, %v3688_v16  ;;  %v6998_v47 = vpop.f32.mrb[41].mxu0  ;;  %12060 = vst [vmem:[#allocation99_spill] sm:$0xff] %v7001_v20  ;;  %v7029_v33 = vadd.s32 %v6548_v23, %v2408_v31  ;;  %v2411_v31 = vadd.s32 392, %v6540_v18 }
 0x1a0   : > { %12059 = vst [vmem:[#allocation98_spill] sm:$0xff] %v6998_v47  ;;  %v3689_v10 = vsel %vm11124_vm14, %v6998_v47, 0.0  ;;  %v7008_v9 = vpop.f32.mrb[42].mxu0  ;;  %vm11134_vm14 = vcmp.lt.s32.totalorder %v7001_v20, 4096 }
 0x1a1   : > { %12061 = vst [vmem:[#allocation100_spill] sm:$0xff] %v7008_v9  ;;  %v3944_v45 = vadd.f32 %v3943_v50, %v3689_v10  ;;  %v7011_v16 = vpop.f32.mrb[43].mxu0  ;;  %v3691_v50 = vsel %vm11132_vm12, %v6995_v19, 0.0  ;;  %12065 = vst [vmem:[#allocation104_spill] sm:$0xff] %v7029_v33  ;;  %vm11155_vm12 = vcmp.lt.s32.totalorder %v7023_v42, 4096  ;;  %v7065_v26 = vadd.s32 %v6548_v23, %v2411_v31  ;;  %v6100_v31 = vld [vmem:[%s6456_s11 + $0x378] sm:$0xff]  }
 0x1a2   : > { %12062 = vst [vmem:[#allocation101_spill] sm:$0xff] %v7011_v16  ;;  %v3690_v58 = vsel %vm11139_vm13, %v7011_v16, 0.0  ;;  %vm11151_vm13 = vcmp.lt.s32.totalorder %v7057_v6, 4096  ;;  %v2414_v42 = vadd.s32 416, %v6540_v18  ;;  %v2431_v19 = vadd.s32 552, %v6540_v18 }
 0x1a3   : > { %v3945_v5 = vadd.f32 %v3944_v45, %v3690_v58  ;;  %v3692_v45 = vsel %vm11134_vm14, %v7008_v9, 0.0  ;;  %5862 = vmatmul.mubr.bf16.gmra.mrb[88].mxu1 %v6098_v2  ;;  %vm11147_vm14 = vcmp.lt.s32.totalorder %v7029_v33, 4096  ;;  %v2413_v2 = vadd.s32 408, %v6540_v18  ;;  %12072 = vst [vmem:[#allocation111_spill] sm:$0xff] %v7065_v26 }
 0x1a4   : > { %v7099_v33 = vadd.s32 %v6548_v23, %v2414_v42 }
 0x1a5   : > { %v3946_v10 = vadd.f32 %v3945_v5, %v3691_v50  ;;  %v7043_v5 = vadd.s32 %v6548_v23, %v2409_v52  ;;  %v2412_v52 = vadd.s32 400, %v6540_v18 }
 0x1a6   : > { %v7037_v58 = vpop.f32.mrb[44].mxu0  ;;  %12079 = vst [vmem:[#allocation118_spill] sm:$0xff] %v7099_v33 }
 0x1a7   : > { %12066 = vst [vmem:[#allocation105_spill] sm:$0xff] %v7037_v58  ;;  %v3947_v29 = vadd.f32 %v3946_v10, %v3692_v45  ;;  %v7040_v28 = vpop.f32.mrb[45].mxu0  ;;  %12068 = vst [vmem:[#allocation107_spill] sm:$0xff] %v7043_v5  ;;  %v7071_v3 = vadd.s32 %v6548_v23, %v2412_v52  ;;  %v2415_v52 = vadd.s32 424, %v6540_v18 }
 0x1a8   : > { %12067 = vst [vmem:[#allocation106_spill] sm:$0xff] %v7040_v28  ;;  %v3693_v50 = vsel %vm11136_vm15, %v7040_v28, 0.0  ;;  %v7050_v20 = vpop.f32.mrb[46].mxu0  ;;  %vm11149_vm15 = vcmp.lt.s32.totalorder %v7043_v5, 4096 }
 0x1a9   : > { %12069 = vst [vmem:[#allocation108_spill] sm:$0xff] %v7050_v20  ;;  %v3948_v10 = vadd.f32 %v3947_v29, %v3693_v50  ;;  %v7053_v45 = vpop.f32.mrb[47].mxu0  ;;  %v3695_v29 = vsel %vm11147_vm14, %v7037_v58, 0.0  ;;  %12073 = vst [vmem:[#allocation112_spill] sm:$0xff] %v7071_v3  ;;  %vm11171_vm14 = vcmp.lt.s32.totalorder %v7065_v26, 4096  ;;  %v2418_v26 = vadd.s32 448, %v6540_v18 }
 0x1aa   : > { %12070 = vst [vmem:[#allocation109_spill] sm:$0xff] %v7053_v45  ;;  %v3694_v35 = vsel %vm11155_vm12, %v7053_v45, 0.0  ;;  %v6099_v45 = vld [vmem:[%s6456_s11 + $0x370] sm:$0xff]   ;;  %vm11167_vm12 = vcmp.lt.s32.totalorder %v7099_v33, 4096 }
 0x1ab   : > { %v3949_v53 = vadd.f32 %v3948_v10, %v3694_v35  ;;  %v3696_v10 = vsel %vm11149_vm15, %v7050_v20, 0.0  ;;  %5865 = vmatprep.mubr.bf16.mxu1 %v6099_v45  ;;  %vm11163_vm15 = vcmp.lt.s32.totalorder %v7071_v3, 4096  ;;  %v7141_v3 = vadd.s32 %v6548_v23, %v2418_v26 }
 0x1ac   : > { %5866 = vmatmul.mubr.bf16.gmra.mrb[92].mxu1 %v6100_v31  ;;  %v2417_v31 = vadd.s32 440, %v6540_v18 }
 0x1ad   : > { %v3950_v50 = vadd.f32 %v3949_v53, %v3695_v29  ;;  %v7085_v53 = vadd.s32 %v6548_v23, %v2413_v2  ;;  %v2416_v2 = vadd.s32 432, %v6540_v18  ;;  %12087 = vst [vmem:[#allocation126_spill] sm:$0xff] %v7141_v3 }
 0x1ae   : > { %v7079_v35 = vpop.f32.mrb[48].mxu0 }
 0x1af   : > { %12074 = vst [vmem:[#allocation113_spill] sm:$0xff] %v7079_v35  ;;  %v3951_v28 = vadd.f32 %v3950_v50, %v3696_v10  ;;  %v7082_v9 = vpop.f32.mrb[49].mxu0  ;;  %12076 = vst [vmem:[#allocation115_spill] sm:$0xff] %v7085_v53  ;;  %v7113_v42 = vadd.s32 %v6548_v23, %v2416_v2  ;;  %v2419_v2 = vadd.s32 456, %v6540_v18 }
 0x1b0   : > { %12075 = vst [vmem:[#allocation114_spill] sm:$0xff] %v7082_v9  ;;  %v3697_v29 = vsel %vm11151_vm13, %v7082_v9, 0.0  ;;  %v7092_v5 = vpop.f32.mrb[50].mxu0  ;;  %vm11165_vm13 = vcmp.lt.s32.totalorder %v7085_v53, 4096  ;;  %v7107_v9 = vadd.s32 %v6548_v23, %v2415_v52  ;;  %v6102_v52 = vld [vmem:[%s6456_s11 + $0x388] sm:$0xff]  }
 0x1b1   : > { %12077 = vst [vmem:[#allocation116_spill] sm:$0xff] %v7092_v5  ;;  %v3952_v50 = vadd.f32 %v3951_v28, %v3697_v29  ;;  %v7095_v10 = vpop.f32.mrb[51].mxu0  ;;  %v3699_v28 = vsel %vm11163_vm15, %v7079_v35, 0.0  ;;  %12081 = vst [vmem:[#allocation120_spill] sm:$0xff] %v7113_v42 }
 0x1b2   : > { %12078 = vst [vmem:[#allocation117_spill] sm:$0xff] %v7095_v10  ;;  %v3698_v45 = vsel %vm11171_vm14, %v7095_v10, 0.0  ;;  %12080 = vst [vmem:[#allocation119_spill] sm:$0xff] %v7107_v9  ;;  %v6101_v10 = vld [vmem:[%s6456_s11 + $0x380] sm:$0xff]   ;;  %vm11187_vm15 = vcmp.lt.s32.totalorder %v7107_v9, 4096  ;;  %vm11183_vm14 = vcmp.lt.s32.totalorder %v7141_v3, 4096 }
 0x1b3   : > { %v3953_v6 = vadd.f32 %v3952_v50, %v3698_v45  ;;  %v3700_v50 = vsel %vm11165_vm13, %v7092_v5, 0.0  ;;  %5869 = vmatprep.mubr.bf16.mxu1 %v6101_v10  ;;  %vm11179_vm13 = vcmp.lt.s32.totalorder %v7113_v42, 4096  ;;  %v2422_v9 = vadd.s32 480, %v6540_v18 }
 0x1b4   : > { %5870 = vmatmul.mubr.bf16.gmra.mrb[96].mxu1 %v6102_v52  ;;  %v2421_v52 = vadd.s32 472, %v6540_v18 }
 0x1b5   : > { %v3954_v29 = vadd.f32 %v3953_v6, %v3699_v28  ;;  %v7127_v6 = vadd.s32 %v6548_v23, %v2417_v31  ;;  %v2420_v31 = vadd.s32 464, %v6540_v18  ;;  %v7183_v42 = vadd.s32 %v6548_v23, %v2422_v9 }
 0x1b6   : > { %v7121_v45 = vpop.f32.mrb[52].mxu0 }
 0x1b7   : > { %12082 = vst [vmem:[#allocation121_spill] sm:$0xff] %v7121_v45  ;;  %v3955_v20 = vadd.f32 %v3954_v29, %v3700_v50  ;;  %v7124_v58 = vpop.f32.mrb[53].mxu0  ;;  %12084 = vst [vmem:[#allocation123_spill] sm:$0xff] %v7127_v6  ;;  %v7155_v26 = vadd.s32 %v6548_v23, %v2420_v31  ;;  %v2423_v31 = vadd.s32 488, %v6540_v18 }
 0x1b8   : > { %12083 = vst [vmem:[#allocation122_spill] sm:$0xff] %v7124_v58  ;;  %v3701_v28 = vsel %vm11167_vm12, %v7124_v58, 0.0  ;;  %v7134_v53 = vpop.f32.mrb[54].mxu0  ;;  %vm11181_vm12 = vcmp.lt.s32.totalorder %v7127_v6, 4096  ;;  %v7149_v58 = vadd.s32 %v6548_v23, %v2419_v2  ;;  %v6104_v2 = vld [vmem:[%s6456_s11 + $0x398] sm:$0xff]   ;;  %12095 = vst [vmem:[#allocation134_spill] sm:$0xff] %v7183_v42 }
 0x1b9   : > { %12085 = vst [vmem:[#allocation124_spill] sm:$0xff] %v7134_v53  ;;  %v3956_v29 = vadd.f32 %v3955_v20, %v3701_v28  ;;  %v7137_v50 = vpop.f32.mrb[55].mxu0  ;;  %v3703_v20 = vsel %vm11179_vm13, %v7121_v45, 0.0  ;;  %12089 = vst [vmem:[#allocation128_spill] sm:$0xff] %v7155_v26 }
 0x1ba   : > { %12086 = vst [vmem:[#allocation125_spill] sm:$0xff] %v7137_v50  ;;  %v3702_v10 = vsel %vm11187_vm15, %v7137_v50, 0.0  ;;  %12088 = vst [vmem:[#allocation127_spill] sm:$0xff] %v7149_v58  ;;  %v6103_v50 = vld [vmem:[%s6456_s11 + $0x390] sm:$0xff]   ;;  %vm11321_vm13 = vcmp.lt.s32.totalorder %v7149_v58, 4096  ;;  %vm11199_vm15 = vcmp.lt.s32.totalorder %v7183_v42, 4096 }
 0x1bb   : > { %v3957_v33 = vadd.f32 %v3956_v29, %v3702_v10  ;;  %v3704_v29 = vsel %vm11181_vm12, %v7134_v53, 0.0  ;;  %5873 = vmatprep.mubr.bf16.mxu1 %v6103_v50  ;;  %vm11195_vm12 = vcmp.lt.s32.totalorder %v7155_v26, 4096  ;;  %v2426_v58 = vadd.s32 512, %v6540_v18 }
 0x1bc   : > { %5874 = vmatmul.mubr.bf16.gmra.mrb[100].mxu1 %v6104_v2  ;;  %v2425_v2 = vadd.s32 504, %v6540_v18 }
 0x1bd   : > { %v3958_v28 = vadd.f32 %v3957_v33, %v3703_v20  ;;  %v7169_v33 = vadd.s32 %v6548_v23, %v2421_v52  ;;  %v2424_v52 = vadd.s32 496, %v6540_v18  ;;  %v7225_v26 = vadd.s32 %v6548_v23, %v2426_v58 }
 0x1be   : > { %v7163_v10 = vpop.f32.mrb[56].mxu0 }
 0x1bf   : > { %12090 = vst [vmem:[#allocation129_spill] sm:$0xff] %v7163_v10  ;;  %v3959_v5 = vadd.f32 %v3958_v28, %v3704_v29  ;;  %v7166_v35 = vpop.f32.mrb[57].mxu0  ;;  %12092 = vst [vmem:[#allocation131_spill] sm:$0xff] %v7169_v33  ;;  %v7197_v9 = vadd.s32 %v6548_v23, %v2424_v52  ;;  %v2427_v52 = vadd.s32 520, %v6540_v18 }
 0x1c0   : > { %12091 = vst [vmem:[#allocation130_spill] sm:$0xff] %v7166_v35  ;;  %v3705_v20 = vsel %vm11183_vm14, %v7166_v35, 0.0  ;;  %v7176_v6 = vpop.f32.mrb[58].mxu0  ;;  %vm11197_vm14 = vcmp.lt.s32.totalorder %v7169_v33, 4096  ;;  %v7191_v35 = vadd.s32 %v6548_v23, %v2423_v31  ;;  %v6106_v31 = vld [vmem:[%s6456_s11 + $0x3a8] sm:$0xff]   ;;  %12103 = vst [vmem:[#allocation142_spill] sm:$0xff] %v7225_v26 }
 0x1c1   : > { %12093 = vst [vmem:[#allocation132_spill] sm:$0xff] %v7176_v6  ;;  %v3960_v28 = vadd.f32 %v3959_v5, %v3705_v20  ;;  %v7179_v29 = vpop.f32.mrb[59].mxu0  ;;  %v3707_v5 = vsel %vm11195_vm12, %v7163_v10, 0.0  ;;  %12097 = vst [vmem:[#allocation136_spill] sm:$0xff] %v7197_v9 }
 0x1c2   : > { %12094 = vst [vmem:[#allocation133_spill] sm:$0xff] %v7179_v29  ;;  %v3706_v50 = vsel %vm11321_vm13, %v7179_v29, 0.0  ;;  %12096 = vst [vmem:[#allocation135_spill] sm:$0xff] %v7191_v35  ;;  %v6105_v29 = vld [vmem:[%s6456_s11 + $0x3a0] sm:$0xff]   ;;  %vm11206_vm12 = vcmp.lt.s32.totalorder %v7191_v35, 4096 }
 0x1c3   : > { %v3961_v3 = vadd.f32 %v3960_v28, %v3706_v50  ;;  %v3708_v28 = vsel %vm11197_vm14, %v7176_v6, 0.0  ;;  %5877 = vmatprep.mubr.bf16.mxu1 %v6105_v29  ;;  %vm11214_vm14 = vcmp.lt.s32.totalorder %v7197_v9, 4096 }
 0x1c4   : > { %5878 = vmatmul.mubr.bf16.gmra.mrb[104].mxu1 %v6106_v31  ;;  %v2429_v31 = vadd.s32 536, %v6540_v18 }
 0x1c5   : > { %v3962_v20 = vadd.f32 %v3961_v3, %v3707_v5  ;;  %v7211_v3 = vadd.s32 %v6548_v23, %v2425_v2  ;;  %v2428_v2 = vadd.s32 528, %v6540_v18 }
 0x1c6   : > { %v7205_v50 = vpop.f32.mrb[60].mxu0 }
 0x1c7   : > { %12098 = vst [vmem:[#allocation137_spill] sm:$0xff] %v7205_v50  ;;  %v3963_v53 = vadd.f32 %v3962_v20, %v3708_v28  ;;  %v7208_v45 = vpop.f32.mrb[61].mxu0  ;;  %12100 = vst [vmem:[#allocation139_spill] sm:$0xff] %v7211_v3  ;;  %v3711_v58 = vsel %vm11214_vm14, %v7205_v50, 0.0  ;;  %v7243_v35 = vadd.s32 %v6548_v23, %v2428_v2  ;;  %v6108_v50 = vld [vmem:[%s6456_s11 + $0x3b8] sm:$0xff]   ;;  %v7261_v2 = vadd.s32 %v6548_v23, %v2429_v31 }
 0x1c8   : > { %12099 = vst [vmem:[#allocation138_spill] sm:$0xff] %v7208_v45  ;;  %v3709_v5 = vsel %vm11199_vm15, %v7208_v45, 0.0  ;;  %v7218_v33 = vpop.f32.mrb[62].mxu0  ;;  %vm11220_vm15 = vcmp.lt.s32.totalorder %v7211_v3, 4096  ;;  %v2432_v31 = vadd.s32 560, %v6540_v18 }
 0x1c9   : > { %12101 = vst [vmem:[#allocation140_spill] sm:$0xff] %v7218_v33  ;;  %v3964_v20 = vadd.f32 %v3963_v53, %v3709_v5  ;;  %v7221_v28 = vpop.f32.mrb[63].mxu0  ;;  %v7233_v53 = vadd.s32 %v6548_v23, %v2427_v52  ;;  %v7235_v5 = vpop.f32.mrb[0].mxu1  ;;  %12107 = vst [vmem:[#allocation146_spill] sm:$0xff] %v7243_v35  ;;  %v6107_v52 = vld [vmem:[%s6456_s11 + $0x3b0] sm:$0xff]  }
 0x1ca   : > { %12102 = vst [vmem:[#allocation141_spill] sm:$0xff] %v7221_v28  ;;  %v3710_v29 = vsel %vm11206_vm12, %v7221_v28, 0.0  ;;  %12105 = vst [vmem:[#allocation144_spill] sm:$0xff] %v7235_v5  ;;  %v7240_v45 = vpop.f32.mrb[1].mxu1  ;;  %vm11223_vm12 = vcmp.lt.s32.totalorder %v7225_v26, 4096  ;;  %v3712_v28 = vsel %vm11220_vm15, %v7218_v33, 0.0  ;;  %5881 = vmatprep.mubr.bf16.mxu1 %v6107_v52 }
 0x1cb   : > { %v3965_v42 = vadd.f32 %v3964_v20, %v3710_v29  ;;  %12104 = vst [vmem:[#allocation143_spill] sm:$0xff] %v7233_v53  ;;  %12106 = vst [vmem:[#allocation145_spill] sm:$0xff] %v7240_v45  ;;  %v2430_v20 = vadd.s32 544, %v6540_v18  ;;  %v7247_v29 = vpop.f32.mrb[2].mxu1  ;;  %vm11230_vm14 = vcmp.lt.s32.totalorder %v7233_v53, 4096  ;;  %vm11238_vm15 = vcmp.lt.s32.totalorder %v7243_v35, 4096 }
 0x1cc   : > { %12108 = vst [vmem:[#allocation147_spill] sm:$0xff] %v7247_v29  ;;  %v7255_v9 = vpop.f32.mrb[3].mxu1  ;;  %12112 = vst [vmem:[#allocation151_spill] sm:$0xff] %v7261_v2  ;;  %5882 = vmatmul.mubr.bf16.gmra.mrb[108].mxu1 %v6108_v50  ;;  %v2433_v50 = vadd.s32 568, %v6540_v18  ;;  %v7293_v53 = vadd.s32 %v6548_v23, %v2432_v31 }
 0x1cd   : > { %v3966_v6 = vadd.f32 %v3965_v42, %v3711_v58  ;;  %12110 = vst [vmem:[#allocation149_spill] sm:$0xff] %v7255_v9  ;;  %v7275_v16 = vadd.s32 %v6548_v23, %v2430_v20 }
 0x1ce   : > { %v7253_v10 = vpop.f32.mrb[64].mxu0  ;;  %12119 = vst [vmem:[#allocation158_spill] sm:$0xff] %v7293_v53  ;;  %v7311_v31 = vadd.s32 %v6548_v23, %v2433_v50  ;;  %v2436_v50 = vadd.s32 592, %v6540_v18 }
 0x1cf   : > { %12109 = vst [vmem:[#allocation148_spill] sm:$0xff] %v7253_v10  ;;  %v3967_v42 = vadd.f32 %v3966_v6, %v3712_v28  ;;  %v7258_v58 = vpop.f32.mrb[65].mxu0  ;;  %12115 = vst [vmem:[#allocation154_spill] sm:$0xff] %v7275_v16  ;;  %v3715_v20 = vsel %vm11238_vm15, %v7253_v10, 0.0  ;;  %v6110_v10 = vld [vmem:[%s6456_s11 + $0x3c8] sm:$0xff]  }
 0x1d0   : > { %12111 = vst [vmem:[#allocation150_spill] sm:$0xff] %v7258_v58  ;;  %v3713_v3 = vsel %vm11223_vm12, %v7258_v58, 0.0  ;;  %v7268_v33 = vpop.f32.mrb[66].mxu0  ;;  %vm11244_vm12 = vcmp.lt.s32.totalorder %v7261_v2, 4096  ;;  %12124 = vst [vmem:[#allocation163_spill] sm:$0xff] %v7311_v31 }
 0x1d1   : > { %12113 = vst [vmem:[#allocation152_spill] sm:$0xff] %v7268_v33  ;;  %v3968_v6 = vadd.f32 %v3967_v42, %v3713_v3  ;;  %v7271_v28 = vpop.f32.mrb[67].mxu0  ;;  %v7283_v3 = vadd.s32 %v6548_v23, %v2431_v19  ;;  %v7285_v42 = vpop.f32.mrb[4].mxu1  ;;  %v6109_v19 = vld [vmem:[%s6456_s11 + $0x3c0] sm:$0xff]  }
 0x1d2   : > { %12114 = vst [vmem:[#allocation153_spill] sm:$0xff] %v7271_v28  ;;  %v3714_v52 = vsel %vm11230_vm14, %v7271_v28, 0.0  ;;  %12117 = vst [vmem:[#allocation156_spill] sm:$0xff] %v7285_v42  ;;  %v7290_v58 = vpop.f32.mrb[5].mxu1  ;;  %vm11247_vm14 = vcmp.lt.s32.totalorder %v7275_v16, 4096  ;;  %v3716_v28 = vsel %vm11244_vm12, %v7268_v33, 0.0  ;;  %5885 = vmatprep.mubr.bf16.mxu1 %v6109_v19 }
 0x1d3   : > { %v3969_v26 = vadd.f32 %v3968_v6, %v3714_v52  ;;  %12116 = vst [vmem:[#allocation155_spill] sm:$0xff] %v7283_v3  ;;  %12118 = vst [vmem:[#allocation157_spill] sm:$0xff] %v7290_v58  ;;  %v2434_v6 = vadd.s32 576, %v6540_v18  ;;  %v7297_v52 = vpop.f32.mrb[6].mxu1  ;;  %vm11254_vm15 = vcmp.lt.s32.totalorder %v7283_v3, 4096  ;;  %vm11262_vm12 = vcmp.lt.s32.totalorder %v7293_v53, 4096 }
 0x1d4   : > { %12120 = vst [vmem:[#allocation159_spill] sm:$0xff] %v7297_v52  ;;  %v7305_v35 = vpop.f32.mrb[7].mxu1  ;;  %5886 = vmatmul.mubr.bf16.gmra.mrb[112].mxu1 %v6110_v10  ;;  %v2437_v10 = vadd.s32 600, %v6540_v18  ;;  %v7343_v3 = vadd.s32 %v6548_v23, %v2436_v50 }
 0x1d5   : > { %v3970_v47 = vadd.f32 %v3969_v26, %v3715_v20  ;;  %12122 = vst [vmem:[#allocation161_spill] sm:$0xff] %v7305_v35  ;;  %v7325_v60 = vadd.s32 %v6548_v23, %v2434_v6 }
 0x1d6   : > { %v7303_v8 = vpop.f32.mrb[68].mxu0  ;;  %12131 = vst [vmem:[#allocation170_spill] sm:$0xff] %v7343_v3 }
 0x1d7   : > { %12121 = vst [vmem:[#allocation160_spill] sm:$0xff] %v7303_v8  ;;  %v3971_v26 = vadd.f32 %v3970_v47, %v3716_v28  ;;  %v7308_v20 = vpop.f32.mrb[69].mxu0  ;;  %12127 = vst [vmem:[#allocation166_spill] sm:$0xff] %v7325_v60  ;;  %v3719_v6 = vsel %vm11262_vm12, %v7303_v8, 0.0  ;;  %v6112_v8 = vld [vmem:[%s6456_s11 + $0x3d8] sm:$0xff]  }
 0x1d8   : > { %12123 = vst [vmem:[#allocation162_spill] sm:$0xff] %v7308_v20  ;;  %v3717_v2 = vsel %vm11247_vm14, %v7308_v20, 0.0  ;;  %v7318_v33 = vpop.f32.mrb[70].mxu0  ;;  %vm11268_vm14 = vcmp.lt.s32.totalorder %v7311_v31, 4096 }
 0x1d9   : > { %12125 = vst [vmem:[#allocation164_spill] sm:$0xff] %v7318_v33  ;;  %v3972_v47 = vadd.f32 %v3971_v26, %v3717_v2  ;;  %v7321_v28 = vpop.f32.mrb[71].mxu0  ;;  %v7333_v2 = vadd.s32 %v6548_v23, %v2435_v56  ;;  %v7335_v26 = vpop.f32.mrb[8].mxu1  ;;  %v6111_v56 = vld [vmem:[%s6456_s11 + $0x3d0] sm:$0xff]  }
 0x1da   : > { %12126 = vst [vmem:[#allocation165_spill] sm:$0xff] %v7321_v28  ;;  %v3718_v19 = vsel %vm11254_vm15, %v7321_v28, 0.0  ;;  %12129 = vst [vmem:[#allocation168_spill] sm:$0xff] %v7335_v26  ;;  %v7340_v20 = vpop.f32.mrb[9].mxu1  ;;  %vm11273_vm15 = vcmp.lt.s32.totalorder %v7325_v60, 4096  ;;  %v3720_v28 = vsel %vm11268_vm14, %v7318_v33, 0.0  ;;  %5889 = vmatprep.mubr.bf16.mxu1 %v6111_v56 }
 0x1db   : > { %v3973_v16 = vadd.f32 %v3972_v47, %v3718_v19  ;;  %12128 = vst [vmem:[#allocation167_spill] sm:$0xff] %v7333_v2  ;;  %12130 = vst [vmem:[#allocation169_spill] sm:$0xff] %v7340_v20  ;;  %v2438_v47 = vadd.s32 608, %v6540_v18  ;;  %v7347_v19 = vpop.f32.mrb[10].mxu1  ;;  %vm11278_vm12 = vcmp.lt.s32.totalorder %v7333_v2, 4096  ;;  %vm11286_vm14 = vcmp.lt.s32.totalorder %v7343_v3, 4096 }
 0x1dc   : > { %12132 = vst [vmem:[#allocation171_spill] sm:$0xff] %v7347_v19  ;;  %v7355_v53 = vpop.f32.mrb[11].mxu1  ;;  %5890 = vmatmul.mubr.bf16.gmra.mrb[116].mxu1 %v6112_v8  ;;  %v2441_v8 = vadd.s32 632, %v6540_v18 }
 0x1dd   : > { %v3974_v7 = vadd.f32 %v3973_v16, %v3719_v6  ;;  %12134 = vst [vmem:[#allocation173_spill] sm:$0xff] %v7355_v53  ;;  %v7361_v6 = vadd.s32 %v6548_v23, %v2437_v10 }
 0x1de   : > { %v7353_v59 = vpop.f32.mrb[72].mxu0 }
 0x1df   : > { %12133 = vst [vmem:[#allocation172_spill] sm:$0xff] %v7353_v59  ;;  %v7358_v16 = vpop.f32.mrb[73].mxu0  ;;  %v3975_v50 = vadd.f32 %v3974_v7, %v3720_v28  ;;  %12136 = vst [vmem:[#allocation175_spill] sm:$0xff] %v7361_v6  ;;  %v2440_v7 = vadd.s32 624, %v6540_v18  ;;  %v7375_v28 = vadd.s32 %v6548_v23, %v2438_v47  ;;  %v3723_v47 = vsel %vm11286_vm14, %v7353_v59, 0.0  ;;  %v6114_v59 = vld [vmem:[%s6456_s11 + $0x3e8] sm:$0xff]  }
 0x1e0   : > { %12135 = vst [vmem:[#allocation174_spill] sm:$0xff] %v7358_v16  ;;  %v3721_v31 = vsel %vm11273_vm15, %v7358_v16, 0.0  ;;  %v7368_v33 = vpop.f32.mrb[74].mxu0  ;;  %vm11292_vm15 = vcmp.lt.s32.totalorder %v7361_v6, 4096 }
 0x1e1   : > { %12137 = vst [vmem:[#allocation176_spill] sm:$0xff] %v7368_v33  ;;  %v3976_v11 = vadd.f32 %v3975_v50, %v3721_v31  ;;  %v7371_v41 = vpop.f32.mrb[75].mxu0  ;;  %12139 = vst [vmem:[#allocation178_spill] sm:$0xff] %v7375_v28  ;;  %v7383_v31 = vadd.s32 %v6548_v23, %v2439_v37  ;;  %v7385_v50 = vpop.f32.mrb[12].mxu1  ;;  %v7393_v2 = vadd.s32 %v6548_v23, %v2440_v7  ;;  %v6113_v37 = vld [vmem:[%s6456_s11 + $0x3e0] sm:$0xff]  }
 0x1e2   : > { %12138 = vst [vmem:[#allocation177_spill] sm:$0xff] %v7371_v41  ;;  %v3722_v10 = vsel %vm11278_vm12, %v7371_v41, 0.0  ;;  %12141 = vst [vmem:[#allocation180_spill] sm:$0xff] %v7385_v50  ;;  %v7390_v60 = vpop.f32.mrb[13].mxu1  ;;  %vm11297_vm12 = vcmp.lt.s32.totalorder %v7375_v28, 4096  ;;  %v3724_v41 = vsel %vm11292_vm15, %v7368_v33, 0.0  ;;  %5893 = vmatprep.mubr.bf16.mxu1 %v6113_v37 }
 0x1e3   : > { %v3977_v56 = vadd.f32 %v3976_v11, %v3722_v10  ;;  %12140 = vst [vmem:[#allocation179_spill] sm:$0xff] %v7383_v31  ;;  %12142 = vst [vmem:[#allocation181_spill] sm:$0xff] %v7390_v60  ;;  %v2442_v11 = vadd.s32 640, %v6540_v18  ;;  %v7397_v10 = vpop.f32.mrb[14].mxu1  ;;  %vm11302_vm14 = vcmp.lt.s32.totalorder %v7383_v31, 4096  ;;  %vm11310_vm15 = vcmp.lt.s32.totalorder %v7393_v2, 4096 }
 0x1e4   : > { %12143 = vst [vmem:[#allocation182_spill] sm:$0xff] %v7393_v2  ;;  %12144 = vst [vmem:[#allocation183_spill] sm:$0xff] %v7397_v10  ;;  %v7405_v3 = vpop.f32.mrb[15].mxu1  ;;  %5894 = vmatmul.mubr.bf16.gmra.mrb[120].mxu1 %v6114_v59  ;;  %v2445_v59 = vadd.s32 664, %v6540_v18 }
 0x1e5   : > { %v3978_v16 = vadd.f32 %v3977_v56, %v3723_v47  ;;  %12146 = vst [vmem:[#allocation185_spill] sm:$0xff] %v7405_v3  ;;  %v7411_v47 = vadd.s32 %v6548_v23, %v2441_v8 }
 0x1e6   : > { %v7403_v61 = vpop.f32.mrb[76].mxu0 }
 0x1e7   : > { %12145 = vst [vmem:[#allocation184_spill] sm:$0xff] %v7403_v61  ;;  %v7408_v56 = vpop.f32.mrb[77].mxu0  ;;  %v3979_v7 = vadd.f32 %v3978_v16, %v3724_v41  ;;  %12148 = vst [vmem:[#allocation187_spill] sm:$0xff] %v7411_v47  ;;  %v2444_v41 = vadd.s32 656, %v6540_v18  ;;  %v7425_v16 = vadd.s32 %v6548_v23, %v2442_v11  ;;  %v3727_v11 = vsel %vm11310_vm15, %v7403_v61, 0.0  ;;  %v6116_v61 = vld [vmem:[%s6456_s11 + $0x3f8] sm:$0xff]  }
 0x1e8   : > { %12147 = vst [vmem:[#allocation186_spill] sm:$0xff] %v7408_v56  ;;  %v3725_v6 = vsel %vm11297_vm12, %v7408_v56, 0.0  ;;  %v7418_v33 = vpop.f32.mrb[78].mxu0  ;;  %vm11316_vm12 = vcmp.lt.s32.totalorder %v7411_v47, 4096 }
 0x1e9   : > { %12149 = vst [vmem:[#allocation188_spill] sm:$0xff] %v7418_v33  ;;  %v3980_v13 = vadd.f32 %v3979_v7, %v3725_v6  ;;  %v7421_v12 = vpop.f32.mrb[79].mxu0  ;;  %12151 = vst [vmem:[#allocation190_spill] sm:$0xff] %v7425_v16  ;;  %v7433_v6 = vadd.s32 %v6548_v23, %v2443_v21  ;;  %v7435_v7 = vpop.f32.mrb[16].mxu1  ;;  %v7443_v31 = vadd.s32 %v6548_v23, %v2444_v41  ;;  %v6115_v21 = vld [vmem:[%s6456_s11 + $0x3f0] sm:$0xff]  }
 0x1ea   : > { %12150 = vst [vmem:[#allocation189_spill] sm:$0xff] %v7421_v12  ;;  %v3726_v8 = vsel %vm11302_vm14, %v7421_v12, 0.0  ;;  %12153 = vst [vmem:[#allocation192_spill] sm:$0xff] %v7435_v7  ;;  %v7440_v28 = vpop.f32.mrb[17].mxu1  ;;  %vm11341_vm14 = vcmp.lt.s32.totalorder %v7425_v16, 4096  ;;  %v3728_v12 = vsel %vm11316_vm12, %v7418_v33, 0.0  ;;  %5897 = vmatprep.mubr.bf16.mxu1 %v6115_v21 }
 0x1eb   : > { %v3981_v37 = vadd.f32 %v3980_v13, %v3726_v8  ;;  %12152 = vst [vmem:[#allocation191_spill] sm:$0xff] %v7433_v6  ;;  %12154 = vst [vmem:[#allocation193_spill] sm:$0xff] %v7440_v28  ;;  %v2446_v13 = vadd.s32 672, %v6540_v18  ;;  %v7447_v8 = vpop.f32.mrb[18].mxu1  ;;  %vm11326_vm15 = vcmp.lt.s32.totalorder %v7433_v6, 4096  ;;  %vm11332_vm12 = vcmp.lt.s32.totalorder %v7443_v31, 4096 }
 0x1ec   : > { %12155 = vst [vmem:[#allocation194_spill] sm:$0xff] %v7443_v31  ;;  %12156 = vst [vmem:[#allocation195_spill] sm:$0xff] %v7447_v8  ;;  %v7455_v2 = vpop.f32.mrb[19].mxu1  ;;  %5898 = vmatmul.mubr.bf16.gmra.mrb[124].mxu1 %v6116_v61  ;;  %v2449_v16 = vadd.s32 696, %v6540_v18  ;;  %v7483_v61 = vadd.s32 %v6548_v23, %v2447_v44 }
 0x1ed   : > { %v3982_v56 = vadd.f32 %v3981_v37, %v3727_v11  ;;  %12158 = vst [vmem:[#allocation197_spill] sm:$0xff] %v7455_v2  ;;  %v7461_v11 = vadd.s32 %v6548_v23, %v2445_v59 }
 0x1ee   : > { %v7453_v27 = vpop.f32.mrb[80].mxu0  ;;  %12164 = vst [vmem:[#allocation203_spill] sm:$0xff] %v7483_v61 }
 0x1ef   : > { %12157 = vst [vmem:[#allocation196_spill] sm:$0xff] %v7453_v27  ;;  %v7458_v37 = vpop.f32.mrb[81].mxu0  ;;  %v3983_v41 = vadd.f32 %v3982_v56, %v3728_v12  ;;  %12160 = vst [vmem:[#allocation199_spill] sm:$0xff] %v7461_v11  ;;  %v2448_v12 = vadd.s32 688, %v6540_v18  ;;  %v7475_v56 = vadd.s32 %v6548_v23, %v2446_v13  ;;  %vm11336_vm13 = vcmp.lt.s32.totalorder %v7461_v11, 4096 }
 0x1f0   : > { %12159 = vst [vmem:[#allocation198_spill] sm:$0xff] %v7458_v37  ;;  %v3729_v47 = vsel %vm11341_vm14, %v7458_v37, 0.0  ;;  %v7468_v33 = vpop.f32.mrb[82].mxu0 }
 0x1f1   : > { %12161 = vst [vmem:[#allocation200_spill] sm:$0xff] %v7468_v33  ;;  %v3984_v39 = vadd.f32 %v3983_v41, %v3729_v47  ;;  %v7471_v0 = vpop.f32.mrb[83].mxu0  ;;  %12163 = vst [vmem:[#allocation202_spill] sm:$0xff] %v7475_v56  ;;  %v7485_v47 = vpop.f32.mrb[20].mxu1  ;;  %v3731_v41 = vsel %vm11332_vm12, %v7453_v27, 0.0  ;;  %v7493_v6 = vadd.s32 %v6548_v23, %v2448_v12  ;;  %v3732_v44 = vsel %vm11336_vm13, %v7468_v33, 0.0 }
 0x1f2   : > { %12162 = vst [vmem:[#allocation201_spill] sm:$0xff] %v7471_v0  ;;  %v3730_v59 = vsel %vm11326_vm15, %v7471_v0, 0.0  ;;  %12165 = vst [vmem:[#allocation204_spill] sm:$0xff] %v7485_v47  ;;  %v7490_v13 = vpop.f32.mrb[21].mxu1  ;;  %vm11365_vm15 = vcmp.lt.s32.totalorder %v7475_v56, 4096  ;;  %v7509_v12 = vadd.s32 %v6548_v23, %v2449_v16  ;;  %vm11350_vm12 = vcmp.lt.s32.totalorder %v7483_v61, 4096 }
 0x1f3   : > { %v3985_v21 = vadd.f32 %v3984_v39, %v3730_v59  ;;  %12166 = vst [vmem:[#allocation205_spill] sm:$0xff] %v7490_v13  ;;  %12167 = vst [vmem:[#allocation206_spill] sm:$0xff] %v7493_v6  ;;  %v2450_v39 = vadd.s32 704, %v6540_v18  ;;  %v7497_v59 = vpop.f32.mrb[22].mxu1  ;;  %vm11356_vm13 = vcmp.lt.s32.totalorder %v7493_v6, 4096 }
 0x1f4   : > { %12168 = vst [vmem:[#allocation207_spill] sm:$0xff] %v7497_v59  ;;  %v7504_v31 = vpop.f32.mrb[23].mxu1  ;;  %12172 = vst [vmem:[#allocation211_spill] sm:$0xff] %v7509_v12  ;;  %vm11360_vm14 = vcmp.lt.s32.totalorder %v7509_v12, 4096 }
 0x1f5   : > { %v3986_v37 = vadd.f32 %v3985_v21, %v3731_v41  ;;  %12170 = vst [vmem:[#allocation209_spill] sm:$0xff] %v7504_v31  ;;  %v2451_v41 = vadd.s32 712, %v6540_v18  ;;  %v7523_v16 = vadd.s32 %v6548_v23, %v2450_v39 }
 0x1f6   : > { %v7502_v0 = vpop.f32.mrb[84].mxu0 }
 0x1f7   : > { %12169 = vst [vmem:[#allocation208_spill] sm:$0xff] %v7502_v0  ;;  %v7506_v27 = vpop.f32.mrb[85].mxu0  ;;  %v3987_v21 = vadd.f32 %v3986_v37, %v3732_v44  ;;  %v2452_v37 = vadd.s32 720, %v6540_v18  ;;  %12175 = vst [vmem:[#allocation214_spill] sm:$0xff] %v7523_v16  ;;  %v7531_v48 = vadd.s32 %v6548_v23, %v2451_v41 }
 0x1f8   : > { %12171 = vst [vmem:[#allocation210_spill] sm:$0xff] %v7506_v27  ;;  %v3733_v43 = vsel %vm11365_vm15, %v7506_v27, 0.0  ;;  %v7516_v11 = vpop.f32.mrb[86].mxu0  ;;  %v2453_v27 = vadd.s32 728, %v6540_v18 }
 0x1f9   : > { %12173 = vst [vmem:[#allocation212_spill] sm:$0xff] %v7516_v11  ;;  %v3988_v33 = vadd.f32 %v3987_v21, %v3733_v43  ;;  %v7519_v15 = vpop.f32.mrb[87].mxu0  ;;  %12176 = vst [vmem:[#allocation215_spill] sm:$0xff] %v7531_v48  ;;  %v7533_v43 = vpop.f32.mrb[24].mxu1  ;;  %v3735_v21 = vsel %vm11356_vm13, %v7502_v0, 0.0  ;;  %v7541_v61 = vadd.s32 %v6548_v23, %v2452_v37  ;;  %v3736_v41 = vsel %vm11360_vm14, %v7516_v11, 0.0 }
 0x1fa   : > { %12174 = vst [vmem:[#allocation213_spill] sm:$0xff] %v7519_v15  ;;  %v3734_v44 = vsel %vm11350_vm12, %v7519_v15, 0.0  ;;  %12177 = vst [vmem:[#allocation216_spill] sm:$0xff] %v7533_v43  ;;  %v7538_v39 = vpop.f32.mrb[25].mxu1  ;;  %vm11389_vm12 = vcmp.lt.s32.totalorder %v7523_v16, 4096  ;;  %v7557_v37 = vadd.s32 %v6548_v23, %v2453_v27  ;;  %vm11374_vm13 = vcmp.lt.s32.totalorder %v7531_v48, 4096 }
 0x1fb   : > { %v3989_v56 = vadd.f32 %v3988_v33, %v3734_v44  ;;  %12178 = vst [vmem:[#allocation217_spill] sm:$0xff] %v7538_v39  ;;  %12179 = vst [vmem:[#allocation218_spill] sm:$0xff] %v7541_v61  ;;  %v2454_v33 = vadd.s32 736, %v6540_v18  ;;  %v7545_v44 = vpop.f32.mrb[26].mxu1  ;;  %vm11380_vm14 = vcmp.lt.s32.totalorder %v7541_v61, 4096 }
 0x1fc   : > { %12180 = vst [vmem:[#allocation219_spill] sm:$0xff] %v7545_v44  ;;  %v7552_v6 = vpop.f32.mrb[27].mxu1  ;;  %12184 = vst [vmem:[#allocation223_spill] sm:$0xff] %v7557_v37  ;;  %vm11384_vm15 = vcmp.lt.s32.totalorder %v7557_v37, 4096 }
 0x1fd   : > { %v3990_v22 = vadd.f32 %v3989_v56, %v3735_v21  ;;  %12182 = vst [vmem:[#allocation221_spill] sm:$0xff] %v7552_v6  ;;  %v2455_v21 = vadd.s32 744, %v6540_v18  ;;  %v7571_v27 = vadd.s32 %v6548_v23, %v2454_v33 }
 0x1fe   : > { %v7550_v15 = vpop.f32.mrb[88].mxu0 }
 0x1ff   : > { %12181 = vst [vmem:[#allocation220_spill] sm:$0xff] %v7550_v15  ;;  %v7554_v0 = vpop.f32.mrb[89].mxu0  ;;  %v3991_v56 = vadd.f32 %v3990_v22, %v3736_v41  ;;  %v2456_v22 = vadd.s32 752, %v6540_v18  ;;  %12187 = vst [vmem:[#allocation226_spill] sm:$0xff] %v7571_v27  ;;  %v7579_v49 = vadd.s32 %v6548_v23, %v2455_v21 }
 0x200   : > { %12183 = vst [vmem:[#allocation222_spill] sm:$0xff] %v7554_v0  ;;  %v3737_v46 = vsel %vm11389_vm12, %v7554_v0, 0.0  ;;  %v7564_v12 = vpop.f32.mrb[90].mxu0  ;;  %v2457_v0 = vadd.s32 760, %v6540_v18 }
 0x201   : > { %12185 = vst [vmem:[#allocation224_spill] sm:$0xff] %v7564_v12  ;;  %v3992_v11 = vadd.f32 %v3991_v56, %v3737_v46  ;;  %v7567_v25 = vpop.f32.mrb[91].mxu0  ;;  %12188 = vst [vmem:[#allocation227_spill] sm:$0xff] %v7579_v49  ;;  %v7581_v46 = vpop.f32.mrb[28].mxu1  ;;  %v3739_v56 = vsel %vm11380_vm14, %v7550_v15, 0.0  ;;  %v7589_v48 = vadd.s32 %v6548_v23, %v2456_v22  ;;  %v3740_v21 = vsel %vm11384_vm15, %v7564_v12, 0.0 }
 0x202   : > { %12186 = vst [vmem:[#allocation225_spill] sm:$0xff] %v7567_v25  ;;  %v3738_v41 = vsel %vm11374_vm13, %v7567_v25, 0.0  ;;  %12189 = vst [vmem:[#allocation228_spill] sm:$0xff] %v7581_v46  ;;  %v7586_v33 = vpop.f32.mrb[29].mxu1  ;;  %vm11413_vm13 = vcmp.lt.s32.totalorder %v7571_v27, 4096  ;;  %v7605_v22 = vadd.s32 %v6548_v23, %v2457_v0  ;;  %vm11398_vm14 = vcmp.lt.s32.totalorder %v7579_v49, 4096 }
 0x203   : > { %v3993_v16 = vadd.f32 %v3992_v11, %v3738_v41  ;;  %12190 = vst [vmem:[#allocation229_spill] sm:$0xff] %v7586_v33  ;;  %12191 = vst [vmem:[#allocation230_spill] sm:$0xff] %v7589_v48  ;;  %v2458_v11 = vadd.s32 768, %v6540_v18  ;;  %v7593_v41 = vpop.f32.mrb[30].mxu1  ;;  %vm11404_vm15 = vcmp.lt.s32.totalorder %v7589_v48, 4096 }
 0x204   : > { %12192 = vst [vmem:[#allocation231_spill] sm:$0xff] %v7593_v41  ;;  %v7600_v61 = vpop.f32.mrb[31].mxu1  ;;  %12196 = vst [vmem:[#allocation235_spill] sm:$0xff] %v7605_v22  ;;  %vm11408_vm12 = vcmp.lt.s32.totalorder %v7605_v22, 4096 }
 0x205   : > { %v3994_v36 = vadd.f32 %v3993_v16, %v3739_v56  ;;  %12194 = vst [vmem:[#allocation233_spill] sm:$0xff] %v7600_v61  ;;  %v2459_v56 = vadd.s32 776, %v6540_v18  ;;  %v7619_v0 = vadd.s32 %v6548_v23, %v2458_v11 }
 0x206   : > { %v7598_v25 = vpop.f32.mrb[92].mxu0 }
 0x207   : > { %12193 = vst [vmem:[#allocation232_spill] sm:$0xff] %v7598_v25  ;;  %v7602_v15 = vpop.f32.mrb[93].mxu0  ;;  %v3995_v16 = vadd.f32 %v3994_v36, %v3740_v21  ;;  %v2460_v36 = vadd.s32 784, %v6540_v18  ;;  %12199 = vst [vmem:[#allocation238_spill] sm:$0xff] %v7619_v0  ;;  %v7627_v4 = vadd.s32 %v6548_v23, %v2459_v56 }
 0x208   : > { %12195 = vst [vmem:[#allocation234_spill] sm:$0xff] %v7602_v15  ;;  %v3741_v63 = vsel %vm11413_vm13, %v7602_v15, 0.0  ;;  %v7612_v37 = vpop.f32.mrb[94].mxu0  ;;  %v2461_v15 = vadd.s32 792, %v6540_v18 }
 0x209   : > { %12197 = vst [vmem:[#allocation236_spill] sm:$0xff] %v7612_v37  ;;  %v3996_v12 = vadd.f32 %v3995_v16, %v3741_v63  ;;  %v7615_v51 = vpop.f32.mrb[95].mxu0  ;;  %12200 = vst [vmem:[#allocation239_spill] sm:$0xff] %v7627_v4  ;;  %v7629_v63 = vpop.f32.mrb[32].mxu1  ;;  %v3743_v16 = vsel %vm11404_vm15, %v7598_v25, 0.0  ;;  %v7637_v49 = vadd.s32 %v6548_v23, %v2460_v36  ;;  %v3744_v56 = vsel %vm11408_vm12, %v7612_v37, 0.0 }
 0x20a   : > { %12198 = vst [vmem:[#allocation237_spill] sm:$0xff] %v7615_v51  ;;  %v3742_v21 = vsel %vm11398_vm14, %v7615_v51, 0.0  ;;  %12201 = vst [vmem:[#allocation240_spill] sm:$0xff] %v7629_v63  ;;  %v7634_v11 = vpop.f32.mrb[33].mxu1  ;;  %vm11437_vm14 = vcmp.lt.s32.totalorder %v7619_v0, 4096  ;;  %v7653_v36 = vadd.s32 %v6548_v23, %v2461_v15  ;;  %vm11422_vm15 = vcmp.lt.s32.totalorder %v7627_v4, 4096 }
 0x20b   : > { %v3997_v27 = vadd.f32 %v3996_v12, %v3742_v21  ;;  %12202 = vst [vmem:[#allocation241_spill] sm:$0xff] %v7634_v11  ;;  %12203 = vst [vmem:[#allocation242_spill] sm:$0xff] %v7637_v49  ;;  %v2462_v12 = vadd.s32 800, %v6540_v18  ;;  %v7641_v21 = vpop.f32.mrb[34].mxu1  ;;  %vm11428_vm12 = vcmp.lt.s32.totalorder %v7637_v49, 4096 }
 0x20c   : > { %12204 = vst [vmem:[#allocation243_spill] sm:$0xff] %v7641_v21  ;;  %v7648_v48 = vpop.f32.mrb[35].mxu1  ;;  %12208 = vst [vmem:[#allocation247_spill] sm:$0xff] %v7653_v36  ;;  %vm11432_vm13 = vcmp.lt.s32.totalorder %v7653_v36, 4096 }
 0x20d   : > { %v3998_v55 = vadd.f32 %v3997_v27, %v3743_v16  ;;  %12206 = vst [vmem:[#allocation245_spill] sm:$0xff] %v7648_v48  ;;  %v2463_v16 = vadd.s32 808, %v6540_v18  ;;  %v7667_v15 = vadd.s32 %v6548_v23, %v2462_v12 }
 0x20e   : > { %v7646_v51 = vpop.f32.mrb[96].mxu0 }
 0x20f   : > { %12205 = vst [vmem:[#allocation244_spill] sm:$0xff] %v7646_v51  ;;  %v7650_v25 = vpop.f32.mrb[97].mxu0  ;;  %v3999_v27 = vadd.f32 %v3998_v55, %v3744_v56  ;;  %v2464_v55 = vadd.s32 816, %v6540_v18  ;;  %12211 = vst [vmem:[#allocation250_spill] sm:$0xff] %v7667_v15  ;;  %v7675_v30 = vadd.s32 %v6548_v23, %v2463_v16 }
 0x210   : > { %12207 = vst [vmem:[#allocation246_spill] sm:$0xff] %v7650_v25  ;;  %v3745_v24 = vsel %vm11437_vm14, %v7650_v25, 0.0  ;;  %v7660_v22 = vpop.f32.mrb[98].mxu0  ;;  %v2465_v25 = vadd.s32 824, %v6540_v18 }
 0x211   : > { %12209 = vst [vmem:[#allocation248_spill] sm:$0xff] %v7660_v22  ;;  %v4000_v37 = vadd.f32 %v3999_v27, %v3745_v24  ;;  %v7663_v14 = vpop.f32.mrb[99].mxu0  ;;  %12212 = vst [vmem:[#allocation251_spill] sm:$0xff] %v7675_v30  ;;  %v7677_v24 = vpop.f32.mrb[36].mxu1  ;;  %v3747_v27 = vsel %vm11428_vm12, %v7646_v51, 0.0  ;;  %v7685_v4 = vadd.s32 %v6548_v23, %v2464_v55  ;;  %v3748_v16 = vsel %vm11432_vm13, %v7660_v22, 0.0 }
 0x212   : > { %12210 = vst [vmem:[#allocation249_spill] sm:$0xff] %v7663_v14  ;;  %v3746_v56 = vsel %vm11422_vm15, %v7663_v14, 0.0  ;;  %12213 = vst [vmem:[#allocation252_spill] sm:$0xff] %v7677_v24  ;;  %v7682_v12 = vpop.f32.mrb[37].mxu1  ;;  %vm11461_vm15 = vcmp.lt.s32.totalorder %v7667_v15, 4096  ;;  %v7701_v55 = vadd.s32 %v6548_v23, %v2465_v25  ;;  %vm11446_vm12 = vcmp.lt.s32.totalorder %v7675_v30, 4096 }
 0x213   : > { %v4001_v0 = vadd.f32 %v4000_v37, %v3746_v56  ;;  %12214 = vst [vmem:[#allocation253_spill] sm:$0xff] %v7682_v12  ;;  %12215 = vst [vmem:[#allocation254_spill] sm:$0xff] %v7685_v4  ;;  %v2466_v37 = vadd.s32 832, %v6540_v18  ;;  %v7689_v56 = vpop.f32.mrb[38].mxu1  ;;  %vm11452_vm13 = vcmp.lt.s32.totalorder %v7685_v4, 4096 }
 0x214   : > { %12216 = vst [vmem:[#allocation255_spill] sm:$0xff] %v7689_v56  ;;  %v7696_v49 = vpop.f32.mrb[39].mxu1  ;;  %12220 = vst [vmem:[#allocation259_spill] sm:$0xff] %v7701_v55  ;;  %vm11456_vm14 = vcmp.lt.s32.totalorder %v7701_v55, 4096 }
 0x215   : > { %v4002_v17 = vadd.f32 %v4001_v0, %v3747_v27  ;;  %12218 = vst [vmem:[#allocation257_spill] sm:$0xff] %v7696_v49  ;;  %v2467_v27 = vadd.s32 840, %v6540_v18  ;;  %v7715_v25 = vadd.s32 %v6548_v23, %v2466_v37 }
 0x216   : > { %v7694_v14 = vpop.f32.mrb[100].mxu0 }
 0x217   : > { %12217 = vst [vmem:[#allocation256_spill] sm:$0xff] %v7694_v14  ;;  %v7698_v51 = vpop.f32.mrb[101].mxu0  ;;  %v4003_v0 = vadd.f32 %v4002_v17, %v3748_v16  ;;  %v2468_v17 = vadd.s32 848, %v6540_v18  ;;  %12223 = vst [vmem:[#allocation262_spill] sm:$0xff] %v7715_v25  ;;  %v7723_v1 = vadd.s32 %v6548_v23, %v2467_v27 }
 0x218   : > { %12219 = vst [vmem:[#allocation258_spill] sm:$0xff] %v7698_v51  ;;  %v3749_v62 = vsel %vm11461_vm15, %v7698_v51, 0.0  ;;  %v7708_v36 = vpop.f32.mrb[102].mxu0  ;;  %v2469_v51 = vadd.s32 856, %v6540_v18 }
 0x219   : > { %12221 = vst [vmem:[#allocation260_spill] sm:$0xff] %v7708_v36  ;;  %v4004_v22 = vadd.f32 %v4003_v0, %v3749_v62  ;;  %v7711_v54 = vpop.f32.mrb[103].mxu0  ;;  %12224 = vst [vmem:[#allocation263_spill] sm:$0xff] %v7723_v1  ;;  %v7725_v62 = vpop.f32.mrb[40].mxu1  ;;  %v3751_v0 = vsel %vm11452_vm13, %v7694_v14, 0.0  ;;  %v7733_v30 = vadd.s32 %v6548_v23, %v2468_v17  ;;  %v3752_v27 = vsel %vm11456_vm14, %v7708_v36, 0.0 }
 0x21a   : > { %12222 = vst [vmem:[#allocation261_spill] sm:$0xff] %v7711_v54  ;;  %v3750_v16 = vsel %vm11446_vm12, %v7711_v54, 0.0  ;;  %12225 = vst [vmem:[#allocation264_spill] sm:$0xff] %v7725_v62  ;;  %v7730_v37 = vpop.f32.mrb[41].mxu1  ;;  %vm11483_vm12 = vcmp.lt.s32.totalorder %v7715_v25, 4096  ;;  %v7749_v17 = vadd.s32 %v6548_v23, %v2469_v51  ;;  %vm11470_vm13 = vcmp.lt.s32.totalorder %v7723_v1, 4096 }
 0x21b   : > { %v4005_v15 = vadd.f32 %v4004_v22, %v3750_v16  ;;  %12226 = vst [vmem:[#allocation265_spill] sm:$0xff] %v7730_v37  ;;  %12227 = vst [vmem:[#allocation266_spill] sm:$0xff] %v7733_v30  ;;  %v2470_v22 = vadd.s32 864, %v6540_v18  ;;  %v7737_v16 = vpop.f32.mrb[42].mxu1  ;;  %vm11476_vm14 = vcmp.lt.s32.totalorder %v7733_v30, 4096 }
 0x21c   : > { %12228 = vst [vmem:[#allocation267_spill] sm:$0xff] %v7737_v16  ;;  %v7744_v4 = vpop.f32.mrb[43].mxu1  ;;  %12232 = vst [vmem:[#allocation271_spill] sm:$0xff] %v7749_v17  ;;  %vm11479_vm15 = vcmp.lt.s32.totalorder %v7749_v17, 4096 }
 0x21d   : > { %v4006_v57 = vadd.f32 %v4005_v15, %v3751_v0  ;;  %12230 = vst [vmem:[#allocation269_spill] sm:$0xff] %v7744_v4  ;;  %v2471_v0 = vadd.s32 872, %v6540_v18  ;;  %v7763_v51 = vadd.s32 %v6548_v23, %v2470_v22 }
 0x21e   : > { %v7742_v54 = vpop.f32.mrb[104].mxu0 }
 0x21f   : > { %12229 = vst [vmem:[#allocation268_spill] sm:$0xff] %v7742_v54  ;;  %v7746_v14 = vpop.f32.mrb[105].mxu0  ;;  %v4007_v15 = vadd.f32 %v4006_v57, %v3752_v27  ;;  %v2472_v57 = vadd.s32 880, %v6540_v18  ;;  %12235 = vst [vmem:[#allocation274_spill] sm:$0xff] %v7763_v51  ;;  %v7771_v40 = vadd.s32 %v6548_v23, %v2471_v0 }
 0x220   : > { %12231 = vst [vmem:[#allocation270_spill] sm:$0xff] %v7746_v14  ;;  %v3753_v38 = vsel %vm11483_vm12, %v7746_v14, 0.0  ;;  %v7756_v55 = vpop.f32.mrb[106].mxu0  ;;  %v2473_v14 = vadd.s32 888, %v6540_v18 }
 0x221   : > { %12233 = vst [vmem:[#allocation272_spill] sm:$0xff] %v7756_v55  ;;  %v4008_v36 = vadd.f32 %v4007_v15, %v3753_v38  ;;  %v7759_v32 = vpop.f32.mrb[107].mxu0  ;;  %12236 = vst [vmem:[#allocation275_spill] sm:$0xff] %v7771_v40  ;;  %v7773_v38 = vpop.f32.mrb[44].mxu1  ;;  %v3755_v15 = vsel %vm11476_vm14, %v7742_v54, 0.0  ;;  %v7781_v1 = vadd.s32 %v6548_v23, %v2472_v57  ;;  %v3756_v0 = vsel %vm11479_vm15, %v7756_v55, 0.0 }
 0x222   : > { %12234 = vst [vmem:[#allocation273_spill] sm:$0xff] %v7759_v32  ;;  %v3754_v27 = vsel %vm11470_vm13, %v7759_v32, 0.0  ;;  %12237 = vst [vmem:[#allocation276_spill] sm:$0xff] %v7773_v38  ;;  %v7778_v22 = vpop.f32.mrb[45].mxu1  ;;  %vm11503_vm13 = vcmp.lt.s32.totalorder %v7763_v51, 4096  ;;  %v7797_v57 = vadd.s32 %v6548_v23, %v2473_v14  ;;  %vm11490_vm14 = vcmp.lt.s32.totalorder %v7771_v40, 4096 }
 0x223   : > { %v4009_v25 = vadd.f32 %v4008_v36, %v3754_v27  ;;  %12238 = vst [vmem:[#allocation277_spill] sm:$0xff] %v7778_v22  ;;  %12239 = vst [vmem:[#allocation278_spill] sm:$0xff] %v7781_v1  ;;  %v2474_v36 = vadd.s32 896, %v6540_v18  ;;  %v7785_v27 = vpop.f32.mrb[46].mxu1  ;;  %vm11496_vm15 = vcmp.lt.s32.totalorder %v7781_v1, 4096 }
 0x224   : > { %12240 = vst [vmem:[#allocation279_spill] sm:$0xff] %v7785_v27  ;;  %v7792_v30 = vpop.f32.mrb[47].mxu1  ;;  %12244 = vst [vmem:[#allocation283_spill] sm:$0xff] %v7797_v57  ;;  %vm11499_vm12 = vcmp.lt.s32.totalorder %v7797_v57, 4096 }
 0x225   : > { %v4010_v34 = vadd.f32 %v4009_v25, %v3755_v15  ;;  %12242 = vst [vmem:[#allocation281_spill] sm:$0xff] %v7792_v30  ;;  %v2475_v15 = vadd.s32 904, %v6540_v18  ;;  %v7811_v14 = vadd.s32 %v6548_v23, %v2474_v36 }
 0x226   : > { %v7790_v32 = vpop.f32.mrb[108].mxu0 }
 0x227   : > { %12241 = vst [vmem:[#allocation280_spill] sm:$0xff] %v7790_v32  ;;  %v7794_v54 = vpop.f32.mrb[109].mxu0  ;;  %v4011_v25 = vadd.f32 %v4010_v34, %v3756_v0  ;;  %v2476_v34 = vadd.s32 912, %v6540_v18  ;;  %12247 = vst [vmem:[#allocation286_spill] sm:$0xff] %v7811_v14  ;;  %v7819_v30 = vadd.s32 %v6548_v23, %v2475_v15 }
 0x228   : > { %12243 = vst [vmem:[#allocation282_spill] sm:$0xff] %v7794_v54  ;;  %v3757_v27 = vsel %vm11503_vm13, %v7794_v54, 0.0  ;;  %v7804_v17 = vpop.f32.mrb[110].mxu0  ;;  %v2477_v54 = vadd.s32 920, %v6540_v18 }
 0x229   : > { %12245 = vst [vmem:[#allocation284_spill] sm:$0xff] %v7804_v17  ;;  %v4012_v55 = vadd.f32 %v4011_v25, %v3757_v27  ;;  %v7807_v38 = vpop.f32.mrb[111].mxu0  ;;  %12248 = vst [vmem:[#allocation287_spill] sm:$0xff] %v7819_v30  ;;  %v7821_v27 = vpop.f32.mrb[48].mxu1  ;;  %v3759_v25 = vsel %vm11496_vm15, %v7790_v32, 0.0  ;;  %v7829_v40 = vadd.s32 %v6548_v23, %v2476_v34  ;;  %v3760_v15 = vsel %vm11499_vm12, %v7804_v17, 0.0 }
 0x22a   : > { %12246 = vst [vmem:[#allocation285_spill] sm:$0xff] %v7807_v38  ;;  %v3758_v0 = vsel %vm11490_vm14, %v7807_v38, 0.0  ;;  %12249 = vst [vmem:[#allocation288_spill] sm:$0xff] %v7821_v27  ;;  %v7826_v36 = vpop.f32.mrb[49].mxu1  ;;  %vm11523_vm14 = vcmp.lt.s32.totalorder %v7811_v14, 4096  ;;  %v7845_v34 = vadd.s32 %v6548_v23, %v2477_v54  ;;  %vm11510_vm15 = vcmp.lt.s32.totalorder %v7819_v30, 4096 }
 0x22b   : > { %v4013_v51 = vadd.f32 %v4012_v55, %v3758_v0  ;;  %12250 = vst [vmem:[#allocation289_spill] sm:$0xff] %v7826_v36  ;;  %12251 = vst [vmem:[#allocation290_spill] sm:$0xff] %v7829_v40  ;;  %v2478_v55 = vadd.s32 928, %v6540_v18  ;;  %v7833_v0 = vpop.f32.mrb[50].mxu1  ;;  %vm11516_vm12 = vcmp.lt.s32.totalorder %v7829_v40, 4096 }
 0x22c   : > { %12252 = vst [vmem:[#allocation291_spill] sm:$0xff] %v7833_v0  ;;  %v7840_v1 = vpop.f32.mrb[51].mxu1  ;;  %12256 = vst [vmem:[#allocation295_spill] sm:$0xff] %v7845_v34  ;;  %vm11519_vm13 = vcmp.lt.s32.totalorder %v7845_v34, 4096 }
 0x22d   : > { %v4014_v22 = vadd.f32 %v4013_v51, %v3759_v25  ;;  %12254 = vst [vmem:[#allocation293_spill] sm:$0xff] %v7840_v1  ;;  %v2479_v25 = vadd.s32 936, %v6540_v18  ;;  %v7859_v54 = vadd.s32 %v6548_v23, %v2478_v55 }
 0x22e   : > { %v7838_v38 = vpop.f32.mrb[112].mxu0 }
 0x22f   : > { %12253 = vst [vmem:[#allocation292_spill] sm:$0xff] %v7838_v38  ;;  %v7842_v32 = vpop.f32.mrb[113].mxu0  ;;  %v4015_v51 = vadd.f32 %v4014_v22, %v3760_v15  ;;  %v2480_v22 = vadd.s32 944, %v6540_v18  ;;  %12259 = vst [vmem:[#allocation298_spill] sm:$0xff] %v7859_v54  ;;  %v7867_v1 = vadd.s32 %v6548_v23, %v2479_v25 }
 0x230   : > { %12255 = vst [vmem:[#allocation294_spill] sm:$0xff] %v7842_v32  ;;  %v3761_v0 = vsel %vm11523_vm14, %v7842_v32, 0.0  ;;  %v7852_v57 = vpop.f32.mrb[114].mxu0  ;;  %v2481_v32 = vadd.s32 952, %v6540_v18 }
 0x231   : > { %12257 = vst [vmem:[#allocation296_spill] sm:$0xff] %v7852_v57  ;;  %v4016_v17 = vadd.f32 %v4015_v51, %v3761_v0  ;;  %v7855_v27 = vpop.f32.mrb[115].mxu0  ;;  %12260 = vst [vmem:[#allocation299_spill] sm:$0xff] %v7867_v1  ;;  %v7869_v0 = vpop.f32.mrb[52].mxu1  ;;  %v3763_v51 = vsel %vm11516_vm12, %v7838_v38, 0.0  ;;  %v7877_v30 = vadd.s32 %v6548_v23, %v2480_v22  ;;  %v3764_v25 = vsel %vm11519_vm13, %v7852_v57, 0.0 }
 0x232   : > { %12258 = vst [vmem:[#allocation297_spill] sm:$0xff] %v7855_v27  ;;  %v3762_v15 = vsel %vm11510_vm15, %v7855_v27, 0.0  ;;  %12261 = vst [vmem:[#allocation300_spill] sm:$0xff] %v7869_v0  ;;  %v7874_v55 = vpop.f32.mrb[53].mxu1  ;;  %vm11563_vm15 = vcmp.lt.s32.totalorder %v7859_v54, 4096  ;;  %v7893_v22 = vadd.s32 %v6548_v23, %v2481_v32  ;;  %vm11530_vm12 = vcmp.lt.s32.totalorder %v7867_v1, 4096 }
 0x233   : > { %v4017_v14 = vadd.f32 %v4016_v17, %v3762_v15  ;;  %12262 = vst [vmem:[#allocation301_spill] sm:$0xff] %v7874_v55  ;;  %12263 = vst [vmem:[#allocation302_spill] sm:$0xff] %v7877_v30  ;;  %v2482_v17 = vadd.s32 960, %v6540_v18  ;;  %v7881_v15 = vpop.f32.mrb[54].mxu1  ;;  %vm11536_vm13 = vcmp.lt.s32.totalorder %v7877_v30, 4096 }
 0x234   : > { %12264 = vst [vmem:[#allocation303_spill] sm:$0xff] %v7881_v15  ;;  %v7888_v40 = vpop.f32.mrb[55].mxu1  ;;  %12268 = vst [vmem:[#allocation307_spill] sm:$0xff] %v7893_v22  ;;  %vm11539_vm14 = vcmp.lt.s32.totalorder %v7893_v22, 4096 }
 0x235   : > { %v4018_v36 = vadd.f32 %v4017_v14, %v3763_v51  ;;  %12266 = vst [vmem:[#allocation305_spill] sm:$0xff] %v7888_v40  ;;  %v2483_v51 = vadd.s32 968, %v6540_v18  ;;  %v7907_v32 = vadd.s32 %v6548_v23, %v2482_v17 }
 0x236   : > { %v7886_v27 = vpop.f32.mrb[116].mxu0 }
 0x237   : > { %12265 = vst [vmem:[#allocation304_spill] sm:$0xff] %v7886_v27  ;;  %v7890_v38 = vpop.f32.mrb[117].mxu0  ;;  %v4019_v14 = vadd.f32 %v4018_v36, %v3764_v25  ;;  %v2484_v36 = vadd.s32 976, %v6540_v18  ;;  %12271 = vst [vmem:[#allocation310_spill] sm:$0xff] %v7907_v32  ;;  %v7915_v40 = vadd.s32 %v6548_v23, %v2483_v51 }
 0x238   : > { %12267 = vst [vmem:[#allocation306_spill] sm:$0xff] %v7890_v38  ;;  %v3765_v15 = vsel %vm11563_vm15, %v7890_v38, 0.0  ;;  %v7900_v34 = vpop.f32.mrb[118].mxu0  ;;  %v2485_v38 = vadd.s32 984, %v6540_v18 }
 0x239   : > { %12269 = vst [vmem:[#allocation308_spill] sm:$0xff] %v7900_v34  ;;  %v4020_v57 = vadd.f32 %v4019_v14, %v3765_v15  ;;  %v7903_v0 = vpop.f32.mrb[119].mxu0  ;;  %12272 = vst [vmem:[#allocation311_spill] sm:$0xff] %v7915_v40  ;;  %v7917_v15 = vpop.f32.mrb[56].mxu1  ;;  %v3767_v14 = vsel %vm11536_vm13, %v7886_v27, 0.0  ;;  %v7925_v1 = vadd.s32 %v6548_v23, %v2484_v36  ;;  %v3768_v51 = vsel %vm11539_vm14, %v7900_v34, 0.0 }
 0x23a   : > { %12270 = vst [vmem:[#allocation309_spill] sm:$0xff] %v7903_v0  ;;  %v3766_v25 = vsel %vm11530_vm12, %v7903_v0, 0.0  ;;  %12273 = vst [vmem:[#allocation312_spill] sm:$0xff] %v7917_v15  ;;  %v7922_v17 = vpop.f32.mrb[57].mxu1  ;;  %vm11544_vm12 = vcmp.lt.s32.totalorder %v7907_v32, 4096  ;;  %v7941_v36 = vadd.s32 %v6548_v23, %v2485_v38  ;;  %vm11552_vm13 = vcmp.lt.s32.totalorder %v7915_v40, 4096 }
 0x23b   : > { %v4021_v54 = vadd.f32 %v4020_v57, %v3766_v25  ;;  %12274 = vst [vmem:[#allocation313_spill] sm:$0xff] %v7922_v17  ;;  %12275 = vst [vmem:[#allocation314_spill] sm:$0xff] %v7925_v1  ;;  %v2486_v57 = vadd.s32 992, %v6540_v18  ;;  %v7929_v25 = vpop.f32.mrb[58].mxu1  ;;  %vm11557_vm14 = vcmp.lt.s32.totalorder %v7925_v1, 4096 }
 0x23c   : > { %12276 = vst [vmem:[#allocation315_spill] sm:$0xff] %v7929_v25  ;;  %v7936_v30 = vpop.f32.mrb[59].mxu1  ;;  %12280 = vst [vmem:[#allocation319_spill] sm:$0xff] %v7941_v36 }
 0x23d   : > { %v4022_v55 = vadd.f32 %v4021_v54, %v3767_v14  ;;  %12278 = vst [vmem:[#allocation317_spill] sm:$0xff] %v7936_v30  ;;  %v2487_v14 = vadd.s32 1000, %v6540_v18  ;;  %v7955_v38 = vadd.s32 %v6548_v23, %v2486_v57  ;;  %v2489_v30 = vadd.s32 1016, %v6540_v18 }
 0x23e   : > { %v7934_v0 = vpop.f32.mrb[120].mxu0 }
 0x23f   : > { %12277 = vst [vmem:[#allocation316_spill] sm:$0xff] %v7934_v0  ;;  %v7938_v27 = vpop.f32.mrb[121].mxu0  ;;  %v4023_v54 = vadd.f32 %v4022_v55, %v3768_v51  ;;  %v2488_v55 = vadd.s32 1008, %v6540_v18  ;;  %12283 = vst [vmem:[#allocation322_spill] sm:$0xff] %v7955_v38  ;;  %v3771_v57 = vsel %vm11557_vm14, %v7934_v0, 0.0 }
 0x240   : > { %12279 = vst [vmem:[#allocation318_spill] sm:$0xff] %v7938_v27  ;;  %v3769_v25 = vsel %vm11544_vm12, %v7938_v27, 0.0  ;;  %v7948_v22 = vpop.f32.mrb[122].mxu0  ;;  %vm11561_vm12 = vcmp.lt.s32.totalorder %v7941_v36, 4096  ;;  %v7963_v27 = vadd.s32 %v6548_v23, %v2487_v14 }
 0x241   : > { %12281 = vst [vmem:[#allocation320_spill] sm:$0xff] %v7948_v22  ;;  %v4024_v34 = vadd.f32 %v4023_v54, %v3769_v25  ;;  %v7951_v15 = vpop.f32.mrb[123].mxu0  ;;  %v2490_v25 = vadd.s32 1024, %v6540_v18  ;;  %v7966_v54 = vpop.f32.mrb[60].mxu1  ;;  %v3772_v14 = vsel %vm11561_vm12, %v7948_v22, 0.0 }
 0x242   : > { %12282 = vst [vmem:[#allocation321_spill] sm:$0xff] %v7951_v15  ;;  %v3770_v51 = vsel %vm11552_vm13, %v7951_v15, 0.0  ;;  %12284 = vst [vmem:[#allocation323_spill] sm:$0xff] %v7963_v27  ;;  %v7971_v17 = vpop.f32.mrb[61].mxu1  ;;  %v7974_v15 = vadd.s32 %v6548_v23, %v2488_v55  ;;  %vm11565_vm13 = vcmp.lt.s32.totalorder %v7955_v38, 4096  ;;  %vm11578_vm14 = vcmp.lt.s32.totalorder %v7963_v27, 4096 }
 0x243   : > { %v4025_v32 = vadd.f32 %v4024_v34, %v3770_v51  ;;  %12285 = vst [vmem:[#allocation324_spill] sm:$0xff] %v7966_v54  ;;  %12286 = vst [vmem:[#allocation325_spill] sm:$0xff] %v7971_v17  ;;  %v7977_v34 = vpop.f32.mrb[62].mxu1  ;;  %v7985_v54 = vadd.s32 %v6548_v23, %v2489_v30  ;;  %v7993_v55 = vadd.s32 %v6548_v23, %v2490_v25 }
 0x244   : > { %12287 = vst [vmem:[#allocation326_spill] sm:$0xff] %v7974_v15  ;;  %12288 = vst [vmem:[#allocation327_spill] sm:$0xff] %v7977_v34  ;;  %v7987_v1 = vpop.f32.mrb[63].mxu1  ;;  %vm11577_vm12 = vcmp.lt.s32.totalorder %v7974_v15, 4096 }
 0x245   : > { %v4026_v40 = vadd.f32 %v4025_v32, %v3771_v57  ;;  %12290 = vst [vmem:[#allocation329_spill] sm:$0xff] %v7985_v54  ;;  %12291 = vst [vmem:[#allocation330_spill] sm:$0xff] %v7987_v1  ;;  %v2491_v57 = vadd.s32 1032, %v6540_v18  ;;  %vm11581_vm15 = vcmp.lt.s32.totalorder %v7985_v54, 4096  ;;  %v2496_v54 = vadd.s32 1072, %v6540_v18 }
 0x246   : > { %v7982_v51 = vpop.f32.mrb[124].mxu0  ;;  %12293 = vst [vmem:[#allocation332_spill] sm:$0xff] %v7993_v55 }
 0x247   : > { %12289 = vst [vmem:[#allocation328_spill] sm:$0xff] %v7982_v51  ;;  %v7989_v0 = vpop.f32.mrb[125].mxu0  ;;  %v4027_v32 = vadd.f32 %v4026_v40, %v3772_v14  ;;  %v2492_v40 = vadd.s32 1040, %v6540_v18  ;;  %v2493_v14 = vadd.s32 1048, %v6540_v18  ;;  %v8012_v38 = vadd.s32 %v6548_v23, %v2491_v57 }
 0x248   : > { %12292 = vst [vmem:[#allocation331_spill] sm:$0xff] %v7989_v0  ;;  %v3773_v36 = vsel %vm11565_vm13, %v7989_v0, 0.0  ;;  %v7999_v22 = vpop.f32.mrb[126].mxu0  ;;  %vm11580_vm13 = vcmp.lt.s32.totalorder %v7993_v55, 4096  ;;  %v3775_v0 = vsel %vm11577_vm12, %v7982_v51, 0.0  ;;  %v2498_v55 = vadd.s32 1088, %v6540_v18 }
 0x249   : > { %12294 = vst [vmem:[#allocation333_spill] sm:$0xff] %v7999_v22  ;;  %v4028_v30 = vadd.f32 %v4027_v32, %v3773_v36  ;;  %v8002_v34 = vpop.f32.mrb[127].mxu0  ;;  %12296 = vst [vmem:[#allocation335_spill] sm:$0xff] %v8012_v38  ;;  %v2494_v36 = vadd.s32 1056, %v6540_v18  ;;  %v8015_v32 = vpop.f32.mrb[64].mxu1  ;;  %v3776_v57 = vsel %vm11581_vm15, %v7999_v22, 0.0 }
 0x24a   : > { %12295 = vst [vmem:[#allocation334_spill] sm:$0xff] %v8002_v34  ;;  %v3774_v25 = vsel %vm11578_vm14, %v8002_v34, 0.0  ;;  %12297 = vst [vmem:[#allocation336_spill] sm:$0xff] %v8015_v32  ;;  %v8020_v17 = vpop.f32.mrb[65].mxu1  ;;  %v8023_v34 = vadd.s32 %v6548_v23, %v2492_v40  ;;  %v8034_v32 = vadd.s32 %v6548_v23, %v2493_v14  ;;  %vm11594_vm12 = vcmp.lt.s32.totalorder %v8012_v38, 4096 }
 0x24b   : > { %v4029_v1 = vadd.f32 %v4028_v30, %v3774_v25  ;;  %12298 = vst [vmem:[#allocation337_spill] sm:$0xff] %v8020_v17  ;;  %v8025_v30 = vpop.f32.mrb[66].mxu1  ;;  %v3777_v25 = vsel %vm11580_vm13, %v7240_v45, 0.0  ;;  %v3778_v14 = vsel %vm11594_vm12, %v7255_v9, 0.0  ;;  %v8063_v9 = vadd.s32 %v6548_v23, %v2496_v54 }
 0x24c   : > { %12299 = vst [vmem:[#allocation338_spill] sm:$0xff] %v8023_v34  ;;  %12300 = vst [vmem:[#allocation339_spill] sm:$0xff] %v8034_v32  ;;  %v8036_v15 = vpop.f32.mrb[67].mxu1  ;;  %vm11593_vm14 = vcmp.lt.s32.totalorder %v8023_v34, 4096  ;;  %vm11597_vm13 = vcmp.lt.s32.totalorder %v8034_v32, 4096  ;;  %v8080_v54 = vadd.s32 %v6548_v23, %v2498_v55  ;;  %v2500_v32 = vadd.s32 1104, %v6540_v18 }
 0x24d   : > { %v4030_v27 = vadd.f32 %v4029_v1, %v3775_v0  ;;  %v8040_v1 = vadd.s32 %v6548_v23, %v2494_v36  ;;  %v2495_v0 = vadd.s32 1064, %v6540_v18  ;;  %12303 = vst [vmem:[#allocation342_spill] sm:$0xff] %v8063_v9  ;;  %vm11609_vm12 = vcmp.lt.s32.totalorder %v8063_v9, 4096 }
 0x24e   : > { %v8055_v45 = vpop.f32.mrb[68].mxu1  ;;  %12305 = vst [vmem:[#allocation344_spill] sm:$0xff] %v8080_v54 }
 0x24f   : > { %v4031_v51 = vadd.f32 %v4030_v27, %v3776_v57  ;;  %12301 = vst [vmem:[#allocation340_spill] sm:$0xff] %v8040_v1  ;;  %v2497_v27 = vadd.s32 1080, %v6540_v18  ;;  %vm11596_vm15 = vcmp.lt.s32.totalorder %v8040_v1, 4096  ;;  %v8052_v36 = vadd.s32 %v6548_v23, %v2495_v0 }
 0x250   : > { %v3780_v0 = vsel %vm11597_vm13, %v7247_v29, 0.0  ;;  %vm11612_vm13 = vcmp.lt.s32.totalorder %v8080_v54, 4096  ;;  %v2502_v1 = vadd.s32 1120, %v6540_v18  ;;  %v2506_v54 = vadd.s32 1152, %v6540_v18 }
 0x251   : > { %v4032_v40 = vadd.f32 %v4031_v51, %v3777_v25  ;;  %12302 = vst [vmem:[#allocation341_spill] sm:$0xff] %v8052_v36  ;;  %v3779_v51 = vsel %vm11593_vm14, %v7235_v5, 0.0  ;;  %v8060_v25 = vpop.f32.mrb[69].mxu1  ;;  %v8074_v22 = vadd.s32 %v6548_v23, %v2497_v27  ;;  %vm11610_vm14 = vcmp.lt.s32.totalorder %v8052_v36, 4096 }
 0x252   : > { %v3782_v27 = vsel %vm11610_vm14, %v7305_v35, 0.0  ;;  %v8103_v35 = vadd.s32 %v6548_v23, %v2500_v32  ;;  %v8120_v32 = vadd.s32 %v6548_v23, %v2502_v1 }
 0x253   : > { %v4033_v57 = vadd.f32 %v4032_v40, %v3778_v14  ;;  %v8065_v40 = vpop.f32.mrb[70].mxu1  ;;  %v3781_v14 = vsel %vm11596_vm15, %v7290_v58, 0.0  ;;  %12304 = vst [vmem:[#allocation343_spill] sm:$0xff] %v8074_v22  ;;  %vm11613_vm15 = vcmp.lt.s32.totalorder %v8074_v22, 4096  ;;  %v2504_v22 = vadd.s32 1136, %v6540_v18 }
 0x254   : > { %v8076_v34 = vpop.f32.mrb[71].mxu1  ;;  %12307 = vst [vmem:[#allocation346_spill] sm:$0xff] %v8103_v35  ;;  %12309 = vst [vmem:[#allocation348_spill] sm:$0xff] %v8120_v32  ;;  %vm11625_vm14 = vcmp.lt.s32.totalorder %v8103_v35, 4096 }
 0x255   : > { %v4034_v38 = vadd.f32 %v4033_v57, %v3779_v51  ;;  %v2499_v57 = vadd.s32 1096, %v6540_v18 }
 0x256   : > { %v8095_v58 = vpop.f32.mrb[72].mxu1 }
 0x257   : > { %v4035_v5 = vadd.f32 %v4034_v38, %v3780_v0  ;;  %v2501_v38 = vadd.s32 1112, %v6540_v18  ;;  %v8092_v55 = vadd.s32 %v6548_v23, %v2499_v57  ;;  %v3784_v57 = vsel %vm11613_vm15, %v7297_v52, 0.0 }
 0x258   : > { %vm11628_vm15 = vcmp.lt.s32.totalorder %v8120_v32, 4096  ;;  %v2510_v32 = vadd.s32 1184, %v6540_v18 }
 0x259   : > { %v4036_v51 = vadd.f32 %v4035_v5, %v3781_v14  ;;  %12306 = vst [vmem:[#allocation345_spill] sm:$0xff] %v8092_v55  ;;  %v3783_v5 = vsel %vm11609_vm12, %v7285_v42, 0.0  ;;  %v8100_v14 = vpop.f32.mrb[73].mxu1  ;;  %v8114_v29 = vadd.s32 %v6548_v23, %v2501_v38  ;;  %vm11626_vm12 = vcmp.lt.s32.totalorder %v8092_v55, 4096 }
 0x25a   : > { %v3786_v38 = vsel %vm11626_vm12, %v7355_v53, 0.0  ;;  %v8143_v53 = vadd.s32 %v6548_v23, %v2504_v22  ;;  %v8160_v22 = vadd.s32 %v6548_v23, %v2506_v54 }
 0x25b   : > { %v4037_v0 = vadd.f32 %v4036_v51, %v3782_v27  ;;  %v8105_v51 = vpop.f32.mrb[74].mxu1  ;;  %v3785_v27 = vsel %vm11612_vm13, %v7340_v20, 0.0  ;;  %12308 = vst [vmem:[#allocation347_spill] sm:$0xff] %v8114_v29  ;;  %vm11629_vm13 = vcmp.lt.s32.totalorder %v8114_v29, 4096  ;;  %v2508_v29 = vadd.s32 1168, %v6540_v18 }
 0x25c   : > { %v8116_v9 = vpop.f32.mrb[75].mxu1  ;;  %12311 = vst [vmem:[#allocation350_spill] sm:$0xff] %v8143_v53  ;;  %12313 = vst [vmem:[#allocation352_spill] sm:$0xff] %v8160_v22  ;;  %vm11641_vm12 = vcmp.lt.s32.totalorder %v8143_v53, 4096 }
 0x25d   : > { %v4038_v36 = vadd.f32 %v4037_v0, %v3783_v5  ;;  %v2503_v0 = vadd.s32 1128, %v6540_v18 }
 0x25e   : > { %v8135_v20 = vpop.f32.mrb[76].mxu1 }
 0x25f   : > { %v4039_v42 = vadd.f32 %v4038_v36, %v3784_v57  ;;  %v2505_v36 = vadd.s32 1144, %v6540_v18  ;;  %v8132_v1 = vadd.s32 %v6548_v23, %v2503_v0  ;;  %v3788_v0 = vsel %vm11629_vm13, %v7347_v19, 0.0 }
 0x260   : > { %vm11644_vm13 = vcmp.lt.s32.totalorder %v8160_v22, 4096  ;;  %v2514_v22 = vadd.s32 1216, %v6540_v18 }
 0x261   : > { %v4040_v5 = vadd.f32 %v4039_v42, %v3785_v27  ;;  %12310 = vst [vmem:[#allocation349_spill] sm:$0xff] %v8132_v1  ;;  %v3787_v42 = vsel %vm11625_vm14, %v7335_v26, 0.0  ;;  %v8140_v27 = vpop.f32.mrb[77].mxu1  ;;  %v8154_v52 = vadd.s32 %v6548_v23, %v2505_v36  ;;  %vm11642_vm14 = vcmp.lt.s32.totalorder %v8132_v1, 4096 }
 0x262   : > { %v3790_v36 = vsel %vm11642_vm14, %v7405_v3, 0.0  ;;  %v8183_v3 = vadd.s32 %v6548_v23, %v2508_v29  ;;  %v8200_v29 = vadd.s32 %v6548_v23, %v2510_v32 }
 0x263   : > { %v4041_v57 = vadd.f32 %v4040_v5, %v3786_v38  ;;  %v8145_v5 = vpop.f32.mrb[78].mxu1  ;;  %v3789_v38 = vsel %vm11628_vm15, %v7390_v60, 0.0  ;;  %12312 = vst [vmem:[#allocation351_spill] sm:$0xff] %v8154_v52  ;;  %vm11645_vm15 = vcmp.lt.s32.totalorder %v8154_v52, 4096  ;;  %v2512_v52 = vadd.s32 1200, %v6540_v18 }
 0x264   : > { %v8156_v35 = vpop.f32.mrb[79].mxu1  ;;  %12315 = vst [vmem:[#allocation354_spill] sm:$0xff] %v8183_v3  ;;  %12317 = vst [vmem:[#allocation356_spill] sm:$0xff] %v8200_v29  ;;  %vm11657_vm14 = vcmp.lt.s32.totalorder %v8183_v3, 4096 }
 0x265   : > { %v4042_v55 = vadd.f32 %v4041_v57, %v3787_v42  ;;  %v2507_v57 = vadd.s32 1160, %v6540_v18 }
 0x266   : > { %v8175_v60 = vpop.f32.mrb[80].mxu1 }
 0x267   : > { %v4043_v26 = vadd.f32 %v4042_v55, %v3788_v0  ;;  %v2509_v55 = vadd.s32 1176, %v6540_v18  ;;  %v8172_v54 = vadd.s32 %v6548_v23, %v2507_v57  ;;  %v3792_v57 = vsel %vm11645_vm15, %v7397_v10, 0.0 }
 0x268   : > { %vm11660_vm15 = vcmp.lt.s32.totalorder %v8200_v29, 4096  ;;  %v2518_v29 = vadd.s32 1248, %v6540_v18 }
 0x269   : > { %v4044_v42 = vadd.f32 %v4043_v26, %v3789_v38  ;;  %12314 = vst [vmem:[#allocation353_spill] sm:$0xff] %v8172_v54  ;;  %v3791_v26 = vsel %vm11641_vm12, %v7385_v50, 0.0  ;;  %v8180_v38 = vpop.f32.mrb[81].mxu1  ;;  %v8194_v19 = vadd.s32 %v6548_v23, %v2509_v55  ;;  %vm11658_vm12 = vcmp.lt.s32.totalorder %v8172_v54, 4096 }
 0x26a   : > { %v3794_v55 = vsel %vm11658_vm12, %v7455_v2, 0.0  ;;  %v8223_v2 = vadd.s32 %v6548_v23, %v2512_v52  ;;  %v8240_v52 = vadd.s32 %v6548_v23, %v2514_v22 }
 0x26b   : > { %v4045_v0 = vadd.f32 %v4044_v42, %v3790_v36  ;;  %v8185_v42 = vpop.f32.mrb[82].mxu1  ;;  %v3793_v36 = vsel %vm11644_vm13, %v7440_v28, 0.0  ;;  %12316 = vst [vmem:[#allocation355_spill] sm:$0xff] %v8194_v19  ;;  %vm11661_vm13 = vcmp.lt.s32.totalorder %v8194_v19, 4096  ;;  %v2516_v19 = vadd.s32 1232, %v6540_v18 }
 0x26c   : > { %v8196_v53 = vpop.f32.mrb[83].mxu1  ;;  %12319 = vst [vmem:[#allocation358_spill] sm:$0xff] %v8223_v2  ;;  %12321 = vst [vmem:[#allocation360_spill] sm:$0xff] %v8240_v52  ;;  %vm11673_vm12 = vcmp.lt.s32.totalorder %v8223_v2, 4096 }
 0x26d   : > { %v4046_v1 = vadd.f32 %v4045_v0, %v3791_v26  ;;  %v2511_v0 = vadd.s32 1192, %v6540_v18 }
 0x26e   : > { %v8215_v28 = vpop.f32.mrb[84].mxu1 }
 0x26f   : > { %v4047_v50 = vadd.f32 %v4046_v1, %v3792_v57  ;;  %v2513_v1 = vadd.s32 1208, %v6540_v18  ;;  %v8212_v32 = vadd.s32 %v6548_v23, %v2511_v0  ;;  %v3796_v0 = vsel %vm11661_vm13, %v7447_v8, 0.0 }
 0x270   : > { %vm11676_vm13 = vcmp.lt.s32.totalorder %v8240_v52, 4096  ;;  %v2522_v52 = vadd.s32 1280, %v6540_v18 }
 0x271   : > { %v4048_v26 = vadd.f32 %v4047_v50, %v3793_v36  ;;  %12318 = vst [vmem:[#allocation357_spill] sm:$0xff] %v8212_v32  ;;  %v3795_v50 = vsel %vm11657_vm14, %v7435_v7, 0.0  ;;  %v8220_v36 = vpop.f32.mrb[85].mxu1  ;;  %v8234_v10 = vadd.s32 %v6548_v23, %v2513_v1  ;;  %vm11674_vm14 = vcmp.lt.s32.totalorder %v8212_v32, 4096 }
 0x272   : > { %v3798_v1 = vsel %vm11674_vm14, %v7504_v31, 0.0  ;;  %v8263_v31 = vadd.s32 %v6548_v23, %v2516_v19  ;;  %v8280_v19 = vadd.s32 %v6548_v23, %v2518_v29 }
 0x273   : > { %v4049_v57 = vadd.f32 %v4048_v26, %v3794_v55  ;;  %v8225_v26 = vpop.f32.mrb[86].mxu1  ;;  %v3797_v55 = vsel %vm11660_vm15, %v7490_v13, 0.0  ;;  %12320 = vst [vmem:[#allocation359_spill] sm:$0xff] %v8234_v10  ;;  %vm11677_vm15 = vcmp.lt.s32.totalorder %v8234_v10, 4096  ;;  %v2520_v10 = vadd.s32 1264, %v6540_v18 }
 0x274   : > { %v8236_v3 = vpop.f32.mrb[87].mxu1  ;;  %12323 = vst [vmem:[#allocation362_spill] sm:$0xff] %v8263_v31  ;;  %12325 = vst [vmem:[#allocation364_spill] sm:$0xff] %v8280_v19  ;;  %vm11689_vm14 = vcmp.lt.s32.totalorder %v8263_v31, 4096 }
 0x275   : > { %v4050_v54 = vadd.f32 %v4049_v57, %v3795_v50  ;;  %v2515_v57 = vadd.s32 1224, %v6540_v18 }
 0x276   : > { %v8255_v13 = vpop.f32.mrb[88].mxu1 }
 0x277   : > { %v4051_v7 = vadd.f32 %v4050_v54, %v3796_v0  ;;  %v2517_v54 = vadd.s32 1240, %v6540_v18  ;;  %v8252_v22 = vadd.s32 %v6548_v23, %v2515_v57  ;;  %v3800_v57 = vsel %vm11677_vm15, %v7497_v59, 0.0 }
 0x278   : > { %vm11692_vm15 = vcmp.lt.s32.totalorder %v8280_v19, 4096  ;;  %v2526_v19 = vadd.s32 1312, %v6540_v18 }
 0x279   : > { %v4052_v50 = vadd.f32 %v4051_v7, %v3797_v55  ;;  %12322 = vst [vmem:[#allocation361_spill] sm:$0xff] %v8252_v22  ;;  %v3799_v7 = vsel %vm11673_vm12, %v7485_v47, 0.0  ;;  %v8260_v55 = vpop.f32.mrb[89].mxu1  ;;  %v8274_v8 = vadd.s32 %v6548_v23, %v2517_v54  ;;  %vm11690_vm12 = vcmp.lt.s32.totalorder %v8252_v22, 4096 }
 0x27a   : > { %v3802_v54 = vsel %vm11690_vm12, %v7552_v6, 0.0  ;;  %v8303_v6 = vadd.s32 %v6548_v23, %v2520_v10  ;;  %v8320_v10 = vadd.s32 %v6548_v23, %v2522_v52 }
 0x27b   : > { %v4053_v0 = vadd.f32 %v4052_v50, %v3798_v1  ;;  %v8265_v50 = vpop.f32.mrb[90].mxu1  ;;  %v3801_v1 = vsel %vm11676_vm13, %v7538_v39, 0.0  ;;  %12324 = vst [vmem:[#allocation363_spill] sm:$0xff] %v8274_v8  ;;  %vm11693_vm13 = vcmp.lt.s32.totalorder %v8274_v8, 4096  ;;  %v2524_v8 = vadd.s32 1296, %v6540_v18 }
 0x27c   : > { %v8276_v2 = vpop.f32.mrb[91].mxu1  ;;  %12327 = vst [vmem:[#allocation366_spill] sm:$0xff] %v8303_v6  ;;  %12329 = vst [vmem:[#allocation368_spill] sm:$0xff] %v8320_v10  ;;  %vm11705_vm12 = vcmp.lt.s32.totalorder %v8303_v6, 4096 }
 0x27d   : > { %v4054_v32 = vadd.f32 %v4053_v0, %v3799_v7  ;;  %v2519_v0 = vadd.s32 1256, %v6540_v18 }
 0x27f   : > { %v4055_v47 = vadd.f32 %v4054_v32, %v3800_v57  ;;  %v2521_v32 = vadd.s32 1272, %v6540_v18  ;;  %v8292_v29 = vadd.s32 %v6548_v23, %v2519_v0  ;;  %v8295_v39 = vpop.f32.mrb[92].mxu1  ;;  %v3804_v0 = vsel %vm11693_vm13, %v7545_v44, 0.0 }
 0x280   : > { %vm11708_vm13 = vcmp.lt.s32.totalorder %v8320_v10, 4096  ;;  %v2530_v10 = vadd.s32 1344, %v6540_v18 }
 0x281   : > { %v4056_v7 = vadd.f32 %v4055_v47, %v3801_v1  ;;  %12326 = vst [vmem:[#allocation365_spill] sm:$0xff] %v8292_v29  ;;  %v3803_v47 = vsel %vm11689_vm14, %v7533_v43, 0.0  ;;  %v8300_v1 = vpop.f32.mrb[93].mxu1  ;;  %v8314_v59 = vadd.s32 %v6548_v23, %v2521_v32  ;;  %vm11706_vm14 = vcmp.lt.s32.totalorder %v8292_v29, 4096 }
 0x282   : > { %v3806_v32 = vsel %vm11706_vm14, %v7600_v61, 0.0  ;;  %v8343_v61 = vadd.s32 %v6548_v23, %v2524_v8  ;;  %v8360_v8 = vadd.s32 %v6548_v23, %v2526_v19 }
 0x283   : > { %v4057_v57 = vadd.f32 %v4056_v7, %v3802_v54  ;;  %v8305_v7 = vpop.f32.mrb[94].mxu1  ;;  %v3805_v54 = vsel %vm11692_vm15, %v7586_v33, 0.0  ;;  %12328 = vst [vmem:[#allocation367_spill] sm:$0xff] %v8314_v59  ;;  %vm11709_vm15 = vcmp.lt.s32.totalorder %v8314_v59, 4096  ;;  %v2528_v59 = vadd.s32 1328, %v6540_v18 }
 0x284   : > { %v8316_v31 = vpop.f32.mrb[95].mxu1  ;;  %12332 = vst [vmem:[#allocation371_spill] sm:$0xff] %v8343_v61  ;;  %12335 = vst [vmem:[#allocation374_spill] sm:$0xff] %v8360_v8  ;;  %vm11721_vm14 = vcmp.lt.s32.totalorder %v8343_v61, 4096 }
 0x285   : > { %v4058_v22 = vadd.f32 %v4057_v57, %v3803_v47  ;;  %v2523_v57 = vadd.s32 1288, %v6540_v18 }
 0x287   : > { %v4059_v43 = vadd.f32 %v4058_v22, %v3804_v0  ;;  %v2525_v22 = vadd.s32 1304, %v6540_v18  ;;  %v8332_v52 = vadd.s32 %v6548_v23, %v2523_v57  ;;  %v8335_v33 = vpop.f32.mrb[96].mxu1  ;;  %v3808_v57 = vsel %vm11709_vm15, %v7593_v41, 0.0 }
 0x288   : > { %12331 = vst [vmem:[#allocation370_spill] sm:$0xff] %v8335_v33  ;;  %vm11724_vm15 = vcmp.lt.s32.totalorder %v8360_v8, 4096  ;;  %v2534_v8 = vadd.s32 1376, %v6540_v18 }
 0x289   : > { %v4060_v47 = vadd.f32 %v4059_v43, %v3805_v54  ;;  %12330 = vst [vmem:[#allocation369_spill] sm:$0xff] %v8332_v52  ;;  %v3807_v43 = vsel %vm11705_vm12, %v7581_v46, 0.0  ;;  %v8340_v54 = vpop.f32.mrb[97].mxu1  ;;  %v8354_v44 = vadd.s32 %v6548_v23, %v2525_v22  ;;  %vm11722_vm12 = vcmp.lt.s32.totalorder %v8332_v52, 4096 }
 0x28a   : > { %v3810_v22 = vsel %vm11722_vm12, %v7648_v48, 0.0  ;;  %v8383_v48 = vadd.s32 %v6548_v23, %v2528_v59  ;;  %v8400_v59 = vadd.s32 %v6548_v23, %v2530_v10 }
 0x28b   : > { %v4061_v0 = vadd.f32 %v4060_v47, %v3806_v32  ;;  %v8345_v47 = vpop.f32.mrb[98].mxu1  ;;  %v3809_v32 = vsel %vm11708_vm13, %v7634_v11, 0.0  ;;  %12334 = vst [vmem:[#allocation373_spill] sm:$0xff] %v8354_v44  ;;  %vm11725_vm13 = vcmp.lt.s32.totalorder %v8354_v44, 4096  ;;  %v2532_v44 = vadd.s32 1360, %v6540_v18 }
 0x28c   : > { %12333 = vst [vmem:[#allocation372_spill] sm:$0xff] %v8345_v47  ;;  %v8356_v6 = vpop.f32.mrb[99].mxu1  ;;  %12339 = vst [vmem:[#allocation378_spill] sm:$0xff] %v8383_v48  ;;  %vm11737_vm12 = vcmp.lt.s32.totalorder %v8383_v48, 4096 }
 0x28d   : > { %v4062_v29 = vadd.f32 %v4061_v0, %v3807_v43  ;;  %v2527_v0 = vadd.s32 1320, %v6540_v18  ;;  %12342 = vst [vmem:[#allocation381_spill] sm:$0xff] %v8400_v59 }
 0x28f   : > { %v4063_v46 = vadd.f32 %v4062_v29, %v3808_v57  ;;  %v2529_v29 = vadd.s32 1336, %v6540_v18  ;;  %v8372_v19 = vadd.s32 %v6548_v23, %v2527_v0  ;;  %v8375_v11 = vpop.f32.mrb[100].mxu1  ;;  %v3812_v0 = vsel %vm11725_vm13, %v7641_v21, 0.0 }
 0x290   : > { %12337 = vst [vmem:[#allocation376_spill] sm:$0xff] %v8375_v11  ;;  %vm11740_vm13 = vcmp.lt.s32.totalorder %v8400_v59, 4096  ;;  %v2538_v59 = vadd.s32 1408, %v6540_v18 }
 0x291   : > { %v4064_v43 = vadd.f32 %v4063_v46, %v3809_v32  ;;  %12336 = vst [vmem:[#allocation375_spill] sm:$0xff] %v8372_v19  ;;  %v3811_v46 = vsel %vm11721_vm14, %v7629_v63, 0.0  ;;  %v8380_v32 = vpop.f32.mrb[101].mxu1  ;;  %v8394_v41 = vadd.s32 %v6548_v23, %v2529_v29  ;;  %vm11738_vm14 = vcmp.lt.s32.totalorder %v8372_v19, 4096 }
 0x292   : > { %12338 = vst [vmem:[#allocation377_spill] sm:$0xff] %v8380_v32  ;;  %v3814_v29 = vsel %vm11738_vm14, %v7696_v49, 0.0  ;;  %v8423_v49 = vadd.s32 %v6548_v23, %v2532_v44  ;;  %v8440_v44 = vadd.s32 %v6548_v23, %v2534_v8 }
 0x293   : > { %v4065_v57 = vadd.f32 %v4064_v43, %v3810_v22  ;;  %v8385_v43 = vpop.f32.mrb[102].mxu1  ;;  %v3813_v22 = vsel %vm11724_vm15, %v7682_v12, 0.0  ;;  %12341 = vst [vmem:[#allocation380_spill] sm:$0xff] %v8394_v41  ;;  %vm11741_vm15 = vcmp.lt.s32.totalorder %v8394_v41, 4096  ;;  %v2536_v41 = vadd.s32 1392, %v6540_v18 }
 0x294   : > { %12340 = vst [vmem:[#allocation379_spill] sm:$0xff] %v8385_v43  ;;  %v8396_v61 = vpop.f32.mrb[103].mxu1  ;;  %12346 = vst [vmem:[#allocation385_spill] sm:$0xff] %v8423_v49  ;;  %vm11754_vm14 = vcmp.lt.s32.totalorder %v8423_v49, 4096 }
 0x295   : > { %v4066_v52 = vadd.f32 %v4065_v57, %v3811_v46  ;;  %v2531_v57 = vadd.s32 1352, %v6540_v18  ;;  %12350 = vst [vmem:[#allocation389_spill] sm:$0xff] %v8440_v44 }
 0x297   : > { %v4067_v63 = vadd.f32 %v4066_v52, %v3812_v0  ;;  %v2533_v52 = vadd.s32 1368, %v6540_v18  ;;  %v8412_v10 = vadd.s32 %v6548_v23, %v2531_v57  ;;  %v8415_v12 = vpop.f32.mrb[104].mxu1  ;;  %v3816_v57 = vsel %vm11741_vm15, %v7689_v56, 0.0 }
 0x298   : > { %12344 = vst [vmem:[#allocation383_spill] sm:$0xff] %v8415_v12  ;;  %vm11757_vm15 = vcmp.lt.s32.totalorder %v8440_v44, 4096  ;;  %v12360_v44 = vld [vmem:[#allocation281_spill] sm:$0xff] }
 0x299   : > { %v4068_v46 = vadd.f32 %v4067_v63, %v3813_v22  ;;  %12343 = vst [vmem:[#allocation382_spill] sm:$0xff] %v8412_v10  ;;  %v3815_v63 = vsel %vm11737_vm12, %v7677_v24, 0.0  ;;  %v8420_v22 = vpop.f32.mrb[105].mxu1  ;;  %v8434_v21 = vadd.s32 %v6548_v23, %v2533_v52  ;;  %vm11755_vm12 = vcmp.lt.s32.totalorder %v8412_v10, 4096 }
 0x29a   : > { %12345 = vst [vmem:[#allocation384_spill] sm:$0xff] %v8420_v22  ;;  %v3818_v52 = vsel %vm11755_vm12, %v7744_v4, 0.0  ;;  %v8463_v4 = vadd.s32 %v6548_v23, %v2536_v41  ;;  %v8480_v41 = vadd.s32 %v6548_v23, %v2538_v59 }
 0x29b   : > { %v4069_v0 = vadd.f32 %v4068_v46, %v3814_v29  ;;  %v8425_v46 = vpop.f32.mrb[106].mxu1  ;;  %v3817_v29 = vsel %vm11740_vm13, %v7730_v37, 0.0  ;;  %12348 = vst [vmem:[#allocation387_spill] sm:$0xff] %v8434_v21  ;;  %vm11759_vm13 = vcmp.lt.s32.totalorder %v8434_v21, 4096  ;;  %v2540_v21 = vadd.s32 1424, %v6540_v18 }
 0x29c   : > { %12347 = vst [vmem:[#allocation386_spill] sm:$0xff] %v8425_v46  ;;  %v8436_v48 = vpop.f32.mrb[107].mxu1  ;;  %12354 = vst [vmem:[#allocation393_spill] sm:$0xff] %v8463_v4  ;;  %vm11768_vm12 = vcmp.lt.s32.totalorder %v8463_v4, 4096 }
 0x29d   : > { %v4070_v19 = vadd.f32 %v4069_v0, %v3815_v63  ;;  %12349 = vst [vmem:[#allocation388_spill] sm:$0xff] %v8436_v48  ;;  %v2535_v0 = vadd.s32 1384, %v6540_v18  ;;  %12359 = vst [vmem:[#allocation397_spill] sm:$0xff] %v8480_v41 }
 0x29f   : > { %v4071_v24 = vadd.f32 %v4070_v19, %v3816_v57  ;;  %v2537_v19 = vadd.s32 1400, %v6540_v18  ;;  %v8452_v8 = vadd.s32 %v6548_v23, %v2535_v0  ;;  %v8455_v37 = vpop.f32.mrb[108].mxu1  ;;  %v3820_v0 = vsel %vm11759_vm13, %v7737_v16, 0.0 }
 0x2a0   : > { %12352 = vst [vmem:[#allocation391_spill] sm:$0xff] %v8455_v37  ;;  %vm11771_vm13 = vcmp.lt.s32.totalorder %v8480_v41, 4096  ;;  %v12372_v41 = vld [vmem:[#allocation293_spill] sm:$0xff] }
 0x2a1   : > { %v4072_v63 = vadd.f32 %v4071_v24, %v3817_v29  ;;  %12351 = vst [vmem:[#allocation390_spill] sm:$0xff] %v8452_v8  ;;  %v3819_v24 = vsel %vm11754_vm14, %v7725_v62, 0.0  ;;  %v8460_v29 = vpop.f32.mrb[109].mxu1  ;;  %v8474_v37 = vadd.s32 %v6548_v23, %v2537_v19  ;;  %vm11769_vm14 = vcmp.lt.s32.totalorder %v8452_v8, 4096 }
 0x2a2   : > { %12353 = vst [vmem:[#allocation392_spill] sm:$0xff] %v8460_v29  ;;  %v3822_v19 = vsel %vm11769_vm14, %v12360_v44, 0.0  ;;  %v8503_v44 = vadd.s32 %v6548_v23, %v2540_v21 }
 0x2a3   : > { %v4073_v57 = vadd.f32 %v4072_v63, %v3818_v52  ;;  %v8465_v63 = vpop.f32.mrb[110].mxu1  ;;  %v12356_v52 = vld [vmem:[#allocation277_spill] sm:$0xff]  ;;  %12357 = vst [vmem:[#allocation395_spill] sm:$0xff] %v8474_v37 }
 0x2a4   : > { %12355 = vst [vmem:[#allocation394_spill] sm:$0xff] %v8465_v63  ;;  %v3821_v56 = vsel %vm11757_vm15, %v12356_v52, 0.0  ;;  %v8476_v49 = vpop.f32.mrb[111].mxu1  ;;  %vm11773_vm15 = vcmp.lt.s32.totalorder %v8474_v37, 4096  ;;  %v2542_v52 = vadd.s32 1440, %v6540_v18  ;;  %12365 = vst [vmem:[#allocation401_spill] sm:$0xff] %v8503_v44 }
 0x2a5   : > { %v4074_v10 = vadd.f32 %v4073_v57, %v3819_v24  ;;  %12358 = vst [vmem:[#allocation396_spill] sm:$0xff] %v8476_v49  ;;  %v2539_v57 = vadd.s32 1416, %v6540_v18  ;;  %v12368_v49 = vld [vmem:[#allocation289_spill] sm:$0xff]  ;;  %vm11780_vm14 = vcmp.lt.s32.totalorder %v8503_v44, 4096  ;;  %v2544_v37 = vadd.s32 1456, %v6540_v18 }
 0x2a6   : > { %v8520_v21 = vadd.s32 %v6548_v23, %v2542_v52 }
 0x2a7   : > { %v4075_v62 = vadd.f32 %v4074_v10, %v3820_v0  ;;  %v2541_v10 = vadd.s32 1432, %v6540_v18  ;;  %v8492_v59 = vadd.s32 %v6548_v23, %v2539_v57  ;;  %v8495_v16 = vpop.f32.mrb[112].mxu1 }
 0x2a8   : > { %12362 = vst [vmem:[#allocation399_spill] sm:$0xff] %v8495_v16  ;;  %v8500_v63 = vpop.f32.mrb[113].mxu1  ;;  %v3825_v16 = vsel %vm11771_vm13, %v12368_v49, 0.0  ;;  %12371 = vst [vmem:[#allocation405_spill] sm:$0xff] %v8520_v21  ;;  %v2546_v49 = vadd.s32 1472, %v6540_v18 }
 0x2a9   : > { %v4076_v24 = vadd.f32 %v4075_v62, %v3821_v56  ;;  %12361 = vst [vmem:[#allocation398_spill] sm:$0xff] %v8492_v59  ;;  %v12363_v56 = vld [vmem:[#allocation276_spill] sm:$0xff]  ;;  %12364 = vst [vmem:[#allocation400_spill] sm:$0xff] %v8500_v63  ;;  %v8514_v29 = vadd.s32 %v6548_v23, %v2541_v10 }
 0x2aa   : > { %v3823_v62 = vsel %vm11768_vm12, %v12363_v56, 0.0  ;;  %vm11781_vm12 = vcmp.lt.s32.totalorder %v8492_v59, 4096 }
 0x2ab   : > { %v4077_v0 = vadd.f32 %v4076_v24, %v3822_v19  ;;  %v8505_v24 = vpop.f32.mrb[114].mxu1  ;;  %v12367_v19 = vld [vmem:[#allocation279_spill] sm:$0xff]  ;;  %12369 = vst [vmem:[#allocation403_spill] sm:$0xff] %v8514_v29  ;;  %vm11785_vm13 = vcmp.lt.s32.totalorder %v8514_v29, 4096  ;;  %v3826_v10 = vsel %vm11781_vm12, %v12372_v41, 0.0  ;;  %v8543_v41 = vadd.s32 %v6548_v23, %v2544_v37 }
 0x2ac   : > { %12366 = vst [vmem:[#allocation402_spill] sm:$0xff] %v8505_v24  ;;  %v3824_v57 = vsel %vm11773_vm15, %v12367_v19, 0.0  ;;  %v8516_v4 = vpop.f32.mrb[115].mxu1  ;;  %vm11783_vm15 = vcmp.lt.s32.totalorder %v8520_v21, 4096  ;;  %v8560_v37 = vadd.s32 %v6548_v23, %v2546_v49  ;;  %v2548_v29 = vadd.s32 1488, %v6540_v18  ;;  %v12384_v21 = vld [vmem:[#allocation305_spill] sm:$0xff] }
 0x2ad   : > { %v4078_v8 = vadd.f32 %v4077_v0, %v3823_v62  ;;  %12370 = vst [vmem:[#allocation404_spill] sm:$0xff] %v8516_v4  ;;  %v2543_v0 = vadd.s32 1448, %v6540_v18  ;;  %12377 = vst [vmem:[#allocation409_spill] sm:$0xff] %v8543_v41  ;;  %v12380_v4 = vld [vmem:[#allocation301_spill] sm:$0xff]  ;;  %vm11792_vm12 = vcmp.lt.s32.totalorder %v8543_v41, 4096 }
 0x2ae   : > { %12383 = vst [vmem:[#allocation413_spill] sm:$0xff] %v8560_v37 }
 0x2af   : > { %v4079_v56 = vadd.f32 %v4078_v8, %v3824_v57  ;;  %v2545_v8 = vadd.s32 1464, %v6540_v18  ;;  %v8532_v52 = vadd.s32 %v6548_v23, %v2543_v0  ;;  %v8535_v19 = vpop.f32.mrb[116].mxu1 }
 0x2b0   : > { %12374 = vst [vmem:[#allocation407_spill] sm:$0xff] %v8535_v19  ;;  %v8540_v24 = vpop.f32.mrb[117].mxu1  ;;  %v3829_v19 = vsel %vm11783_vm15, %v12380_v4, 0.0  ;;  %v2550_v4 = vadd.s32 1504, %v6540_v18 }
 0x2b1   : > { %v4080_v62 = vadd.f32 %v4079_v56, %v3825_v16  ;;  %12373 = vst [vmem:[#allocation406_spill] sm:$0xff] %v8532_v52  ;;  %v12375_v16 = vld [vmem:[#allocation288_spill] sm:$0xff]  ;;  %12376 = vst [vmem:[#allocation408_spill] sm:$0xff] %v8540_v24  ;;  %v8554_v63 = vadd.s32 %v6548_v23, %v2545_v8 }
 0x2b2   : > { %v3827_v56 = vsel %vm11780_vm14, %v12375_v16, 0.0  ;;  %vm11793_vm14 = vcmp.lt.s32.totalorder %v8532_v52, 4096 }
 0x2b3   : > { %v4081_v57 = vadd.f32 %v4080_v62, %v3826_v10  ;;  %v8545_v62 = vpop.f32.mrb[118].mxu1  ;;  %v12379_v10 = vld [vmem:[#allocation291_spill] sm:$0xff]  ;;  %12381 = vst [vmem:[#allocation411_spill] sm:$0xff] %v8554_v63  ;;  %vm11797_vm15 = vcmp.lt.s32.totalorder %v8554_v63, 4096  ;;  %v3830_v8 = vsel %vm11793_vm14, %v12384_v21, 0.0  ;;  %v8583_v21 = vadd.s32 %v6548_v23, %v2548_v29 }
 0x2b4   : > { %12378 = vst [vmem:[#allocation410_spill] sm:$0xff] %v8545_v62  ;;  %v3828_v0 = vsel %vm11785_vm13, %v12379_v10, 0.0  ;;  %v8556_v44 = vpop.f32.mrb[119].mxu1  ;;  %vm11795_vm13 = vcmp.lt.s32.totalorder %v8560_v37, 4096  ;;  %v8600_v29 = vadd.s32 %v6548_v23, %v2550_v4  ;;  %v2552_v63 = vadd.s32 1520, %v6540_v18  ;;  %v12396_v37 = vld [vmem:[#allocation317_spill] sm:$0xff] }
 0x2b5   : > { %v4082_v59 = vadd.f32 %v4081_v57, %v3827_v56  ;;  %12382 = vst [vmem:[#allocation412_spill] sm:$0xff] %v8556_v44  ;;  %v2547_v57 = vadd.s32 1480, %v6540_v18  ;;  %12389 = vst [vmem:[#allocation417_spill] sm:$0xff] %v8583_v21  ;;  %v12392_v44 = vld [vmem:[#allocation313_spill] sm:$0xff]  ;;  %vm11804_vm14 = vcmp.lt.s32.totalorder %v8583_v21, 4096 }
 0x2b6   : > { %12395 = vst [vmem:[#allocation421_spill] sm:$0xff] %v8600_v29 }
 0x2b7   : > { %v4083_v16 = vadd.f32 %v4082_v59, %v3828_v0  ;;  %v2549_v59 = vadd.s32 1496, %v6540_v18  ;;  %v8572_v49 = vadd.s32 %v6548_v23, %v2547_v57  ;;  %v8575_v10 = vpop.f32.mrb[120].mxu1 }
 0x2b8   : > { %12386 = vst [vmem:[#allocation415_spill] sm:$0xff] %v8575_v10  ;;  %v8580_v62 = vpop.f32.mrb[121].mxu1  ;;  %v3833_v10 = vsel %vm11795_vm13, %v12392_v44, 0.0  ;;  %v2554_v44 = vadd.s32 1536, %v6540_v18 }
 0x2b9   : > { %v4084_v56 = vadd.f32 %v4083_v16, %v3829_v19  ;;  %12385 = vst [vmem:[#allocation414_spill] sm:$0xff] %v8572_v49  ;;  %v12387_v19 = vld [vmem:[#allocation300_spill] sm:$0xff]  ;;  %12388 = vst [vmem:[#allocation416_spill] sm:$0xff] %v8580_v62  ;;  %v8594_v24 = vadd.s32 %v6548_v23, %v2549_v59 }
 0x2ba   : > { %v3831_v16 = vsel %vm11792_vm12, %v12387_v19, 0.0  ;;  %vm11805_vm12 = vcmp.lt.s32.totalorder %v8572_v49, 4096 }
 0x2bb   : > { %v4085_v0 = vadd.f32 %v4084_v56, %v3830_v8  ;;  %v8585_v56 = vpop.f32.mrb[122].mxu1  ;;  %v12391_v8 = vld [vmem:[#allocation303_spill] sm:$0xff]  ;;  %12393 = vst [vmem:[#allocation419_spill] sm:$0xff] %v8594_v24  ;;  %vm11809_vm13 = vcmp.lt.s32.totalorder %v8594_v24, 4096  ;;  %v3834_v59 = vsel %vm11805_vm12, %v12396_v37, 0.0  ;;  %v8623_v37 = vadd.s32 %v6548_v23, %v2552_v63 }
 0x2bc   : > { %12390 = vst [vmem:[#allocation418_spill] sm:$0xff] %v8585_v56  ;;  %v3832_v57 = vsel %vm11797_vm15, %v12391_v8, 0.0  ;;  %v8596_v41 = vpop.f32.mrb[123].mxu1  ;;  %vm11807_vm15 = vcmp.lt.s32.totalorder %v8600_v29, 4096  ;;  %v8640_v63 = vadd.s32 %v6548_v23, %v2554_v44  ;;  %v2556_v24 = vadd.s32 1552, %v6540_v18  ;;  %v12408_v29 = vld [vmem:[#allocation330_spill] sm:$0xff] }
 0x2bd   : > { %v4086_v52 = vadd.f32 %v4085_v0, %v3831_v16  ;;  %12394 = vst [vmem:[#allocation420_spill] sm:$0xff] %v8596_v41  ;;  %v2551_v0 = vadd.s32 1512, %v6540_v18  ;;  %12401 = vst [vmem:[#allocation425_spill] sm:$0xff] %v8623_v37  ;;  %v12404_v41 = vld [vmem:[#allocation325_spill] sm:$0xff]  ;;  %vm11814_vm12 = vcmp.lt.s32.totalorder %v8623_v37, 4096 }
 0x2be   : > { %12407 = vst [vmem:[#allocation429_spill] sm:$0xff] %v8640_v63 }
 0x2bf   : > { %v4087_v19 = vadd.f32 %v4086_v52, %v3832_v57  ;;  %v2553_v52 = vadd.s32 1528, %v6540_v18  ;;  %v8612_v4 = vadd.s32 %v6548_v23, %v2551_v0  ;;  %v8615_v8 = vpop.f32.mrb[124].mxu1 }
 0x2c0   : > { %12398 = vst [vmem:[#allocation423_spill] sm:$0xff] %v8615_v8  ;;  %v8620_v56 = vpop.f32.mrb[125].mxu1  ;;  %v3837_v8 = vsel %vm11807_vm15, %v12404_v41, 0.0  ;;  %v2558_v41 = vadd.s32 1568, %v6540_v18 }
 0x2c1   : > { %v4088_v16 = vadd.f32 %v4087_v19, %v3833_v10  ;;  %12397 = vst [vmem:[#allocation422_spill] sm:$0xff] %v8612_v4  ;;  %v12399_v10 = vld [vmem:[#allocation312_spill] sm:$0xff]  ;;  %12400 = vst [vmem:[#allocation424_spill] sm:$0xff] %v8620_v56  ;;  %v8634_v62 = vadd.s32 %v6548_v23, %v2553_v52 }
 0x2c2   : > { %v3835_v19 = vsel %vm11804_vm14, %v12399_v10, 0.0  ;;  %vm11812_vm14 = vcmp.lt.s32.totalorder %v8612_v4, 4096  ;;  %v12412_v4 = vld [vmem:[#allocation327_spill] sm:$0xff]  ;;  %v8672_v37 = vadd.s32 %v6548_v23, %v2558_v41 }
 0x2c3   : > { %v4089_v57 = vadd.f32 %v4088_v16, %v3834_v59  ;;  %v8625_v16 = vpop.f32.mrb[126].mxu1  ;;  %v12403_v59 = vld [vmem:[#allocation315_spill] sm:$0xff]  ;;  %12405 = vst [vmem:[#allocation427_spill] sm:$0xff] %v8634_v62  ;;  %vm11815_vm15 = vcmp.lt.s32.totalorder %v8634_v62, 4096  ;;  %v3838_v52 = vsel %vm11812_vm14, %v12408_v29, 0.0  ;;  %v12416_v62 = vld [vmem:[#allocation336_spill] sm:$0xff] }
 0x2c4   : > { %12402 = vst [vmem:[#allocation426_spill] sm:$0xff] %v8625_v16  ;;  %v3836_v0 = vsel %vm11809_vm13, %v12403_v59, 0.0  ;;  %v8636_v21 = vpop.f32.mrb[127].mxu1  ;;  %vm11816_vm13 = vcmp.lt.s32.totalorder %v8640_v63, 4096  ;;  %v12410_v59 = vld [vmem:[#allocation324_spill] sm:$0xff]  ;;  %v8659_v16 = vadd.s32 %v6548_v23, %v2556_v24  ;;  %v3840_v29 = vsel %vm11815_vm15, %v12412_v4, 0.0 }
 0x2c5   : > { %v4090_v49 = vadd.f32 %v4089_v57, %v3835_v19  ;;  %12406 = vst [vmem:[#allocation428_spill] sm:$0xff] %v8636_v21  ;;  %v2555_v57 = vadd.s32 1544, %v6540_v18  ;;  %12414 = vst [vmem:[#allocation431_spill] sm:$0xff] %v8672_v37  ;;  %v2559_v24 = vadd.s32 1576, %v6540_v18  ;;  %v2562_v63 = vadd.s32 1600, %v6540_v18 }
 0x2c6   : > { %12411 = vst [vmem:[#allocation324_spill] sm:$0xff] %v8659_v16 }
 0x2c7   : > { %v4091_v10 = vadd.f32 %v4090_v49, %v3836_v0  ;;  %v2557_v49 = vadd.s32 1560, %v6540_v18  ;;  %v8652_v44 = vadd.s32 %v6548_v23, %v2555_v57  ;;  %v8684_v41 = vadd.s32 %v6548_v23, %v2559_v24 }
 0x2c9   : > { %v4092_v19 = vadd.f32 %v4091_v10, %v3837_v8  ;;  %12409 = vst [vmem:[#allocation430_spill] sm:$0xff] %v8652_v44  ;;  %v3839_v8 = vsel %vm11814_vm12, %v12410_v59, 0.0  ;;  %v8668_v57 = vadd.s32 %v6548_v23, %v2557_v49  ;;  %vm11822_vm14 = vcmp.lt.s32.totalorder %v8652_v44, 4096  ;;  %12415 = vst [vmem:[#allocation432_spill] sm:$0xff] %v8684_v41 }
 0x2ca   : > { %vm11824_vm12 = vcmp.lt.s32.totalorder %v8659_v16, 4096  ;;  %v3842_v49 = vsel %vm11822_vm14, %v8036_v15, 0.0  ;;  %vm11830_vm14 = vcmp.lt.s32.totalorder %v8684_v41, 4096  ;;  %v8704_v16 = vadd.s32 %v6548_v23, %v2562_v63 }
 0x2cb   : > { %v4093_v0 = vadd.f32 %v4092_v19, %v3838_v52  ;;  %v3841_v19 = vsel %vm11816_vm13, %v8020_v17, 0.0  ;;  %12413 = vst [vmem:[#allocation327_spill] sm:$0xff] %v8668_v57  ;;  %vm11825_vm15 = vcmp.lt.s32.totalorder %v8668_v57, 4096  ;;  %vm11826_vm13 = vcmp.lt.s32.totalorder %v8672_v37, 4096 }
 0x2cc   : > { %v3844_v44 = vsel %vm11825_vm15, %v8025_v30, 0.0  ;;  %12419 = vst [vmem:[#allocation434_spill] sm:$0xff] %v8704_v16  ;;  %v2566_v37 = vadd.s32 1632, %v6540_v18 }
 0x2cd   : > { %v4094_v10 = vadd.f32 %v4093_v0, %v3839_v8  ;;  %v2560_v8 = vadd.s32 1584, %v6540_v18 }
 0x2cf   : > { %v4095_v52 = vadd.f32 %v4094_v10, %v3840_v29  ;;  %v2561_v29 = vadd.s32 1592, %v6540_v18  ;;  %v8691_v17 = vadd.s32 %v6548_v23, %v2560_v8  ;;  %v2563_v8 = vadd.s32 1608, %v6540_v18 }
 0x2d1   : > { %v4096_v0 = vadd.f32 %v4095_v52, %v3841_v19  ;;  %v3843_v19 = vsel %vm11824_vm12, %v12416_v62, 0.0  ;;  %12417 = vst [vmem:[#allocation336_spill] sm:$0xff] %v8691_v17  ;;  %v8700_v24 = vadd.s32 %v6548_v23, %v2561_v29  ;;  %vm11832_vm12 = vcmp.lt.s32.totalorder %v8691_v17, 4096 }
 0x2d2   : > { %v3846_v29 = vsel %vm11830_vm14, %v8076_v34, 0.0  ;;  %v8716_v63 = vadd.s32 %v6548_v23, %v2563_v8  ;;  %v8736_v17 = vadd.s32 %v6548_v23, %v2566_v37 }
 0x2d3   : > { %v4097_v10 = vadd.f32 %v4096_v0, %v3842_v49  ;;  %v3845_v0 = vsel %vm11826_vm13, %v8060_v25, 0.0  ;;  %12418 = vst [vmem:[#allocation433_spill] sm:$0xff] %v8700_v24  ;;  %vm11833_vm15 = vcmp.lt.s32.totalorder %v8700_v24, 4096  ;;  %vm11834_vm13 = vcmp.lt.s32.totalorder %v8704_v16, 4096 }
 0x2d4   : > { %12420 = vst [vmem:[#allocation435_spill] sm:$0xff] %v8716_v63  ;;  %v3848_v41 = vsel %vm11833_vm15, %v8065_v40, 0.0  ;;  %vm11838_vm14 = vcmp.lt.s32.totalorder %v8716_v63, 4096  ;;  %12423 = vst [vmem:[#allocation438_spill] sm:$0xff] %v8736_v17  ;;  %v2570_v16 = vadd.s32 1664, %v6540_v18 }
 0x2d5   : > { %v4098_v52 = vadd.f32 %v4097_v10, %v3843_v19  ;;  %v2564_v19 = vadd.s32 1616, %v6540_v18 }
 0x2d7   : > { %v4099_v49 = vadd.f32 %v4098_v52, %v3844_v44  ;;  %v2565_v44 = vadd.s32 1624, %v6540_v18  ;;  %v8723_v57 = vadd.s32 %v6548_v23, %v2564_v19  ;;  %v2567_v19 = vadd.s32 1640, %v6540_v18 }
 0x2d9   : > { %v4100_v10 = vadd.f32 %v4099_v49, %v3845_v0  ;;  %v3847_v0 = vsel %vm11832_vm12, %v8055_v45, 0.0  ;;  %12421 = vst [vmem:[#allocation436_spill] sm:$0xff] %v8723_v57  ;;  %v8732_v8 = vadd.s32 %v6548_v23, %v2565_v44  ;;  %vm11840_vm12 = vcmp.lt.s32.totalorder %v8723_v57, 4096 }
 0x2da   : > { %v3850_v44 = vsel %vm11838_vm14, %v8116_v9, 0.0  ;;  %v8748_v37 = vadd.s32 %v6548_v23, %v2567_v19  ;;  %v8768_v57 = vadd.s32 %v6548_v23, %v2570_v16 }
 0x2db   : > { %v4101_v52 = vadd.f32 %v4100_v10, %v3846_v29  ;;  %v3849_v10 = vsel %vm11834_vm13, %v8100_v14, 0.0  ;;  %12422 = vst [vmem:[#allocation437_spill] sm:$0xff] %v8732_v8  ;;  %vm11841_vm15 = vcmp.lt.s32.totalorder %v8732_v8, 4096  ;;  %vm11842_vm13 = vcmp.lt.s32.totalorder %v8736_v17, 4096 }
 0x2dc   : > { %12424 = vst [vmem:[#allocation439_spill] sm:$0xff] %v8748_v37  ;;  %v3852_v63 = vsel %vm11841_vm15, %v8105_v51, 0.0  ;;  %vm11846_vm14 = vcmp.lt.s32.totalorder %v8748_v37, 4096  ;;  %12427 = vst [vmem:[#allocation442_spill] sm:$0xff] %v8768_v57  ;;  %v2574_v17 = vadd.s32 1696, %v6540_v18 }
 0x2dd   : > { %v4102_v49 = vadd.f32 %v4101_v52, %v3847_v0  ;;  %v2568_v0 = vadd.s32 1648, %v6540_v18 }
 0x2df   : > { %v4103_v29 = vadd.f32 %v4102_v49, %v3848_v41  ;;  %v2569_v41 = vadd.s32 1656, %v6540_v18  ;;  %v8755_v24 = vadd.s32 %v6548_v23, %v2568_v0  ;;  %v2571_v0 = vadd.s32 1672, %v6540_v18 }
 0x2e1   : > { %v4104_v52 = vadd.f32 %v4103_v29, %v3849_v10  ;;  %v3851_v10 = vsel %vm11840_vm12, %v8095_v58, 0.0  ;;  %12425 = vst [vmem:[#allocation440_spill] sm:$0xff] %v8755_v24  ;;  %v8764_v19 = vadd.s32 %v6548_v23, %v2569_v41  ;;  %vm11848_vm12 = vcmp.lt.s32.totalorder %v8755_v24, 4096 }
 0x2e2   : > { %v3854_v41 = vsel %vm11846_vm14, %v8156_v35, 0.0  ;;  %v8780_v16 = vadd.s32 %v6548_v23, %v2571_v0  ;;  %v8800_v24 = vadd.s32 %v6548_v23, %v2574_v17 }
 0x2e3   : > { %v4105_v49 = vadd.f32 %v4104_v52, %v3850_v44  ;;  %v3853_v52 = vsel %vm11842_vm13, %v8140_v27, 0.0  ;;  %12426 = vst [vmem:[#allocation441_spill] sm:$0xff] %v8764_v19  ;;  %vm11849_vm15 = vcmp.lt.s32.totalorder %v8764_v19, 4096  ;;  %vm11850_vm13 = vcmp.lt.s32.totalorder %v8768_v57, 4096 }
 0x2e4   : > { %12428 = vst [vmem:[#allocation443_spill] sm:$0xff] %v8780_v16  ;;  %v3856_v37 = vsel %vm11849_vm15, %v8145_v5, 0.0  ;;  %vm11854_vm14 = vcmp.lt.s32.totalorder %v8780_v16, 4096  ;;  %12431 = vst [vmem:[#allocation446_spill] sm:$0xff] %v8800_v24  ;;  %v2578_v57 = vadd.s32 1728, %v6540_v18 }
 0x2e5   : > { %v4106_v29 = vadd.f32 %v4105_v49, %v3851_v10  ;;  %v2572_v10 = vadd.s32 1680, %v6540_v18 }
 0x2e7   : > { %v4107_v44 = vadd.f32 %v4106_v29, %v3852_v63  ;;  %v2573_v63 = vadd.s32 1688, %v6540_v18  ;;  %v8787_v8 = vadd.s32 %v6548_v23, %v2572_v10  ;;  %v2575_v10 = vadd.s32 1704, %v6540_v18 }
 0x2e9   : > { %v4108_v49 = vadd.f32 %v4107_v44, %v3853_v52  ;;  %v3855_v52 = vsel %vm11848_vm12, %v8135_v20, 0.0  ;;  %12429 = vst [vmem:[#allocation444_spill] sm:$0xff] %v8787_v8  ;;  %v8796_v0 = vadd.s32 %v6548_v23, %v2573_v63  ;;  %vm11856_vm12 = vcmp.lt.s32.totalorder %v8787_v8, 4096 }
 0x2ea   : > { %v3858_v63 = vsel %vm11854_vm14, %v8196_v53, 0.0  ;;  %v8812_v17 = vadd.s32 %v6548_v23, %v2575_v10  ;;  %v8832_v8 = vadd.s32 %v6548_v23, %v2578_v57 }
 0x2eb   : > { %v4109_v29 = vadd.f32 %v4108_v49, %v3854_v41  ;;  %v3857_v49 = vsel %vm11850_vm13, %v8180_v38, 0.0  ;;  %12430 = vst [vmem:[#allocation445_spill] sm:$0xff] %v8796_v0  ;;  %vm11857_vm15 = vcmp.lt.s32.totalorder %v8796_v0, 4096  ;;  %vm11858_vm13 = vcmp.lt.s32.totalorder %v8800_v24, 4096 }
 0x2ec   : > { %12432 = vst [vmem:[#allocation447_spill] sm:$0xff] %v8812_v17  ;;  %v3860_v16 = vsel %vm11857_vm15, %v8185_v42, 0.0  ;;  %vm11862_vm14 = vcmp.lt.s32.totalorder %v8812_v17, 4096  ;;  %12435 = vst [vmem:[#allocation450_spill] sm:$0xff] %v8832_v8  ;;  %v2582_v24 = vadd.s32 1760, %v6540_v18 }
 0x2ed   : > { %v4110_v44 = vadd.f32 %v4109_v29, %v3855_v52  ;;  %v2576_v52 = vadd.s32 1712, %v6540_v18 }
 0x2ef   : > { %v4111_v41 = vadd.f32 %v4110_v44, %v3856_v37  ;;  %v2577_v37 = vadd.s32 1720, %v6540_v18  ;;  %v8819_v19 = vadd.s32 %v6548_v23, %v2576_v52  ;;  %v2579_v52 = vadd.s32 1736, %v6540_v18 }
 0x2f1   : > { %v4112_v29 = vadd.f32 %v4111_v41, %v3857_v49  ;;  %v3859_v49 = vsel %vm11856_vm12, %v8175_v60, 0.0  ;;  %12433 = vst [vmem:[#allocation448_spill] sm:$0xff] %v8819_v19  ;;  %v8828_v10 = vadd.s32 %v6548_v23, %v2577_v37  ;;  %vm11864_vm12 = vcmp.lt.s32.totalorder %v8819_v19, 4096 }
 0x2f2   : > { %v3862_v37 = vsel %vm11862_vm14, %v8236_v3, 0.0  ;;  %v8844_v57 = vadd.s32 %v6548_v23, %v2579_v52  ;;  %v8864_v19 = vadd.s32 %v6548_v23, %v2582_v24 }
 0x2f3   : > { %v4113_v44 = vadd.f32 %v4112_v29, %v3858_v63  ;;  %v3861_v29 = vsel %vm11858_vm13, %v8220_v36, 0.0  ;;  %12434 = vst [vmem:[#allocation449_spill] sm:$0xff] %v8828_v10  ;;  %vm11865_vm15 = vcmp.lt.s32.totalorder %v8828_v10, 4096  ;;  %vm11866_vm13 = vcmp.lt.s32.totalorder %v8832_v8, 4096 }
 0x2f4   : > { %12436 = vst [vmem:[#allocation451_spill] sm:$0xff] %v8844_v57  ;;  %v3864_v17 = vsel %vm11865_vm15, %v8225_v26, 0.0  ;;  %vm11870_vm14 = vcmp.lt.s32.totalorder %v8844_v57, 4096  ;;  %12439 = vst [vmem:[#allocation454_spill] sm:$0xff] %v8864_v19  ;;  %v2586_v8 = vadd.s32 1792, %v6540_v18 }
 0x2f5   : > { %v4114_v41 = vadd.f32 %v4113_v44, %v3859_v49  ;;  %v2580_v49 = vadd.s32 1744, %v6540_v18 }
 0x2f7   : > { %v4115_v63 = vadd.f32 %v4114_v41, %v3860_v16  ;;  %v2581_v16 = vadd.s32 1752, %v6540_v18  ;;  %v8851_v0 = vadd.s32 %v6548_v23, %v2580_v49  ;;  %v2583_v49 = vadd.s32 1768, %v6540_v18 }
 0x2f9   : > { %v4116_v44 = vadd.f32 %v4115_v63, %v3861_v29  ;;  %v3863_v29 = vsel %vm11864_vm12, %v8215_v28, 0.0  ;;  %12437 = vst [vmem:[#allocation452_spill] sm:$0xff] %v8851_v0  ;;  %v8860_v52 = vadd.s32 %v6548_v23, %v2581_v16  ;;  %vm11872_vm12 = vcmp.lt.s32.totalorder %v8851_v0, 4096 }
 0x2fa   : > { %v3866_v16 = vsel %vm11870_vm14, %v8276_v2, 0.0  ;;  %v8876_v24 = vadd.s32 %v6548_v23, %v2583_v49  ;;  %v8896_v0 = vadd.s32 %v6548_v23, %v2586_v8 }
 0x2fb   : > { %v4117_v41 = vadd.f32 %v4116_v44, %v3862_v37  ;;  %v3865_v44 = vsel %vm11866_vm13, %v8260_v55, 0.0  ;;  %12438 = vst [vmem:[#allocation453_spill] sm:$0xff] %v8860_v52  ;;  %vm11873_vm15 = vcmp.lt.s32.totalorder %v8860_v52, 4096  ;;  %vm11874_vm13 = vcmp.lt.s32.totalorder %v8864_v19, 4096 }
 0x2fc   : > { %12440 = vst [vmem:[#allocation455_spill] sm:$0xff] %v8876_v24  ;;  %v3868_v57 = vsel %vm11873_vm15, %v8265_v50, 0.0  ;;  %vm11878_vm14 = vcmp.lt.s32.totalorder %v8876_v24, 4096  ;;  %12443 = vst [vmem:[#allocation458_spill] sm:$0xff] %v8896_v0  ;;  %v2590_v19 = vadd.s32 1824, %v6540_v18 }
 0x2fd   : > { %v4118_v63 = vadd.f32 %v4117_v41, %v3863_v29  ;;  %v2584_v29 = vadd.s32 1776, %v6540_v18 }
 0x2ff   : > { %v4119_v37 = vadd.f32 %v4118_v63, %v3864_v17  ;;  %v2585_v17 = vadd.s32 1784, %v6540_v18  ;;  %v8883_v10 = vadd.s32 %v6548_v23, %v2584_v29  ;;  %v2587_v29 = vadd.s32 1800, %v6540_v18 }
 0x301   : > { %v4120_v41 = vadd.f32 %v4119_v37, %v3865_v44  ;;  %v3867_v44 = vsel %vm11872_vm12, %v8255_v13, 0.0  ;;  %12441 = vst [vmem:[#allocation456_spill] sm:$0xff] %v8883_v10  ;;  %v8892_v49 = vadd.s32 %v6548_v23, %v2585_v17  ;;  %vm11880_vm12 = vcmp.lt.s32.totalorder %v8883_v10, 4096 }
 0x302   : > { %v3870_v17 = vsel %vm11878_vm14, %v8316_v31, 0.0  ;;  %v8908_v8 = vadd.s32 %v6548_v23, %v2587_v29  ;;  %v8928_v10 = vadd.s32 %v6548_v23, %v2590_v19 }
 0x303   : > { %v4121_v63 = vadd.f32 %v4120_v41, %v3866_v16  ;;  %v3869_v41 = vsel %vm11874_vm13, %v8300_v1, 0.0  ;;  %12442 = vst [vmem:[#allocation457_spill] sm:$0xff] %v8892_v49  ;;  %vm11881_vm15 = vcmp.lt.s32.totalorder %v8892_v49, 4096  ;;  %vm11882_vm13 = vcmp.lt.s32.totalorder %v8896_v0, 4096 }
 0x304   : > { %12444 = vst [vmem:[#allocation459_spill] sm:$0xff] %v8908_v8  ;;  %v3872_v24 = vsel %vm11881_vm15, %v8305_v7, 0.0  ;;  %vm11886_vm14 = vcmp.lt.s32.totalorder %v8908_v8, 4096  ;;  %12447 = vst [vmem:[#allocation462_spill] sm:$0xff] %v8928_v10  ;;  %v2594_v0 = vadd.s32 1856, %v6540_v18 }
 0x305   : > { %v4122_v37 = vadd.f32 %v4121_v63, %v3867_v44  ;;  %v2588_v44 = vadd.s32 1808, %v6540_v18 }
 0x307   : > { %v4123_v16 = vadd.f32 %v4122_v37, %v3868_v57  ;;  %v2589_v57 = vadd.s32 1816, %v6540_v18  ;;  %v8915_v52 = vadd.s32 %v6548_v23, %v2588_v44  ;;  %v2591_v44 = vadd.s32 1832, %v6540_v18 }
 0x309   : > { %v4124_v63 = vadd.f32 %v4123_v16, %v3869_v41  ;;  %v3871_v41 = vsel %vm11880_vm12, %v8295_v39, 0.0  ;;  %12445 = vst [vmem:[#allocation460_spill] sm:$0xff] %v8915_v52  ;;  %v8924_v29 = vadd.s32 %v6548_v23, %v2589_v57  ;;  %vm11888_vm12 = vcmp.lt.s32.totalorder %v8915_v52, 4096 }
 0x30a   : > { %v3874_v57 = vsel %vm11886_vm14, %v8356_v6, 0.0  ;;  %v8940_v19 = vadd.s32 %v6548_v23, %v2591_v44  ;;  %v8960_v52 = vadd.s32 %v6548_v23, %v2594_v0 }
 0x30b   : > { %v4125_v37 = vadd.f32 %v4124_v63, %v3870_v17  ;;  %v3873_v63 = vsel %vm11882_vm13, %v8340_v54, 0.0  ;;  %12446 = vst [vmem:[#allocation461_spill] sm:$0xff] %v8924_v29  ;;  %vm11889_vm15 = vcmp.lt.s32.totalorder %v8924_v29, 4096  ;;  %vm11890_vm13 = vcmp.lt.s32.totalorder %v8928_v10, 4096 }
 0x30c   : > { %12448 = vst [vmem:[#allocation463_spill] sm:$0xff] %v8940_v19  ;;  %v3876_v8 = vsel %vm11889_vm15, %v8345_v47, 0.0  ;;  %vm11894_vm14 = vcmp.lt.s32.totalorder %v8940_v19, 4096  ;;  %12451 = vst [vmem:[#allocation466_spill] sm:$0xff] %v8960_v52  ;;  %v2598_v10 = vadd.s32 1888, %v6540_v18 }
 0x30d   : > { %v4126_v16 = vadd.f32 %v4125_v37, %v3871_v41  ;;  %v2592_v41 = vadd.s32 1840, %v6540_v18 }
 0x30f   : > { %v4127_v17 = vadd.f32 %v4126_v16, %v3872_v24  ;;  %v2593_v24 = vadd.s32 1848, %v6540_v18  ;;  %v8947_v49 = vadd.s32 %v6548_v23, %v2592_v41  ;;  %v2595_v41 = vadd.s32 1864, %v6540_v18 }
 0x311   : > { %v4128_v37 = vadd.f32 %v4127_v17, %v3873_v63  ;;  %v3875_v63 = vsel %vm11888_vm12, %v8335_v33, 0.0  ;;  %12449 = vst [vmem:[#allocation464_spill] sm:$0xff] %v8947_v49  ;;  %v8956_v44 = vadd.s32 %v6548_v23, %v2593_v24  ;;  %vm11896_vm12 = vcmp.lt.s32.totalorder %v8947_v49, 4096 }
 0x312   : > { %v3878_v24 = vsel %vm11894_vm14, %v8396_v61, 0.0  ;;  %v8972_v0 = vadd.s32 %v6548_v23, %v2595_v41  ;;  %v8992_v49 = vadd.s32 %v6548_v23, %v2598_v10 }
 0x313   : > { %v4129_v16 = vadd.f32 %v4128_v37, %v3874_v57  ;;  %v3877_v37 = vsel %vm11890_vm13, %v8380_v32, 0.0  ;;  %12450 = vst [vmem:[#allocation465_spill] sm:$0xff] %v8956_v44  ;;  %vm11897_vm15 = vcmp.lt.s32.totalorder %v8956_v44, 4096  ;;  %vm11898_vm13 = vcmp.lt.s32.totalorder %v8960_v52, 4096 }
 0x314   : > { %12452 = vst [vmem:[#allocation467_spill] sm:$0xff] %v8972_v0  ;;  %v3880_v19 = vsel %vm11897_vm15, %v8385_v43, 0.0  ;;  %vm11904_vm14 = vcmp.lt.s32.totalorder %v8972_v0, 4096  ;;  %12455 = vst [vmem:[#allocation470_spill] sm:$0xff] %v8992_v49  ;;  %v2602_v52 = vadd.s32 1920, %v6540_v18 }
 0x315   : > { %v4130_v17 = vadd.f32 %v4129_v16, %v3875_v63  ;;  %v2596_v63 = vadd.s32 1872, %v6540_v18 }
 0x317   : > { %v4131_v57 = vadd.f32 %v4130_v17, %v3876_v8  ;;  %v2597_v8 = vadd.s32 1880, %v6540_v18  ;;  %v8979_v29 = vadd.s32 %v6548_v23, %v2596_v63  ;;  %v2599_v63 = vadd.s32 1896, %v6540_v18 }
 0x319   : > { %v4132_v16 = vadd.f32 %v4131_v57, %v3877_v37  ;;  %v3879_v37 = vsel %vm11896_vm12, %v8375_v11, 0.0  ;;  %12453 = vst [vmem:[#allocation468_spill] sm:$0xff] %v8979_v29  ;;  %v8988_v41 = vadd.s32 %v6548_v23, %v2597_v8  ;;  %vm11906_vm12 = vcmp.lt.s32.totalorder %v8979_v29, 4096 }
 0x31a   : > { %v3882_v8 = vsel %vm11904_vm14, %v8436_v48, 0.0  ;;  %v9004_v10 = vadd.s32 %v6548_v23, %v2599_v63  ;;  %v9024_v29 = vadd.s32 %v6548_v23, %v2602_v52 }
 0x31b   : > { %v4133_v17 = vadd.f32 %v4132_v16, %v3878_v24  ;;  %v3881_v16 = vsel %vm11898_vm13, %v8420_v22, 0.0  ;;  %12454 = vst [vmem:[#allocation469_spill] sm:$0xff] %v8988_v41  ;;  %vm11907_vm15 = vcmp.lt.s32.totalorder %v8988_v41, 4096  ;;  %vm11909_vm13 = vcmp.lt.s32.totalorder %v8992_v49, 4096  ;;  %v12461_v49 = vld [vmem:[#allocation396_spill] sm:$0xff] }
 0x31c   : > { %12456 = vst [vmem:[#allocation471_spill] sm:$0xff] %v9004_v10  ;;  %v3884_v0 = vsel %vm11907_vm15, %v8425_v46, 0.0  ;;  %vm11916_vm14 = vcmp.lt.s32.totalorder %v9004_v10, 4096  ;;  %12460 = vst [vmem:[#allocation474_spill] sm:$0xff] %v9024_v29  ;;  %v2606_v41 = vadd.s32 1952, %v6540_v18  ;;  %v12465_v10 = vld [vmem:[#allocation394_spill] sm:$0xff] }
 0x31d   : > { %v4134_v57 = vadd.f32 %v4133_v17, %v3879_v37  ;;  %v2600_v37 = vadd.s32 1904, %v6540_v18 }
 0x31f   : > { %v4135_v24 = vadd.f32 %v4134_v57, %v3880_v19  ;;  %v2601_v19 = vadd.s32 1912, %v6540_v18  ;;  %v9011_v44 = vadd.s32 %v6548_v23, %v2600_v37  ;;  %v2603_v37 = vadd.s32 1928, %v6540_v18 }
 0x321   : > { %v4136_v17 = vadd.f32 %v4135_v24, %v3881_v16  ;;  %v3883_v16 = vsel %vm11906_vm12, %v8415_v12, 0.0  ;;  %12457 = vst [vmem:[#allocation472_spill] sm:$0xff] %v9011_v44  ;;  %v9020_v63 = vadd.s32 %v6548_v23, %v2601_v19  ;;  %vm11918_vm12 = vcmp.lt.s32.totalorder %v9011_v44, 4096 }
 0x322   : > { %v3886_v19 = vsel %vm11916_vm14, %v12461_v49, 0.0  ;;  %v9036_v52 = vadd.s32 %v6548_v23, %v2603_v37  ;;  %v9056_v44 = vadd.s32 %v6548_v23, %v2606_v41 }
 0x323   : > { %v4137_v57 = vadd.f32 %v4136_v17, %v3882_v8  ;;  %v12458_v17 = vld [vmem:[#allocation392_spill] sm:$0xff]  ;;  %12459 = vst [vmem:[#allocation473_spill] sm:$0xff] %v9020_v63  ;;  %vm11919_vm15 = vcmp.lt.s32.totalorder %v9020_v63, 4096  ;;  %v2610_v63 = vadd.s32 1984, %v6540_v18 }
 0x324   : > { %v3885_v8 = vsel %vm11909_vm13, %v12458_v17, 0.0  ;;  %vm11921_vm13 = vcmp.lt.s32.totalorder %v9024_v29, 4096  ;;  %12462 = vst [vmem:[#allocation475_spill] sm:$0xff] %v9036_v52  ;;  %v12463_v17 = vld [vmem:[#allocation391_spill] sm:$0xff]  ;;  %v3888_v49 = vsel %vm11919_vm15, %v12465_v10, 0.0  ;;  %vm11924_vm14 = vcmp.lt.s32.totalorder %v9036_v52, 4096 }
 0x325   : > { %v4138_v24 = vadd.f32 %v4137_v57, %v3883_v16  ;;  %v2604_v16 = vadd.s32 1936, %v6540_v18  ;;  %12468 = vst [vmem:[#allocation478_spill] sm:$0xff] %v9056_v44  ;;  %v12469_v29 = vld [vmem:[#allocation404_spill] sm:$0xff]  ;;  %v12473_v52 = vld [vmem:[#allocation402_spill] sm:$0xff] }
 0x327   : > { %v4139_v48 = vadd.f32 %v4138_v24, %v3884_v0  ;;  %v2605_v0 = vadd.s32 1944, %v6540_v18  ;;  %v9043_v46 = vadd.s32 %v6548_v23, %v2604_v16  ;;  %v2607_v16 = vadd.s32 1960, %v6540_v18 }
 0x329   : > { %v4140_v57 = vadd.f32 %v4139_v48, %v3885_v8  ;;  %v3887_v48 = vsel %vm11918_vm12, %v12463_v17, 0.0  ;;  %12464 = vst [vmem:[#allocation476_spill] sm:$0xff] %v9043_v46  ;;  %v9052_v37 = vadd.s32 %v6548_v23, %v2605_v0  ;;  %vm11926_vm12 = vcmp.lt.s32.totalorder %v9043_v46, 4096 }
 0x32a   : > { %v3890_v0 = vsel %vm11924_vm14, %v12469_v29, 0.0  ;;  %v9068_v41 = vadd.s32 %v6548_v23, %v2607_v16  ;;  %v9088_v46 = vadd.s32 %v6548_v23, %v2610_v63 }
 0x32b   : > { %v4141_v24 = vadd.f32 %v4140_v57, %v3886_v19  ;;  %v12466_v57 = vld [vmem:[#allocation400_spill] sm:$0xff]  ;;  %12467 = vst [vmem:[#allocation477_spill] sm:$0xff] %v9052_v37  ;;  %vm11927_vm15 = vcmp.lt.s32.totalorder %v9052_v37, 4096 }
 0x32c   : > { %v3889_v19 = vsel %vm11921_vm13, %v12466_v57, 0.0  ;;  %vm11929_vm13 = vcmp.lt.s32.totalorder %v9056_v44, 4096  ;;  %12470 = vst [vmem:[#allocation479_spill] sm:$0xff] %v9068_v41  ;;  %v12471_v57 = vld [vmem:[#allocation399_spill] sm:$0xff]  ;;  %vm11932_vm14 = vcmp.lt.s32.totalorder %v9068_v41, 4096  ;;  %12476 = vst [vmem:[#allocation482_spill] sm:$0xff] %v9088_v46 }
 0x32d   : > { %v4142_v8 = vadd.f32 %v4141_v24, %v3887_v48  ;;  %v2608_v48 = vadd.s32 1968, %v6540_v18  ;;  %v12477_v44 = vld [vmem:[#allocation412_spill] sm:$0xff] }
 0x32f   : > { %v4143_v12 = vadd.f32 %v4142_v8, %v3888_v49  ;;  %v2609_v49 = vadd.s32 1976, %v6540_v18  ;;  %v9075_v10 = vadd.s32 %v6548_v23, %v2608_v48  ;;  %v2611_v48 = vadd.s32 1992, %v6540_v18 }
 0x331   : > { %v4144_v24 = vadd.f32 %v4143_v12, %v3889_v19  ;;  %v3891_v12 = vsel %vm11926_vm12, %v12471_v57, 0.0  ;;  %12472 = vst [vmem:[#allocation480_spill] sm:$0xff] %v9075_v10  ;;  %v9084_v29 = vadd.s32 %v6548_v23, %v2609_v49  ;;  %vm11933_vm12 = vcmp.lt.s32.totalorder %v9075_v10, 4096  ;;  %v12487_v10 = vld [vmem:[#allocation415_spill] sm:$0xff] }
 0x332   : > { %v3894_v49 = vsel %vm11932_vm14, %v12477_v44, 0.0 }
 0x333   : > { %v4145_v8 = vadd.f32 %v4144_v24, %v3890_v0  ;;  %v3892_v24 = vsel %vm11927_vm15, %v12473_v52, 0.0  ;;  %v12474_v0 = vld [vmem:[#allocation408_spill] sm:$0xff]  ;;  %12475 = vst [vmem:[#allocation481_spill] sm:$0xff] %v9084_v29  ;;  %vm11936_vm15 = vcmp.lt.s32.totalorder %v9084_v29, 4096  ;;  %v2616_v29 = vadd.s32 2032, %v6540_v18 }
 0x334   : > { %v3893_v16 = vsel %vm11929_vm13, %v12474_v0, 0.0  ;;  %vm11935_vm13 = vcmp.lt.s32.totalorder %v9088_v46, 4096  ;;  %v12481_v0 = vld [vmem:[#allocation410_spill] sm:$0xff] }
 0x335   : > { %v4146_v19 = vadd.f32 %v4145_v8, %v3891_v12  ;;  %v2612_v12 = vadd.s32 2000, %v6540_v18 }
 0x337   : > { %v4147_v17 = vadd.f32 %v4146_v19, %v3892_v24  ;;  %v2613_v19 = vadd.s32 2008, %v6540_v18  ;;  %v2614_v24 = vadd.s32 2016, %v6540_v18  ;;  %v9111_v44 = vadd.s32 %v6548_v23, %v2612_v12 }
 0x338   : > { %v2615_v12 = vadd.s32 2024, %v6540_v18 }
 0x339   : > { %v4148_v8 = vadd.f32 %v4147_v17, %v3893_v16  ;;  %v9104_v17 = vadd.s32 %v6548_v23, %v2611_v48  ;;  %v12479_v16 = vld [vmem:[#allocation407_spill] sm:$0xff]  ;;  %12480 = vst [vmem:[#allocation484_spill] sm:$0xff] %v9111_v44  ;;  %v9121_v52 = vadd.s32 %v6548_v23, %v2613_v19  ;;  %v12485_v19 = vld [vmem:[#allocation420_spill] sm:$0xff] }
 0x33a   : > { %v3895_v41 = vsel %vm11933_vm12, %v12479_v16, 0.0  ;;  %vm11940_vm12 = vcmp.lt.s32.totalorder %v9111_v44, 4096  ;;  %v9139_v46 = vadd.s32 %v6548_v23, %v2615_v12 }
 0x33b   : > { %v4149_v63 = vadd.f32 %v4148_v8, %v3894_v49  ;;  %12478 = vst [vmem:[#allocation483_spill] sm:$0xff] %v9104_v17  ;;  %v3896_v8 = vsel %vm11936_vm15, %v12481_v0, 0.0  ;;  %v12482_v49 = vld [vmem:[#allocation416_spill] sm:$0xff]  ;;  %12483 = vst [vmem:[#allocation485_spill] sm:$0xff] %v9121_v52  ;;  %vm11941_vm14 = vcmp.lt.s32.totalorder %v9104_v17, 4096  ;;  %v12489_v17 = vld [vmem:[#allocation418_spill] sm:$0xff] }
 0x33c   : > { %v3897_v48 = vsel %vm11935_vm13, %v12482_v49, 0.0  ;;  %vm11942_vm13 = vcmp.lt.s32.totalorder %v9121_v52, 4096  ;;  %12486 = vst [vmem:[#allocation487_spill] sm:$0xff] %v9139_v46  ;;  %v9145_v49 = vadd.s32 %v6548_v23, %v2616_v29  ;;  %v12491_v52 = vld [vmem:[#allocation423_spill] sm:$0xff] }
 0x33d   : > { %v4150_v37 = vadd.f32 %v4149_v63, %v3895_v41  ;;  %v9125_v41 = vadd.s32 %v6548_v23, %v2614_v24  ;;  %v2617_v24 = vadd.s32 2040, %v6540_v18 }
 0x33e   : > { %12488 = vst [vmem:[#allocation488_spill] sm:$0xff] %v9145_v49 }
 0x33f   : > { %v4151_v57 = vadd.f32 %v4150_v37, %v3896_v8  ;;  %12484 = vst [vmem:[#allocation486_spill] sm:$0xff] %v9125_v41  ;;  %v3898_v37 = vsel %vm11941_vm14, %v12485_v19, 0.0  ;;  %vm3127_vm15 = vcmp.lt.s32.totalorder %v9125_v41, 4096  ;;  %vm3129_vm14 = vcmp.lt.s32.totalorder %v9145_v49, 4096  ;;  %v12704_v49 = vld [vmem:[#allocation21_spill] sm:$0xff] }
 0x340   : > { %v3901_v18 = vsel %vm3127_vm15, %v8620_v56, 0.0 }
 0x341   : > { %v4152_v63 = vadd.f32 %v4151_v57, %v3897_v48  ;;  %v3899_v57 = vsel %vm11940_vm12, %v12487_v10, 0.0  ;;  %vm3128_vm12 = vcmp.lt.s32.totalorder %v9139_v46, 4096 }
 0x343   : > { %v4153_v8 = vadd.f32 %v4152_v63, %v3898_v37  ;;  %v3900_v63 = vsel %vm11942_vm13, %v12489_v17, 0.0  ;;  %v9156_v37 = vadd.s32 %v6548_v23, %v2617_v24  ;;  %v4166_v23 = vstv %s3136_s9  ;;  %v12492_v24 = vld [vmem:[#allocation426_spill] sm:$0xff] }
 0x344   : > { %6117 = vrcp.f32 %v4166_v23  ;;  %v12683_v23 = vld [vmem:[#allocation337_spill] sm:$0xff] }
 0x345   : > { %v4154_v48 = vadd.f32 %v4153_v8, %v3899_v57  ;;  %12490 = vst [vmem:[#allocation489_spill] sm:$0xff] %v9156_v37  ;;  %v3902_v8 = vsel %vm3128_vm12, %v8636_v21, 0.0  ;;  %vm3130_vm13 = vcmp.lt.s32.totalorder %v9156_v37, 4096 }
 0x346   : > { %v3904_v41 = vsel %vm3130_vm13, %v12492_v24, 0.0  ;;  %v12710_v24 = vld [vmem:[#allocation20_spill] sm:$0xff] }
 0x347   : > { %v4155_v12 = vadd.f32 %v4154_v48, %v3900_v63  ;;  %v3903_v48 = vsel %vm3129_vm14, %v12491_v52, 0.0 }
 0x349   : > { %v4156_v29 = vadd.f32 %v4155_v12, %v3901_v18 }
 0x34b   : > { %v4157_v57 = vadd.f32 %v4156_v29, %v3902_v8  ;;  %v12493_v8 = vld [vmem:[#allocation18_spill] sm:$0xff] }
 0x34d   : > { %v4158_v63 = vadd.f32 %v4157_v57, %v3903_v48  ;;  %v12676_v48 = vld [vmem:[#allocation303_spill] sm:$0xff]  ;;  %v12682_v57 = vld [vmem:[#allocation330_spill] sm:$0xff] }
 0x34e   : > { %v6118_v17 = vpop.eup %6117 }
 0x34f   : > { %v4159_v44 = vadd.f32 %v4158_v63, %v3904_v41  ;;  %v12677_v41 = vld [vmem:[#allocation313_spill] sm:$0xff] }
 0x351   : > { %v4160_v18 = vrot.slane %v4159_v44, 4 }
 0x353   : > { %v4161_v12 = vadd.f32 %v4160_v18, %v4159_v44  ;;  %v12707_v44 = vld [vmem:[#allocation17_spill] sm:$0xff] }
 0x354   : > { %v12719_v18 = vld [vmem:[#allocation25_spill] sm:$0xff] }
 0x355   : > { %v4162_v56 = vrot.slane %v4161_v12, 2 }
 0x357   : > { %v4163_v46 = vadd.f32 %v4162_v56, %v4161_v12  ;;  %v12679_v56 = vld [vmem:[#allocation312_spill] sm:$0xff] }
 0x359   : > { %v4164_v21 = vrot.slane %v4163_v46, 1 }
 0x35b   : > { %v9170_v10 = vadd.f32 %v4164_v21, %v4163_v46  ;;  %v12680_v46 = vld [vmem:[#allocation315_spill] sm:$0xff] }
 0x35d   : > { %v9173_v29 = vmul.f32 %v6118_v17, %v9170_v10  ;;  %v12681_v17 = vld [vmem:[#allocation325_spill] sm:$0xff]  ;;  %4681 = vst [vmem:[%s206_s4] sm:$0x1] %v9170_v10 }
 0x35f   : > { %v12702_v11 = vsub.f32 %v12493_v8, %v9173_v29  ;;  %v12705_v43 = vsub.f32 %v12704_v49, %v9173_v29  ;;  %v12708_v21 = vsub.f32 %v12707_v44, %v9173_v29  ;;  %v12711_v8 = vsub.f32 %v12710_v24, %v9173_v29  ;;  %v12713_v49 = vld [vmem:[#allocation26_spill] sm:$0xff]  ;;  %v12716_v44 = vld [vmem:[#allocation29_spill] sm:$0xff] }
 0x360   : > { %v12714_v37 = vsub.f32 %v12713_v49, %v9173_v29  ;;  %v12717_v52 = vsub.f32 %v12716_v44, %v9173_v29 }
 0x361   : > { %v4425_v12 = vsel %vm2875_vm0, %v12702_v11, 0.0  ;;  %v4426_v22 = vsel %vm2876_vm1, %v12705_v43, 0.0  ;;  %v4427_v32 = vsel %vm2877_vm2, %v12708_v21, 0.0  ;;  %v4428_v11 = vsel %vm2878_vm3, %v12711_v8, 0.0  ;;  %v12722_v43 = vld [vmem:[#allocation28_spill] sm:$0xff]  ;;  %v12725_v21 = vld [vmem:[#allocation34_spill] sm:$0xff] }
 0x362   : > { %v4682_v63 = vmul.f32 %v4425_v12, %v4425_v12  ;;  %v4683_v16 = vmul.f32 %v4426_v22, %v4426_v22  ;;  %v4684_v19 = vmul.f32 %v4427_v32, %v4427_v32  ;;  %v4429_v22 = vsel %vm2879_vm4, %v12714_v37, 0.0 }
 0x363   : > { %v4685_v12 = vmul.f32 %v4428_v11, %v4428_v11  ;;  %v4430_v47 = vsel %vm2880_vm5, %v12717_v52, 0.0  ;;  %v4686_v24 = vmul.f32 %v4429_v22, %v4429_v22  ;;  %v12720_v32 = vsub.f32 %v12719_v18, %v9173_v29 }
 0x364   : > { %v4938_v0 = vadd.f32 %v4683_v16, %v4682_v63  ;;  %v4687_v8 = vmul.f32 %v4430_v47, %v4430_v47  ;;  %v12723_v11 = vsub.f32 %v12722_v43, %v9173_v29  ;;  %v12726_v22 = vsub.f32 %v12725_v21, %v9173_v29  ;;  %v12728_v16 = vld [vmem:[#allocation37_spill] sm:$0xff] }
 0x365   : > { %v4431_v63 = vsel %vm2881_vm6, %v12720_v32, 0.0  ;;  %v12729_v47 = vsub.f32 %v12728_v16, %v9173_v29 }
 0x366   : > { %v4939_v10 = vadd.f32 %v4938_v0, %v4684_v19  ;;  %v4432_v19 = vsel %vm2882_vm7, %v12723_v11, 0.0  ;;  %v4688_v37 = vmul.f32 %v4431_v63, %v4431_v63  ;;  %v12731_v0 = vld [vmem:[#allocation33_spill] sm:$0xff] }
 0x367   : > { %v4689_v52 = vmul.f32 %v4432_v19, %v4432_v19  ;;  %v12732_v63 = vsub.f32 %v12731_v0, %v9173_v29 }
 0x368   : > { %v4940_v33 = vadd.f32 %v4939_v10, %v4685_v12  ;;  %v4433_v12 = vsel %vm2883_vm8, %v12726_v22, 0.0  ;;  %v12734_v10 = vld [vmem:[#allocation36_spill] sm:$0xff] }
 0x369   : > { %v4690_v32 = vmul.f32 %v4433_v12, %v4433_v12  ;;  %v12735_v19 = vsub.f32 %v12734_v10, %v9173_v29 }
 0x36a   : > { %v4941_v49 = vadd.f32 %v4940_v33, %v4686_v24  ;;  %v4434_v24 = vsel %vm2884_vm9, %v12729_v47, 0.0  ;;  %v12737_v33 = vld [vmem:[#allocation42_spill] sm:$0xff] }
 0x36b   : > { %v4691_v11 = vmul.f32 %v4434_v24, %v4434_v24  ;;  %v12738_v12 = vsub.f32 %v12737_v33, %v9173_v29 }
 0x36c   : > { %v4942_v44 = vadd.f32 %v4941_v49, %v4687_v8  ;;  %v4435_v49 = vsel %vm2885_vm10, %v12732_v63, 0.0  ;;  %v12741_v8 = vld [vmem:[#allocation45_spill] sm:$0xff] }
 0x36d   : > { %v4692_v22 = vmul.f32 %v4435_v49, %v4435_v49  ;;  %v12742_v24 = vsub.f32 %v12741_v8, %v9173_v29 }
 0x36e   : > { %v4943_v18 = vadd.f32 %v4942_v44, %v4688_v37  ;;  %v4436_v44 = vsel %vm2886_vm11, %v12735_v19, 0.0  ;;  %v12745_v37 = vld [vmem:[#allocation41_spill] sm:$0xff] }
 0x36f   : > { %v4693_v47 = vmul.f32 %v4436_v44, %v4436_v44  ;;  %v12746_v49 = vsub.f32 %v12745_v37, %v9173_v29 }
 0x370   : > { %v4944_v43 = vadd.f32 %v4943_v18, %v4689_v52  ;;  %v12739_v52 = vld [vmem:[#allocation38_spill] sm:$0xff] }
 0x371   : > { %vm12740_vm0 = vcmp.lt.s32.totalorder %v12739_v52, 4096  ;;  %v12749_v52 = vld [vmem:[#allocation44_spill] sm:$0xff] }
 0x372   : > { %v4945_v21 = vadd.f32 %v4944_v43, %v4690_v32  ;;  %v4437_v18 = vsel %vm12740_vm0, %v12738_v12, 0.0  ;;  %v12743_v32 = vld [vmem:[#allocation39_spill] sm:$0xff]  ;;  %v12750_v44 = vsub.f32 %v12749_v52, %v9173_v29 }
 0x373   : > { %vm12744_vm1 = vcmp.lt.s32.totalorder %v12743_v32, 4096  ;;  %v4694_v63 = vmul.f32 %v4437_v18, %v4437_v18  ;;  %v12753_v32 = vld [vmem:[#allocation50_spill] sm:$0xff] }
 0x374   : > { %v4946_v16 = vadd.f32 %v4945_v21, %v4691_v11  ;;  %v4438_v43 = vsel %vm12744_vm1, %v12742_v24, 0.0  ;;  %v12747_v11 = vld [vmem:[#allocation40_spill] sm:$0xff]  ;;  %v12754_v18 = vsub.f32 %v12753_v32, %v9173_v29 }
 0x375   : > { %vm12748_vm2 = vcmp.lt.s32.totalorder %v12747_v11, 4096  ;;  %v4695_v19 = vmul.f32 %v4438_v43, %v4438_v43  ;;  %v12757_v11 = vld [vmem:[#allocation53_spill] sm:$0xff] }
 0x376   : > { %v4947_v0 = vadd.f32 %v4946_v16, %v4692_v22  ;;  %v4439_v21 = vsel %vm12748_vm2, %v12746_v49, 0.0  ;;  %v12751_v22 = vld [vmem:[#allocation43_spill] sm:$0xff]  ;;  %v12758_v43 = vsub.f32 %v12757_v11, %v9173_v29 }
 0x377   : > { %vm12752_vm3 = vcmp.lt.s32.totalorder %v12751_v22, 4096  ;;  %v4696_v12 = vmul.f32 %v4439_v21, %v4439_v21  ;;  %v12761_v22 = vld [vmem:[#allocation49_spill] sm:$0xff] }
 0x378   : > { %v4948_v10 = vadd.f32 %v4947_v0, %v4693_v47  ;;  %v4440_v16 = vsel %vm12752_vm3, %v12750_v44, 0.0  ;;  %v12755_v47 = vld [vmem:[#allocation46_spill] sm:$0xff]  ;;  %v12762_v21 = vsub.f32 %v12761_v22, %v9173_v29 }
 0x379   : > { %vm12756_vm4 = vcmp.lt.s32.totalorder %v12755_v47, 4096  ;;  %v4697_v24 = vmul.f32 %v4440_v16, %v4440_v16  ;;  %v12765_v47 = vld [vmem:[#allocation52_spill] sm:$0xff] }
 0x37a   : > { %v4949_v33 = vadd.f32 %v4948_v10, %v4694_v63  ;;  %v4441_v0 = vsel %vm12756_vm4, %v12754_v18, 0.0  ;;  %v12759_v63 = vld [vmem:[#allocation47_spill] sm:$0xff]  ;;  %v12766_v16 = vsub.f32 %v12765_v47, %v9173_v29 }
 0x37b   : > { %vm12760_vm5 = vcmp.lt.s32.totalorder %v12759_v63, 4096  ;;  %v4698_v49 = vmul.f32 %v4441_v0, %v4441_v0  ;;  %v12769_v63 = vld [vmem:[#allocation58_spill] sm:$0xff] }
 0x37c   : > { %v4950_v8 = vadd.f32 %v4949_v33, %v4695_v19  ;;  %v4442_v10 = vsel %vm12760_vm5, %v12758_v43, 0.0  ;;  %v12763_v19 = vld [vmem:[#allocation48_spill] sm:$0xff]  ;;  %v12770_v0 = vsub.f32 %v12769_v63, %v9173_v29 }
 0x37d   : > { %vm12764_vm6 = vcmp.lt.s32.totalorder %v12763_v19, 4096  ;;  %v4699_v44 = vmul.f32 %v4442_v10, %v4442_v10  ;;  %v12773_v19 = vld [vmem:[#allocation61_spill] sm:$0xff] }
 0x37e   : > { %v4951_v37 = vadd.f32 %v4950_v8, %v4696_v12  ;;  %v4443_v33 = vsel %vm12764_vm6, %v12762_v21, 0.0  ;;  %v12767_v12 = vld [vmem:[#allocation51_spill] sm:$0xff]  ;;  %v12774_v10 = vsub.f32 %v12773_v19, %v9173_v29 }
 0x37f   : > { %vm12768_vm7 = vcmp.lt.s32.totalorder %v12767_v12, 4096  ;;  %v4700_v18 = vmul.f32 %v4443_v33, %v4443_v33  ;;  %v12777_v12 = vld [vmem:[#allocation57_spill] sm:$0xff] }
 0x380   : > { %v4952_v52 = vadd.f32 %v4951_v37, %v4697_v24  ;;  %v4444_v8 = vsel %vm12768_vm7, %v12766_v16, 0.0  ;;  %v12771_v24 = vld [vmem:[#allocation54_spill] sm:$0xff]  ;;  %v12778_v33 = vsub.f32 %v12777_v12, %v9173_v29 }
 0x381   : > { %vm12772_vm8 = vcmp.lt.s32.totalorder %v12771_v24, 4096  ;;  %v4701_v43 = vmul.f32 %v4444_v8, %v4444_v8  ;;  %v12781_v24 = vld [vmem:[#allocation60_spill] sm:$0xff] }
 0x382   : > { %v4953_v32 = vadd.f32 %v4952_v52, %v4698_v49  ;;  %v4445_v37 = vsel %vm12772_vm8, %v12770_v0, 0.0  ;;  %v12775_v49 = vld [vmem:[#allocation55_spill] sm:$0xff]  ;;  %v12782_v8 = vsub.f32 %v12781_v24, %v9173_v29 }
 0x383   : > { %vm12776_vm9 = vcmp.lt.s32.totalorder %v12775_v49, 4096  ;;  %v4702_v21 = vmul.f32 %v4445_v37, %v4445_v37  ;;  %v12785_v49 = vld [vmem:[#allocation66_spill] sm:$0xff] }
 0x384   : > { %v4954_v11 = vadd.f32 %v4953_v32, %v4699_v44  ;;  %v4446_v52 = vsel %vm12776_vm9, %v12774_v10, 0.0  ;;  %v12779_v44 = vld [vmem:[#allocation56_spill] sm:$0xff]  ;;  %v12786_v37 = vsub.f32 %v12785_v49, %v9173_v29 }
 0x385   : > { %vm12780_vm10 = vcmp.lt.s32.totalorder %v12779_v44, 4096  ;;  %v4703_v16 = vmul.f32 %v4446_v52, %v4446_v52  ;;  %v12789_v44 = vld [vmem:[#allocation69_spill] sm:$0xff] }
 0x386   : > { %v4955_v22 = vadd.f32 %v4954_v11, %v4700_v18  ;;  %v4447_v32 = vsel %vm12780_vm10, %v12778_v33, 0.0  ;;  %v12783_v18 = vld [vmem:[#allocation59_spill] sm:$0xff]  ;;  %v12790_v52 = vsub.f32 %v12789_v44, %v9173_v29 }
 0x387   : > { %vm12784_vm11 = vcmp.lt.s32.totalorder %v12783_v18, 4096  ;;  %v4704_v0 = vmul.f32 %v4447_v32, %v4447_v32  ;;  %v12793_v18 = vld [vmem:[#allocation65_spill] sm:$0xff] }
 0x388   : > { %v4956_v47 = vadd.f32 %v4955_v22, %v4701_v43  ;;  %v4448_v11 = vsel %vm12784_vm11, %v12782_v8, 0.0  ;;  %v12787_v43 = vld [vmem:[#allocation62_spill] sm:$0xff]  ;;  %v12794_v32 = vsub.f32 %v12793_v18, %v9173_v29 }
 0x389   : > { %vm12788_vm0 = vcmp.lt.s32.totalorder %v12787_v43, 4096  ;;  %v4705_v10 = vmul.f32 %v4448_v11, %v4448_v11  ;;  %v12797_v43 = vld [vmem:[#allocation68_spill] sm:$0xff] }
 0x38a   : > { %v4957_v63 = vadd.f32 %v4956_v47, %v4702_v21  ;;  %v4449_v22 = vsel %vm12788_vm0, %v12786_v37, 0.0  ;;  %v12791_v21 = vld [vmem:[#allocation63_spill] sm:$0xff]  ;;  %v12798_v11 = vsub.f32 %v12797_v43, %v9173_v29 }
 0x38b   : > { %vm12792_vm1 = vcmp.lt.s32.totalorder %v12791_v21, 4096  ;;  %v4706_v33 = vmul.f32 %v4449_v22, %v4449_v22  ;;  %v12801_v21 = vld [vmem:[#allocation74_spill] sm:$0xff] }
 0x38c   : > { %v4958_v19 = vadd.f32 %v4957_v63, %v4703_v16  ;;  %v4450_v47 = vsel %vm12792_vm1, %v12790_v52, 0.0  ;;  %v12795_v16 = vld [vmem:[#allocation64_spill] sm:$0xff]  ;;  %v12802_v22 = vsub.f32 %v12801_v21, %v9173_v29 }
 0x38d   : > { %vm12796_vm2 = vcmp.lt.s32.totalorder %v12795_v16, 4096  ;;  %v4707_v8 = vmul.f32 %v4450_v47, %v4450_v47  ;;  %v12805_v16 = vld [vmem:[#allocation77_spill] sm:$0xff] }
 0x38e   : > { %v4959_v12 = vadd.f32 %v4958_v19, %v4704_v0  ;;  %v4451_v63 = vsel %vm12796_vm2, %v12794_v32, 0.0  ;;  %v12799_v0 = vld [vmem:[#allocation67_spill] sm:$0xff]  ;;  %v12806_v47 = vsub.f32 %v12805_v16, %v9173_v29 }
 0x38f   : > { %vm12800_vm3 = vcmp.lt.s32.totalorder %v12799_v0, 4096  ;;  %v4708_v37 = vmul.f32 %v4451_v63, %v4451_v63  ;;  %v12809_v0 = vld [vmem:[#allocation73_spill] sm:$0xff] }
 0x390   : > { %v4960_v24 = vadd.f32 %v4959_v12, %v4705_v10  ;;  %v4452_v19 = vsel %vm12800_vm3, %v12798_v11, 0.0  ;;  %v12803_v10 = vld [vmem:[#allocation70_spill] sm:$0xff]  ;;  %v12810_v63 = vsub.f32 %v12809_v0, %v9173_v29 }
 0x391   : > { %vm12804_vm4 = vcmp.lt.s32.totalorder %v12803_v10, 4096  ;;  %v4709_v52 = vmul.f32 %v4452_v19, %v4452_v19  ;;  %v12813_v10 = vld [vmem:[#allocation76_spill] sm:$0xff] }
 0x392   : > { %v4961_v49 = vadd.f32 %v4960_v24, %v4706_v33  ;;  %v4453_v12 = vsel %vm12804_vm4, %v12802_v22, 0.0  ;;  %v12807_v33 = vld [vmem:[#allocation71_spill] sm:$0xff]  ;;  %v12814_v19 = vsub.f32 %v12813_v10, %v9173_v29 }
 0x393   : > { %vm12808_vm5 = vcmp.lt.s32.totalorder %v12807_v33, 4096  ;;  %v4710_v32 = vmul.f32 %v4453_v12, %v4453_v12  ;;  %v12817_v33 = vld [vmem:[#allocation82_spill] sm:$0xff] }
 0x394   : > { %v4962_v44 = vadd.f32 %v4961_v49, %v4707_v8  ;;  %v4454_v24 = vsel %vm12808_vm5, %v12806_v47, 0.0  ;;  %v12811_v8 = vld [vmem:[#allocation72_spill] sm:$0xff]  ;;  %v12818_v12 = vsub.f32 %v12817_v33, %v9173_v29 }
 0x395   : > { %vm12812_vm6 = vcmp.lt.s32.totalorder %v12811_v8, 4096  ;;  %v4711_v11 = vmul.f32 %v4454_v24, %v4454_v24  ;;  %v12821_v8 = vld [vmem:[#allocation85_spill] sm:$0xff] }
 0x396   : > { %v4963_v18 = vadd.f32 %v4962_v44, %v4708_v37  ;;  %v4455_v49 = vsel %vm12812_vm6, %v12810_v63, 0.0  ;;  %v12815_v37 = vld [vmem:[#allocation75_spill] sm:$0xff]  ;;  %v12822_v24 = vsub.f32 %v12821_v8, %v9173_v29 }
 0x397   : > { %vm12816_vm7 = vcmp.lt.s32.totalorder %v12815_v37, 4096  ;;  %v4712_v22 = vmul.f32 %v4455_v49, %v4455_v49  ;;  %v12825_v37 = vld [vmem:[#allocation81_spill] sm:$0xff] }
 0x398   : > { %v4964_v43 = vadd.f32 %v4963_v18, %v4709_v52  ;;  %v4456_v44 = vsel %vm12816_vm7, %v12814_v19, 0.0  ;;  %v12819_v52 = vld [vmem:[#allocation78_spill] sm:$0xff]  ;;  %v12826_v49 = vsub.f32 %v12825_v37, %v9173_v29 }
 0x399   : > { %vm12820_vm8 = vcmp.lt.s32.totalorder %v12819_v52, 4096  ;;  %v4713_v47 = vmul.f32 %v4456_v44, %v4456_v44  ;;  %v12829_v52 = vld [vmem:[#allocation84_spill] sm:$0xff] }
 0x39a   : > { %v4965_v21 = vadd.f32 %v4964_v43, %v4710_v32  ;;  %v4457_v18 = vsel %vm12820_vm8, %v12818_v12, 0.0  ;;  %v12823_v32 = vld [vmem:[#allocation79_spill] sm:$0xff]  ;;  %v12830_v44 = vsub.f32 %v12829_v52, %v9173_v29 }
 0x39b   : > { %vm12824_vm9 = vcmp.lt.s32.totalorder %v12823_v32, 4096  ;;  %v4714_v63 = vmul.f32 %v4457_v18, %v4457_v18  ;;  %v12833_v32 = vld [vmem:[#allocation90_spill] sm:$0xff] }
 0x39c   : > { %v4966_v16 = vadd.f32 %v4965_v21, %v4711_v11  ;;  %v4458_v43 = vsel %vm12824_vm9, %v12822_v24, 0.0  ;;  %v12827_v11 = vld [vmem:[#allocation80_spill] sm:$0xff]  ;;  %v12834_v18 = vsub.f32 %v12833_v32, %v9173_v29 }
 0x39d   : > { %vm12828_vm10 = vcmp.lt.s32.totalorder %v12827_v11, 4096  ;;  %v4715_v19 = vmul.f32 %v4458_v43, %v4458_v43  ;;  %v12837_v11 = vld [vmem:[#allocation93_spill] sm:$0xff] }
 0x39e   : > { %v4967_v0 = vadd.f32 %v4966_v16, %v4712_v22  ;;  %v4459_v21 = vsel %vm12828_vm10, %v12826_v49, 0.0  ;;  %v12831_v22 = vld [vmem:[#allocation83_spill] sm:$0xff]  ;;  %v12838_v43 = vsub.f32 %v12837_v11, %v9173_v29 }
 0x39f   : > { %vm12832_vm11 = vcmp.lt.s32.totalorder %v12831_v22, 4096  ;;  %v4716_v12 = vmul.f32 %v4459_v21, %v4459_v21  ;;  %v12841_v22 = vld [vmem:[#allocation89_spill] sm:$0xff] }
 0x3a0   : > { %v4968_v10 = vadd.f32 %v4967_v0, %v4713_v47  ;;  %v4460_v16 = vsel %vm12832_vm11, %v12830_v44, 0.0  ;;  %v12835_v47 = vld [vmem:[#allocation86_spill] sm:$0xff]  ;;  %v12842_v21 = vsub.f32 %v12841_v22, %v9173_v29 }
 0x3a1   : > { %vm12836_vm0 = vcmp.lt.s32.totalorder %v12835_v47, 4096  ;;  %v4717_v24 = vmul.f32 %v4460_v16, %v4460_v16  ;;  %v12845_v47 = vld [vmem:[#allocation92_spill] sm:$0xff] }
 0x3a2   : > { %v4969_v33 = vadd.f32 %v4968_v10, %v4714_v63  ;;  %v4461_v0 = vsel %vm12836_vm0, %v12834_v18, 0.0  ;;  %v12839_v63 = vld [vmem:[#allocation87_spill] sm:$0xff]  ;;  %v12846_v16 = vsub.f32 %v12845_v47, %v9173_v29 }
 0x3a3   : > { %vm12840_vm1 = vcmp.lt.s32.totalorder %v12839_v63, 4096  ;;  %v4718_v49 = vmul.f32 %v4461_v0, %v4461_v0  ;;  %v12849_v63 = vld [vmem:[#allocation98_spill] sm:$0xff] }
 0x3a4   : > { %v4970_v8 = vadd.f32 %v4969_v33, %v4715_v19  ;;  %v4462_v10 = vsel %vm12840_vm1, %v12838_v43, 0.0  ;;  %v12843_v19 = vld [vmem:[#allocation88_spill] sm:$0xff]  ;;  %v12850_v0 = vsub.f32 %v12849_v63, %v9173_v29 }
 0x3a5   : > { %vm12844_vm2 = vcmp.lt.s32.totalorder %v12843_v19, 4096  ;;  %v4719_v44 = vmul.f32 %v4462_v10, %v4462_v10  ;;  %v12853_v19 = vld [vmem:[#allocation101_spill] sm:$0xff] }
 0x3a6   : > { %v4971_v37 = vadd.f32 %v4970_v8, %v4716_v12  ;;  %v4463_v33 = vsel %vm12844_vm2, %v12842_v21, 0.0  ;;  %v12847_v12 = vld [vmem:[#allocation91_spill] sm:$0xff]  ;;  %v12854_v10 = vsub.f32 %v12853_v19, %v9173_v29 }
 0x3a7   : > { %vm12848_vm3 = vcmp.lt.s32.totalorder %v12847_v12, 4096  ;;  %v4720_v18 = vmul.f32 %v4463_v33, %v4463_v33  ;;  %v12857_v12 = vld [vmem:[#allocation97_spill] sm:$0xff] }
 0x3a8   : > { %v4972_v52 = vadd.f32 %v4971_v37, %v4717_v24  ;;  %v4464_v8 = vsel %vm12848_vm3, %v12846_v16, 0.0  ;;  %v12851_v24 = vld [vmem:[#allocation94_spill] sm:$0xff]  ;;  %v12858_v33 = vsub.f32 %v12857_v12, %v9173_v29 }
 0x3a9   : > { %vm12852_vm4 = vcmp.lt.s32.totalorder %v12851_v24, 4096  ;;  %v4721_v43 = vmul.f32 %v4464_v8, %v4464_v8  ;;  %v12861_v24 = vld [vmem:[#allocation100_spill] sm:$0xff] }
 0x3aa   : > { %v4973_v32 = vadd.f32 %v4972_v52, %v4718_v49  ;;  %v4465_v37 = vsel %vm12852_vm4, %v12850_v0, 0.0  ;;  %v12855_v49 = vld [vmem:[#allocation95_spill] sm:$0xff]  ;;  %v12862_v8 = vsub.f32 %v12861_v24, %v9173_v29 }
 0x3ab   : > { %vm12856_vm5 = vcmp.lt.s32.totalorder %v12855_v49, 4096  ;;  %v4722_v21 = vmul.f32 %v4465_v37, %v4465_v37  ;;  %v12865_v49 = vld [vmem:[#allocation106_spill] sm:$0xff] }
 0x3ac   : > { %v4974_v11 = vadd.f32 %v4973_v32, %v4719_v44  ;;  %v4466_v52 = vsel %vm12856_vm5, %v12854_v10, 0.0  ;;  %v12859_v44 = vld [vmem:[#allocation96_spill] sm:$0xff]  ;;  %v12866_v37 = vsub.f32 %v12865_v49, %v9173_v29 }
 0x3ad   : > { %vm12860_vm6 = vcmp.lt.s32.totalorder %v12859_v44, 4096  ;;  %v4723_v16 = vmul.f32 %v4466_v52, %v4466_v52  ;;  %v12869_v44 = vld [vmem:[#allocation109_spill] sm:$0xff] }
 0x3ae   : > { %v4975_v22 = vadd.f32 %v4974_v11, %v4720_v18  ;;  %v4467_v32 = vsel %vm12860_vm6, %v12858_v33, 0.0  ;;  %v12863_v18 = vld [vmem:[#allocation99_spill] sm:$0xff]  ;;  %v12870_v52 = vsub.f32 %v12869_v44, %v9173_v29 }
 0x3af   : > { %vm12864_vm7 = vcmp.lt.s32.totalorder %v12863_v18, 4096  ;;  %v4724_v0 = vmul.f32 %v4467_v32, %v4467_v32  ;;  %v12873_v18 = vld [vmem:[#allocation105_spill] sm:$0xff] }
 0x3b0   : > { %v4976_v47 = vadd.f32 %v4975_v22, %v4721_v43  ;;  %v4468_v11 = vsel %vm12864_vm7, %v12862_v8, 0.0  ;;  %v12867_v43 = vld [vmem:[#allocation102_spill] sm:$0xff]  ;;  %v12874_v32 = vsub.f32 %v12873_v18, %v9173_v29 }
 0x3b1   : > { %vm12868_vm8 = vcmp.lt.s32.totalorder %v12867_v43, 4096  ;;  %v4725_v10 = vmul.f32 %v4468_v11, %v4468_v11  ;;  %v12877_v43 = vld [vmem:[#allocation108_spill] sm:$0xff] }
 0x3b2   : > { %v4977_v63 = vadd.f32 %v4976_v47, %v4722_v21  ;;  %v4469_v22 = vsel %vm12868_vm8, %v12866_v37, 0.0  ;;  %v12871_v21 = vld [vmem:[#allocation103_spill] sm:$0xff]  ;;  %v12878_v11 = vsub.f32 %v12877_v43, %v9173_v29 }
 0x3b3   : > { %vm12872_vm9 = vcmp.lt.s32.totalorder %v12871_v21, 4096  ;;  %v4726_v33 = vmul.f32 %v4469_v22, %v4469_v22  ;;  %v12881_v21 = vld [vmem:[#allocation114_spill] sm:$0xff] }
 0x3b4   : > { %v4978_v19 = vadd.f32 %v4977_v63, %v4723_v16  ;;  %v4470_v47 = vsel %vm12872_vm9, %v12870_v52, 0.0  ;;  %v12875_v16 = vld [vmem:[#allocation104_spill] sm:$0xff]  ;;  %v12882_v22 = vsub.f32 %v12881_v21, %v9173_v29 }
 0x3b5   : > { %vm12876_vm10 = vcmp.lt.s32.totalorder %v12875_v16, 4096  ;;  %v4727_v8 = vmul.f32 %v4470_v47, %v4470_v47  ;;  %v12885_v16 = vld [vmem:[#allocation117_spill] sm:$0xff] }
 0x3b6   : > { %v4979_v12 = vadd.f32 %v4978_v19, %v4724_v0  ;;  %v4471_v63 = vsel %vm12876_vm10, %v12874_v32, 0.0  ;;  %v12879_v0 = vld [vmem:[#allocation107_spill] sm:$0xff]  ;;  %v12886_v47 = vsub.f32 %v12885_v16, %v9173_v29 }
 0x3b7   : > { %vm12880_vm11 = vcmp.lt.s32.totalorder %v12879_v0, 4096  ;;  %v4728_v37 = vmul.f32 %v4471_v63, %v4471_v63  ;;  %v12889_v0 = vld [vmem:[#allocation113_spill] sm:$0xff] }
 0x3b8   : > { %v4980_v24 = vadd.f32 %v4979_v12, %v4725_v10  ;;  %v4472_v19 = vsel %vm12880_vm11, %v12878_v11, 0.0  ;;  %v12883_v10 = vld [vmem:[#allocation110_spill] sm:$0xff]  ;;  %v12890_v63 = vsub.f32 %v12889_v0, %v9173_v29 }
 0x3b9   : > { %vm12884_vm0 = vcmp.lt.s32.totalorder %v12883_v10, 4096  ;;  %v4729_v52 = vmul.f32 %v4472_v19, %v4472_v19  ;;  %v12893_v10 = vld [vmem:[#allocation116_spill] sm:$0xff] }
 0x3ba   : > { %v4981_v49 = vadd.f32 %v4980_v24, %v4726_v33  ;;  %v4473_v12 = vsel %vm12884_vm0, %v12882_v22, 0.0  ;;  %v12887_v33 = vld [vmem:[#allocation111_spill] sm:$0xff]  ;;  %v12894_v19 = vsub.f32 %v12893_v10, %v9173_v29 }
 0x3bb   : > { %vm12888_vm1 = vcmp.lt.s32.totalorder %v12887_v33, 4096  ;;  %v4730_v32 = vmul.f32 %v4473_v12, %v4473_v12  ;;  %v12897_v33 = vld [vmem:[#allocation122_spill] sm:$0xff] }
 0x3bc   : > { %v4982_v44 = vadd.f32 %v4981_v49, %v4727_v8  ;;  %v4474_v24 = vsel %vm12888_vm1, %v12886_v47, 0.0  ;;  %v12891_v8 = vld [vmem:[#allocation112_spill] sm:$0xff]  ;;  %v12898_v12 = vsub.f32 %v12897_v33, %v9173_v29 }
 0x3bd   : > { %vm12892_vm2 = vcmp.lt.s32.totalorder %v12891_v8, 4096  ;;  %v4731_v11 = vmul.f32 %v4474_v24, %v4474_v24  ;;  %v12901_v8 = vld [vmem:[#allocation125_spill] sm:$0xff] }
 0x3be   : > { %v4983_v18 = vadd.f32 %v4982_v44, %v4728_v37  ;;  %v4475_v49 = vsel %vm12892_vm2, %v12890_v63, 0.0  ;;  %v12895_v37 = vld [vmem:[#allocation115_spill] sm:$0xff]  ;;  %v12902_v24 = vsub.f32 %v12901_v8, %v9173_v29 }
 0x3bf   : > { %vm12896_vm3 = vcmp.lt.s32.totalorder %v12895_v37, 4096  ;;  %v4732_v22 = vmul.f32 %v4475_v49, %v4475_v49  ;;  %v12905_v37 = vld [vmem:[#allocation121_spill] sm:$0xff] }
 0x3c0   : > { %v4984_v43 = vadd.f32 %v4983_v18, %v4729_v52  ;;  %v4476_v44 = vsel %vm12896_vm3, %v12894_v19, 0.0  ;;  %v12899_v52 = vld [vmem:[#allocation118_spill] sm:$0xff]  ;;  %v12906_v49 = vsub.f32 %v12905_v37, %v9173_v29 }
 0x3c1   : > { %vm12900_vm4 = vcmp.lt.s32.totalorder %v12899_v52, 4096  ;;  %v4733_v47 = vmul.f32 %v4476_v44, %v4476_v44  ;;  %v12909_v52 = vld [vmem:[#allocation124_spill] sm:$0xff] }
 0x3c2   : > { %v4985_v21 = vadd.f32 %v4984_v43, %v4730_v32  ;;  %v4477_v18 = vsel %vm12900_vm4, %v12898_v12, 0.0  ;;  %v12903_v32 = vld [vmem:[#allocation119_spill] sm:$0xff]  ;;  %v12910_v44 = vsub.f32 %v12909_v52, %v9173_v29 }
 0x3c3   : > { %vm12904_vm5 = vcmp.lt.s32.totalorder %v12903_v32, 4096  ;;  %v4734_v63 = vmul.f32 %v4477_v18, %v4477_v18  ;;  %v12913_v32 = vld [vmem:[#allocation130_spill] sm:$0xff] }
 0x3c4   : > { %v4986_v16 = vadd.f32 %v4985_v21, %v4731_v11  ;;  %v4478_v43 = vsel %vm12904_vm5, %v12902_v24, 0.0  ;;  %v12907_v11 = vld [vmem:[#allocation120_spill] sm:$0xff]  ;;  %v12914_v18 = vsub.f32 %v12913_v32, %v9173_v29 }
 0x3c5   : > { %vm12908_vm6 = vcmp.lt.s32.totalorder %v12907_v11, 4096  ;;  %v4735_v19 = vmul.f32 %v4478_v43, %v4478_v43  ;;  %v12917_v11 = vld [vmem:[#allocation133_spill] sm:$0xff] }
 0x3c6   : > { %v4987_v0 = vadd.f32 %v4986_v16, %v4732_v22  ;;  %v4479_v21 = vsel %vm12908_vm6, %v12906_v49, 0.0  ;;  %v12911_v22 = vld [vmem:[#allocation123_spill] sm:$0xff]  ;;  %v12918_v43 = vsub.f32 %v12917_v11, %v9173_v29 }
 0x3c7   : > { %vm12912_vm7 = vcmp.lt.s32.totalorder %v12911_v22, 4096  ;;  %v4736_v12 = vmul.f32 %v4479_v21, %v4479_v21  ;;  %v12921_v22 = vld [vmem:[#allocation129_spill] sm:$0xff] }
 0x3c8   : > { %v4988_v10 = vadd.f32 %v4987_v0, %v4733_v47  ;;  %v4480_v16 = vsel %vm12912_vm7, %v12910_v44, 0.0  ;;  %v12915_v47 = vld [vmem:[#allocation126_spill] sm:$0xff]  ;;  %v12922_v21 = vsub.f32 %v12921_v22, %v9173_v29 }
 0x3c9   : > { %vm12916_vm8 = vcmp.lt.s32.totalorder %v12915_v47, 4096  ;;  %v4737_v24 = vmul.f32 %v4480_v16, %v4480_v16  ;;  %v12925_v47 = vld [vmem:[#allocation132_spill] sm:$0xff] }
 0x3ca   : > { %v4989_v33 = vadd.f32 %v4988_v10, %v4734_v63  ;;  %v4481_v0 = vsel %vm12916_vm8, %v12914_v18, 0.0  ;;  %v12919_v63 = vld [vmem:[#allocation127_spill] sm:$0xff]  ;;  %v12926_v16 = vsub.f32 %v12925_v47, %v9173_v29 }
 0x3cb   : > { %vm12920_vm9 = vcmp.lt.s32.totalorder %v12919_v63, 4096  ;;  %v4738_v49 = vmul.f32 %v4481_v0, %v4481_v0  ;;  %v12929_v63 = vld [vmem:[#allocation138_spill] sm:$0xff] }
 0x3cc   : > { %v4990_v8 = vadd.f32 %v4989_v33, %v4735_v19  ;;  %v4482_v10 = vsel %vm12920_vm9, %v12918_v43, 0.0  ;;  %v12923_v19 = vld [vmem:[#allocation128_spill] sm:$0xff]  ;;  %v12930_v0 = vsub.f32 %v12929_v63, %v9173_v29 }
 0x3cd   : > { %vm12924_vm10 = vcmp.lt.s32.totalorder %v12923_v19, 4096  ;;  %v4739_v44 = vmul.f32 %v4482_v10, %v4482_v10  ;;  %v12933_v19 = vld [vmem:[#allocation141_spill] sm:$0xff] }
 0x3ce   : > { %v4991_v37 = vadd.f32 %v4990_v8, %v4736_v12  ;;  %v4483_v33 = vsel %vm12924_vm10, %v12922_v21, 0.0  ;;  %v12927_v12 = vld [vmem:[#allocation131_spill] sm:$0xff]  ;;  %v12934_v10 = vsub.f32 %v12933_v19, %v9173_v29 }
 0x3cf   : > { %vm12928_vm11 = vcmp.lt.s32.totalorder %v12927_v12, 4096  ;;  %v4740_v18 = vmul.f32 %v4483_v33, %v4483_v33  ;;  %v12937_v12 = vld [vmem:[#allocation137_spill] sm:$0xff] }
 0x3d0   : > { %v4992_v52 = vadd.f32 %v4991_v37, %v4737_v24  ;;  %v4484_v8 = vsel %vm12928_vm11, %v12926_v16, 0.0  ;;  %v12931_v24 = vld [vmem:[#allocation134_spill] sm:$0xff]  ;;  %v12938_v33 = vsub.f32 %v12937_v12, %v9173_v29 }
 0x3d1   : > { %vm12932_vm0 = vcmp.lt.s32.totalorder %v12931_v24, 4096  ;;  %v4741_v43 = vmul.f32 %v4484_v8, %v4484_v8  ;;  %v12941_v24 = vld [vmem:[#allocation140_spill] sm:$0xff] }
 0x3d2   : > { %v4993_v32 = vadd.f32 %v4992_v52, %v4738_v49  ;;  %v4485_v37 = vsel %vm12932_vm0, %v12930_v0, 0.0  ;;  %v12935_v49 = vld [vmem:[#allocation135_spill] sm:$0xff]  ;;  %v12942_v8 = vsub.f32 %v12941_v24, %v9173_v29 }
 0x3d3   : > { %vm12936_vm1 = vcmp.lt.s32.totalorder %v12935_v49, 4096  ;;  %v4742_v21 = vmul.f32 %v4485_v37, %v4485_v37  ;;  %v12945_v49 = vld [vmem:[#allocation150_spill] sm:$0xff] }
 0x3d4   : > { %v4994_v11 = vadd.f32 %v4993_v32, %v4739_v44  ;;  %v4486_v52 = vsel %vm12936_vm1, %v12934_v10, 0.0  ;;  %v12939_v44 = vld [vmem:[#allocation136_spill] sm:$0xff]  ;;  %v12946_v37 = vsub.f32 %v12945_v49, %v9173_v29 }
 0x3d5   : > { %vm12940_vm2 = vcmp.lt.s32.totalorder %v12939_v44, 4096  ;;  %v4743_v16 = vmul.f32 %v4486_v52, %v4486_v52  ;;  %v12949_v44 = vld [vmem:[#allocation153_spill] sm:$0xff] }
 0x3d6   : > { %v4995_v22 = vadd.f32 %v4994_v11, %v4740_v18  ;;  %v4487_v32 = vsel %vm12940_vm2, %v12938_v33, 0.0  ;;  %v12943_v18 = vld [vmem:[#allocation139_spill] sm:$0xff]  ;;  %v12950_v52 = vsub.f32 %v12949_v44, %v9173_v29 }
 0x3d7   : > { %vm12944_vm3 = vcmp.lt.s32.totalorder %v12943_v18, 4096  ;;  %v4744_v0 = vmul.f32 %v4487_v32, %v4487_v32  ;;  %v12953_v18 = vld [vmem:[#allocation148_spill] sm:$0xff] }
 0x3d8   : > { %v4996_v47 = vadd.f32 %v4995_v22, %v4741_v43  ;;  %v4488_v11 = vsel %vm12944_vm3, %v12942_v8, 0.0  ;;  %v12947_v43 = vld [vmem:[#allocation142_spill] sm:$0xff]  ;;  %v12954_v32 = vsub.f32 %v12953_v18, %v9173_v29 }
 0x3d9   : > { %vm12948_vm4 = vcmp.lt.s32.totalorder %v12947_v43, 4096  ;;  %v4745_v10 = vmul.f32 %v4488_v11, %v4488_v11  ;;  %v12957_v43 = vld [vmem:[#allocation152_spill] sm:$0xff] }
 0x3da   : > { %v4997_v63 = vadd.f32 %v4996_v47, %v4742_v21  ;;  %v4489_v22 = vsel %vm12948_vm4, %v12946_v37, 0.0  ;;  %v12951_v21 = vld [vmem:[#allocation143_spill] sm:$0xff]  ;;  %v12958_v11 = vsub.f32 %v12957_v43, %v9173_v29 }
 0x3db   : > { %vm12952_vm5 = vcmp.lt.s32.totalorder %v12951_v21, 4096  ;;  %v4746_v33 = vmul.f32 %v4489_v22, %v4489_v22  ;;  %v12961_v21 = vld [vmem:[#allocation162_spill] sm:$0xff] }
 0x3dc   : > { %v4998_v19 = vadd.f32 %v4997_v63, %v4743_v16  ;;  %v4490_v47 = vsel %vm12952_vm5, %v12950_v52, 0.0  ;;  %v12955_v16 = vld [vmem:[#allocation146_spill] sm:$0xff]  ;;  %v12962_v22 = vsub.f32 %v12961_v21, %v9173_v29 }
 0x3dd   : > { %vm12956_vm6 = vcmp.lt.s32.totalorder %v12955_v16, 4096  ;;  %v4747_v8 = vmul.f32 %v4490_v47, %v4490_v47  ;;  %v12965_v16 = vld [vmem:[#allocation165_spill] sm:$0xff] }
 0x3de   : > { %v4999_v12 = vadd.f32 %v4998_v19, %v4744_v0  ;;  %v4491_v63 = vsel %vm12956_vm6, %v12954_v32, 0.0  ;;  %v12959_v0 = vld [vmem:[#allocation151_spill] sm:$0xff]  ;;  %v12966_v47 = vsub.f32 %v12965_v16, %v9173_v29 }
 0x3df   : > { %vm12960_vm7 = vcmp.lt.s32.totalorder %v12959_v0, 4096  ;;  %v4748_v37 = vmul.f32 %v4491_v63, %v4491_v63  ;;  %v12969_v0 = vld [vmem:[#allocation160_spill] sm:$0xff] }
 0x3e0   : > { %v5000_v24 = vadd.f32 %v4999_v12, %v4745_v10  ;;  %v4492_v19 = vsel %vm12960_vm7, %v12958_v11, 0.0  ;;  %v12963_v10 = vld [vmem:[#allocation154_spill] sm:$0xff]  ;;  %v12970_v63 = vsub.f32 %v12969_v0, %v9173_v29 }
 0x3e1   : > { %vm12964_vm8 = vcmp.lt.s32.totalorder %v12963_v10, 4096  ;;  %v4749_v52 = vmul.f32 %v4492_v19, %v4492_v19  ;;  %v12973_v10 = vld [vmem:[#allocation164_spill] sm:$0xff] }
 0x3e2   : > { %v5001_v49 = vadd.f32 %v5000_v24, %v4746_v33  ;;  %v4493_v12 = vsel %vm12964_vm8, %v12962_v22, 0.0  ;;  %v12967_v33 = vld [vmem:[#allocation155_spill] sm:$0xff]  ;;  %v12974_v19 = vsub.f32 %v12973_v10, %v9173_v29 }
 0x3e3   : > { %vm12968_vm9 = vcmp.lt.s32.totalorder %v12967_v33, 4096  ;;  %v4750_v32 = vmul.f32 %v4493_v12, %v4493_v12  ;;  %v12977_v33 = vld [vmem:[#allocation174_spill] sm:$0xff] }
 0x3e4   : > { %v5002_v44 = vadd.f32 %v5001_v49, %v4747_v8  ;;  %v4494_v24 = vsel %vm12968_vm9, %v12966_v47, 0.0  ;;  %v12971_v8 = vld [vmem:[#allocation158_spill] sm:$0xff]  ;;  %v12978_v12 = vsub.f32 %v12977_v33, %v9173_v29 }
 0x3e5   : > { %vm12972_vm10 = vcmp.lt.s32.totalorder %v12971_v8, 4096  ;;  %v4751_v11 = vmul.f32 %v4494_v24, %v4494_v24  ;;  %v12981_v8 = vld [vmem:[#allocation177_spill] sm:$0xff] }
 0x3e6   : > { %v5003_v18 = vadd.f32 %v5002_v44, %v4748_v37  ;;  %v4495_v49 = vsel %vm12972_vm10, %v12970_v63, 0.0  ;;  %v12975_v37 = vld [vmem:[#allocation163_spill] sm:$0xff]  ;;  %v12982_v24 = vsub.f32 %v12981_v8, %v9173_v29 }
 0x3e7   : > { %vm12976_vm11 = vcmp.lt.s32.totalorder %v12975_v37, 4096  ;;  %v4752_v22 = vmul.f32 %v4495_v49, %v4495_v49  ;;  %v12985_v37 = vld [vmem:[#allocation172_spill] sm:$0xff] }
 0x3e8   : > { %v5004_v43 = vadd.f32 %v5003_v18, %v4749_v52  ;;  %v4496_v44 = vsel %vm12976_vm11, %v12974_v19, 0.0  ;;  %v12979_v52 = vld [vmem:[#allocation166_spill] sm:$0xff]  ;;  %v12986_v49 = vsub.f32 %v12985_v37, %v9173_v29 }
 0x3e9   : > { %vm12980_vm0 = vcmp.lt.s32.totalorder %v12979_v52, 4096  ;;  %v4753_v47 = vmul.f32 %v4496_v44, %v4496_v44  ;;  %v12989_v52 = vld [vmem:[#allocation176_spill] sm:$0xff] }
 0x3ea   : > { %v5005_v21 = vadd.f32 %v5004_v43, %v4750_v32  ;;  %v4497_v18 = vsel %vm12980_vm0, %v12978_v12, 0.0  ;;  %v12983_v32 = vld [vmem:[#allocation167_spill] sm:$0xff]  ;;  %v12990_v44 = vsub.f32 %v12989_v52, %v9173_v29 }
 0x3eb   : > { %vm12984_vm1 = vcmp.lt.s32.totalorder %v12983_v32, 4096  ;;  %v4754_v63 = vmul.f32 %v4497_v18, %v4497_v18  ;;  %v12993_v32 = vld [vmem:[#allocation186_spill] sm:$0xff] }
 0x3ec   : > { %v5006_v16 = vadd.f32 %v5005_v21, %v4751_v11  ;;  %v4498_v43 = vsel %vm12984_vm1, %v12982_v24, 0.0  ;;  %v12987_v11 = vld [vmem:[#allocation170_spill] sm:$0xff]  ;;  %v12994_v18 = vsub.f32 %v12993_v32, %v9173_v29 }
 0x3ed   : > { %vm12988_vm2 = vcmp.lt.s32.totalorder %v12987_v11, 4096  ;;  %v4755_v19 = vmul.f32 %v4498_v43, %v4498_v43  ;;  %v12997_v11 = vld [vmem:[#allocation189_spill] sm:$0xff] }
 0x3ee   : > { %v5007_v0 = vadd.f32 %v5006_v16, %v4752_v22  ;;  %v4499_v21 = vsel %vm12988_vm2, %v12986_v49, 0.0  ;;  %v12991_v22 = vld [vmem:[#allocation175_spill] sm:$0xff]  ;;  %v12998_v43 = vsub.f32 %v12997_v11, %v9173_v29 }
 0x3ef   : > { %vm12992_vm3 = vcmp.lt.s32.totalorder %v12991_v22, 4096  ;;  %v4756_v12 = vmul.f32 %v4499_v21, %v4499_v21  ;;  %v13001_v22 = vld [vmem:[#allocation184_spill] sm:$0xff] }
 0x3f0   : > { %v5008_v10 = vadd.f32 %v5007_v0, %v4753_v47  ;;  %v4500_v16 = vsel %vm12992_vm3, %v12990_v44, 0.0  ;;  %v12995_v47 = vld [vmem:[#allocation178_spill] sm:$0xff]  ;;  %v13002_v21 = vsub.f32 %v13001_v22, %v9173_v29 }
 0x3f1   : > { %vm12996_vm4 = vcmp.lt.s32.totalorder %v12995_v47, 4096  ;;  %v4757_v24 = vmul.f32 %v4500_v16, %v4500_v16  ;;  %v13005_v47 = vld [vmem:[#allocation188_spill] sm:$0xff] }
 0x3f2   : > { %v5009_v33 = vadd.f32 %v5008_v10, %v4754_v63  ;;  %v4501_v0 = vsel %vm12996_vm4, %v12994_v18, 0.0  ;;  %v12999_v63 = vld [vmem:[#allocation179_spill] sm:$0xff]  ;;  %v13006_v16 = vsub.f32 %v13005_v47, %v9173_v29 }
 0x3f3   : > { %vm13000_vm5 = vcmp.lt.s32.totalorder %v12999_v63, 4096  ;;  %v4758_v49 = vmul.f32 %v4501_v0, %v4501_v0  ;;  %v13009_v63 = vld [vmem:[#allocation198_spill] sm:$0xff] }
 0x3f4   : > { %v5010_v8 = vadd.f32 %v5009_v33, %v4755_v19  ;;  %v4502_v10 = vsel %vm13000_vm5, %v12998_v43, 0.0  ;;  %v13003_v19 = vld [vmem:[#allocation182_spill] sm:$0xff]  ;;  %v13010_v0 = vsub.f32 %v13009_v63, %v9173_v29 }
 0x3f5   : > { %vm13004_vm6 = vcmp.lt.s32.totalorder %v13003_v19, 4096  ;;  %v4759_v44 = vmul.f32 %v4502_v10, %v4502_v10  ;;  %v13013_v19 = vld [vmem:[#allocation201_spill] sm:$0xff] }
 0x3f6   : > { %v5011_v37 = vadd.f32 %v5010_v8, %v4756_v12  ;;  %v4503_v33 = vsel %vm13004_vm6, %v13002_v21, 0.0  ;;  %v13007_v12 = vld [vmem:[#allocation187_spill] sm:$0xff]  ;;  %v13014_v10 = vsub.f32 %v13013_v19, %v9173_v29 }
 0x3f7   : > { %vm13008_vm7 = vcmp.lt.s32.totalorder %v13007_v12, 4096  ;;  %v4760_v18 = vmul.f32 %v4503_v33, %v4503_v33  ;;  %v13017_v12 = vld [vmem:[#allocation196_spill] sm:$0xff] }
 0x3f8   : > { %v5012_v52 = vadd.f32 %v5011_v37, %v4757_v24  ;;  %v4504_v8 = vsel %vm13008_vm7, %v13006_v16, 0.0  ;;  %v13011_v24 = vld [vmem:[#allocation190_spill] sm:$0xff]  ;;  %v13018_v33 = vsub.f32 %v13017_v12, %v9173_v29 }
 0x3f9   : > { %vm13012_vm8 = vcmp.lt.s32.totalorder %v13011_v24, 4096  ;;  %v4761_v43 = vmul.f32 %v4504_v8, %v4504_v8  ;;  %v13021_v24 = vld [vmem:[#allocation200_spill] sm:$0xff] }
 0x3fa   : > { %v5013_v32 = vadd.f32 %v5012_v52, %v4758_v49  ;;  %v4505_v37 = vsel %vm13012_vm8, %v13010_v0, 0.0  ;;  %v13015_v49 = vld [vmem:[#allocation191_spill] sm:$0xff]  ;;  %v13022_v8 = vsub.f32 %v13021_v24, %v9173_v29 }
 0x3fb   : > { %vm13016_vm9 = vcmp.lt.s32.totalorder %v13015_v49, 4096  ;;  %v4762_v21 = vmul.f32 %v4505_v37, %v4505_v37  ;;  %v13025_v49 = vld [vmem:[#allocation210_spill] sm:$0xff] }
 0x3fc   : > { %v5014_v11 = vadd.f32 %v5013_v32, %v4759_v44  ;;  %v4506_v52 = vsel %vm13016_vm9, %v13014_v10, 0.0  ;;  %v13019_v44 = vld [vmem:[#allocation194_spill] sm:$0xff]  ;;  %v13026_v37 = vsub.f32 %v13025_v49, %v9173_v29 }
 0x3fd   : > { %vm13020_vm10 = vcmp.lt.s32.totalorder %v13019_v44, 4096  ;;  %v4763_v16 = vmul.f32 %v4506_v52, %v4506_v52  ;;  %v13029_v44 = vld [vmem:[#allocation213_spill] sm:$0xff] }
 0x3fe   : > { %v5015_v22 = vadd.f32 %v5014_v11, %v4760_v18  ;;  %v4507_v32 = vsel %vm13020_vm10, %v13018_v33, 0.0  ;;  %v13023_v18 = vld [vmem:[#allocation199_spill] sm:$0xff]  ;;  %v13030_v52 = vsub.f32 %v13029_v44, %v9173_v29 }
 0x3ff   : > { %vm13024_vm11 = vcmp.lt.s32.totalorder %v13023_v18, 4096  ;;  %v4764_v0 = vmul.f32 %v4507_v32, %v4507_v32  ;;  %v13033_v18 = vld [vmem:[#allocation208_spill] sm:$0xff] }
 0x400   : > { %v5016_v47 = vadd.f32 %v5015_v22, %v4761_v43  ;;  %v4508_v11 = vsel %vm13024_vm11, %v13022_v8, 0.0  ;;  %v13027_v43 = vld [vmem:[#allocation202_spill] sm:$0xff]  ;;  %v13034_v32 = vsub.f32 %v13033_v18, %v9173_v29 }
 0x401   : > { %vm13028_vm0 = vcmp.lt.s32.totalorder %v13027_v43, 4096  ;;  %v4765_v10 = vmul.f32 %v4508_v11, %v4508_v11  ;;  %v13037_v43 = vld [vmem:[#allocation212_spill] sm:$0xff] }
 0x402   : > { %v5017_v63 = vadd.f32 %v5016_v47, %v4762_v21  ;;  %v4509_v22 = vsel %vm13028_vm0, %v13026_v37, 0.0  ;;  %v13031_v21 = vld [vmem:[#allocation203_spill] sm:$0xff]  ;;  %v13038_v11 = vsub.f32 %v13037_v43, %v9173_v29 }
 0x403   : > { %vm13032_vm1 = vcmp.lt.s32.totalorder %v13031_v21, 4096  ;;  %v4766_v33 = vmul.f32 %v4509_v22, %v4509_v22  ;;  %v13041_v21 = vld [vmem:[#allocation222_spill] sm:$0xff] }
 0x404   : > { %v5018_v19 = vadd.f32 %v5017_v63, %v4763_v16  ;;  %v4510_v47 = vsel %vm13032_vm1, %v13030_v52, 0.0  ;;  %v13035_v16 = vld [vmem:[#allocation206_spill] sm:$0xff]  ;;  %v13042_v22 = vsub.f32 %v13041_v21, %v9173_v29 }
 0x405   : > { %vm13036_vm2 = vcmp.lt.s32.totalorder %v13035_v16, 4096  ;;  %v4767_v8 = vmul.f32 %v4510_v47, %v4510_v47  ;;  %v13045_v16 = vld [vmem:[#allocation225_spill] sm:$0xff] }
 0x406   : > { %v5019_v12 = vadd.f32 %v5018_v19, %v4764_v0  ;;  %v4511_v63 = vsel %vm13036_vm2, %v13034_v32, 0.0  ;;  %v13039_v0 = vld [vmem:[#allocation211_spill] sm:$0xff]  ;;  %v13046_v47 = vsub.f32 %v13045_v16, %v9173_v29 }
 0x407   : > { %vm13040_vm3 = vcmp.lt.s32.totalorder %v13039_v0, 4096  ;;  %v4768_v37 = vmul.f32 %v4511_v63, %v4511_v63  ;;  %v13049_v0 = vld [vmem:[#allocation220_spill] sm:$0xff] }
 0x408   : > { %v5020_v24 = vadd.f32 %v5019_v12, %v4765_v10  ;;  %v4512_v19 = vsel %vm13040_vm3, %v13038_v11, 0.0  ;;  %v13043_v10 = vld [vmem:[#allocation214_spill] sm:$0xff]  ;;  %v13050_v63 = vsub.f32 %v13049_v0, %v9173_v29 }
 0x409   : > { %vm13044_vm4 = vcmp.lt.s32.totalorder %v13043_v10, 4096  ;;  %v4769_v52 = vmul.f32 %v4512_v19, %v4512_v19  ;;  %v13053_v10 = vld [vmem:[#allocation224_spill] sm:$0xff] }
 0x40a   : > { %v5021_v49 = vadd.f32 %v5020_v24, %v4766_v33  ;;  %v4513_v12 = vsel %vm13044_vm4, %v13042_v22, 0.0  ;;  %v13047_v33 = vld [vmem:[#allocation215_spill] sm:$0xff]  ;;  %v13054_v19 = vsub.f32 %v13053_v10, %v9173_v29 }
 0x40b   : > { %vm13048_vm5 = vcmp.lt.s32.totalorder %v13047_v33, 4096  ;;  %v4770_v32 = vmul.f32 %v4513_v12, %v4513_v12  ;;  %v13057_v33 = vld [vmem:[#allocation234_spill] sm:$0xff] }
 0x40c   : > { %v5022_v44 = vadd.f32 %v5021_v49, %v4767_v8  ;;  %v4514_v24 = vsel %vm13048_vm5, %v13046_v47, 0.0  ;;  %v13051_v8 = vld [vmem:[#allocation218_spill] sm:$0xff]  ;;  %v13058_v12 = vsub.f32 %v13057_v33, %v9173_v29 }
 0x40d   : > { %vm13052_vm6 = vcmp.lt.s32.totalorder %v13051_v8, 4096  ;;  %v4771_v11 = vmul.f32 %v4514_v24, %v4514_v24  ;;  %v13061_v8 = vld [vmem:[#allocation237_spill] sm:$0xff] }
 0x40e   : > { %v5023_v18 = vadd.f32 %v5022_v44, %v4768_v37  ;;  %v4515_v49 = vsel %vm13052_vm6, %v13050_v63, 0.0  ;;  %v13055_v37 = vld [vmem:[#allocation223_spill] sm:$0xff]  ;;  %v13062_v24 = vsub.f32 %v13061_v8, %v9173_v29 }
 0x40f   : > { %vm13056_vm7 = vcmp.lt.s32.totalorder %v13055_v37, 4096  ;;  %v4772_v22 = vmul.f32 %v4515_v49, %v4515_v49  ;;  %v13065_v37 = vld [vmem:[#allocation232_spill] sm:$0xff] }
 0x410   : > { %v5024_v43 = vadd.f32 %v5023_v18, %v4769_v52  ;;  %v4516_v44 = vsel %vm13056_vm7, %v13054_v19, 0.0  ;;  %v13059_v52 = vld [vmem:[#allocation226_spill] sm:$0xff]  ;;  %v13066_v49 = vsub.f32 %v13065_v37, %v9173_v29 }
 0x411   : > { %vm13060_vm8 = vcmp.lt.s32.totalorder %v13059_v52, 4096  ;;  %v4773_v47 = vmul.f32 %v4516_v44, %v4516_v44  ;;  %v13069_v52 = vld [vmem:[#allocation236_spill] sm:$0xff] }
 0x412   : > { %v5025_v21 = vadd.f32 %v5024_v43, %v4770_v32  ;;  %v4517_v18 = vsel %vm13060_vm8, %v13058_v12, 0.0  ;;  %v13063_v32 = vld [vmem:[#allocation227_spill] sm:$0xff]  ;;  %v13070_v44 = vsub.f32 %v13069_v52, %v9173_v29 }
 0x413   : > { %vm13064_vm9 = vcmp.lt.s32.totalorder %v13063_v32, 4096  ;;  %v4774_v63 = vmul.f32 %v4517_v18, %v4517_v18  ;;  %v13073_v32 = vld [vmem:[#allocation246_spill] sm:$0xff] }
 0x414   : > { %v5026_v16 = vadd.f32 %v5025_v21, %v4771_v11  ;;  %v4518_v43 = vsel %vm13064_vm9, %v13062_v24, 0.0  ;;  %v13067_v11 = vld [vmem:[#allocation230_spill] sm:$0xff]  ;;  %v13074_v18 = vsub.f32 %v13073_v32, %v9173_v29 }
 0x415   : > { %vm13068_vm10 = vcmp.lt.s32.totalorder %v13067_v11, 4096  ;;  %v4775_v19 = vmul.f32 %v4518_v43, %v4518_v43  ;;  %v13077_v11 = vld [vmem:[#allocation249_spill] sm:$0xff] }
 0x416   : > { %v5027_v0 = vadd.f32 %v5026_v16, %v4772_v22  ;;  %v4519_v21 = vsel %vm13068_vm10, %v13066_v49, 0.0  ;;  %v13071_v22 = vld [vmem:[#allocation235_spill] sm:$0xff]  ;;  %v13078_v43 = vsub.f32 %v13077_v11, %v9173_v29 }
 0x417   : > { %vm13072_vm11 = vcmp.lt.s32.totalorder %v13071_v22, 4096  ;;  %v4776_v12 = vmul.f32 %v4519_v21, %v4519_v21  ;;  %v13081_v22 = vld [vmem:[#allocation244_spill] sm:$0xff] }
 0x418   : > { %v5028_v10 = vadd.f32 %v5027_v0, %v4773_v47  ;;  %v4520_v16 = vsel %vm13072_vm11, %v13070_v44, 0.0  ;;  %v13075_v47 = vld [vmem:[#allocation238_spill] sm:$0xff]  ;;  %v13082_v21 = vsub.f32 %v13081_v22, %v9173_v29 }
 0x419   : > { %vm13076_vm0 = vcmp.lt.s32.totalorder %v13075_v47, 4096  ;;  %v4777_v24 = vmul.f32 %v4520_v16, %v4520_v16  ;;  %v13085_v47 = vld [vmem:[#allocation248_spill] sm:$0xff] }
 0x41a   : > { %v5029_v33 = vadd.f32 %v5028_v10, %v4774_v63  ;;  %v4521_v0 = vsel %vm13076_vm0, %v13074_v18, 0.0  ;;  %v13079_v63 = vld [vmem:[#allocation239_spill] sm:$0xff]  ;;  %v13086_v16 = vsub.f32 %v13085_v47, %v9173_v29 }
 0x41b   : > { %vm13080_vm1 = vcmp.lt.s32.totalorder %v13079_v63, 4096  ;;  %v4778_v49 = vmul.f32 %v4521_v0, %v4521_v0  ;;  %v13089_v63 = vld [vmem:[#allocation258_spill] sm:$0xff] }
 0x41c   : > { %v5030_v8 = vadd.f32 %v5029_v33, %v4775_v19  ;;  %v4522_v10 = vsel %vm13080_vm1, %v13078_v43, 0.0  ;;  %v13083_v19 = vld [vmem:[#allocation242_spill] sm:$0xff]  ;;  %v13090_v0 = vsub.f32 %v13089_v63, %v9173_v29 }
 0x41d   : > { %vm13084_vm2 = vcmp.lt.s32.totalorder %v13083_v19, 4096  ;;  %v4779_v44 = vmul.f32 %v4522_v10, %v4522_v10  ;;  %v13093_v19 = vld [vmem:[#allocation261_spill] sm:$0xff] }
 0x41e   : > { %v5031_v37 = vadd.f32 %v5030_v8, %v4776_v12  ;;  %v4523_v33 = vsel %vm13084_vm2, %v13082_v21, 0.0  ;;  %v13087_v12 = vld [vmem:[#allocation247_spill] sm:$0xff]  ;;  %v13094_v10 = vsub.f32 %v13093_v19, %v9173_v29 }
 0x41f   : > { %vm13088_vm3 = vcmp.lt.s32.totalorder %v13087_v12, 4096  ;;  %v4780_v18 = vmul.f32 %v4523_v33, %v4523_v33  ;;  %v13097_v12 = vld [vmem:[#allocation256_spill] sm:$0xff] }
 0x420   : > { %v5032_v52 = vadd.f32 %v5031_v37, %v4777_v24  ;;  %v4524_v8 = vsel %vm13088_vm3, %v13086_v16, 0.0  ;;  %v13091_v24 = vld [vmem:[#allocation250_spill] sm:$0xff]  ;;  %v13098_v33 = vsub.f32 %v13097_v12, %v9173_v29 }
 0x421   : > { %vm13092_vm4 = vcmp.lt.s32.totalorder %v13091_v24, 4096  ;;  %v4781_v43 = vmul.f32 %v4524_v8, %v4524_v8  ;;  %v13101_v24 = vld [vmem:[#allocation260_spill] sm:$0xff] }
 0x422   : > { %v5033_v32 = vadd.f32 %v5032_v52, %v4778_v49  ;;  %v4525_v37 = vsel %vm13092_vm4, %v13090_v0, 0.0  ;;  %v13095_v49 = vld [vmem:[#allocation251_spill] sm:$0xff]  ;;  %v13102_v8 = vsub.f32 %v13101_v24, %v9173_v29 }
 0x423   : > { %vm13096_vm5 = vcmp.lt.s32.totalorder %v13095_v49, 4096  ;;  %v4782_v21 = vmul.f32 %v4525_v37, %v4525_v37  ;;  %v13105_v49 = vld [vmem:[#allocation270_spill] sm:$0xff] }
 0x424   : > { %v5034_v11 = vadd.f32 %v5033_v32, %v4779_v44  ;;  %v4526_v52 = vsel %vm13096_vm5, %v13094_v10, 0.0  ;;  %v13099_v44 = vld [vmem:[#allocation254_spill] sm:$0xff]  ;;  %v13106_v37 = vsub.f32 %v13105_v49, %v9173_v29 }
 0x425   : > { %vm13100_vm6 = vcmp.lt.s32.totalorder %v13099_v44, 4096  ;;  %v4783_v16 = vmul.f32 %v4526_v52, %v4526_v52  ;;  %v13109_v44 = vld [vmem:[#allocation273_spill] sm:$0xff] }
 0x426   : > { %v5035_v22 = vadd.f32 %v5034_v11, %v4780_v18  ;;  %v4527_v32 = vsel %vm13100_vm6, %v13098_v33, 0.0  ;;  %v13103_v18 = vld [vmem:[#allocation259_spill] sm:$0xff]  ;;  %v13110_v52 = vsub.f32 %v13109_v44, %v9173_v29 }
 0x427   : > { %vm13104_vm7 = vcmp.lt.s32.totalorder %v13103_v18, 4096  ;;  %v4784_v0 = vmul.f32 %v4527_v32, %v4527_v32  ;;  %v13113_v18 = vld [vmem:[#allocation268_spill] sm:$0xff] }
 0x428   : > { %v5036_v47 = vadd.f32 %v5035_v22, %v4781_v43  ;;  %v4528_v11 = vsel %vm13104_vm7, %v13102_v8, 0.0  ;;  %v13107_v43 = vld [vmem:[#allocation262_spill] sm:$0xff]  ;;  %v13114_v32 = vsub.f32 %v13113_v18, %v9173_v29 }
 0x429   : > { %vm13108_vm8 = vcmp.lt.s32.totalorder %v13107_v43, 4096  ;;  %v4785_v10 = vmul.f32 %v4528_v11, %v4528_v11  ;;  %v13117_v43 = vld [vmem:[#allocation272_spill] sm:$0xff] }
 0x42a   : > { %v5037_v63 = vadd.f32 %v5036_v47, %v4782_v21  ;;  %v4529_v22 = vsel %vm13108_vm8, %v13106_v37, 0.0  ;;  %v13111_v21 = vld [vmem:[#allocation263_spill] sm:$0xff]  ;;  %v13118_v11 = vsub.f32 %v13117_v43, %v9173_v29 }
 0x42b   : > { %vm13112_vm9 = vcmp.lt.s32.totalorder %v13111_v21, 4096  ;;  %v4786_v33 = vmul.f32 %v4529_v22, %v4529_v22  ;;  %v13121_v21 = vld [vmem:[#allocation282_spill] sm:$0xff] }
 0x42c   : > { %v5038_v19 = vadd.f32 %v5037_v63, %v4783_v16  ;;  %v4530_v47 = vsel %vm13112_vm9, %v13110_v52, 0.0  ;;  %v13115_v16 = vld [vmem:[#allocation266_spill] sm:$0xff]  ;;  %v13122_v22 = vsub.f32 %v13121_v21, %v9173_v29 }
 0x42d   : > { %vm13116_vm10 = vcmp.lt.s32.totalorder %v13115_v16, 4096  ;;  %v4787_v8 = vmul.f32 %v4530_v47, %v4530_v47  ;;  %v13125_v16 = vld [vmem:[#allocation285_spill] sm:$0xff] }
 0x42e   : > { %v5039_v12 = vadd.f32 %v5038_v19, %v4784_v0  ;;  %v4531_v63 = vsel %vm13116_vm10, %v13114_v32, 0.0  ;;  %v13119_v0 = vld [vmem:[#allocation271_spill] sm:$0xff]  ;;  %v13126_v47 = vsub.f32 %v13125_v16, %v9173_v29 }
 0x42f   : > { %vm13120_vm11 = vcmp.lt.s32.totalorder %v13119_v0, 4096  ;;  %v4788_v37 = vmul.f32 %v4531_v63, %v4531_v63  ;;  %v13129_v0 = vld [vmem:[#allocation280_spill] sm:$0xff] }
 0x430   : > { %v5040_v24 = vadd.f32 %v5039_v12, %v4785_v10  ;;  %v4532_v19 = vsel %vm13120_vm11, %v13118_v11, 0.0  ;;  %v13123_v10 = vld [vmem:[#allocation274_spill] sm:$0xff]  ;;  %v13130_v63 = vsub.f32 %v13129_v0, %v9173_v29 }
 0x431   : > { %vm13124_vm0 = vcmp.lt.s32.totalorder %v13123_v10, 4096  ;;  %v4789_v52 = vmul.f32 %v4532_v19, %v4532_v19  ;;  %v13133_v10 = vld [vmem:[#allocation284_spill] sm:$0xff] }
 0x432   : > { %v5041_v49 = vadd.f32 %v5040_v24, %v4786_v33  ;;  %v4533_v12 = vsel %vm13124_vm0, %v13122_v22, 0.0  ;;  %v13127_v33 = vld [vmem:[#allocation275_spill] sm:$0xff]  ;;  %v13134_v19 = vsub.f32 %v13133_v10, %v9173_v29 }
 0x433   : > { %vm13128_vm1 = vcmp.lt.s32.totalorder %v13127_v33, 4096  ;;  %v4790_v32 = vmul.f32 %v4533_v12, %v4533_v12  ;;  %v13137_v33 = vld [vmem:[#allocation294_spill] sm:$0xff] }
 0x434   : > { %v5042_v44 = vadd.f32 %v5041_v49, %v4787_v8  ;;  %v4534_v24 = vsel %vm13128_vm1, %v13126_v47, 0.0  ;;  %v13131_v8 = vld [vmem:[#allocation278_spill] sm:$0xff]  ;;  %v13138_v12 = vsub.f32 %v13137_v33, %v9173_v29 }
 0x435   : > { %vm13132_vm2 = vcmp.lt.s32.totalorder %v13131_v8, 4096  ;;  %v4791_v11 = vmul.f32 %v4534_v24, %v4534_v24  ;;  %v13141_v8 = vld [vmem:[#allocation297_spill] sm:$0xff] }
 0x436   : > { %v5043_v18 = vadd.f32 %v5042_v44, %v4788_v37  ;;  %v4535_v49 = vsel %vm13132_vm2, %v13130_v63, 0.0  ;;  %v13135_v37 = vld [vmem:[#allocation283_spill] sm:$0xff]  ;;  %v13142_v24 = vsub.f32 %v13141_v8, %v9173_v29 }
 0x437   : > { %vm13136_vm3 = vcmp.lt.s32.totalorder %v13135_v37, 4096  ;;  %v4792_v22 = vmul.f32 %v4535_v49, %v4535_v49  ;;  %v13145_v37 = vld [vmem:[#allocation292_spill] sm:$0xff] }
 0x438   : > { %v5044_v43 = vadd.f32 %v5043_v18, %v4789_v52  ;;  %v4536_v44 = vsel %vm13136_vm3, %v13134_v19, 0.0  ;;  %v13139_v52 = vld [vmem:[#allocation286_spill] sm:$0xff]  ;;  %v13146_v49 = vsub.f32 %v13145_v37, %v9173_v29 }
 0x439   : > { %vm13140_vm4 = vcmp.lt.s32.totalorder %v13139_v52, 4096  ;;  %v4793_v47 = vmul.f32 %v4536_v44, %v4536_v44  ;;  %v13149_v52 = vld [vmem:[#allocation296_spill] sm:$0xff] }
 0x43a   : > { %v5045_v21 = vadd.f32 %v5044_v43, %v4790_v32  ;;  %v4537_v18 = vsel %vm13140_vm4, %v13138_v12, 0.0  ;;  %v13143_v32 = vld [vmem:[#allocation287_spill] sm:$0xff]  ;;  %v13150_v44 = vsub.f32 %v13149_v52, %v9173_v29 }
 0x43b   : > { %vm13144_vm5 = vcmp.lt.s32.totalorder %v13143_v32, 4096  ;;  %v4794_v63 = vmul.f32 %v4537_v18, %v4537_v18  ;;  %v13153_v32 = vld [vmem:[#allocation306_spill] sm:$0xff] }
 0x43c   : > { %v5046_v16 = vadd.f32 %v5045_v21, %v4791_v11  ;;  %v4538_v43 = vsel %vm13144_vm5, %v13142_v24, 0.0  ;;  %v13147_v11 = vld [vmem:[#allocation290_spill] sm:$0xff]  ;;  %v13154_v18 = vsub.f32 %v13153_v32, %v9173_v29 }
 0x43d   : > { %vm13148_vm6 = vcmp.lt.s32.totalorder %v13147_v11, 4096  ;;  %v4795_v19 = vmul.f32 %v4538_v43, %v4538_v43  ;;  %v13157_v11 = vld [vmem:[#allocation309_spill] sm:$0xff] }
 0x43e   : > { %v5047_v0 = vadd.f32 %v5046_v16, %v4792_v22  ;;  %v4539_v21 = vsel %vm13148_vm6, %v13146_v49, 0.0  ;;  %v13151_v22 = vld [vmem:[#allocation295_spill] sm:$0xff]  ;;  %v13158_v43 = vsub.f32 %v13157_v11, %v9173_v29 }
 0x43f   : > { %vm13152_vm7 = vcmp.lt.s32.totalorder %v13151_v22, 4096  ;;  %v4796_v12 = vmul.f32 %v4539_v21, %v4539_v21  ;;  %v13161_v22 = vld [vmem:[#allocation304_spill] sm:$0xff] }
 0x440   : > { %v5048_v10 = vadd.f32 %v5047_v0, %v4793_v47  ;;  %v4540_v16 = vsel %vm13152_vm7, %v13150_v44, 0.0  ;;  %v13155_v47 = vld [vmem:[#allocation298_spill] sm:$0xff]  ;;  %v13162_v21 = vsub.f32 %v13161_v22, %v9173_v29 }
 0x441   : > { %vm13156_vm8 = vcmp.lt.s32.totalorder %v13155_v47, 4096  ;;  %v4797_v24 = vmul.f32 %v4540_v16, %v4540_v16  ;;  %v13165_v47 = vld [vmem:[#allocation308_spill] sm:$0xff] }
 0x442   : > { %v5049_v33 = vadd.f32 %v5048_v10, %v4794_v63  ;;  %v4541_v0 = vsel %vm13156_vm8, %v13154_v18, 0.0  ;;  %v13159_v63 = vld [vmem:[#allocation299_spill] sm:$0xff]  ;;  %v13166_v16 = vsub.f32 %v13165_v47, %v9173_v29 }
 0x443   : > { %vm13160_vm9 = vcmp.lt.s32.totalorder %v13159_v63, 4096  ;;  %v4798_v49 = vmul.f32 %v4541_v0, %v4541_v0  ;;  %v13169_v63 = vld [vmem:[#allocation318_spill] sm:$0xff] }
 0x444   : > { %v5050_v8 = vadd.f32 %v5049_v33, %v4795_v19  ;;  %v4542_v10 = vsel %vm13160_vm9, %v13158_v43, 0.0  ;;  %v13163_v19 = vld [vmem:[#allocation302_spill] sm:$0xff]  ;;  %v13170_v0 = vsub.f32 %v13169_v63, %v9173_v29 }
 0x445   : > { %vm13164_vm10 = vcmp.lt.s32.totalorder %v13163_v19, 4096  ;;  %v4799_v44 = vmul.f32 %v4542_v10, %v4542_v10  ;;  %v13173_v19 = vld [vmem:[#allocation321_spill] sm:$0xff] }
 0x446   : > { %v5051_v37 = vadd.f32 %v5050_v8, %v4796_v12  ;;  %v4543_v33 = vsel %vm13164_vm10, %v13162_v21, 0.0  ;;  %v13167_v12 = vld [vmem:[#allocation307_spill] sm:$0xff]  ;;  %v13174_v10 = vsub.f32 %v13173_v19, %v9173_v29 }
 0x447   : > { %vm13168_vm11 = vcmp.lt.s32.totalorder %v13167_v12, 4096  ;;  %v4800_v18 = vmul.f32 %v4543_v33, %v4543_v33  ;;  %v13177_v12 = vld [vmem:[#allocation316_spill] sm:$0xff] }
 0x448   : > { %v5052_v52 = vadd.f32 %v5051_v37, %v4797_v24  ;;  %v4544_v8 = vsel %vm13168_vm11, %v13166_v16, 0.0  ;;  %v13171_v24 = vld [vmem:[#allocation310_spill] sm:$0xff]  ;;  %v13178_v33 = vsub.f32 %v13177_v12, %v9173_v29 }
 0x449   : > { %vm13172_vm0 = vcmp.lt.s32.totalorder %v13171_v24, 4096  ;;  %v4801_v43 = vmul.f32 %v4544_v8, %v4544_v8  ;;  %v13181_v24 = vld [vmem:[#allocation320_spill] sm:$0xff] }
 0x44a   : > { %v5053_v32 = vadd.f32 %v5052_v52, %v4798_v49  ;;  %v4545_v37 = vsel %vm13172_vm0, %v13170_v0, 0.0  ;;  %v13175_v49 = vld [vmem:[#allocation311_spill] sm:$0xff]  ;;  %v13182_v8 = vsub.f32 %v13181_v24, %v9173_v29 }
 0x44b   : > { %vm13176_vm1 = vcmp.lt.s32.totalorder %v13175_v49, 4096  ;;  %v4802_v21 = vmul.f32 %v4545_v37, %v4545_v37  ;;  %v13185_v49 = vld [vmem:[#allocation331_spill] sm:$0xff] }
 0x44c   : > { %v5054_v11 = vadd.f32 %v5053_v32, %v4799_v44  ;;  %v4546_v52 = vsel %vm13176_vm1, %v13174_v10, 0.0  ;;  %v13179_v44 = vld [vmem:[#allocation314_spill] sm:$0xff]  ;;  %v13186_v37 = vsub.f32 %v13185_v49, %v9173_v29 }
 0x44d   : > { %vm13180_vm2 = vcmp.lt.s32.totalorder %v13179_v44, 4096  ;;  %v4803_v16 = vmul.f32 %v4546_v52, %v4546_v52  ;;  %v13189_v44 = vld [vmem:[#allocation334_spill] sm:$0xff] }
 0x44e   : > { %v5055_v22 = vadd.f32 %v5054_v11, %v4800_v18  ;;  %v4547_v32 = vsel %vm13180_vm2, %v13178_v33, 0.0  ;;  %v13183_v18 = vld [vmem:[#allocation319_spill] sm:$0xff]  ;;  %v13190_v52 = vsub.f32 %v13189_v44, %v9173_v29 }
 0x44f   : > { %vm13184_vm3 = vcmp.lt.s32.totalorder %v13183_v18, 4096  ;;  %v4804_v0 = vmul.f32 %v4547_v32, %v4547_v32  ;;  %v13193_v18 = vld [vmem:[#allocation328_spill] sm:$0xff] }
 0x450   : > { %v5056_v47 = vadd.f32 %v5055_v22, %v4801_v43  ;;  %v4548_v11 = vsel %vm13184_vm3, %v13182_v8, 0.0  ;;  %v13187_v43 = vld [vmem:[#allocation322_spill] sm:$0xff]  ;;  %v13194_v32 = vsub.f32 %v13193_v18, %v9173_v29 }
 0x451   : > { %vm13188_vm4 = vcmp.lt.s32.totalorder %v13187_v43, 4096  ;;  %v4805_v10 = vmul.f32 %v4548_v11, %v4548_v11  ;;  %v13197_v43 = vld [vmem:[#allocation333_spill] sm:$0xff] }
 0x452   : > { %v5057_v63 = vadd.f32 %v5056_v47, %v4802_v21  ;;  %v4549_v22 = vsel %vm13188_vm4, %v13186_v37, 0.0  ;;  %v13191_v21 = vld [vmem:[#allocation323_spill] sm:$0xff]  ;;  %v13198_v11 = vsub.f32 %v13197_v43, %v9173_v29 }
 0x453   : > { %vm13192_vm5 = vcmp.lt.s32.totalorder %v13191_v21, 4096  ;;  %v4806_v33 = vmul.f32 %v4549_v22, %v4549_v22  ;;  %v13201_v21 = vld [vmem:[#allocation145_spill] sm:$0xff] }
 0x454   : > { %v5058_v19 = vadd.f32 %v5057_v63, %v4803_v16  ;;  %v4550_v47 = vsel %vm13192_vm5, %v13190_v52, 0.0  ;;  %v13195_v16 = vld [vmem:[#allocation326_spill] sm:$0xff]  ;;  %v13202_v22 = vsub.f32 %v13201_v21, %v9173_v29 }
 0x455   : > { %vm13196_vm6 = vcmp.lt.s32.totalorder %v13195_v16, 4096  ;;  %v4807_v8 = vmul.f32 %v4550_v47, %v4550_v47  ;;  %v13205_v16 = vld [vmem:[#allocation149_spill] sm:$0xff] }
 0x456   : > { %v5059_v12 = vadd.f32 %v5058_v19, %v4804_v0  ;;  %v4551_v63 = vsel %vm13196_vm6, %v13194_v32, 0.0  ;;  %v13199_v0 = vld [vmem:[#allocation329_spill] sm:$0xff]  ;;  %v13206_v47 = vsub.f32 %v13205_v16, %v9173_v29 }
 0x457   : > { %vm13200_vm7 = vcmp.lt.s32.totalorder %v13199_v0, 4096  ;;  %v4808_v37 = vmul.f32 %v4551_v63, %v4551_v63  ;;  %v13209_v0 = vld [vmem:[#allocation144_spill] sm:$0xff] }
 0x458   : > { %v5060_v24 = vadd.f32 %v5059_v12, %v4805_v10  ;;  %v4552_v19 = vsel %vm13200_vm7, %v13198_v11, 0.0  ;;  %v13203_v10 = vld [vmem:[#allocation332_spill] sm:$0xff]  ;;  %v13210_v63 = vsub.f32 %v13209_v0, %v9173_v29 }
 0x459   : > { %vm13204_vm8 = vcmp.lt.s32.totalorder %v13203_v10, 4096  ;;  %v4809_v52 = vmul.f32 %v4552_v19, %v4552_v19  ;;  %v13213_v10 = vld [vmem:[#allocation147_spill] sm:$0xff] }
 0x45a   : > { %v5061_v49 = vadd.f32 %v5060_v24, %v4806_v33  ;;  %v4553_v12 = vsel %vm13204_vm8, %v13202_v22, 0.0  ;;  %v13207_v33 = vld [vmem:[#allocation335_spill] sm:$0xff]  ;;  %v13214_v19 = vsub.f32 %v13213_v10, %v9173_v29 }
 0x45b   : > { %vm13208_vm9 = vcmp.lt.s32.totalorder %v13207_v33, 4096  ;;  %v4810_v32 = vmul.f32 %v4553_v12, %v4553_v12  ;;  %v13217_v33 = vld [vmem:[#allocation157_spill] sm:$0xff] }
 0x45c   : > { %v5062_v44 = vadd.f32 %v5061_v49, %v4807_v8  ;;  %v4554_v24 = vsel %vm13208_vm9, %v13206_v47, 0.0  ;;  %v13211_v8 = vld [vmem:[#allocation338_spill] sm:$0xff]  ;;  %v13218_v12 = vsub.f32 %v13217_v33, %v9173_v29 }
 0x45d   : > { %vm13212_vm10 = vcmp.lt.s32.totalorder %v13211_v8, 4096  ;;  %v4811_v11 = vmul.f32 %v4554_v24, %v4554_v24  ;;  %v13221_v8 = vld [vmem:[#allocation161_spill] sm:$0xff] }
 0x45e   : > { %v5063_v18 = vadd.f32 %v5062_v44, %v4808_v37  ;;  %v4555_v49 = vsel %vm13212_vm10, %v13210_v63, 0.0  ;;  %v13215_v37 = vld [vmem:[#allocation339_spill] sm:$0xff]  ;;  %v13222_v24 = vsub.f32 %v13221_v8, %v9173_v29 }
 0x45f   : > { %vm13216_vm11 = vcmp.lt.s32.totalorder %v13215_v37, 4096  ;;  %v4812_v22 = vmul.f32 %v4555_v49, %v4555_v49  ;;  %v13225_v37 = vld [vmem:[#allocation156_spill] sm:$0xff] }
 0x460   : > { %v5064_v43 = vadd.f32 %v5063_v18, %v4809_v52  ;;  %v4556_v44 = vsel %vm13216_vm11, %v13214_v19, 0.0  ;;  %v13219_v52 = vld [vmem:[#allocation340_spill] sm:$0xff]  ;;  %v13226_v49 = vsub.f32 %v13225_v37, %v9173_v29 }
 0x461   : > { %vm13220_vm0 = vcmp.lt.s32.totalorder %v13219_v52, 4096  ;;  %v4813_v47 = vmul.f32 %v4556_v44, %v4556_v44  ;;  %v13229_v52 = vld [vmem:[#allocation159_spill] sm:$0xff] }
 0x462   : > { %v5065_v21 = vadd.f32 %v5064_v43, %v4810_v32  ;;  %v4557_v18 = vsel %vm13220_vm0, %v13218_v12, 0.0  ;;  %v13223_v32 = vld [vmem:[#allocation341_spill] sm:$0xff]  ;;  %v13230_v44 = vsub.f32 %v13229_v52, %v9173_v29 }
 0x463   : > { %vm13224_vm1 = vcmp.lt.s32.totalorder %v13223_v32, 4096  ;;  %v4814_v63 = vmul.f32 %v4557_v18, %v4557_v18  ;;  %v13233_v32 = vld [vmem:[#allocation169_spill] sm:$0xff] }
 0x464   : > { %v5066_v16 = vadd.f32 %v5065_v21, %v4811_v11  ;;  %v4558_v43 = vsel %vm13224_vm1, %v13222_v24, 0.0  ;;  %v13227_v11 = vld [vmem:[#allocation342_spill] sm:$0xff]  ;;  %v13234_v18 = vsub.f32 %v13233_v32, %v9173_v29 }
 0x465   : > { %vm13228_vm2 = vcmp.lt.s32.totalorder %v13227_v11, 4096  ;;  %v4815_v19 = vmul.f32 %v4558_v43, %v4558_v43  ;;  %v13237_v11 = vld [vmem:[#allocation173_spill] sm:$0xff] }
 0x466   : > { %v5067_v0 = vadd.f32 %v5066_v16, %v4812_v22  ;;  %v4559_v21 = vsel %vm13228_vm2, %v13226_v49, 0.0  ;;  %v13231_v22 = vld [vmem:[#allocation343_spill] sm:$0xff]  ;;  %v13238_v43 = vsub.f32 %v13237_v11, %v9173_v29 }
 0x467   : > { %vm13232_vm3 = vcmp.lt.s32.totalorder %v13231_v22, 4096  ;;  %v4816_v12 = vmul.f32 %v4559_v21, %v4559_v21  ;;  %v13241_v22 = vld [vmem:[#allocation168_spill] sm:$0xff] }
 0x468   : > { %v5068_v10 = vadd.f32 %v5067_v0, %v4813_v47  ;;  %v4560_v16 = vsel %vm13232_vm3, %v13230_v44, 0.0  ;;  %v13235_v47 = vld [vmem:[#allocation344_spill] sm:$0xff]  ;;  %v13242_v21 = vsub.f32 %v13241_v22, %v9173_v29 }
 0x469   : > { %vm13236_vm4 = vcmp.lt.s32.totalorder %v13235_v47, 4096  ;;  %v4817_v24 = vmul.f32 %v4560_v16, %v4560_v16  ;;  %v13245_v47 = vld [vmem:[#allocation171_spill] sm:$0xff] }
 0x46a   : > { %v5069_v33 = vadd.f32 %v5068_v10, %v4814_v63  ;;  %v4561_v0 = vsel %vm13236_vm4, %v13234_v18, 0.0  ;;  %v13239_v63 = vld [vmem:[#allocation345_spill] sm:$0xff]  ;;  %v13246_v16 = vsub.f32 %v13245_v47, %v9173_v29 }
 0x46b   : > { %vm13240_vm5 = vcmp.lt.s32.totalorder %v13239_v63, 4096  ;;  %v4818_v49 = vmul.f32 %v4561_v0, %v4561_v0  ;;  %v13249_v63 = vld [vmem:[#allocation181_spill] sm:$0xff] }
 0x46c   : > { %v5070_v8 = vadd.f32 %v5069_v33, %v4815_v19  ;;  %v4562_v10 = vsel %vm13240_vm5, %v13238_v43, 0.0  ;;  %v13243_v19 = vld [vmem:[#allocation346_spill] sm:$0xff]  ;;  %v13250_v0 = vsub.f32 %v13249_v63, %v9173_v29 }
 0x46d   : > { %vm13244_vm6 = vcmp.lt.s32.totalorder %v13243_v19, 4096  ;;  %v4819_v44 = vmul.f32 %v4562_v10, %v4562_v10  ;;  %v13253_v19 = vld [vmem:[#allocation185_spill] sm:$0xff] }
 0x46e   : > { %v5071_v37 = vadd.f32 %v5070_v8, %v4816_v12  ;;  %v4563_v33 = vsel %vm13244_vm6, %v13242_v21, 0.0  ;;  %v13247_v12 = vld [vmem:[#allocation347_spill] sm:$0xff]  ;;  %v13254_v10 = vsub.f32 %v13253_v19, %v9173_v29 }
 0x46f   : > { %vm13248_vm7 = vcmp.lt.s32.totalorder %v13247_v12, 4096  ;;  %v4820_v18 = vmul.f32 %v4563_v33, %v4563_v33  ;;  %v13257_v12 = vld [vmem:[#allocation180_spill] sm:$0xff] }
 0x470   : > { %v5072_v52 = vadd.f32 %v5071_v37, %v4817_v24  ;;  %v4564_v8 = vsel %vm13248_vm7, %v13246_v16, 0.0  ;;  %v13251_v24 = vld [vmem:[#allocation348_spill] sm:$0xff]  ;;  %v13258_v33 = vsub.f32 %v13257_v12, %v9173_v29 }
 0x471   : > { %vm13252_vm8 = vcmp.lt.s32.totalorder %v13251_v24, 4096  ;;  %v4821_v43 = vmul.f32 %v4564_v8, %v4564_v8  ;;  %v13261_v24 = vld [vmem:[#allocation183_spill] sm:$0xff] }
 0x472   : > { %v5073_v32 = vadd.f32 %v5072_v52, %v4818_v49  ;;  %v4565_v37 = vsel %vm13252_vm8, %v13250_v0, 0.0  ;;  %v13255_v49 = vld [vmem:[#allocation349_spill] sm:$0xff]  ;;  %v13262_v8 = vsub.f32 %v13261_v24, %v9173_v29 }
 0x473   : > { %vm13256_vm9 = vcmp.lt.s32.totalorder %v13255_v49, 4096  ;;  %v4822_v21 = vmul.f32 %v4565_v37, %v4565_v37  ;;  %v13265_v49 = vld [vmem:[#allocation193_spill] sm:$0xff] }
 0x474   : > { %v5074_v11 = vadd.f32 %v5073_v32, %v4819_v44  ;;  %v4566_v52 = vsel %vm13256_vm9, %v13254_v10, 0.0  ;;  %v13259_v44 = vld [vmem:[#allocation350_spill] sm:$0xff]  ;;  %v13266_v37 = vsub.f32 %v13265_v49, %v9173_v29 }
 0x475   : > { %vm13260_vm10 = vcmp.lt.s32.totalorder %v13259_v44, 4096  ;;  %v4823_v16 = vmul.f32 %v4566_v52, %v4566_v52  ;;  %v13269_v44 = vld [vmem:[#allocation197_spill] sm:$0xff] }
 0x476   : > { %v5075_v22 = vadd.f32 %v5074_v11, %v4820_v18  ;;  %v4567_v32 = vsel %vm13260_vm10, %v13258_v33, 0.0  ;;  %v13263_v18 = vld [vmem:[#allocation351_spill] sm:$0xff]  ;;  %v13270_v52 = vsub.f32 %v13269_v44, %v9173_v29 }
 0x477   : > { %vm13264_vm11 = vcmp.lt.s32.totalorder %v13263_v18, 4096  ;;  %v4824_v0 = vmul.f32 %v4567_v32, %v4567_v32  ;;  %v13273_v18 = vld [vmem:[#allocation192_spill] sm:$0xff] }
 0x478   : > { %v5076_v47 = vadd.f32 %v5075_v22, %v4821_v43  ;;  %v4568_v11 = vsel %vm13264_vm11, %v13262_v8, 0.0  ;;  %v13267_v43 = vld [vmem:[#allocation352_spill] sm:$0xff]  ;;  %v13274_v32 = vsub.f32 %v13273_v18, %v9173_v29 }
 0x479   : > { %vm13268_vm0 = vcmp.lt.s32.totalorder %v13267_v43, 4096  ;;  %v4825_v10 = vmul.f32 %v4568_v11, %v4568_v11  ;;  %v13277_v43 = vld [vmem:[#allocation195_spill] sm:$0xff] }
 0x47a   : > { %v5077_v63 = vadd.f32 %v5076_v47, %v4822_v21  ;;  %v4569_v22 = vsel %vm13268_vm0, %v13266_v37, 0.0  ;;  %v13271_v21 = vld [vmem:[#allocation353_spill] sm:$0xff]  ;;  %v13278_v11 = vsub.f32 %v13277_v43, %v9173_v29 }
 0x47b   : > { %vm13272_vm1 = vcmp.lt.s32.totalorder %v13271_v21, 4096  ;;  %v4826_v33 = vmul.f32 %v4569_v22, %v4569_v22  ;;  %v13281_v21 = vld [vmem:[#allocation205_spill] sm:$0xff] }
 0x47c   : > { %v5078_v19 = vadd.f32 %v5077_v63, %v4823_v16  ;;  %v4570_v47 = vsel %vm13272_vm1, %v13270_v52, 0.0  ;;  %v13275_v16 = vld [vmem:[#allocation354_spill] sm:$0xff]  ;;  %v13282_v22 = vsub.f32 %v13281_v21, %v9173_v29 }
 0x47d   : > { %vm13276_vm2 = vcmp.lt.s32.totalorder %v13275_v16, 4096  ;;  %v4827_v8 = vmul.f32 %v4570_v47, %v4570_v47  ;;  %v13285_v16 = vld [vmem:[#allocation209_spill] sm:$0xff] }
 0x47e   : > { %v5079_v12 = vadd.f32 %v5078_v19, %v4824_v0  ;;  %v4571_v63 = vsel %vm13276_vm2, %v13274_v32, 0.0  ;;  %v13279_v0 = vld [vmem:[#allocation355_spill] sm:$0xff]  ;;  %v13286_v47 = vsub.f32 %v13285_v16, %v9173_v29 }
 0x47f   : > { %vm13280_vm3 = vcmp.lt.s32.totalorder %v13279_v0, 4096  ;;  %v4828_v37 = vmul.f32 %v4571_v63, %v4571_v63  ;;  %v13289_v0 = vld [vmem:[#allocation204_spill] sm:$0xff] }
 0x480   : > { %v5080_v24 = vadd.f32 %v5079_v12, %v4825_v10  ;;  %v4572_v19 = vsel %vm13280_vm3, %v13278_v11, 0.0  ;;  %v13283_v10 = vld [vmem:[#allocation356_spill] sm:$0xff]  ;;  %v13290_v63 = vsub.f32 %v13289_v0, %v9173_v29 }
 0x481   : > { %vm13284_vm4 = vcmp.lt.s32.totalorder %v13283_v10, 4096  ;;  %v4829_v52 = vmul.f32 %v4572_v19, %v4572_v19  ;;  %v13293_v10 = vld [vmem:[#allocation207_spill] sm:$0xff] }
 0x482   : > { %v5081_v49 = vadd.f32 %v5080_v24, %v4826_v33  ;;  %v4573_v12 = vsel %vm13284_vm4, %v13282_v22, 0.0  ;;  %v13287_v33 = vld [vmem:[#allocation357_spill] sm:$0xff]  ;;  %v13294_v19 = vsub.f32 %v13293_v10, %v9173_v29 }
 0x483   : > { %vm13288_vm5 = vcmp.lt.s32.totalorder %v13287_v33, 4096  ;;  %v4830_v32 = vmul.f32 %v4573_v12, %v4573_v12  ;;  %v13297_v33 = vld [vmem:[#allocation217_spill] sm:$0xff] }
 0x484   : > { %v5082_v44 = vadd.f32 %v5081_v49, %v4827_v8  ;;  %v4574_v24 = vsel %vm13288_vm5, %v13286_v47, 0.0  ;;  %v13291_v8 = vld [vmem:[#allocation358_spill] sm:$0xff]  ;;  %v13298_v12 = vsub.f32 %v13297_v33, %v9173_v29 }
 0x485   : > { %vm13292_vm6 = vcmp.lt.s32.totalorder %v13291_v8, 4096  ;;  %v4831_v11 = vmul.f32 %v4574_v24, %v4574_v24  ;;  %v13301_v8 = vld [vmem:[#allocation221_spill] sm:$0xff] }
 0x486   : > { %v5083_v18 = vadd.f32 %v5082_v44, %v4828_v37  ;;  %v4575_v49 = vsel %vm13292_vm6, %v13290_v63, 0.0  ;;  %v13295_v37 = vld [vmem:[#allocation359_spill] sm:$0xff]  ;;  %v13302_v24 = vsub.f32 %v13301_v8, %v9173_v29 }
 0x487   : > { %vm13296_vm7 = vcmp.lt.s32.totalorder %v13295_v37, 4096  ;;  %v4832_v22 = vmul.f32 %v4575_v49, %v4575_v49  ;;  %v13305_v37 = vld [vmem:[#allocation216_spill] sm:$0xff] }
 0x488   : > { %v5084_v43 = vadd.f32 %v5083_v18, %v4829_v52  ;;  %v4576_v44 = vsel %vm13296_vm7, %v13294_v19, 0.0  ;;  %v13299_v52 = vld [vmem:[#allocation360_spill] sm:$0xff]  ;;  %v13306_v49 = vsub.f32 %v13305_v37, %v9173_v29 }
 0x489   : > { %vm13300_vm8 = vcmp.lt.s32.totalorder %v13299_v52, 4096  ;;  %v4833_v47 = vmul.f32 %v4576_v44, %v4576_v44  ;;  %v13309_v52 = vld [vmem:[#allocation219_spill] sm:$0xff] }
 0x48a   : > { %v5085_v21 = vadd.f32 %v5084_v43, %v4830_v32  ;;  %v4577_v18 = vsel %vm13300_vm8, %v13298_v12, 0.0  ;;  %v13303_v32 = vld [vmem:[#allocation361_spill] sm:$0xff]  ;;  %v13310_v44 = vsub.f32 %v13309_v52, %v9173_v29 }
 0x48b   : > { %vm13304_vm9 = vcmp.lt.s32.totalorder %v13303_v32, 4096  ;;  %v4834_v63 = vmul.f32 %v4577_v18, %v4577_v18  ;;  %v13313_v32 = vld [vmem:[#allocation229_spill] sm:$0xff] }
 0x48c   : > { %v5086_v16 = vadd.f32 %v5085_v21, %v4831_v11  ;;  %v4578_v43 = vsel %vm13304_vm9, %v13302_v24, 0.0  ;;  %v13307_v11 = vld [vmem:[#allocation362_spill] sm:$0xff]  ;;  %v13314_v18 = vsub.f32 %v13313_v32, %v9173_v29 }
 0x48d   : > { %vm13308_vm10 = vcmp.lt.s32.totalorder %v13307_v11, 4096  ;;  %v4835_v19 = vmul.f32 %v4578_v43, %v4578_v43  ;;  %v13317_v11 = vld [vmem:[#allocation233_spill] sm:$0xff] }
 0x48e   : > { %v5087_v0 = vadd.f32 %v5086_v16, %v4832_v22  ;;  %v4579_v21 = vsel %vm13308_vm10, %v13306_v49, 0.0  ;;  %v13311_v22 = vld [vmem:[#allocation363_spill] sm:$0xff]  ;;  %v13318_v43 = vsub.f32 %v13317_v11, %v9173_v29 }
 0x48f   : > { %vm13312_vm11 = vcmp.lt.s32.totalorder %v13311_v22, 4096  ;;  %v4836_v12 = vmul.f32 %v4579_v21, %v4579_v21  ;;  %v13321_v22 = vld [vmem:[#allocation228_spill] sm:$0xff] }
 0x490   : > { %v5088_v10 = vadd.f32 %v5087_v0, %v4833_v47  ;;  %v4580_v16 = vsel %vm13312_vm11, %v13310_v44, 0.0  ;;  %v13315_v47 = vld [vmem:[#allocation364_spill] sm:$0xff]  ;;  %v13322_v21 = vsub.f32 %v13321_v22, %v9173_v29 }
 0x491   : > { %vm13316_vm0 = vcmp.lt.s32.totalorder %v13315_v47, 4096  ;;  %v4837_v24 = vmul.f32 %v4580_v16, %v4580_v16  ;;  %v13325_v47 = vld [vmem:[#allocation231_spill] sm:$0xff] }
 0x492   : > { %v5089_v33 = vadd.f32 %v5088_v10, %v4834_v63  ;;  %v4581_v0 = vsel %vm13316_vm0, %v13314_v18, 0.0  ;;  %v13319_v63 = vld [vmem:[#allocation365_spill] sm:$0xff]  ;;  %v13326_v16 = vsub.f32 %v13325_v47, %v9173_v29 }
 0x493   : > { %vm13320_vm1 = vcmp.lt.s32.totalorder %v13319_v63, 4096  ;;  %v4838_v49 = vmul.f32 %v4581_v0, %v4581_v0  ;;  %v13329_v63 = vld [vmem:[#allocation241_spill] sm:$0xff] }
 0x494   : > { %v5090_v8 = vadd.f32 %v5089_v33, %v4835_v19  ;;  %v4582_v10 = vsel %vm13320_vm1, %v13318_v43, 0.0  ;;  %v13323_v19 = vld [vmem:[#allocation366_spill] sm:$0xff]  ;;  %v13330_v0 = vsub.f32 %v13329_v63, %v9173_v29 }
 0x495   : > { %vm13324_vm2 = vcmp.lt.s32.totalorder %v13323_v19, 4096  ;;  %v4839_v44 = vmul.f32 %v4582_v10, %v4582_v10  ;;  %v13333_v19 = vld [vmem:[#allocation245_spill] sm:$0xff] }
 0x496   : > { %v5091_v37 = vadd.f32 %v5090_v8, %v4836_v12  ;;  %v4583_v33 = vsel %vm13324_vm2, %v13322_v21, 0.0  ;;  %v13327_v12 = vld [vmem:[#allocation367_spill] sm:$0xff]  ;;  %v13334_v10 = vsub.f32 %v13333_v19, %v9173_v29 }
 0x497   : > { %vm13328_vm3 = vcmp.lt.s32.totalorder %v13327_v12, 4096  ;;  %v4840_v18 = vmul.f32 %v4583_v33, %v4583_v33  ;;  %v13337_v12 = vld [vmem:[#allocation240_spill] sm:$0xff] }
 0x498   : > { %v5092_v52 = vadd.f32 %v5091_v37, %v4837_v24  ;;  %v4584_v8 = vsel %vm13328_vm3, %v13326_v16, 0.0  ;;  %v13331_v24 = vld [vmem:[#allocation368_spill] sm:$0xff]  ;;  %v13338_v33 = vsub.f32 %v13337_v12, %v9173_v29 }
 0x499   : > { %vm13332_vm4 = vcmp.lt.s32.totalorder %v13331_v24, 4096  ;;  %v4841_v43 = vmul.f32 %v4584_v8, %v4584_v8  ;;  %v13341_v24 = vld [vmem:[#allocation243_spill] sm:$0xff] }
 0x49a   : > { %v5093_v32 = vadd.f32 %v5092_v52, %v4838_v49  ;;  %v4585_v37 = vsel %vm13332_vm4, %v13330_v0, 0.0  ;;  %v13335_v49 = vld [vmem:[#allocation369_spill] sm:$0xff]  ;;  %v13342_v8 = vsub.f32 %v13341_v24, %v9173_v29 }
 0x49b   : > { %vm13336_vm5 = vcmp.lt.s32.totalorder %v13335_v49, 4096  ;;  %v4842_v21 = vmul.f32 %v4585_v37, %v4585_v37  ;;  %v13345_v49 = vld [vmem:[#allocation253_spill] sm:$0xff] }
 0x49c   : > { %v5094_v11 = vadd.f32 %v5093_v32, %v4839_v44  ;;  %v4586_v52 = vsel %vm13336_vm5, %v13334_v10, 0.0  ;;  %v13339_v44 = vld [vmem:[#allocation371_spill] sm:$0xff]  ;;  %v13346_v37 = vsub.f32 %v13345_v49, %v9173_v29 }
 0x49d   : > { %vm13340_vm6 = vcmp.lt.s32.totalorder %v13339_v44, 4096  ;;  %v4843_v16 = vmul.f32 %v4586_v52, %v4586_v52  ;;  %v13349_v44 = vld [vmem:[#allocation257_spill] sm:$0xff] }
 0x49e   : > { %v5095_v22 = vadd.f32 %v5094_v11, %v4840_v18  ;;  %v4587_v32 = vsel %vm13340_vm6, %v13338_v33, 0.0  ;;  %v13343_v18 = vld [vmem:[#allocation373_spill] sm:$0xff]  ;;  %v13350_v52 = vsub.f32 %v13349_v44, %v9173_v29 }
 0x49f   : > { %vm13344_vm7 = vcmp.lt.s32.totalorder %v13343_v18, 4096  ;;  %v4844_v0 = vmul.f32 %v4587_v32, %v4587_v32  ;;  %v13353_v18 = vld [vmem:[#allocation252_spill] sm:$0xff] }
 0x4a0   : > { %v5096_v47 = vadd.f32 %v5095_v22, %v4841_v43  ;;  %v4588_v11 = vsel %vm13344_vm7, %v13342_v8, 0.0  ;;  %v13347_v43 = vld [vmem:[#allocation374_spill] sm:$0xff]  ;;  %v13354_v32 = vsub.f32 %v13353_v18, %v9173_v29 }
 0x4a1   : > { %vm13348_vm8 = vcmp.lt.s32.totalorder %v13347_v43, 4096  ;;  %v4845_v10 = vmul.f32 %v4588_v11, %v4588_v11  ;;  %v13357_v43 = vld [vmem:[#allocation255_spill] sm:$0xff] }
 0x4a2   : > { %v5097_v63 = vadd.f32 %v5096_v47, %v4842_v21  ;;  %v4589_v22 = vsel %vm13348_vm8, %v13346_v37, 0.0  ;;  %v13351_v21 = vld [vmem:[#allocation375_spill] sm:$0xff]  ;;  %v13358_v11 = vsub.f32 %v13357_v43, %v9173_v29 }
 0x4a3   : > { %vm13352_vm9 = vcmp.lt.s32.totalorder %v13351_v21, 4096  ;;  %v4846_v33 = vmul.f32 %v4589_v22, %v4589_v22  ;;  %v13361_v21 = vld [vmem:[#allocation265_spill] sm:$0xff] }
 0x4a4   : > { %v5098_v19 = vadd.f32 %v5097_v63, %v4843_v16  ;;  %v4590_v47 = vsel %vm13352_vm9, %v13350_v52, 0.0  ;;  %v13355_v16 = vld [vmem:[#allocation378_spill] sm:$0xff]  ;;  %v13362_v22 = vsub.f32 %v13361_v21, %v9173_v29 }
 0x4a5   : > { %vm13356_vm10 = vcmp.lt.s32.totalorder %v13355_v16, 4096  ;;  %v4847_v8 = vmul.f32 %v4590_v47, %v4590_v47  ;;  %v13365_v16 = vld [vmem:[#allocation269_spill] sm:$0xff] }
 0x4a6   : > { %v5099_v12 = vadd.f32 %v5098_v19, %v4844_v0  ;;  %v4591_v63 = vsel %vm13356_vm10, %v13354_v32, 0.0  ;;  %v13359_v0 = vld [vmem:[#allocation380_spill] sm:$0xff]  ;;  %v13366_v47 = vsub.f32 %v13365_v16, %v9173_v29 }
 0x4a7   : > { %vm13360_vm11 = vcmp.lt.s32.totalorder %v13359_v0, 4096  ;;  %v4848_v37 = vmul.f32 %v4591_v63, %v4591_v63  ;;  %v13369_v0 = vld [vmem:[#allocation264_spill] sm:$0xff] }
 0x4a8   : > { %v5100_v24 = vadd.f32 %v5099_v12, %v4845_v10  ;;  %v4592_v19 = vsel %vm13360_vm11, %v13358_v11, 0.0  ;;  %v13363_v10 = vld [vmem:[#allocation381_spill] sm:$0xff]  ;;  %v13370_v63 = vsub.f32 %v13369_v0, %v9173_v29 }
 0x4a9   : > { %vm13364_vm0 = vcmp.lt.s32.totalorder %v13363_v10, 4096  ;;  %v4849_v52 = vmul.f32 %v4592_v19, %v4592_v19  ;;  %v13373_v10 = vld [vmem:[#allocation267_spill] sm:$0xff] }
 0x4aa   : > { %v5101_v49 = vadd.f32 %v5100_v24, %v4846_v33  ;;  %v4593_v12 = vsel %vm13364_vm0, %v13362_v22, 0.0  ;;  %v13367_v33 = vld [vmem:[#allocation382_spill] sm:$0xff]  ;;  %v13374_v19 = vsub.f32 %v13373_v10, %v9173_v29 }
 0x4ab   : > { %vm13368_vm1 = vcmp.lt.s32.totalorder %v13367_v33, 4096  ;;  %v4850_v32 = vmul.f32 %v4593_v12, %v4593_v12  ;;  %v13377_v33 = vld [vmem:[#allocation277_spill] sm:$0xff] }
 0x4ac   : > { %v5102_v44 = vadd.f32 %v5101_v49, %v4847_v8  ;;  %v4594_v24 = vsel %vm13368_vm1, %v13366_v47, 0.0  ;;  %v13371_v8 = vld [vmem:[#allocation385_spill] sm:$0xff]  ;;  %v13378_v12 = vsub.f32 %v13377_v33, %v9173_v29 }
 0x4ad   : > { %vm13372_vm2 = vcmp.lt.s32.totalorder %v13371_v8, 4096  ;;  %v4851_v11 = vmul.f32 %v4594_v24, %v4594_v24  ;;  %v13381_v8 = vld [vmem:[#allocation281_spill] sm:$0xff] }
 0x4ae   : > { %v5103_v18 = vadd.f32 %v5102_v44, %v4848_v37  ;;  %v4595_v49 = vsel %vm13372_vm2, %v13370_v63, 0.0  ;;  %v13375_v37 = vld [vmem:[#allocation387_spill] sm:$0xff]  ;;  %v13382_v24 = vsub.f32 %v13381_v8, %v9173_v29 }
 0x4af   : > { %vm13376_vm3 = vcmp.lt.s32.totalorder %v13375_v37, 4096  ;;  %v4852_v22 = vmul.f32 %v4595_v49, %v4595_v49  ;;  %v13385_v37 = vld [vmem:[#allocation276_spill] sm:$0xff] }
 0x4b0   : > { %v5104_v43 = vadd.f32 %v5103_v18, %v4849_v52  ;;  %v4596_v44 = vsel %vm13376_vm3, %v13374_v19, 0.0  ;;  %v13379_v52 = vld [vmem:[#allocation389_spill] sm:$0xff]  ;;  %v13386_v49 = vsub.f32 %v13385_v37, %v9173_v29 }
 0x4b1   : > { %vm13380_vm4 = vcmp.lt.s32.totalorder %v13379_v52, 4096  ;;  %v4853_v47 = vmul.f32 %v4596_v44, %v4596_v44  ;;  %v13389_v52 = vld [vmem:[#allocation279_spill] sm:$0xff] }
 0x4b2   : > { %v5105_v21 = vadd.f32 %v5104_v43, %v4850_v32  ;;  %v4597_v18 = vsel %vm13380_vm4, %v13378_v12, 0.0  ;;  %v13383_v32 = vld [vmem:[#allocation390_spill] sm:$0xff]  ;;  %v13390_v44 = vsub.f32 %v13389_v52, %v9173_v29 }
 0x4b3   : > { %vm13384_vm5 = vcmp.lt.s32.totalorder %v13383_v32, 4096  ;;  %v4854_v63 = vmul.f32 %v4597_v18, %v4597_v18  ;;  %v13393_v32 = vld [vmem:[#allocation289_spill] sm:$0xff] }
 0x4b4   : > { %v5106_v16 = vadd.f32 %v5105_v21, %v4851_v11  ;;  %v4598_v43 = vsel %vm13384_vm5, %v13382_v24, 0.0  ;;  %v13387_v11 = vld [vmem:[#allocation393_spill] sm:$0xff]  ;;  %v13394_v18 = vsub.f32 %v13393_v32, %v9173_v29 }
 0x4b5   : > { %vm13388_vm6 = vcmp.lt.s32.totalorder %v13387_v11, 4096  ;;  %v4855_v19 = vmul.f32 %v4598_v43, %v4598_v43  ;;  %v13397_v11 = vld [vmem:[#allocation293_spill] sm:$0xff] }
 0x4b6   : > { %v5107_v0 = vadd.f32 %v5106_v16, %v4852_v22  ;;  %v4599_v21 = vsel %vm13388_vm6, %v13386_v49, 0.0  ;;  %v13391_v22 = vld [vmem:[#allocation395_spill] sm:$0xff]  ;;  %v13398_v43 = vsub.f32 %v13397_v11, %v9173_v29 }
 0x4b7   : > { %vm13392_vm7 = vcmp.lt.s32.totalorder %v13391_v22, 4096  ;;  %v4856_v12 = vmul.f32 %v4599_v21, %v4599_v21  ;;  %v13401_v22 = vld [vmem:[#allocation288_spill] sm:$0xff] }
 0x4b8   : > { %v5108_v10 = vadd.f32 %v5107_v0, %v4853_v47  ;;  %v4600_v16 = vsel %vm13392_vm7, %v13390_v44, 0.0  ;;  %v13395_v47 = vld [vmem:[#allocation397_spill] sm:$0xff]  ;;  %v13402_v21 = vsub.f32 %v13401_v22, %v9173_v29 }
 0x4b9   : > { %vm13396_vm8 = vcmp.lt.s32.totalorder %v13395_v47, 4096  ;;  %v4857_v24 = vmul.f32 %v4600_v16, %v4600_v16  ;;  %v13405_v47 = vld [vmem:[#allocation291_spill] sm:$0xff] }
 0x4ba   : > { %v5109_v33 = vadd.f32 %v5108_v10, %v4854_v63  ;;  %v4601_v0 = vsel %vm13396_vm8, %v13394_v18, 0.0  ;;  %v13399_v63 = vld [vmem:[#allocation398_spill] sm:$0xff]  ;;  %v13406_v16 = vsub.f32 %v13405_v47, %v9173_v29 }
 0x4bb   : > { %vm13400_vm9 = vcmp.lt.s32.totalorder %v13399_v63, 4096  ;;  %v4858_v49 = vmul.f32 %v4601_v0, %v4601_v0  ;;  %v13409_v63 = vld [vmem:[#allocation301_spill] sm:$0xff] }
 0x4bc   : > { %v5110_v8 = vadd.f32 %v5109_v33, %v4855_v19  ;;  %v4602_v10 = vsel %vm13400_vm9, %v13398_v43, 0.0  ;;  %v13403_v19 = vld [vmem:[#allocation401_spill] sm:$0xff]  ;;  %v13410_v0 = vsub.f32 %v13409_v63, %v9173_v29 }
 0x4bd   : > { %vm13404_vm10 = vcmp.lt.s32.totalorder %v13403_v19, 4096  ;;  %v4859_v44 = vmul.f32 %v4602_v10, %v4602_v10  ;;  %v13413_v19 = vld [vmem:[#allocation305_spill] sm:$0xff] }
 0x4be   : > { %v5111_v37 = vadd.f32 %v5110_v8, %v4856_v12  ;;  %v4603_v33 = vsel %vm13404_vm10, %v13402_v21, 0.0  ;;  %v13407_v12 = vld [vmem:[#allocation403_spill] sm:$0xff]  ;;  %v13414_v10 = vsub.f32 %v13413_v19, %v9173_v29 }
 0x4bf   : > { %vm13408_vm11 = vcmp.lt.s32.totalorder %v13407_v12, 4096  ;;  %v4860_v18 = vmul.f32 %v4603_v33, %v4603_v33  ;;  %v13417_v12 = vld [vmem:[#allocation300_spill] sm:$0xff] }
 0x4c0   : > { %v5112_v52 = vadd.f32 %v5111_v37, %v4857_v24  ;;  %v4604_v8 = vsel %vm13408_vm11, %v13406_v16, 0.0  ;;  %v13411_v24 = vld [vmem:[#allocation405_spill] sm:$0xff]  ;;  %v13418_v33 = vsub.f32 %v13417_v12, %v9173_v29 }
 0x4c1   : > { %vm13412_vm0 = vcmp.lt.s32.totalorder %v13411_v24, 4096  ;;  %v4861_v43 = vmul.f32 %v4604_v8, %v4604_v8  ;;  %v13421_v8 = vsub.f32 %v12676_v48, %v9173_v29 }
 0x4c2   : > { %v5113_v32 = vadd.f32 %v5112_v52, %v4858_v49  ;;  %v4605_v37 = vsel %vm13412_vm0, %v13410_v0, 0.0  ;;  %v13415_v49 = vld [vmem:[#allocation406_spill] sm:$0xff] }
 0x4c3   : > { %vm13416_vm1 = vcmp.lt.s32.totalorder %v13415_v49, 4096  ;;  %v4862_v21 = vmul.f32 %v4605_v37, %v4605_v37  ;;  %v13424_v37 = vsub.f32 %v12677_v41, %v9173_v29  ;;  %v13427_v49 = vld [vmem:[#allocation317_spill] sm:$0xff] }
 0x4c4   : > { %v5114_v11 = vadd.f32 %v5113_v32, %v4859_v44  ;;  %v4606_v52 = vsel %vm13416_vm1, %v13414_v10, 0.0  ;;  %v13419_v44 = vld [vmem:[#allocation409_spill] sm:$0xff] }
 0x4c5   : > { %vm13420_vm2 = vcmp.lt.s32.totalorder %v13419_v44, 4096  ;;  %v4863_v16 = vmul.f32 %v4606_v52, %v4606_v52  ;;  %v13428_v52 = vsub.f32 %v13427_v49, %v9173_v29  ;;  %v13432_v44 = vld [vmem:[#allocation417_spill] sm:$0xff] }
 0x4c6   : > { %v5115_v22 = vadd.f32 %v5114_v11, %v4860_v18  ;;  %v4607_v32 = vsel %vm13420_vm2, %v13418_v33, 0.0  ;;  %v13422_v18 = vld [vmem:[#allocation411_spill] sm:$0xff]  ;;  %v13431_v33 = vsub.f32 %v12679_v56, %v9173_v29  ;;  %vm13433_vm6 = vcmp.lt.s32.totalorder %v13432_v44, 4096 }
 0x4c7   : > { %vm13423_vm3 = vcmp.lt.s32.totalorder %v13422_v18, 4096  ;;  %v4864_v0 = vmul.f32 %v4607_v32, %v4607_v32  ;;  %v13447_v44 = vld [vmem:[#allocation427_spill] sm:$0xff] }
 0x4c8   : > { %v5116_v47 = vadd.f32 %v5115_v22, %v4861_v43  ;;  %v4608_v11 = vsel %vm13423_vm3, %v13421_v8, 0.0  ;;  %v13425_v43 = vld [vmem:[#allocation413_spill] sm:$0xff]  ;;  %v4611_v32 = vsel %vm13433_vm6, %v13431_v33, 0.0  ;;  %v13435_v8 = vld [vmem:[#allocation419_spill] sm:$0xff]  ;;  %v13446_v33 = vsub.f32 %v12412_v4, %v9173_v29 }
 0x4c9   : > { %vm13426_vm4 = vcmp.lt.s32.totalorder %v13425_v43, 4096  ;;  %v4865_v19 = vmul.f32 %v4608_v11, %v4608_v11  ;;  %vm13436_vm7 = vcmp.lt.s32.totalorder %v13435_v8, 4096  ;;  %v4868_v11 = vmul.f32 %v4611_v32, %v4611_v32 }
 0x4ca   : > { %v5117_v63 = vadd.f32 %v5116_v47, %v4862_v21  ;;  %v4609_v22 = vsel %vm13426_vm4, %v13424_v37, 0.0  ;;  %v13429_v21 = vld [vmem:[#allocation414_spill] sm:$0xff]  ;;  %v13438_v37 = vld [vmem:[#allocation421_spill] sm:$0xff]  ;;  %vm13448_vm11 = vcmp.lt.s32.totalorder %v13447_v44, 4096 }
 0x4cb   : > { %vm13430_vm5 = vcmp.lt.s32.totalorder %v13429_v21, 4096  ;;  %v4866_v48 = vmul.f32 %v4609_v22, %v4609_v22  ;;  %vm13439_vm8 = vcmp.lt.s32.totalorder %v13438_v37, 4096  ;;  %v13443_v21 = vsub.f32 %v12410_v59, %v9173_v29 }
 0x4cc   : > { %v5118_v24 = vadd.f32 %v5117_v63, %v4863_v16  ;;  %v4610_v47 = vsel %vm13430_vm5, %v13428_v52, 0.0  ;;  %v13434_v63 = vsub.f32 %v12680_v46, %v9173_v29  ;;  %v4616_v32 = vsel %vm13448_vm11, %v13446_v33, 0.0  ;;  %v13465_v33 = vld [vmem:[#allocation432_spill] sm:$0xff] }
 0x4cd   : > { %v4867_v41 = vmul.f32 %v4610_v47, %v4610_v47  ;;  %v13444_v47 = vld [vmem:[#allocation425_spill] sm:$0xff]  ;;  %v4873_v8 = vmul.f32 %v4616_v32, %v4616_v32  ;;  %vm13466_vm5 = vcmp.lt.s32.totalorder %v13465_v33, 4096  ;;  %v13467_v32 = vsub.f32 %v8055_v45, %v9173_v29 }
 0x4ce   : > { %v5119_v10 = vadd.f32 %v5118_v24, %v4864_v0  ;;  %v4612_v18 = vsel %vm13436_vm7, %v13434_v63, 0.0  ;;  %v13437_v24 = vsub.f32 %v12681_v17, %v9173_v29  ;;  %vm13445_vm10 = vcmp.lt.s32.totalorder %v13444_v47, 4096  ;;  %v13450_v63 = vld [vmem:[#allocation429_spill] sm:$0xff]  ;;  %v13462_v47 = vld [vmem:[#allocation431_spill] sm:$0xff] }
 0x4cf   : > { %v4869_v56 = vmul.f32 %v4612_v18, %v4612_v18  ;;  %vm13451_vm0 = vcmp.lt.s32.totalorder %v13450_v63, 4096  ;;  %vm13463_vm4 = vcmp.lt.s32.totalorder %v13462_v47, 4096 }
 0x4d0   : > { %v5120_v12 = vadd.f32 %v5119_v10, %v4865_v19  ;;  %v4613_v43 = vsel %vm13439_vm8, %v13437_v24, 0.0  ;;  %v13440_v19 = vsub.f32 %v12682_v57, %v9173_v29  ;;  %v13441_v10 = vld [vmem:[#allocation422_spill] sm:$0xff] }
 0x4d1   : > { %vm13442_vm9 = vcmp.lt.s32.totalorder %v13441_v10, 4096  ;;  %v4870_v46 = vmul.f32 %v4613_v43, %v4613_v43  ;;  %v13455_v43 = vsub.f32 %v12416_v62, %v9173_v29  ;;  %v13458_v10 = vsub.f32 %v8025_v30, %v9173_v29 }
 0x4d2   : > { %v5121_v16 = vadd.f32 %v5120_v12, %v4866_v48  ;;  %v4614_v49 = vsel %vm13442_vm9, %v13440_v19, 0.0  ;;  %v4615_v48 = vsel %vm13445_vm10, %v13443_v21, 0.0  ;;  %v13461_v21 = vsub.f32 %v8060_v25, %v9173_v29 }
 0x4d3   : > { %v4871_v17 = vmul.f32 %v4614_v49, %v4614_v49  ;;  %v4872_v57 = vmul.f32 %v4615_v48, %v4615_v48  ;;  %v13459_v49 = vld [vmem:[#allocation327_spill] sm:$0xff] }
 0x4d4   : > { %v5122_v0 = vadd.f32 %v5121_v16, %v4867_v41  ;;  %v13449_v16 = vsub.f32 %v12683_v23, %v9173_v29  ;;  %v13456_v23 = vld [vmem:[#allocation324_spill] sm:$0xff]  ;;  %vm13460_vm3 = vcmp.lt.s32.totalorder %v13459_v49, 4096  ;;  %v4621_v62 = vsel %vm13463_vm4, %v13461_v21, 0.0 }
 0x4d5   : > { %vm13457_vm2 = vcmp.lt.s32.totalorder %v13456_v23, 4096  ;;  %v4878_v25 = vmul.f32 %v4621_v62, %v4621_v62 }
 0x4d6   : > { %v5123_v22 = vadd.f32 %v5122_v0, %v4868_v11  ;;  %v4617_v59 = vsel %vm13451_vm0, %v13449_v16, 0.0  ;;  %v13452_v11 = vsub.f32 %v8036_v15, %v9173_v29  ;;  %v13453_v0 = vld [vmem:[#allocation430_spill] sm:$0xff]  ;;  %v4620_v15 = vsel %vm13460_vm3, %v13458_v10, 0.0 }
 0x4d7   : > { %vm13454_vm1 = vcmp.lt.s32.totalorder %v13453_v0, 4096  ;;  %v4874_v24 = vmul.f32 %v4617_v59, %v4617_v59  ;;  %v4877_v48 = vmul.f32 %v4620_v15, %v4620_v15 }
 0x4d8   : > { %v5124_v52 = vadd.f32 %v5123_v22, %v4869_v56  ;;  %v4618_v4 = vsel %vm13454_vm1, %v13452_v11, 0.0  ;;  %v4619_v56 = vsel %vm13457_vm2, %v13455_v43, 0.0 }
 0x4d9   : > { %v4875_v22 = vmul.f32 %v4618_v4, %v4618_v4 }
 0x4da   : > { %v5125_v12 = vadd.f32 %v5124_v52, %v4870_v46  ;;  %v4876_v46 = vmul.f32 %v4619_v56, %v4619_v56 }
 0x4dc   : > { %v5126_v41 = vadd.f32 %v5125_v12, %v4871_v17  ;;  %v13464_v12 = vsub.f32 %v8076_v34, %v9173_v29 }
 0x4de   : > { %v5127_v18 = vadd.f32 %v5126_v41, %v4872_v57  ;;  %v4622_v30 = vsel %vm13466_vm5, %v13464_v12, 0.0  ;;  %v13468_v57 = vld [vmem:[#allocation336_spill] sm:$0xff] }
 0x4df   : > { %vm13469_vm6 = vcmp.lt.s32.totalorder %v13468_v57, 4096 }
 0x4e0   : > { %v5128_v37 = vadd.f32 %v5127_v18, %v4873_v8  ;;  %v4623_v34 = vsel %vm13469_vm6, %v13467_v32, 0.0 }
 0x4e2   : > { %v5129_v19 = vadd.f32 %v5128_v37, %v4874_v24 }
 0x4e4   : > { %v5130_v52 = vadd.f32 %v5129_v19, %v4875_v22 }
 0x4e6   : > { %v5131_v17 = vadd.f32 %v5130_v52, %v4876_v46 }
 0x4e8   : > { %v5132_v44 = vadd.f32 %v5131_v17, %v4877_v48 }
 0x4e9   : > { %6190 = shalt.err (!%p6187_p1)
}
 0x4ea   : > { %s6191_s10 = scalar_lea.hbm %s10687_s27, 16  ;;  %s6195_s20 = scalar_lea.hbm %s11057_s2, 32 }
 0x4eb   : > { %p6192_p0 = scmp.ne.s32.totalorder %s10687_s27, %s6191_s10  ;;  %p6196_p2 = scmp.lt.u32.totalorder %s10687_s27, %s11057_s2 }
 0x4ec   : > { %p6197_p4 = scmp.lt.u32.totalorder %s6195_s20, %s6191_s10  ;;  %p6199_p8 = scmp.lt.u32.totalorder %s6191_s10, %s10687_s27 }
 0x4ed   : > { %p6193_p5 = pnand %p6192_p0, %p6401_p12 }
 0x4ee   : > { %p6198_p6 = por %p6197_p4, %p6196_p2 }
 0x4ef   : > { %p6194_p11 = pneg %p6193_p5 }
 0x4f0   : > { %p6200_p10 = por %p6199_p8, %p6198_p6 }
 0x4f2   : > { %p6201_p13 = pnand %p6200_p10, %p6194_p11 }
 0x4f4   : > { %6204 = shalt.err (!%p6201_p13)
}
 0x4f5   : > { %5923 = dma.vmem_to_hbm [thread:$0]  (%p6401_p12), %s10691_s28, 16, %s10687_s27, %s5201_s23   ;;  %v4879_v45 = vmul.f32 %v4622_v30, %v4622_v30  ;;  %v5133_v41 = vadd.f32 %v5132_v44, %v4878_v25  ;;  %v13470_v16 = vsub.f32 %v8065_v40, %v9173_v29  ;;  %v13471_v63 = vld [vmem:[#allocation433_spill] sm:$0xff]  ;;  %v4880_v8 = vmul.f32 %v4623_v34, %v4623_v34  ;;  %v13474_v0 = vld [vmem:[#allocation434_spill] sm:$0xff]  ;;  %v13477_v23 = vld [vmem:[#allocation435_spill] sm:$0xff] }
 0x4f6   : > { %vm13472_vm7 = vcmp.lt.s32.totalorder %v13471_v63, 4096  ;;  %v13473_v11 = vsub.f32 %v8100_v14, %v9173_v29  ;;  %vm13475_vm8 = vcmp.lt.s32.totalorder %v13474_v0, 4096  ;;  %v13476_v43 = vsub.f32 %v8116_v9, %v9173_v29  ;;  %v13480_v10 = vld [vmem:[#allocation436_spill] sm:$0xff]  ;;  %v13483_v52 = vld [vmem:[#allocation437_spill] sm:$0xff]  ;;  %v13486_v48 = vld [vmem:[#allocation438_spill] sm:$0xff]  ;;  %s212_s4 = scalar_lea.vmem [#allocation8], %s6452_s6  ;;  %s11011_s28 = scalar_lea.hbm %s11058_s3, %s5486_s25 }
 0x4f7   : > { %v4624_v59 = vsel %vm13472_vm7, %v13470_v16, 0.0  ;;  %v5134_v18 = vadd.f32 %v5133_v41, %v4879_v45  ;;  %vm13478_vm9 = vcmp.lt.s32.totalorder %v13477_v23, 4096  ;;  %v13479_v19 = vsub.f32 %v8095_v58, %v9173_v29  ;;  %v13489_v30 = vld [vmem:[#allocation439_spill] sm:$0xff]  ;;  %v13492_v57 = vld [vmem:[#allocation440_spill] sm:$0xff]  ;;  %v13495_v16 = vld [vmem:[#allocation441_spill] sm:$0xff]  ;;  %s5230_s26 = sshll.u32 %s212_s4, 4  ;;  %s11013_s26 = int_to_ptr.vmem [resolvable:$true] %s5230_s26 }
 0x4f8   : > { %v4625_v4 = vsel %vm13475_vm8, %v13473_v11, 0.0  ;;  %v4881_v24 = vmul.f32 %v4624_v59, %v4624_v59  ;;  %v4626_v56 = vsel %vm13478_vm9, %v13476_v43, 0.0  ;;  %vm13481_vm10 = vcmp.lt.s32.totalorder %v13480_v10, 4096  ;;  %v13507_v10 = vld [vmem:[#allocation445_spill] sm:$0xff]  ;;  %s5205_s23 = scalar_lea.sflag [#allocation9], %s6452_s6  ;;  %s6205_s29 = scalar_lea.vmem %s11013_s26, 16 }
 0x4f9   : > { %v5135_v37 = vadd.f32 %v5134_v18, %v4880_v8  ;;  %v4882_v40 = vmul.f32 %v4625_v4, %v4625_v4  ;;  %v4627_v49 = vsel %vm13481_vm10, %v13479_v19, 0.0  ;;  %v4883_v14 = vmul.f32 %v4626_v56, %v4626_v56  ;;  %v13498_v18 = vld [vmem:[#allocation442_spill] sm:$0xff]  ;;  %v13504_v56 = vld [vmem:[#allocation444_spill] sm:$0xff]  ;;  %p6206_p3 = scmp.ne.s32.totalorder %s11013_s26, %s6205_s29  ;;  %s6286_s30 = smov [#allocation8]  }
 0x4fa   : > { %v13482_v46 = vsub.f32 %v8105_v51, %v9173_v29  ;;  %vm13484_vm11 = vcmp.lt.s32.totalorder %v13483_v52, 4096  ;;  %v4884_v9 = vmul.f32 %v4627_v49, %v4627_v49  ;;  %v13485_v62 = vsub.f32 %v8140_v27, %v9173_v29  ;;  %s6209_s22 = sshll.u32 %s6286_s30, 4  ;;  %s6210_s22 = int_to_ptr.vmem [resolvable:$false] %s6209_s22 }
 0x4fb   : > { %v5136_v22 = vadd.f32 %v5135_v37, %v4881_v24  ;;  %vm13487_vm0 = vcmp.lt.s32.totalorder %v13486_v48, 4096  ;;  %v13488_v33 = vsub.f32 %v8156_v35, %v9173_v29  ;;  %vm13490_vm1 = vcmp.lt.s32.totalorder %v13489_v30, 4096  ;;  %v13501_v24 = vld [vmem:[#allocation443_spill] sm:$0xff]  ;;  %p6207_p7 = pnand %p6206_p3, %p6401_p12  ;;  %s6211_s16 = scalar_lea.vmem %s6210_s22, 32 }
 0x4fc   : > { %v4628_v21 = vsel %vm13484_vm11, %v13482_v46, 0.0  ;;  %v4629_v17 = vsel %vm13487_vm0, %v13485_v62, 0.0  ;;  %v13491_v32 = vsub.f32 %v8135_v20, %v9173_v29  ;;  %vm13493_vm2 = vcmp.lt.s32.totalorder %v13492_v57, 4096  ;;  %v13510_v46 = vld [vmem:[#allocation446_spill] sm:$0xff]  ;;  %p6212_p1 = scmp.lt.s32.totalorder %s11013_s26, %s6210_s22  ;;  %p6213_p0 = scmp.lt.s32.totalorder %s6211_s16, %s6205_s29 }
 0x4fd   : > { %v5137_v15 = vadd.f32 %v5136_v22, %v4882_v40  ;;  %v4885_v58 = vmul.f32 %v4628_v21, %v4628_v21  ;;  %v4630_v25 = vsel %vm13490_vm1, %v13488_v33, 0.0  ;;  %v4886_v51 = vmul.f32 %v4629_v17, %v4629_v17  ;;  %v13522_v57 = vld [vmem:[#allocation450_spill] sm:$0xff]  ;;  %p6208_p9 = pneg %p6207_p7 }
 0x4fe   : > { %v4631_v34 = vsel %vm13493_vm2, %v13491_v32, 0.0  ;;  %v4887_v27 = vmul.f32 %v4630_v25, %v4630_v25  ;;  %v13494_v41 = vsub.f32 %v8145_v5, %v9173_v29  ;;  %vm13496_vm3 = vcmp.lt.s32.totalorder %v13495_v16, 4096  ;;  %v13519_v25 = vld [vmem:[#allocation449_spill] sm:$0xff]  ;;  %p6214_p5 = por %p6213_p0, %p6212_p1 }
 0x4ff   : > { %v5138_v47 = vadd.f32 %v5137_v15, %v4883_v14  ;;  %v4888_v35 = vmul.f32 %v4631_v34, %v4631_v34  ;;  %v13497_v8 = vsub.f32 %v8180_v38, %v9173_v29  ;;  %vm13499_vm4 = vcmp.lt.s32.totalorder %v13498_v18, 4096 }
 0x500   : > { %v4632_v63 = vsel %vm13496_vm3, %v13494_v41, 0.0  ;;  %v13500_v4 = vsub.f32 %v8196_v53, %v9173_v29  ;;  %vm13502_vm5 = vcmp.lt.s32.totalorder %v13501_v24, 4096  ;;  %v13503_v23 = vsub.f32 %v8175_v60, %v9173_v29  ;;  %v13525_v41 = vld [vmem:[#allocation451_spill] sm:$0xff]  ;;  %p6215_p11 = pnand %p6214_p5, %p6208_p9 }
 0x501   : > { %v5139_v12 = vadd.f32 %v5138_v47, %v4884_v9  ;;  %v4633_v11 = vsel %vm13499_vm4, %v13497_v8, 0.0  ;;  %v4889_v20 = vmul.f32 %v4632_v63, %v4632_v63  ;;  %vm13505_vm6 = vcmp.lt.s32.totalorder %v13504_v56, 4096  ;;  %v13513_v47 = vld [vmem:[#allocation447_spill] sm:$0xff] }
 0x502   : > { %v4634_v37 = vsel %vm13502_vm5, %v13500_v4, 0.0  ;;  %v4890_v5 = vmul.f32 %v4633_v11, %v4633_v11  ;;  %v4635_v40 = vsel %vm13505_vm6, %v13503_v23, 0.0  ;;  %v13506_v19 = vsub.f32 %v8185_v42, %v9173_v29  ;;  %v13537_v56 = vld [vmem:[#allocation455_spill] sm:$0xff] }
 0x503   : > { %v5140_v44 = vadd.f32 %v5139_v12, %v4885_v58  ;;  %v4891_v38 = vmul.f32 %v4634_v37, %v4634_v37  ;;  %vm13508_vm7 = vcmp.lt.s32.totalorder %v13507_v10, 4096  ;;  %v4892_v53 = vmul.f32 %v4635_v40, %v4635_v40  ;;  %v13516_v58 = vld [vmem:[#allocation448_spill] sm:$0xff]  ;;  %v13534_v37 = vld [vmem:[#allocation454_spill] sm:$0xff] }
 0x504   : > { %v4636_v49 = vsel %vm13508_vm7, %v13506_v19, 0.0  ;;  %v13509_v15 = vsub.f32 %v8220_v36, %v9173_v29  ;;  %vm13511_vm8 = vcmp.lt.s32.totalorder %v13510_v46, 4096  ;;  %v13512_v9 = vsub.f32 %v8236_v3, %v9173_v29  ;;  %v13540_v19 = vld [vmem:[#allocation456_spill] sm:$0xff] }
 0x505   : > { %v5141_v45 = vadd.f32 %v5140_v44, %v4886_v51  ;;  %v4893_v60 = vmul.f32 %v4636_v49, %v4636_v49  ;;  %vm13514_vm9 = vcmp.lt.s32.totalorder %v13513_v47, 4096  ;;  %v13515_v17 = vsub.f32 %v8215_v28, %v9173_v29 }
 0x506   : > { %v4637_v52 = vsel %vm13511_vm8, %v13509_v15, 0.0  ;;  %v4638_v62 = vsel %vm13514_vm9, %v13512_v9, 0.0  ;;  %vm13517_vm10 = vcmp.lt.s32.totalorder %v13516_v58, 4096  ;;  %v13518_v30 = vsub.f32 %v8225_v26, %v9173_v29 }
 0x507   : > { %v5142_v59 = vadd.f32 %v5141_v45, %v4887_v27  ;;  %v4894_v42 = vmul.f32 %v4637_v52, %v4637_v52  ;;  %v4639_v12 = vsel %vm13517_vm10, %v13515_v17, 0.0  ;;  %v4895_v36 = vmul.f32 %v4638_v62, %v4638_v62  ;;  %v13549_v62 = vld [vmem:[#allocation459_spill] sm:$0xff]  ;;  %v13551_v17 = vld [vmem:[#allocation370_spill] sm:$0xff] }
 0x508   : > { %vm13520_vm11 = vcmp.lt.s32.totalorder %v13519_v25, 4096  ;;  %v4896_v3 = vmul.f32 %v4639_v12, %v4639_v12  ;;  %v13521_v32 = vsub.f32 %v8260_v55, %v9173_v29  ;;  %vm13523_vm0 = vcmp.lt.s32.totalorder %v13522_v57, 4096  ;;  %v13553_v12 = vld [vmem:[#allocation460_spill] sm:$0xff] }
 0x509   : > { %v5143_v0 = vadd.f32 %v5142_v59, %v4888_v35  ;;  %v4640_v51 = vsel %vm13520_vm11, %v13518_v30, 0.0  ;;  %v13524_v45 = vsub.f32 %v8276_v2, %v9173_v29  ;;  %vm13526_vm1 = vcmp.lt.s32.totalorder %v13525_v41, 4096  ;;  %v13528_v59 = vld [vmem:[#allocation452_spill] sm:$0xff] }
 0x50a   : > { %v4641_v34 = vsel %vm13523_vm0, %v13521_v32, 0.0  ;;  %v4897_v28 = vmul.f32 %v4640_v51, %v4640_v51  ;;  %v13527_v35 = vsub.f32 %v8255_v13, %v9173_v29  ;;  %vm13529_vm2 = vcmp.lt.s32.totalorder %v13528_v59, 4096  ;;  %v13555_v30 = vld [vmem:[#allocation372_spill] sm:$0xff]  ;;  %v13557_v51 = vld [vmem:[#allocation461_spill] sm:$0xff] }
 0x50b   : > { %v5144_v43 = vadd.f32 %v5143_v0, %v4889_v20  ;;  %v4642_v16 = vsel %vm13526_vm1, %v13524_v45, 0.0  ;;  %v4898_v26 = vmul.f32 %v4641_v34, %v4641_v34  ;;  %v13530_v11 = vsub.f32 %v8265_v50, %v9173_v29  ;;  %v13531_v20 = vld [vmem:[#allocation453_spill] sm:$0xff]  ;;  %v13561_v34 = vld [vmem:[#allocation462_spill] sm:$0xff]  ;;  %v13566_v59 = vld [vmem:[#allocation376_spill] sm:$0xff] }
 0x50c   : > { %v4643_v8 = vsel %vm13529_vm2, %v13527_v35, 0.0  ;;  %v4899_v55 = vmul.f32 %v4642_v16, %v4642_v16  ;;  %vm13532_vm3 = vcmp.lt.s32.totalorder %v13531_v20, 4096  ;;  %v13533_v24 = vsub.f32 %v8300_v1, %v9173_v29  ;;  %v13559_v32 = vld [vmem:[#allocation377_spill] sm:$0xff]  ;;  %v13564_v16 = vld [vmem:[#allocation463_spill] sm:$0xff] }
 0x50d   : > { %v5145_v22 = vadd.f32 %v5144_v43, %v4890_v5  ;;  %v4644_v0 = vsel %vm13532_vm3, %v13530_v11, 0.0  ;;  %v4900_v2 = vmul.f32 %v4643_v8, %v4643_v8  ;;  %vm13535_vm4 = vcmp.lt.s32.totalorder %v13534_v37, 4096 }
 0x50e   : > { %v4645_v5 = vsel %vm13535_vm4, %v13533_v24, 0.0  ;;  %v4901_v13 = vmul.f32 %v4644_v0, %v4644_v0  ;;  %v13536_v23 = vsub.f32 %v8316_v31, %v9173_v29  ;;  %vm13538_vm5 = vcmp.lt.s32.totalorder %v13537_v56, 4096  ;;  %v13570_v0 = vld [vmem:[#allocation379_spill] sm:$0xff] }
 0x50f   : > { %v5146_v14 = vadd.f32 %v5145_v22, %v4891_v38  ;;  %v4902_v50 = vmul.f32 %v4645_v5, %v4645_v5  ;;  %v13539_v22 = vsub.f32 %v8295_v39, %v9173_v29  ;;  %vm13541_vm6 = vcmp.lt.s32.totalorder %v13540_v19, 4096  ;;  %v13574_v5 = vld [vmem:[#allocation384_spill] sm:$0xff] }
 0x510   : > { %v4646_v40 = vsel %vm13538_vm5, %v13536_v23, 0.0  ;;  %v13545_v52 = vsub.f32 %v8340_v54, %v9173_v29  ;;  %v13548_v47 = vsub.f32 %v8356_v6, %v9173_v29  ;;  %vm13550_vm9 = vcmp.lt.s32.totalorder %v13549_v62, 4096  ;;  %v13590_v62 = vld [vmem:[#allocation392_spill] sm:$0xff] }
 0x511   : > { %v5147_v21 = vadd.f32 %v5146_v14, %v4892_v53  ;;  %v4647_v10 = vsel %vm13541_vm6, %v13539_v22, 0.0  ;;  %v4903_v1 = vmul.f32 %v4646_v40, %v4646_v40  ;;  %v13542_v53 = vsub.f32 %v8305_v7, %v9173_v29  ;;  %v13543_v14 = vld [vmem:[#allocation457_spill] sm:$0xff]  ;;  %v13580_v22 = vld [vmem:[#allocation467_spill] sm:$0xff] }
 0x512   : > { %vm13544_vm7 = vcmp.lt.s32.totalorder %v13543_v14, 4096  ;;  %v4904_v31 = vmul.f32 %v4647_v10, %v4647_v10  ;;  %v13552_v58 = vsub.f32 %v13551_v17, %v9173_v29  ;;  %vm13554_vm10 = vcmp.lt.s32.totalorder %v13553_v12, 4096  ;;  %v13584_v14 = vld [vmem:[#allocation468_spill] sm:$0xff] }
 0x513   : > { %v5148_v48 = vadd.f32 %v5147_v21, %v4893_v60  ;;  %v4648_v15 = vsel %vm13544_vm7, %v13542_v53, 0.0  ;;  %v13546_v60 = vld [vmem:[#allocation458_spill] sm:$0xff]  ;;  %v13556_v25 = vsub.f32 %v13555_v30, %v9173_v29  ;;  %vm13558_vm11 = vcmp.lt.s32.totalorder %v13557_v51, 4096  ;;  %v13594_v12 = vld [vmem:[#allocation396_spill] sm:$0xff]  ;;  %v13598_v51 = vld [vmem:[#allocation391_spill] sm:$0xff] }
 0x514   : > { %vm13547_vm8 = vcmp.lt.s32.totalorder %v13546_v60, 4096  ;;  %v4905_v39 = vmul.f32 %v4648_v15, %v4648_v15  ;;  %v13560_v57 = vsub.f32 %v13559_v32, %v9173_v29  ;;  %vm13562_vm0 = vcmp.lt.s32.totalorder %v13561_v34, 4096  ;;  %v13602_v34 = vld [vmem:[#allocation394_spill] sm:$0xff] }
 0x515   : > { %v5149_v33 = vadd.f32 %v5148_v48, %v4894_v42  ;;  %v4649_v21 = vsel %vm13547_vm8, %v13545_v52, 0.0  ;;  %v4650_v42 = vsel %vm13550_vm9, %v13548_v47, 0.0  ;;  %v13563_v41 = vsub.f32 %v8396_v61, %v9173_v29  ;;  %v13586_v52 = vld [vmem:[#allocation386_spill] sm:$0xff] }
 0x516   : > { %v4906_v7 = vmul.f32 %v4649_v21, %v4649_v21  ;;  %v4907_v54 = vmul.f32 %v4650_v42, %v4650_v42  ;;  %vm13565_vm1 = vcmp.lt.s32.totalorder %v13564_v16, 4096  ;;  %v13567_v8 = vsub.f32 %v13566_v59, %v9173_v29  ;;  %v13588_v21 = vld [vmem:[#allocation469_spill] sm:$0xff] }
 0x517   : > { %v5150_v44 = vadd.f32 %v5149_v33, %v4895_v36  ;;  %v4651_v36 = vsel %vm13554_vm10, %v13552_v58, 0.0  ;;  %vm13581_vm5 = vcmp.lt.s32.totalorder %v13580_v22, 4096  ;;  %vm13585_vm6 = vcmp.lt.s32.totalorder %v13584_v14, 4096 }
 0x518   : > { %v4908_v6 = vmul.f32 %v4651_v36, %v4651_v36  ;;  %v13587_v60 = vsub.f32 %v13586_v52, %v9173_v29  ;;  %vm13589_vm7 = vcmp.lt.s32.totalorder %v13588_v21, 4096  ;;  %v13591_v42 = vsub.f32 %v13590_v62, %v9173_v29 }
 0x519   : > { %v5151_v27 = vadd.f32 %v5150_v44, %v4896_v3  ;;  %v4652_v3 = vsel %vm13558_vm11, %v13556_v25, 0.0  ;;  %v13595_v36 = vsub.f32 %v13594_v12, %v9173_v29 }
 0x51b   : > { %v5152_v63 = vadd.f32 %v5151_v27, %v4897_v28  ;;  %v4653_v28 = vsel %vm13562_vm0, %v13560_v57, 0.0  ;;  %v4909_v27 = vmul.f32 %v4652_v3, %v4652_v3  ;;  %v13599_v3 = vsub.f32 %v13598_v51, %v9173_v29 }
 0x51d   : > { %v5153_v18 = vadd.f32 %v5152_v63, %v4898_v26  ;;  %v4654_v26 = vsel %vm13565_vm1, %v13563_v41, 0.0  ;;  %v4910_v63 = vmul.f32 %v4653_v28, %v4653_v28  ;;  %v13603_v28 = vsub.f32 %v13602_v34, %v9173_v29 }
 0x51e   : > { %v4911_v11 = vmul.f32 %v4654_v26, %v4654_v26  ;;  %v13606_v26 = vld [vmem:[#allocation400_spill] sm:$0xff] }
 0x51f   : > { %v5154_v4 = vadd.f32 %v5153_v18, %v4899_v55  ;;  %v13568_v55 = vld [vmem:[#allocation464_spill] sm:$0xff] }
 0x520   : > { %vm13569_vm2 = vcmp.lt.s32.totalorder %v13568_v55, 4096 }
 0x521   : > { %v5155_v43 = vadd.f32 %v5154_v4, %v4900_v2  ;;  %v4655_v18 = vsel %vm13569_vm2, %v13567_v8, 0.0  ;;  %v13571_v2 = vsub.f32 %v13570_v0, %v9173_v29  ;;  %v13572_v4 = vld [vmem:[#allocation465_spill] sm:$0xff] }
 0x522   : > { %vm13573_vm3 = vcmp.lt.s32.totalorder %v13572_v4, 4096  ;;  %v4912_v61 = vmul.f32 %v4655_v18, %v4655_v18  ;;  %v13610_v18 = vld [vmem:[#allocation404_spill] sm:$0xff] }
 0x523   : > { %v5156_v38 = vadd.f32 %v5155_v43, %v4901_v13  ;;  %v4656_v24 = vsel %vm13573_vm3, %v13571_v2, 0.0  ;;  %v13575_v13 = vsub.f32 %v13574_v5, %v9173_v29  ;;  %v13576_v43 = vld [vmem:[#allocation466_spill] sm:$0xff] }
 0x524   : > { %vm13577_vm4 = vcmp.lt.s32.totalorder %v13576_v43, 4096  ;;  %v4913_v56 = vmul.f32 %v4656_v24, %v4656_v24  ;;  %v13614_v24 = vld [vmem:[#allocation399_spill] sm:$0xff] }
 0x525   : > { %v5157_v49 = vadd.f32 %v5156_v38, %v4902_v50  ;;  %v4657_v23 = vsel %vm13577_vm4, %v13575_v13, 0.0  ;;  %v13578_v50 = vld [vmem:[#allocation388_spill] sm:$0xff] }
 0x526   : > { %v13579_v38 = vsub.f32 %v13578_v50, %v9173_v29  ;;  %v4914_v10 = vmul.f32 %v4657_v23, %v4657_v23  ;;  %v13618_v23 = vld [vmem:[#allocation402_spill] sm:$0xff] }
 0x527   : > { %v5158_v46 = vadd.f32 %v5157_v49, %v4903_v1  ;;  %v13582_v49 = vld [vmem:[#allocation383_spill] sm:$0xff] }
 0x528   : > { %v4658_v19 = vsel %vm13581_vm5, %v13579_v38, 0.0  ;;  %v13583_v53 = vsub.f32 %v13582_v49, %v9173_v29 }
 0x529   : > { %v5159_v9 = vadd.f32 %v5158_v46, %v4904_v31  ;;  %v4915_v31 = vmul.f32 %v4658_v19, %v4658_v19  ;;  %v13622_v19 = vld [vmem:[#allocation408_spill] sm:$0xff] }
 0x52a   : > { %v4659_v15 = vsel %vm13585_vm6, %v13583_v53, 0.0 }
 0x52b   : > { %v5160_v48 = vadd.f32 %v5159_v9, %v4905_v39  ;;  %v4660_v39 = vsel %vm13589_vm7, %v13587_v60, 0.0  ;;  %v4916_v9 = vmul.f32 %v4659_v15, %v4659_v15  ;;  %v13626_v15 = vld [vmem:[#allocation412_spill] sm:$0xff] }
 0x52c   : > { %v4917_v17 = vmul.f32 %v4660_v39, %v4660_v39  ;;  %v13630_v39 = vld [vmem:[#allocation407_spill] sm:$0xff] }
 0x52d   : > { %v5161_v33 = vadd.f32 %v5160_v48, %v4906_v7  ;;  %v13592_v7 = vld [vmem:[#allocation470_spill] sm:$0xff] }
 0x52e   : > { %vm13593_vm8 = vcmp.lt.s32.totalorder %v13592_v7, 4096 }
 0x52f   : > { %v5162_v44 = vadd.f32 %v5161_v33, %v4907_v54  ;;  %v4661_v48 = vsel %vm13593_vm8, %v13591_v42, 0.0  ;;  %v13596_v54 = vld [vmem:[#allocation471_spill] sm:$0xff] }
 0x530   : > { %vm13597_vm9 = vcmp.lt.s32.totalorder %v13596_v54, 4096  ;;  %v4918_v30 = vmul.f32 %v4661_v48, %v4661_v48  ;;  %v13634_v48 = vld [vmem:[#allocation410_spill] sm:$0xff] }
 0x531   : > { %v5163_v45 = vadd.f32 %v5162_v44, %v4908_v6  ;;  %v4662_v33 = vsel %vm13597_vm9, %v13595_v36, 0.0  ;;  %v13600_v6 = vld [vmem:[#allocation472_spill] sm:$0xff] }
 0x532   : > { %vm13601_vm10 = vcmp.lt.s32.totalorder %v13600_v6, 4096  ;;  %v4919_v32 = vmul.f32 %v4662_v33, %v4662_v33  ;;  %v13638_v33 = vld [vmem:[#allocation416_spill] sm:$0xff] }
 0x533   : > { %v5164_v35 = vadd.f32 %v5163_v45, %v4909_v27  ;;  %v4663_v44 = vsel %vm13601_vm10, %v13599_v3, 0.0  ;;  %v13604_v27 = vld [vmem:[#allocation473_spill] sm:$0xff] }
 0x534   : > { %vm13605_vm11 = vcmp.lt.s32.totalorder %v13604_v27, 4096  ;;  %v4920_v41 = vmul.f32 %v4663_v44, %v4663_v44  ;;  %v13642_v44 = vld [vmem:[#allocation420_spill] sm:$0xff] }
 0x535   : > { %v5165_v20 = vadd.f32 %v5164_v35, %v4910_v63  ;;  %v4664_v45 = vsel %vm13605_vm11, %v13603_v28, 0.0  ;;  %v13607_v63 = vsub.f32 %v13606_v26, %v9173_v29  ;;  %v13608_v35 = vld [vmem:[#allocation474_spill] sm:$0xff] }
 0x536   : > { %vm13609_vm0 = vcmp.lt.s32.totalorder %v13608_v35, 4096  ;;  %v4921_v8 = vmul.f32 %v4664_v45, %v4664_v45  ;;  %v13646_v45 = vld [vmem:[#allocation415_spill] sm:$0xff] }
 0x537   : > { %v5166_v37 = vadd.f32 %v5165_v20, %v4911_v11  ;;  %v4665_v59 = vsel %vm13609_vm0, %v13607_v63, 0.0  ;;  %v13611_v11 = vsub.f32 %v13610_v18, %v9173_v29  ;;  %v13612_v20 = vld [vmem:[#allocation475_spill] sm:$0xff] }
 0x538   : > { %vm13613_vm1 = vcmp.lt.s32.totalorder %v13612_v20, 4096  ;;  %v4922_v2 = vmul.f32 %v4665_v59, %v4665_v59  ;;  %v13650_v59 = vld [vmem:[#allocation418_spill] sm:$0xff] }
 0x539   : > { %v5167_v40 = vadd.f32 %v5166_v37, %v4912_v61  ;;  %v4666_v0 = vsel %vm13613_vm1, %v13611_v11, 0.0  ;;  %v13615_v61 = vsub.f32 %v13614_v24, %v9173_v29  ;;  %v13616_v37 = vld [vmem:[#allocation476_spill] sm:$0xff] }
 0x53a   : > { %vm13617_vm2 = vcmp.lt.s32.totalorder %v13616_v37, 4096  ;;  %v4923_v13 = vmul.f32 %v4666_v0, %v4666_v0  ;;  %v13654_v0 = vld [vmem:[#allocation424_spill] sm:$0xff] }
 0x53b   : > { %v5168_v1 = vadd.f32 %v5167_v40, %v4913_v56  ;;  %v4667_v5 = vsel %vm13617_vm2, %v13615_v61, 0.0  ;;  %v13619_v56 = vsub.f32 %v13618_v23, %v9173_v29  ;;  %v13620_v40 = vld [vmem:[#allocation477_spill] sm:$0xff] }
 0x53c   : > { %vm13621_vm3 = vcmp.lt.s32.totalorder %v13620_v40, 4096  ;;  %v4924_v38 = vmul.f32 %v4667_v5, %v4667_v5  ;;  %v13657_v5 = vld [vmem:[#allocation428_spill] sm:$0xff] }
 0x53d   : > { %v5169_v46 = vadd.f32 %v5168_v1, %v4914_v10  ;;  %v4668_v50 = vsel %vm13621_vm3, %v13619_v56, 0.0  ;;  %v13623_v10 = vsub.f32 %v13622_v19, %v9173_v29  ;;  %v13624_v1 = vld [vmem:[#allocation478_spill] sm:$0xff] }
 0x53e   : > { %vm13625_vm4 = vcmp.lt.s32.totalorder %v13624_v1, 4096  ;;  %v4925_v53 = vmul.f32 %v4668_v50, %v4668_v50  ;;  %v13660_v50 = vld [vmem:[#allocation423_spill] sm:$0xff] }
 0x53f   : > { %v5170_v47 = vadd.f32 %v5169_v46, %v4915_v31  ;;  %v4669_v49 = vsel %vm13625_vm4, %v13623_v10, 0.0  ;;  %v13627_v31 = vsub.f32 %v13626_v15, %v9173_v29  ;;  %v13628_v46 = vld [vmem:[#allocation479_spill] sm:$0xff] }
 0x540   : > { %vm13629_vm5 = vcmp.lt.s32.totalorder %v13628_v46, 4096  ;;  %v4926_v60 = vmul.f32 %v4669_v49, %v4669_v49  ;;  %v13663_v49 = vld [vmem:[#allocation426_spill] sm:$0xff] }
 0x541   : > { %v5171_v58 = vadd.f32 %v5170_v47, %v4916_v9  ;;  %v4670_v52 = vsel %vm13629_vm5, %v13627_v31, 0.0  ;;  %v13631_v9 = vsub.f32 %v13630_v39, %v9173_v29  ;;  %v13632_v47 = vld [vmem:[#allocation480_spill] sm:$0xff] }
 0x542   : > { %vm13633_vm6 = vcmp.lt.s32.totalorder %v13632_v47, 4096  ;;  %v4927_v42 = vmul.f32 %v4670_v52, %v4670_v52 }
 0x543   : > { %v5172_v25 = vadd.f32 %v5171_v58, %v4917_v17  ;;  %v4671_v62 = vsel %vm13633_vm6, %v13631_v9, 0.0  ;;  %v13635_v17 = vsub.f32 %v13634_v48, %v9173_v29  ;;  %v13636_v58 = vld [vmem:[#allocation481_spill] sm:$0xff] }
 0x544   : > { %vm13637_vm7 = vcmp.lt.s32.totalorder %v13636_v58, 4096  ;;  %v4928_v36 = vmul.f32 %v4671_v62, %v4671_v62 }
 0x545   : > { %v5173_v57 = vadd.f32 %v5172_v25, %v4918_v30  ;;  %v4672_v12 = vsel %vm13637_vm7, %v13635_v17, 0.0  ;;  %v13639_v30 = vsub.f32 %v13638_v33, %v9173_v29  ;;  %v13640_v25 = vld [vmem:[#allocation482_spill] sm:$0xff] }
 0x546   : > { %vm13641_vm8 = vcmp.lt.s32.totalorder %v13640_v25, 4096  ;;  %v4929_v3 = vmul.f32 %v4672_v12, %v4672_v12 }
 0x547   : > { %v5174_v16 = vadd.f32 %v5173_v57, %v4919_v32  ;;  %v4673_v51 = vsel %vm13641_vm8, %v13639_v30, 0.0  ;;  %v13643_v32 = vsub.f32 %v13642_v44, %v9173_v29  ;;  %v13644_v57 = vld [vmem:[#allocation483_spill] sm:$0xff] }
 0x548   : > { %vm13645_vm9 = vcmp.lt.s32.totalorder %v13644_v57, 4096  ;;  %v4930_v28 = vmul.f32 %v4673_v51, %v4673_v51 }
 0x549   : > { %v5175_v55 = vadd.f32 %v5174_v16, %v4920_v41  ;;  %v4674_v34 = vsel %vm13645_vm9, %v13643_v32, 0.0  ;;  %v13647_v41 = vsub.f32 %v13646_v45, %v9173_v29  ;;  %v13648_v16 = vld [vmem:[#allocation484_spill] sm:$0xff] }
 0x54a   : > { %vm13649_vm10 = vcmp.lt.s32.totalorder %v13648_v16, 4096  ;;  %v4931_v63 = vmul.f32 %v4674_v34, %v4674_v34 }
 0x54b   : > { %v5176_v4 = vadd.f32 %v5175_v55, %v4921_v8  ;;  %v4675_v26 = vsel %vm13649_vm10, %v13647_v41, 0.0  ;;  %v13651_v8 = vsub.f32 %v13650_v59, %v9173_v29  ;;  %v13652_v55 = vld [vmem:[#allocation485_spill] sm:$0xff] }
 0x54c   : > { %vm13653_vm11 = vcmp.lt.s32.totalorder %v13652_v55, 4096  ;;  %v4932_v11 = vmul.f32 %v4675_v26, %v4675_v26 }
 0x54d   : > { %v5177_v43 = vadd.f32 %v5176_v4, %v4922_v2  ;;  %v4676_v18 = vsel %vm13653_vm11, %v13651_v8, 0.0  ;;  %v13655_v2 = vsub.f32 %v13654_v0, %v9173_v29 }
 0x54e   : > { %v4933_v61 = vmul.f32 %v4676_v18, %v4676_v18 }
 0x54f   : > { %v5178_v22 = vadd.f32 %v5177_v43, %v4923_v13  ;;  %v4677_v24 = vsel %vm3127_vm15, %v13655_v2, 0.0  ;;  %v13658_v13 = vsub.f32 %v13657_v5, %v9173_v29 }
 0x550   : > { %v4934_v56 = vmul.f32 %v4677_v24, %v4677_v24 }
 0x551   : > { %v5179_v14 = vadd.f32 %v5178_v22, %v4924_v38  ;;  %v4678_v23 = vsel %vm3128_vm12, %v13658_v13, 0.0  ;;  %v13661_v38 = vsub.f32 %v13660_v50, %v9173_v29 }
 0x552   : > { %v4935_v10 = vmul.f32 %v4678_v23, %v4678_v23 }
 0x553   : > { %v5180_v21 = vadd.f32 %v5179_v14, %v4925_v53  ;;  %v4679_v19 = vsel %vm3129_vm14, %v13661_v38, 0.0  ;;  %v13664_v53 = vsub.f32 %v13663_v49, %v9173_v29 }
 0x554   : > { %v4936_v31 = vmul.f32 %v4679_v19, %v4679_v19 }
 0x555   : > { %v5181_v7 = vadd.f32 %v5180_v21, %v4926_v60  ;;  %v4680_v15 = vsel %vm3130_vm13, %v13664_v53, 0.0 }
 0x556   : > { %v4937_v52 = vmul.f32 %v4680_v15, %v4680_v15 }
 0x557   : > { %v5182_v54 = vadd.f32 %v5181_v7, %v4927_v42 }
 0x559   : > { %v5183_v6 = vadd.f32 %v5182_v54, %v4928_v36 }
 0x55b   : > { %v5184_v27 = vadd.f32 %v5183_v6, %v4929_v3 }
 0x55d   : > { %v5185_v35 = vadd.f32 %v5184_v27, %v4930_v28 }
 0x55f   : > { %v5186_v20 = vadd.f32 %v5185_v35, %v4931_v63 }
 0x561   : > { %v5187_v37 = vadd.f32 %v5186_v20, %v4932_v11 }
 0x563   : > { %v5188_v40 = vadd.f32 %v5187_v37, %v4933_v61 }
 0x565   : > { %v5189_v1 = vadd.f32 %v5188_v40, %v4934_v56 }
 0x567   : > { %v5190_v46 = vadd.f32 %v5189_v1, %v4935_v10 }
 0x569   : > { %v5191_v60 = vadd.f32 %v5190_v46, %v4936_v31 }
 0x56b   : > { %v5192_v21 = vadd.f32 %v5191_v60, %v4937_v52 }
 0x56d   : > { %v5193_v39 = vrot.slane %v5192_v21, 4 }
 0x56f   : > { %v5194_v9 = vadd.f32 %v5193_v39, %v5192_v21 }
 0x571   : > { %v5195_v47 = vrot.slane %v5194_v9, 2 }
 0x573   : > { %v5196_v62 = vadd.f32 %v5195_v47, %v5194_v9 }
 0x575   : > { %v5197_v42 = vrot.slane %v5196_v62, 1 }
 0x577   : > { %v5198_v7 = vadd.f32 %v5197_v42, %v5196_v62 }
 0x579   : > { %5199 = vst [vmem:[%s212_s4] sm:$0x1] %v5198_v7 }
 0x57a   : > { %6218 = shalt.err (!%p6215_p11)
}
 0x57b   : > { %s6219_s6 = scalar_lea.hbm %s11011_s28, 16  ;;  %s6223_s10 = scalar_lea.hbm %s11058_s3, 32 }
 0x57c   : > { %p6220_p2 = scmp.ne.s32.totalorder %s11011_s28, %s6219_s6  ;;  %p6224_p8 = scmp.lt.u32.totalorder %s11011_s28, %s11058_s3 }
 0x57d   : > { %p6225_p10 = scmp.lt.u32.totalorder %s6223_s10, %s6219_s6  ;;  %p6227_p3 = scmp.lt.u32.totalorder %s6219_s6, %s11011_s28 }
 0x57e   : > { %p6221_p4 = pnand %p6220_p2, %p6401_p12 }
 0x57f   : > { %p6226_p13 = por %p6225_p10, %p6224_p8 }
 0x580   : > { %p6222_p6 = pneg %p6221_p4 }
 0x581   : > { %p6228_p7 = por %p6227_p3, %p6226_p13 }
 0x583   : > { %p6229_p9 = pnand %p6228_p7, %p6222_p6 }
 0x585   : > { %6232 = shalt.err (!%p6229_p9)
}
 0x586   : > { %5924 = dma.vmem_to_hbm [thread:$0]  (%p6401_p12), %s11013_s26, 16, %s11011_s28, %s5205_s23  }
 0x587 PF: > { %s5242_s20 = sand.u32 1, %s6267_s12   ;;  %p13666_p1 = scmp.ne.s32.totalorder %s11965_s19, 0 }
 0x588   : > { %p13667_p0 = scmp.ge.s32.totalorder %s6279_s15, 2  ;;  %s5243_s8 = scalar_lea.sflag [#allocation4], %s5242_s20 }
 0x58a   : > { %p5936_p5 = pnand %p13667_p0, %p13666_p1 }
 0x58c   : > { %6258 = dma.done.wait (!%p5936_p5), %s5243_s8, 16  }
 0x58d   : > { %6260 = vsyncadd (!%p5936_p5), %s5243_s8, 4294967280  ;;  %s5251_s9 = scalar_lea.sflag [#allocation9], %s5242_s20 }
 0x58e   : > { %6262 = dma.done.wait (!%p5936_p5), %s5251_s9, 16  }
 0x58f   : > { %6264 = vsyncadd (!%p5936_p5), %s5251_s9, 4294967280  ;;  %p21_p12 = scmp.ge.s32.totalorder %s6363_s24, 4   ;;  %s13668_s12 = smov %s6271_s13 }
 0x590   : > { %s13669_s13 = smov %s6275_s14  ;;  %s13670_s14 = smov %s6397_s17 }
 0x591   : > { %s13671_s15 = smov %s6363_s24  ;;  %23 = sbr.rel (!%p21_p12) target bundleno = 8 (0x8), region = 94 }
 0x598   :  { %5255 = vsyncpa [#allocation3], 1 }
 0x599   :  { %5257 = vsyncpa [#allocation3 + $0x1], 1 }
 0x59a   :  { %5258 = vsyncpa [#allocation6], 1 }
 0x59b   :  { %5259 = vsyncpa [#allocation4], 1 }
 0x59c   :  { %5261 = vsyncpa [#allocation4 + $0x1], 1 }
 0x59d   :  { %5262 = vsyncpa [#allocation9], 1 }
 0x59e   :  { %5264 = vsyncpa [#allocation9 + $0x1], 1 }

</bundles_post_ra>
